<compile_context>
chip_gen: v5e
topology: v5e:2x2
jax: 0.10.0
libtpu: 0.0.40
codegen_flags: <defaults>
</compile_context>

<pallas_src>
import numpy as np
import jax
import jax.numpy as jnp
from jax import lax
from jax.experimental import pallas as pl
from jax.experimental.pallas import tpu as pltpu

HIDDEN = 128  # LSTM hidden size (hard-coded to 128 in the reference LSTM module)


# ------------------------------ Pallas kernel -------------------------------

def _skim_kernel(frames_ref, w_enc_ref, b_enc_ref,
                 w1_ref, b1_ref,
                 w2_ref, b2_ref,
                 bn2_s_ref, bn2_b_ref,
                 w_cf1_ref, b_cf1_ref,
                 bn3_s_ref, bn3_b_ref,
                 w_cf2_ref, b_cf2_ref,
                 w_cf3_ref, b_cf3_ref,
                 out_ref):
    T, B, _K = frames_ref.shape
    H = HIDDEN

    def lstm_gates(z, c_prev):
        # z: [B, 4*H] f32; gate slices land on 128-lane boundaries.
        i = jax.nn.sigmoid(z[:, 0 * H:1 * H])
        f = jax.nn.sigmoid(z[:, 1 * H:2 * H])
        g = jnp.tanh(z[:, 2 * H:3 * H])
        o = jax.nn.sigmoid(z[:, 3 * H:4 * H])
        c_new = f * c_prev + i * g
        return c_new, o * jnp.tanh(c_new)

    def step(t, carry):
        c1, h1, c2, h2 = carry
        # Per-frame encoder (synthesized resnet18 stand-in): [B,K]@[K,128] MXU.
        feat = (jnp.dot(frames_ref[t], w_enc_ref[...],
                        preferred_element_type=jnp.float32) + b_enc_ref[...])
        # LSTM cell1: fused input/hidden gate matmul  [B,256] @ [256,512].
        xin1 = jnp.concatenate(
            [feat.astype(jnp.bfloat16), h1.astype(jnp.bfloat16)], axis=1)
        z1 = (jnp.dot(xin1, w1_ref[...], preferred_element_type=jnp.float32)
              + b1_ref[...])
        c1, h1 = lstm_gates(z1, c1)
        # LSTM cell2 consumes return_seq[:, t] == h1_t -> lock-step execution.
        xin2 = jnp.concatenate(
            [h1.astype(jnp.bfloat16), h2.astype(jnp.bfloat16)], axis=1)
        z2 = (jnp.dot(xin2, w2_ref[...], preferred_element_type=jnp.float32)
              + b2_ref[...])
        c2, h2 = lstm_gates(z2, c2)
        return (c1, h1, c2, h2)

    z0 = jnp.zeros((B, H), jnp.float32)
    _c1, _h1, _c2, h2 = lax.fori_loop(0, T, step, (z0, z0, z0, z0), unroll=True)

    # Classifier head, fused after the recurrence (no extra launches).
    x = h2 * bn2_s_ref[...] + bn2_b_ref[...]                            # BatchNorm1d_2
    y = (jnp.dot(x.astype(jnp.bfloat16), w_cf1_ref[...],
                 preferred_element_type=jnp.float32) + b_cf1_ref[...])  # cf1
    y = jnp.maximum(y * bn3_s_ref[...] + bn3_b_ref[...], 0.0)           # BN3 + relu
    y = jnp.maximum(
        jnp.dot(y.astype(jnp.bfloat16), w_cf2_ref[...],
                preferred_element_type=jnp.float32) + b_cf2_ref[...], 0.0)  # cf2 + relu
    out_ref[...] = (jnp.dot(y.astype(jnp.bfloat16), w_cf3_ref[...],
                            preferred_element_type=jnp.float32)
                    + b_cf3_ref[...])                                    # cf3


def skim_network_forward(params, seq):
    """seq: [B, T, C, H, W] float32  ->  logits [B, 60] float32."""
    B, T, C, H, W = seq.shape
    K = C * H * W
    # Lane-dense frame layout: [T, B, C*H*W] (K is a multiple of 128), bf16 stream.
    frames = jnp.transpose(seq, (1, 0, 2, 3, 4)).reshape(T, B, K).astype(jnp.bfloat16)

    # Pre-concatenate input/hidden gate weights: z = [x | h] @ [[wx]; [wh]] + b.
    w1 = jnp.concatenate([params["wx1"], params["wh1"]], axis=0)   # [256, 512] bf16
    w2 = jnp.concatenate([params["wx2"], params["wh2"]], axis=0)   # [256, 512] bf16

    vmem = pl.BlockSpec(memory_space=pltpu.MemorySpace.VMEM)
    args = (frames,
            params["w_enc"], params["b_enc"],
            w1, params["b1"],
            w2, params["b2"],
            params["bn2_scale"], params["bn2_shift"],
            params["w_cf1"], params["b_cf1"],
            params["bn3_scale"], params["bn3_shift"],
            params["w_cf2"], params["b_cf2"],
            params["w_cf3"], params["b_cf3"])

    return pl.pallas_call(
        _skim_kernel,
        out_shape=jax.ShapeDtypeStruct((B, 60), jnp.float32),
        in_specs=[vmem] * len(args),
        out_specs=vmem,
    )(*args)


# --------------------------- pure-JAX reference -----------------------------

def skim_network_forward_ref(params, seq):
    B, T, C, H, W = seq.shape
    hdim = HIDDEN
    frames = jnp.transpose(seq, (1, 0, 2, 3, 4)).reshape(T, B, -1).astype(jnp.bfloat16)

    def dot(a, b):
        return jnp.dot(a.astype(jnp.bfloat16), b, preferred_element_type=jnp.float32)

    def cell(x, c, h, wx, wh, b):
        z = dot(x, wx) + dot(h, wh) + b
        i = jax.nn.sigmoid(z[:, :hdim]); f = jax.nn.sigmoid(z[:, hdim:2 * hdim])
        g = jnp.tanh(z[:, 2 * hdim:3 * hdim]); o = jax.nn.sigmoid(z[:, 3 * hdim:])
        c = f * c + i * g
        return c, o * jnp.tanh(c)

    c1 = jnp.zeros((B, hdim), jnp.float32); h1 = jnp.zeros((B, hdim), jnp.float32)
    c2 = jnp.zeros((B, hdim), jnp.float32); h2 = jnp.zeros((B, hdim), jnp.float32)
    for t in range(T):
        feat = dot(frames[t], params["w_enc"]) + params["b_enc"]
        c1, h1 = cell(feat, c1, h1, params["wx1"], params["wh1"], params["b1"])
        c2, h2 = cell(h1, c2, h2, params["wx2"], params["wh2"], params["b2"])
    x = h2 * params["bn2_scale"] + params["bn2_shift"]
    y = dot(x, params["w_cf1"]) + params["b_cf1"]
    y = jnp.maximum(y * params["bn3_scale"] + params["bn3_shift"], 0.0)
    y = jnp.maximum(dot(y, params["w_cf2"]) + params["b_cf2"], 0.0)
    return dot(y, params["w_cf3"]) + params["b_cf3"]


# --------------------------------- params -----------------------------------

def init_params(key, *, in_features, hidden=HIDDEN):
    ks = list(jax.random.split(key, 16))
    kit = iter(ks)

    def lin(fan_in, fan_out):
        lim = 1.0 / np.sqrt(fan_in)
        w = jax.random.uniform(next(kit), (fan_in, fan_out), jnp.float32, -lim, lim)
        b = jax.random.uniform(next(kit), (1, fan_out), jnp.float32, -lim, lim)
        return w.astype(jnp.bfloat16), b   # weights bf16 (MXU), biases f32

    w_enc, b_enc = lin(in_features, hidden)         # synthesized resnet18 encoder
    wx1, b1 = lin(hidden, 4 * hidden)               # LSTM cell1
    wh1, _ = lin(hidden, 4 * hidden)
    wx2, b2 = lin(hidden, 4 * hidden)               # LSTM cell2
    wh2, _ = lin(hidden, 4 * hidden)
    w_cf1, b_cf1 = lin(hidden, 128)                 # cf1
    w_cf2, b_cf2 = lin(128, 64)                     # cf2
    w_cf3, b_cf3 = lin(64, 60)                      # cf3

    # BatchNorm1d (inference mode): gamma=1, beta=0, running_mean=0, running_var=1.
    eps = 1e-5
    bn_scale = jnp.full((1, hidden), 1.0 / np.sqrt(1.0 + eps), jnp.float32)
    bn_shift = jnp.zeros((1, hidden), jnp.float32)

    return dict(
        w_enc=w_enc, b_enc=b_enc,
        wx1=wx1, wh1=wh1, b1=b1,
        wx2=wx2, wh2=wh2, b2=b2,
        bn2_scale=bn_scale, bn2_shift=bn_shift,
        w_cf1=w_cf1, b_cf1=b_cf1,
        bn3_scale=bn_scale, bn3_shift=bn_shift,
        w_cf2=w_cf2, b_cf2=b_cf2,
        w_cf3=w_cf3, b_cf3=b_cf3,
    )


if __name__ == "__main__":
    key = jax.random.PRNGKey(0)
    kseq, kp = jax.random.split(key)

    B, T, C, H, W = 2, 8, 3, 16, 16          # small demo shapes; hidden_unit = 128
    seq = jax.random.normal(kseq, (B, T, C, H, W), dtype=jnp.float32)
    params = init_params(kp, in_features=C * H * W)

    fwd = jax.jit(skim_network_forward)
    out = jax.block_until_ready(fwd(params, seq))

    assert out.shape == (B, 60) and out.dtype == jnp.float32
    assert bool(jnp.all(jnp.isfinite(out)))

    ref = jax.block_until_ready(skim_network_forward_ref(params, seq))
    np.testing.assert_allclose(np.asarray(out), np.asarray(ref), rtol=2e-2, atol=2e-2)

    print("KERNEL_OK")
</pallas_src>

<mosaic_0001>
module attributes {stable_mosaic.version = 11 : i64} {
  func.func @_skim_kernel(%arg0: memref<8x2x768xbf16, #tpu.memory_space<vmem>>, %arg1: memref<768x128xbf16, #tpu.memory_space<vmem>>, %arg2: memref<1x128xf32, #tpu.memory_space<vmem>>, %arg3: memref<256x512xbf16, #tpu.memory_space<vmem>>, %arg4: memref<1x512xf32, #tpu.memory_space<vmem>>, %arg5: memref<256x512xbf16, #tpu.memory_space<vmem>>, %arg6: memref<1x512xf32, #tpu.memory_space<vmem>>, %arg7: memref<1x128xf32, #tpu.memory_space<vmem>>, %arg8: memref<1x128xf32, #tpu.memory_space<vmem>>, %arg9: memref<128x128xbf16, #tpu.memory_space<vmem>>, %arg10: memref<1x128xf32, #tpu.memory_space<vmem>>, %arg11: memref<1x128xf32, #tpu.memory_space<vmem>>, %arg12: memref<1x128xf32, #tpu.memory_space<vmem>>, %arg13: memref<128x64xbf16, #tpu.memory_space<vmem>>, %arg14: memref<1x64xf32, #tpu.memory_space<vmem>>, %arg15: memref<64x60xbf16, #tpu.memory_space<vmem>>, %arg16: memref<1x60xf32, #tpu.memory_space<vmem>>, %arg17: memref<2x60xf32, #tpu.memory_space<vmem>>) attributes {dimension_semantics = [], scalar_prefetch = 0 : i64, scratch_operands = 0 : i64, tpu.core_type = #tpu.core_type<tc>} {
    %cst = arith.constant 0.000000e+00 : f32
    %0 = vector.broadcast %cst : f32 to vector<2x128xf32>
    %c0_i32 = arith.constant 0 : i32
    %1 = arith.index_cast %c0_i32 : i32 to index
    %c0 = arith.constant 0 : index
    %c0_0 = arith.constant 0 : index
    %2 = vector.load %arg0[%1, %c0, %c0_0] : memref<8x2x768xbf16, #tpu.memory_space<vmem>>, vector<1x2x768xbf16>
    %3 = vector.shape_cast %2 : vector<1x2x768xbf16> to vector<2x768xbf16>
    %c0_1 = arith.constant 0 : index
    %c0_2 = arith.constant 0 : index
    %4 = vector.load %arg1[%c0_1, %c0_2] : memref<768x128xbf16, #tpu.memory_space<vmem>>, vector<768x128xbf16>
    %cst_3 = arith.constant dense<0.000000e+00> : vector<2x128xf32>
    %5 = tpu.matmul %3, %4, %cst_3 {dimension_numbers = #tpu.dot_dimension_numbers<[1], [0], [0], [1], [0, 0, 1, 1], [], []>} : vector<2x768xbf16>, vector<768x128xbf16>, vector<2x128xf32> -> vector<2x128xf32>
    %c0_4 = arith.constant 0 : index
    %c0_5 = arith.constant 0 : index
    %6 = vector.load %arg2[%c0_4, %c0_5] : memref<1x128xf32, #tpu.memory_space<vmem>>, vector<1x128xf32>
    %7 = vector.broadcast %6 : vector<1x128xf32> to vector<2x128xf32>
    %8 = arith.addf %5, %7 : vector<2x128xf32>
    %9 = arith.truncf %8 : vector<2x128xf32> to vector<2x128xbf16>
    %10 = arith.truncf %0 : vector<2x128xf32> to vector<2x128xbf16>
    %11 = tpu.concatenate %9, %10 in 1 : vector<2x128xbf16>, vector<2x128xbf16> -> vector<2x256xbf16>
    %c0_6 = arith.constant 0 : index
    %c0_7 = arith.constant 0 : index
    %12 = vector.load %arg3[%c0_6, %c0_7] : memref<256x512xbf16, #tpu.memory_space<vmem>>, vector<256x512xbf16>
    %cst_8 = arith.constant dense<0.000000e+00> : vector<2x512xf32>
    %13 = tpu.matmul %11, %12, %cst_8 {dimension_numbers = #tpu.dot_dimension_numbers<[1], [0], [0], [1], [0, 0, 1, 1], [], []>} : vector<2x256xbf16>, vector<256x512xbf16>, vector<2x512xf32> -> vector<2x512xf32>
    %c0_9 = arith.constant 0 : index
    %c0_10 = arith.constant 0 : index
    %14 = vector.load %arg4[%c0_9, %c0_10] : memref<1x512xf32, #tpu.memory_space<vmem>>, vector<1x512xf32>
    %15 = vector.broadcast %14 : vector<1x512xf32> to vector<2x512xf32>
    %16 = arith.addf %13, %15 : vector<2x512xf32>
    %17 = vector.extract_strided_slice %16 {offsets = [0, 0], sizes = [2, 128], strides = [1, 1]} : vector<2x512xf32> to vector<2x128xf32>
    %18 = arith.negf %17 : vector<2x128xf32>
    %19 = math.exp %18 : vector<2x128xf32>
    %cst_11 = arith.constant 1.000000e+00 : f32
    %20 = vector.broadcast %cst_11 : f32 to vector<2x128xf32>
    %21 = arith.addf %20, %19 : vector<2x128xf32>
    %22 = arith.divf %20, %21 : vector<2x128xf32>
    %23 = vector.extract_strided_slice %16 {offsets = [0, 128], sizes = [2, 128], strides = [1, 1]} : vector<2x512xf32> to vector<2x128xf32>
    %24 = arith.negf %23 : vector<2x128xf32>
    %25 = math.exp %24 : vector<2x128xf32>
    %cst_12 = arith.constant 1.000000e+00 : f32
    %26 = vector.broadcast %cst_12 : f32 to vector<2x128xf32>
    %27 = arith.addf %26, %25 : vector<2x128xf32>
    %28 = arith.divf %26, %27 : vector<2x128xf32>
    %29 = vector.extract_strided_slice %16 {offsets = [0, 256], sizes = [2, 128], strides = [1, 1]} : vector<2x512xf32> to vector<2x128xf32>
    %30 = math.tanh %29 : vector<2x128xf32>
    %31 = vector.extract_strided_slice %16 {offsets = [0, 384], sizes = [2, 128], strides = [1, 1]} : vector<2x512xf32> to vector<2x128xf32>
    %32 = arith.negf %31 : vector<2x128xf32>
    %33 = math.exp %32 : vector<2x128xf32>
    %cst_13 = arith.constant 1.000000e+00 : f32
    %34 = vector.broadcast %cst_13 : f32 to vector<2x128xf32>
    %35 = arith.addf %34, %33 : vector<2x128xf32>
    %36 = arith.divf %34, %35 : vector<2x128xf32>
    %37 = arith.mulf %28, %0 : vector<2x128xf32>
    %38 = arith.mulf %22, %30 : vector<2x128xf32>
    %39 = arith.addf %37, %38 : vector<2x128xf32>
    %40 = math.tanh %39 : vector<2x128xf32>
    %41 = arith.mulf %36, %40 : vector<2x128xf32>
    %42 = arith.truncf %41 : vector<2x128xf32> to vector<2x128xbf16>
    %43 = arith.truncf %0 : vector<2x128xf32> to vector<2x128xbf16>
    %44 = tpu.concatenate %42, %43 in 1 : vector<2x128xbf16>, vector<2x128xbf16> -> vector<2x256xbf16>
    %c0_14 = arith.constant 0 : index
    %c0_15 = arith.constant 0 : index
    %45 = vector.load %arg5[%c0_14, %c0_15] : memref<256x512xbf16, #tpu.memory_space<vmem>>, vector<256x512xbf16>
    %cst_16 = arith.constant dense<0.000000e+00> : vector<2x512xf32>
    %46 = tpu.matmul %44, %45, %cst_16 {dimension_numbers = #tpu.dot_dimension_numbers<[1], [0], [0], [1], [0, 0, 1, 1], [], []>} : vector<2x256xbf16>, vector<256x512xbf16>, vector<2x512xf32> -> vector<2x512xf32>
    %c0_17 = arith.constant 0 : index
    %c0_18 = arith.constant 0 : index
    %47 = vector.load %arg6[%c0_17, %c0_18] : memref<1x512xf32, #tpu.memory_space<vmem>>, vector<1x512xf32>
    %48 = vector.broadcast %47 : vector<1x512xf32> to vector<2x512xf32>
    %49 = arith.addf %46, %48 : vector<2x512xf32>
    %50 = vector.extract_strided_slice %49 {offsets = [0, 0], sizes = [2, 128], strides = [1, 1]} : vector<2x512xf32> to vector<2x128xf32>
    %51 = arith.negf %50 : vector<2x128xf32>
    %52 = math.exp %51 : vector<2x128xf32>
    %cst_19 = arith.constant 1.000000e+00 : f32
    %53 = vector.broadcast %cst_19 : f32 to vector<2x128xf32>
    %54 = arith.addf %53, %52 : vector<2x128xf32>
    %55 = arith.divf %53, %54 : vector<2x128xf32>
    %56 = vector.extract_strided_slice %49 {offsets = [0, 128], sizes = [2, 128], strides = [1, 1]} : vector<2x512xf32> to vector<2x128xf32>
    %57 = arith.negf %56 : vector<2x128xf32>
    %58 = math.exp %57 : vector<2x128xf32>
    %cst_20 = arith.constant 1.000000e+00 : f32
    %59 = vector.broadcast %cst_20 : f32 to vector<2x128xf32>
    %60 = arith.addf %59, %58 : vector<2x128xf32>
    %61 = arith.divf %59, %60 : vector<2x128xf32>
    %62 = vector.extract_strided_slice %49 {offsets = [0, 256], sizes = [2, 128], strides = [1, 1]} : vector<2x512xf32> to vector<2x128xf32>
    %63 = math.tanh %62 : vector<2x128xf32>
    %64 = vector.extract_strided_slice %49 {offsets = [0, 384], sizes = [2, 128], strides = [1, 1]} : vector<2x512xf32> to vector<2x128xf32>
    %65 = arith.negf %64 : vector<2x128xf32>
    %66 = math.exp %65 : vector<2x128xf32>
    %cst_21 = arith.constant 1.000000e+00 : f32
    %67 = vector.broadcast %cst_21 : f32 to vector<2x128xf32>
    %68 = arith.addf %67, %66 : vector<2x128xf32>
    %69 = arith.divf %67, %68 : vector<2x128xf32>
    %70 = arith.mulf %61, %0 : vector<2x128xf32>
    %71 = arith.mulf %55, %63 : vector<2x128xf32>
    %72 = arith.addf %70, %71 : vector<2x128xf32>
    %73 = math.tanh %72 : vector<2x128xf32>
    %74 = arith.mulf %69, %73 : vector<2x128xf32>
    %c1_i32 = arith.constant 1 : i32
    %75 = arith.index_cast %c1_i32 : i32 to index
    %c0_22 = arith.constant 0 : index
    %c0_23 = arith.constant 0 : index
    %76 = vector.load %arg0[%75, %c0_22, %c0_23] : memref<8x2x768xbf16, #tpu.memory_space<vmem>>, vector<1x2x768xbf16>
    %77 = vector.shape_cast %76 : vector<1x2x768xbf16> to vector<2x768xbf16>
    %c0_24 = arith.constant 0 : index
    %c0_25 = arith.constant 0 : index
    %78 = vector.load %arg1[%c0_24, %c0_25] : memref<768x128xbf16, #tpu.memory_space<vmem>>, vector<768x128xbf16>
    %cst_26 = arith.constant dense<0.000000e+00> : vector<2x128xf32>
    %79 = tpu.matmul %77, %78, %cst_26 {dimension_numbers = #tpu.dot_dimension_numbers<[1], [0], [0], [1], [0, 0, 1, 1], [], []>} : vector<2x768xbf16>, vector<768x128xbf16>, vector<2x128xf32> -> vector<2x128xf32>
    %c0_27 = arith.constant 0 : index
    %c0_28 = arith.constant 0 : index
    %80 = vector.load %arg2[%c0_27, %c0_28] : memref<1x128xf32, #tpu.memory_space<vmem>>, vector<1x128xf32>
    %81 = vector.broadcast %80 : vector<1x128xf32> to vector<2x128xf32>
    %82 = arith.addf %79, %81 : vector<2x128xf32>
    %83 = arith.truncf %82 : vector<2x128xf32> to vector<2x128xbf16>
    %84 = arith.truncf %41 : vector<2x128xf32> to vector<2x128xbf16>
    %85 = tpu.concatenate %83, %84 in 1 : vector<2x128xbf16>, vector<2x128xbf16> -> vector<2x256xbf16>
    %c0_29 = arith.constant 0 : index
    %c0_30 = arith.constant 0 : index
    %86 = vector.load %arg3[%c0_29, %c0_30] : memref<256x512xbf16, #tpu.memory_space<vmem>>, vector<256x512xbf16>
    %cst_31 = arith.constant dense<0.000000e+00> : vector<2x512xf32>
    %87 = tpu.matmul %85, %86, %cst_31 {dimension_numbers = #tpu.dot_dimension_numbers<[1], [0], [0], [1], [0, 0, 1, 1], [], []>} : vector<2x256xbf16>, vector<256x512xbf16>, vector<2x512xf32> -> vector<2x512xf32>
    %c0_32 = arith.constant 0 : index
    %c0_33 = arith.constant 0 : index
    %88 = vector.load %arg4[%c0_32, %c0_33] : memref<1x512xf32, #tpu.memory_space<vmem>>, vector<1x512xf32>
    %89 = vector.broadcast %88 : vector<1x512xf32> to vector<2x512xf32>
    %90 = arith.addf %87, %89 : vector<2x512xf32>
    %91 = vector.extract_strided_slice %90 {offsets = [0, 0], sizes = [2, 128], strides = [1, 1]} : vector<2x512xf32> to vector<2x128xf32>
    %92 = arith.negf %91 : vector<2x128xf32>
    %93 = math.exp %92 : vector<2x128xf32>
    %cst_34 = arith.constant 1.000000e+00 : f32
    %94 = vector.broadcast %cst_34 : f32 to vector<2x128xf32>
    %95 = arith.addf %94, %93 : vector<2x128xf32>
    %96 = arith.divf %94, %95 : vector<2x128xf32>
    %97 = vector.extract_strided_slice %90 {offsets = [0, 128], sizes = [2, 128], strides = [1, 1]} : vector<2x512xf32> to vector<2x128xf32>
    %98 = arith.negf %97 : vector<2x128xf32>
    %99 = math.exp %98 : vector<2x128xf32>
    %cst_35 = arith.constant 1.000000e+00 : f32
    %100 = vector.broadcast %cst_35 : f32 to vector<2x128xf32>
    %101 = arith.addf %100, %99 : vector<2x128xf32>
    %102 = arith.divf %100, %101 : vector<2x128xf32>
    %103 = vector.extract_strided_slice %90 {offsets = [0, 256], sizes = [2, 128], strides = [1, 1]} : vector<2x512xf32> to vector<2x128xf32>
    %104 = math.tanh %103 : vector<2x128xf32>
    %105 = vector.extract_strided_slice %90 {offsets = [0, 384], sizes = [2, 128], strides = [1, 1]} : vector<2x512xf32> to vector<2x128xf32>
    %106 = arith.negf %105 : vector<2x128xf32>
    %107 = math.exp %106 : vector<2x128xf32>
    %cst_36 = arith.constant 1.000000e+00 : f32
    %108 = vector.broadcast %cst_36 : f32 to vector<2x128xf32>
    %109 = arith.addf %108, %107 : vector<2x128xf32>
    %110 = arith.divf %108, %109 : vector<2x128xf32>
    %111 = arith.mulf %102, %39 : vector<2x128xf32>
    %112 = arith.mulf %96, %104 : vector<2x128xf32>
    %113 = arith.addf %111, %112 : vector<2x128xf32>
    %114 = math.tanh %113 : vector<2x128xf32>
    %115 = arith.mulf %110, %114 : vector<2x128xf32>
    %116 = arith.truncf %115 : vector<2x128xf32> to vector<2x128xbf16>
    %117 = arith.truncf %74 : vector<2x128xf32> to vector<2x128xbf16>
    %118 = tpu.concatenate %116, %117 in 1 : vector<2x128xbf16>, vector<2x128xbf16> -> vector<2x256xbf16>
    %c0_37 = arith.constant 0 : index
    %c0_38 = arith.constant 0 : index
    %119 = vector.load %arg5[%c0_37, %c0_38] : memref<256x512xbf16, #tpu.memory_space<vmem>>, vector<256x512xbf16>
    %cst_39 = arith.constant dense<0.000000e+00> : vector<2x512xf32>
    %120 = tpu.matmul %118, %119, %cst_39 {dimension_numbers = #tpu.dot_dimension_numbers<[1], [0], [0], [1], [0, 0, 1, 1], [], []>} : vector<2x256xbf16>, vector<256x512xbf16>, vector<2x512xf32> -> vector<2x512xf32>
    %c0_40 = arith.constant 0 : index
    %c0_41 = arith.constant 0 : index
    %121 = vector.load %arg6[%c0_40, %c0_41] : memref<1x512xf32, #tpu.memory_space<vmem>>, vector<1x512xf32>
    %122 = vector.broadcast %121 : vector<1x512xf32> to vector<2x512xf32>
    %123 = arith.addf %120, %122 : vector<2x512xf32>
    %124 = vector.extract_strided_slice %123 {offsets = [0, 0], sizes = [2, 128], strides = [1, 1]} : vector<2x512xf32> to vector<2x128xf32>
    %125 = arith.negf %124 : vector<2x128xf32>
    %126 = math.exp %125 : vector<2x128xf32>
    %cst_42 = arith.constant 1.000000e+00 : f32
    %127 = vector.broadcast %cst_42 : f32 to vector<2x128xf32>
    %128 = arith.addf %127, %126 : vector<2x128xf32>
    %129 = arith.divf %127, %128 : vector<2x128xf32>
    %130 = vector.extract_strided_slice %123 {offsets = [0, 128], sizes = [2, 128], strides = [1, 1]} : vector<2x512xf32> to vector<2x128xf32>
    %131 = arith.negf %130 : vector<2x128xf32>
    %132 = math.exp %131 : vector<2x128xf32>
    %cst_43 = arith.constant 1.000000e+00 : f32
    %133 = vector.broadcast %cst_43 : f32 to vector<2x128xf32>
    %134 = arith.addf %133, %132 : vector<2x128xf32>
    %135 = arith.divf %133, %134 : vector<2x128xf32>
    %136 = vector.extract_strided_slice %123 {offsets = [0, 256], sizes = [2, 128], strides = [1, 1]} : vector<2x512xf32> to vector<2x128xf32>
    %137 = math.tanh %136 : vector<2x128xf32>
    %138 = vector.extract_strided_slice %123 {offsets = [0, 384], sizes = [2, 128], strides = [1, 1]} : vector<2x512xf32> to vector<2x128xf32>
    %139 = arith.negf %138 : vector<2x128xf32>
    %140 = math.exp %139 : vector<2x128xf32>
    %cst_44 = arith.constant 1.000000e+00 : f32
    %141 = vector.broadcast %cst_44 : f32 to vector<2x128xf32>
    %142 = arith.addf %141, %140 : vector<2x128xf32>
    %143 = arith.divf %141, %142 : vector<2x128xf32>
    %144 = arith.mulf %135, %72 : vector<2x128xf32>
    %145 = arith.mulf %129, %137 : vector<2x128xf32>
    %146 = arith.addf %144, %145 : vector<2x128xf32>
    %147 = math.tanh %146 : vector<2x128xf32>
    %148 = arith.mulf %143, %147 : vector<2x128xf32>
    %c2_i32 = arith.constant 2 : i32
    %149 = arith.index_cast %c2_i32 : i32 to index
    %c0_45 = arith.constant 0 : index
    %c0_46 = arith.constant 0 : index
    %150 = vector.load %arg0[%149, %c0_45, %c0_46] : memref<8x2x768xbf16, #tpu.memory_space<vmem>>, vector<1x2x768xbf16>
    %151 = vector.shape_cast %150 : vector<1x2x768xbf16> to vector<2x768xbf16>
    %c0_47 = arith.constant 0 : index
    %c0_48 = arith.constant 0 : index
    %152 = vector.load %arg1[%c0_47, %c0_48] : memref<768x128xbf16, #tpu.memory_space<vmem>>, vector<768x128xbf16>
    %cst_49 = arith.constant dense<0.000000e+00> : vector<2x128xf32>
    %153 = tpu.matmul %151, %152, %cst_49 {dimension_numbers = #tpu.dot_dimension_numbers<[1], [0], [0], [1], [0, 0, 1, 1], [], []>} : vector<2x768xbf16>, vector<768x128xbf16>, vector<2x128xf32> -> vector<2x128xf32>
    %c0_50 = arith.constant 0 : index
    %c0_51 = arith.constant 0 : index
    %154 = vector.load %arg2[%c0_50, %c0_51] : memref<1x128xf32, #tpu.memory_space<vmem>>, vector<1x128xf32>
    %155 = vector.broadcast %154 : vector<1x128xf32> to vector<2x128xf32>
    %156 = arith.addf %153, %155 : vector<2x128xf32>
    %157 = arith.truncf %156 : vector<2x128xf32> to vector<2x128xbf16>
    %158 = arith.truncf %115 : vector<2x128xf32> to vector<2x128xbf16>
    %159 = tpu.concatenate %157, %158 in 1 : vector<2x128xbf16>, vector<2x128xbf16> -> vector<2x256xbf16>
    %c0_52 = arith.constant 0 : index
    %c0_53 = arith.constant 0 : index
    %160 = vector.load %arg3[%c0_52, %c0_53] : memref<256x512xbf16, #tpu.memory_space<vmem>>, vector<256x512xbf16>
    %cst_54 = arith.constant dense<0.000000e+00> : vector<2x512xf32>
    %161 = tpu.matmul %159, %160, %cst_54 {dimension_numbers = #tpu.dot_dimension_numbers<[1], [0], [0], [1], [0, 0, 1, 1], [], []>} : vector<2x256xbf16>, vector<256x512xbf16>, vector<2x512xf32> -> vector<2x512xf32>
    %c0_55 = arith.constant 0 : index
    %c0_56 = arith.constant 0 : index
    %162 = vector.load %arg4[%c0_55, %c0_56] : memref<1x512xf32, #tpu.memory_space<vmem>>, vector<1x512xf32>
    %163 = vector.broadcast %162 : vector<1x512xf32> to vector<2x512xf32>
    %164 = arith.addf %161, %163 : vector<2x512xf32>
    %165 = vector.extract_strided_slice %164 {offsets = [0, 0], sizes = [2, 128], strides = [1, 1]} : vector<2x512xf32> to vector<2x128xf32>
    %166 = arith.negf %165 : vector<2x128xf32>
    %167 = math.exp %166 : vector<2x128xf32>
    %cst_57 = arith.constant 1.000000e+00 : f32
    %168 = vector.broadcast %cst_57 : f32 to vector<2x128xf32>
    %169 = arith.addf %168, %167 : vector<2x128xf32>
    %170 = arith.divf %168, %169 : vector<2x128xf32>
    %171 = vector.extract_strided_slice %164 {offsets = [0, 128], sizes = [2, 128], strides = [1, 1]} : vector<2x512xf32> to vector<2x128xf32>
    %172 = arith.negf %171 : vector<2x128xf32>
    %173 = math.exp %172 : vector<2x128xf32>
    %cst_58 = arith.constant 1.000000e+00 : f32
    %174 = vector.broadcast %cst_58 : f32 to vector<2x128xf32>
    %175 = arith.addf %174, %173 : vector<2x128xf32>
    %176 = arith.divf %174, %175 : vector<2x128xf32>
    %177 = vector.extract_strided_slice %164 {offsets = [0, 256], sizes = [2, 128], strides = [1, 1]} : vector<2x512xf32> to vector<2x128xf32>
    %178 = math.tanh %177 : vector<2x128xf32>
    %179 = vector.extract_strided_slice %164 {offsets = [0, 384], sizes = [2, 128], strides = [1, 1]} : vector<2x512xf32> to vector<2x128xf32>
    %180 = arith.negf %179 : vector<2x128xf32>
    %181 = math.exp %180 : vector<2x128xf32>
    %cst_59 = arith.constant 1.000000e+00 : f32
    %182 = vector.broadcast %cst_59 : f32 to vector<2x128xf32>
    %183 = arith.addf %182, %181 : vector<2x128xf32>
    %184 = arith.divf %182, %183 : vector<2x128xf32>
    %185 = arith.mulf %176, %113 : vector<2x128xf32>
    %186 = arith.mulf %170, %178 : vector<2x128xf32>
    %187 = arith.addf %185, %186 : vector<2x128xf32>
    %188 = math.tanh %187 : vector<2x128xf32>
    %189 = arith.mulf %184, %188 : vector<2x128xf32>
    %190 = arith.truncf %189 : vector<2x128xf32> to vector<2x128xbf16>
    %191 = arith.truncf %148 : vector<2x128xf32> to vector<2x128xbf16>
    %192 = tpu.concatenate %190, %191 in 1 : vector<2x128xbf16>, vector<2x128xbf16> -> vector<2x256xbf16>
    %c0_60 = arith.constant 0 : index
    %c0_61 = arith.constant 0 : index
    %193 = vector.load %arg5[%c0_60, %c0_61] : memref<256x512xbf16, #tpu.memory_space<vmem>>, vector<256x512xbf16>
    %cst_62 = arith.constant dense<0.000000e+00> : vector<2x512xf32>
    %194 = tpu.matmul %192, %193, %cst_62 {dimension_numbers = #tpu.dot_dimension_numbers<[1], [0], [0], [1], [0, 0, 1, 1], [], []>} : vector<2x256xbf16>, vector<256x512xbf16>, vector<2x512xf32> -> vector<2x512xf32>
    %c0_63 = arith.constant 0 : index
    %c0_64 = arith.constant 0 : index
    %195 = vector.load %arg6[%c0_63, %c0_64] : memref<1x512xf32, #tpu.memory_space<vmem>>, vector<1x512xf32>
    %196 = vector.broadcast %195 : vector<1x512xf32> to vector<2x512xf32>
    %197 = arith.addf %194, %196 : vector<2x512xf32>
    %198 = vector.extract_strided_slice %197 {offsets = [0, 0], sizes = [2, 128], strides = [1, 1]} : vector<2x512xf32> to vector<2x128xf32>
    %199 = arith.negf %198 : vector<2x128xf32>
    %200 = math.exp %199 : vector<2x128xf32>
    %cst_65 = arith.constant 1.000000e+00 : f32
    %201 = vector.broadcast %cst_65 : f32 to vector<2x128xf32>
    %202 = arith.addf %201, %200 : vector<2x128xf32>
    %203 = arith.divf %201, %202 : vector<2x128xf32>
    %204 = vector.extract_strided_slice %197 {offsets = [0, 128], sizes = [2, 128], strides = [1, 1]} : vector<2x512xf32> to vector<2x128xf32>
    %205 = arith.negf %204 : vector<2x128xf32>
    %206 = math.exp %205 : vector<2x128xf32>
    %cst_66 = arith.constant 1.000000e+00 : f32
    %207 = vector.broadcast %cst_66 : f32 to vector<2x128xf32>
    %208 = arith.addf %207, %206 : vector<2x128xf32>
    %209 = arith.divf %207, %208 : vector<2x128xf32>
    %210 = vector.extract_strided_slice %197 {offsets = [0, 256], sizes = [2, 128], strides = [1, 1]} : vector<2x512xf32> to vector<2x128xf32>
    %211 = math.tanh %210 : vector<2x128xf32>
    %212 = vector.extract_strided_slice %197 {offsets = [0, 384], sizes = [2, 128], strides = [1, 1]} : vector<2x512xf32> to vector<2x128xf32>
    %213 = arith.negf %212 : vector<2x128xf32>
    %214 = math.exp %213 : vector<2x128xf32>
    %cst_67 = arith.constant 1.000000e+00 : f32
    %215 = vector.broadcast %cst_67 : f32 to vector<2x128xf32>
    %216 = arith.addf %215, %214 : vector<2x128xf32>
    %217 = arith.divf %215, %216 : vector<2x128xf32>
    %218 = arith.mulf %209, %146 : vector<2x128xf32>
    %219 = arith.mulf %203, %211 : vector<2x128xf32>
    %220 = arith.addf %218, %219 : vector<2x128xf32>
    %221 = math.tanh %220 : vector<2x128xf32>
    %222 = arith.mulf %217, %221 : vector<2x128xf32>
    %c3_i32 = arith.constant 3 : i32
    %223 = arith.index_cast %c3_i32 : i32 to index
    %c0_68 = arith.constant 0 : index
    %c0_69 = arith.constant 0 : index
    %224 = vector.load %arg0[%223, %c0_68, %c0_69] : memref<8x2x768xbf16, #tpu.memory_space<vmem>>, vector<1x2x768xbf16>
    %225 = vector.shape_cast %224 : vector<1x2x768xbf16> to vector<2x768xbf16>
    %c0_70 = arith.constant 0 : index
    %c0_71 = arith.constant 0 : index
    %226 = vector.load %arg1[%c0_70, %c0_71] : memref<768x128xbf16, #tpu.memory_space<vmem>>, vector<768x128xbf16>
    %cst_72 = arith.constant dense<0.000000e+00> : vector<2x128xf32>
    %227 = tpu.matmul %225, %226, %cst_72 {dimension_numbers = #tpu.dot_dimension_numbers<[1], [0], [0], [1], [0, 0, 1, 1], [], []>} : vector<2x768xbf16>, vector<768x128xbf16>, vector<2x128xf32> -> vector<2x128xf32>
    %c0_73 = arith.constant 0 : index
    %c0_74 = arith.constant 0 : index
    %228 = vector.load %arg2[%c0_73, %c0_74] : memref<1x128xf32, #tpu.memory_space<vmem>>, vector<1x128xf32>
    %229 = vector.broadcast %228 : vector<1x128xf32> to vector<2x128xf32>
    %230 = arith.addf %227, %229 : vector<2x128xf32>
    %231 = arith.truncf %230 : vector<2x128xf32> to vector<2x128xbf16>
    %232 = arith.truncf %189 : vector<2x128xf32> to vector<2x128xbf16>
    %233 = tpu.concatenate %231, %232 in 1 : vector<2x128xbf16>, vector<2x128xbf16> -> vector<2x256xbf16>
    %c0_75 = arith.constant 0 : index
    %c0_76 = arith.constant 0 : index
    %234 = vector.load %arg3[%c0_75, %c0_76] : memref<256x512xbf16, #tpu.memory_space<vmem>>, vector<256x512xbf16>
    %cst_77 = arith.constant dense<0.000000e+00> : vector<2x512xf32>
    %235 = tpu.matmul %233, %234, %cst_77 {dimension_numbers = #tpu.dot_dimension_numbers<[1], [0], [0], [1], [0, 0, 1, 1], [], []>} : vector<2x256xbf16>, vector<256x512xbf16>, vector<2x512xf32> -> vector<2x512xf32>
    %c0_78 = arith.constant 0 : index
    %c0_79 = arith.constant 0 : index
    %236 = vector.load %arg4[%c0_78, %c0_79] : memref<1x512xf32, #tpu.memory_space<vmem>>, vector<1x512xf32>
    %237 = vector.broadcast %236 : vector<1x512xf32> to vector<2x512xf32>
    %238 = arith.addf %235, %237 : vector<2x512xf32>
    %239 = vector.extract_strided_slice %238 {offsets = [0, 0], sizes = [2, 128], strides = [1, 1]} : vector<2x512xf32> to vector<2x128xf32>
    %240 = arith.negf %239 : vector<2x128xf32>
    %241 = math.exp %240 : vector<2x128xf32>
    %cst_80 = arith.constant 1.000000e+00 : f32
    %242 = vector.broadcast %cst_80 : f32 to vector<2x128xf32>
    %243 = arith.addf %242, %241 : vector<2x128xf32>
    %244 = arith.divf %242, %243 : vector<2x128xf32>
    %245 = vector.extract_strided_slice %238 {offsets = [0, 128], sizes = [2, 128], strides = [1, 1]} : vector<2x512xf32> to vector<2x128xf32>
    %246 = arith.negf %245 : vector<2x128xf32>
    %247 = math.exp %246 : vector<2x128xf32>
    %cst_81 = arith.constant 1.000000e+00 : f32
    %248 = vector.broadcast %cst_81 : f32 to vector<2x128xf32>
    %249 = arith.addf %248, %247 : vector<2x128xf32>
    %250 = arith.divf %248, %249 : vector<2x128xf32>
    %251 = vector.extract_strided_slice %238 {offsets = [0, 256], sizes = [2, 128], strides = [1, 1]} : vector<2x512xf32> to vector<2x128xf32>
    %252 = math.tanh %251 : vector<2x128xf32>
    %253 = vector.extract_strided_slice %238 {offsets = [0, 384], sizes = [2, 128], strides = [1, 1]} : vector<2x512xf32> to vector<2x128xf32>
    %254 = arith.negf %253 : vector<2x128xf32>
    %255 = math.exp %254 : vector<2x128xf32>
    %cst_82 = arith.constant 1.000000e+00 : f32
    %256 = vector.broadcast %cst_82 : f32 to vector<2x128xf32>
    %257 = arith.addf %256, %255 : vector<2x128xf32>
    %258 = arith.divf %256, %257 : vector<2x128xf32>
    %259 = arith.mulf %250, %187 : vector<2x128xf32>
    %260 = arith.mulf %244, %252 : vector<2x128xf32>
    %261 = arith.addf %259, %260 : vector<2x128xf32>
    %262 = math.tanh %261 : vector<2x128xf32>
    %263 = arith.mulf %258, %262 : vector<2x128xf32>
    %264 = arith.truncf %263 : vector<2x128xf32> to vector<2x128xbf16>
    %265 = arith.truncf %222 : vector<2x128xf32> to vector<2x128xbf16>
    %266 = tpu.concatenate %264, %265 in 1 : vector<2x128xbf16>, vector<2x128xbf16> -> vector<2x256xbf16>
    %c0_83 = arith.constant 0 : index
    %c0_84 = arith.constant 0 : index
    %267 = vector.load %arg5[%c0_83, %c0_84] : memref<256x512xbf16, #tpu.memory_space<vmem>>, vector<256x512xbf16>
    %cst_85 = arith.constant dense<0.000000e+00> : vector<2x512xf32>
    %268 = tpu.matmul %266, %267, %cst_85 {dimension_numbers = #tpu.dot_dimension_numbers<[1], [0], [0], [1], [0, 0, 1, 1], [], []>} : vector<2x256xbf16>, vector<256x512xbf16>, vector<2x512xf32> -> vector<2x512xf32>
    %c0_86 = arith.constant 0 : index
    %c0_87 = arith.constant 0 : index
    %269 = vector.load %arg6[%c0_86, %c0_87] : memref<1x512xf32, #tpu.memory_space<vmem>>, vector<1x512xf32>
    %270 = vector.broadcast %269 : vector<1x512xf32> to vector<2x512xf32>
    %271 = arith.addf %268, %270 : vector<2x512xf32>
    %272 = vector.extract_strided_slice %271 {offsets = [0, 0], sizes = [2, 128], strides = [1, 1]} : vector<2x512xf32> to vector<2x128xf32>
    %273 = arith.negf %272 : vector<2x128xf32>
    %274 = math.exp %273 : vector<2x128xf32>
    %cst_88 = arith.constant 1.000000e+00 : f32
    %275 = vector.broadcast %cst_88 : f32 to vector<2x128xf32>
    %276 = arith.addf %275, %274 : vector<2x128xf32>
    %277 = arith.divf %275, %276 : vector<2x128xf32>
    %278 = vector.extract_strided_slice %271 {offsets = [0, 128], sizes = [2, 128], strides = [1, 1]} : vector<2x512xf32> to vector<2x128xf32>
    %279 = arith.negf %278 : vector<2x128xf32>
    %280 = math.exp %279 : vector<2x128xf32>
    %cst_89 = arith.constant 1.000000e+00 : f32
    %281 = vector.broadcast %cst_89 : f32 to vector<2x128xf32>
    %282 = arith.addf %281, %280 : vector<2x128xf32>
    %283 = arith.divf %281, %282 : vector<2x128xf32>
    %284 = vector.extract_strided_slice %271 {offsets = [0, 256], sizes = [2, 128], strides = [1, 1]} : vector<2x512xf32> to vector<2x128xf32>
    %285 = math.tanh %284 : vector<2x128xf32>
    %286 = vector.extract_strided_slice %271 {offsets = [0, 384], sizes = [2, 128], strides = [1, 1]} : vector<2x512xf32> to vector<2x128xf32>
    %287 = arith.negf %286 : vector<2x128xf32>
    %288 = math.exp %287 : vector<2x128xf32>
    %cst_90 = arith.constant 1.000000e+00 : f32
    %289 = vector.broadcast %cst_90 : f32 to vector<2x128xf32>
    %290 = arith.addf %289, %288 : vector<2x128xf32>
    %291 = arith.divf %289, %290 : vector<2x128xf32>
    %292 = arith.mulf %283, %220 : vector<2x128xf32>
    %293 = arith.mulf %277, %285 : vector<2x128xf32>
    %294 = arith.addf %292, %293 : vector<2x128xf32>
    %295 = math.tanh %294 : vector<2x128xf32>
    %296 = arith.mulf %291, %295 : vector<2x128xf32>
    %c4_i32 = arith.constant 4 : i32
    %297 = arith.index_cast %c4_i32 : i32 to index
    %c0_91 = arith.constant 0 : index
    %c0_92 = arith.constant 0 : index
    %298 = vector.load %arg0[%297, %c0_91, %c0_92] : memref<8x2x768xbf16, #tpu.memory_space<vmem>>, vector<1x2x768xbf16>
    %299 = vector.shape_cast %298 : vector<1x2x768xbf16> to vector<2x768xbf16>
    %c0_93 = arith.constant 0 : index
    %c0_94 = arith.constant 0 : index
    %300 = vector.load %arg1[%c0_93, %c0_94] : memref<768x128xbf16, #tpu.memory_space<vmem>>, vector<768x128xbf16>
    %cst_95 = arith.constant dense<0.000000e+00> : vector<2x128xf32>
    %301 = tpu.matmul %299, %300, %cst_95 {dimension_numbers = #tpu.dot_dimension_numbers<[1], [0], [0], [1], [0, 0, 1, 1], [], []>} : vector<2x768xbf16>, vector<768x128xbf16>, vector<2x128xf32> -> vector<2x128xf32>
    %c0_96 = arith.constant 0 : index
    %c0_97 = arith.constant 0 : index
    %302 = vector.load %arg2[%c0_96, %c0_97] : memref<1x128xf32, #tpu.memory_space<vmem>>, vector<1x128xf32>
    %303 = vector.broadcast %302 : vector<1x128xf32> to vector<2x128xf32>
    %304 = arith.addf %301, %303 : vector<2x128xf32>
    %305 = arith.truncf %304 : vector<2x128xf32> to vector<2x128xbf16>
    %306 = arith.truncf %263 : vector<2x128xf32> to vector<2x128xbf16>
    %307 = tpu.concatenate %305, %306 in 1 : vector<2x128xbf16>, vector<2x128xbf16> -> vector<2x256xbf16>
    %c0_98 = arith.constant 0 : index
    %c0_99 = arith.constant 0 : index
    %308 = vector.load %arg3[%c0_98, %c0_99] : memref<256x512xbf16, #tpu.memory_space<vmem>>, vector<256x512xbf16>
    %cst_100 = arith.constant dense<0.000000e+00> : vector<2x512xf32>
    %309 = tpu.matmul %307, %308, %cst_100 {dimension_numbers = #tpu.dot_dimension_numbers<[1], [0], [0], [1], [0, 0, 1, 1], [], []>} : vector<2x256xbf16>, vector<256x512xbf16>, vector<2x512xf32> -> vector<2x512xf32>
    %c0_101 = arith.constant 0 : index
    %c0_102 = arith.constant 0 : index
    %310 = vector.load %arg4[%c0_101, %c0_102] : memref<1x512xf32, #tpu.memory_space<vmem>>, vector<1x512xf32>
    %311 = vector.broadcast %310 : vector<1x512xf32> to vector<2x512xf32>
    %312 = arith.addf %309, %311 : vector<2x512xf32>
    %313 = vector.extract_strided_slice %312 {offsets = [0, 0], sizes = [2, 128], strides = [1, 1]} : vector<2x512xf32> to vector<2x128xf32>
    %314 = arith.negf %313 : vector<2x128xf32>
    %315 = math.exp %314 : vector<2x128xf32>
    %cst_103 = arith.constant 1.000000e+00 : f32
    %316 = vector.broadcast %cst_103 : f32 to vector<2x128xf32>
    %317 = arith.addf %316, %315 : vector<2x128xf32>
    %318 = arith.divf %316, %317 : vector<2x128xf32>
    %319 = vector.extract_strided_slice %312 {offsets = [0, 128], sizes = [2, 128], strides = [1, 1]} : vector<2x512xf32> to vector<2x128xf32>
    %320 = arith.negf %319 : vector<2x128xf32>
    %321 = math.exp %320 : vector<2x128xf32>
    %cst_104 = arith.constant 1.000000e+00 : f32
    %322 = vector.broadcast %cst_104 : f32 to vector<2x128xf32>
    %323 = arith.addf %322, %321 : vector<2x128xf32>
    %324 = arith.divf %322, %323 : vector<2x128xf32>
    %325 = vector.extract_strided_slice %312 {offsets = [0, 256], sizes = [2, 128], strides = [1, 1]} : vector<2x512xf32> to vector<2x128xf32>
    %326 = math.tanh %325 : vector<2x128xf32>
    %327 = vector.extract_strided_slice %312 {offsets = [0, 384], sizes = [2, 128], strides = [1, 1]} : vector<2x512xf32> to vector<2x128xf32>
    %328 = arith.negf %327 : vector<2x128xf32>
    %329 = math.exp %328 : vector<2x128xf32>
    %cst_105 = arith.constant 1.000000e+00 : f32
    %330 = vector.broadcast %cst_105 : f32 to vector<2x128xf32>
    %331 = arith.addf %330, %329 : vector<2x128xf32>
    %332 = arith.divf %330, %331 : vector<2x128xf32>
    %333 = arith.mulf %324, %261 : vector<2x128xf32>
    %334 = arith.mulf %318, %326 : vector<2x128xf32>
    %335 = arith.addf %333, %334 : vector<2x128xf32>
    %336 = math.tanh %335 : vector<2x128xf32>
    %337 = arith.mulf %332, %336 : vector<2x128xf32>
    %338 = arith.truncf %337 : vector<2x128xf32> to vector<2x128xbf16>
    %339 = arith.truncf %296 : vector<2x128xf32> to vector<2x128xbf16>
    %340 = tpu.concatenate %338, %339 in 1 : vector<2x128xbf16>, vector<2x128xbf16> -> vector<2x256xbf16>
    %c0_106 = arith.constant 0 : index
    %c0_107 = arith.constant 0 : index
    %341 = vector.load %arg5[%c0_106, %c0_107] : memref<256x512xbf16, #tpu.memory_space<vmem>>, vector<256x512xbf16>
    %cst_108 = arith.constant dense<0.000000e+00> : vector<2x512xf32>
    %342 = tpu.matmul %340, %341, %cst_108 {dimension_numbers = #tpu.dot_dimension_numbers<[1], [0], [0], [1], [0, 0, 1, 1], [], []>} : vector<2x256xbf16>, vector<256x512xbf16>, vector<2x512xf32> -> vector<2x512xf32>
    %c0_109 = arith.constant 0 : index
    %c0_110 = arith.constant 0 : index
    %343 = vector.load %arg6[%c0_109, %c0_110] : memref<1x512xf32, #tpu.memory_space<vmem>>, vector<1x512xf32>
    %344 = vector.broadcast %343 : vector<1x512xf32> to vector<2x512xf32>
    %345 = arith.addf %342, %344 : vector<2x512xf32>
    %346 = vector.extract_strided_slice %345 {offsets = [0, 0], sizes = [2, 128], strides = [1, 1]} : vector<2x512xf32> to vector<2x128xf32>
    %347 = arith.negf %346 : vector<2x128xf32>
    %348 = math.exp %347 : vector<2x128xf32>
    %cst_111 = arith.constant 1.000000e+00 : f32
    %349 = vector.broadcast %cst_111 : f32 to vector<2x128xf32>
    %350 = arith.addf %349, %348 : vector<2x128xf32>
    %351 = arith.divf %349, %350 : vector<2x128xf32>
    %352 = vector.extract_strided_slice %345 {offsets = [0, 128], sizes = [2, 128], strides = [1, 1]} : vector<2x512xf32> to vector<2x128xf32>
    %353 = arith.negf %352 : vector<2x128xf32>
    %354 = math.exp %353 : vector<2x128xf32>
    %cst_112 = arith.constant 1.000000e+00 : f32
    %355 = vector.broadcast %cst_112 : f32 to vector<2x128xf32>
    %356 = arith.addf %355, %354 : vector<2x128xf32>
    %357 = arith.divf %355, %356 : vector<2x128xf32>
    %358 = vector.extract_strided_slice %345 {offsets = [0, 256], sizes = [2, 128], strides = [1, 1]} : vector<2x512xf32> to vector<2x128xf32>
    %359 = math.tanh %358 : vector<2x128xf32>
    %360 = vector.extract_strided_slice %345 {offsets = [0, 384], sizes = [2, 128], strides = [1, 1]} : vector<2x512xf32> to vector<2x128xf32>
    %361 = arith.negf %360 : vector<2x128xf32>
    %362 = math.exp %361 : vector<2x128xf32>
    %cst_113 = arith.constant 1.000000e+00 : f32
    %363 = vector.broadcast %cst_113 : f32 to vector<2x128xf32>
    %364 = arith.addf %363, %362 : vector<2x128xf32>
    %365 = arith.divf %363, %364 : vector<2x128xf32>
    %366 = arith.mulf %357, %294 : vector<2x128xf32>
    %367 = arith.mulf %351, %359 : vector<2x128xf32>
    %368 = arith.addf %366, %367 : vector<2x128xf32>
    %369 = math.tanh %368 : vector<2x128xf32>
    %370 = arith.mulf %365, %369 : vector<2x128xf32>
    %c5_i32 = arith.constant 5 : i32
    %371 = arith.index_cast %c5_i32 : i32 to index
    %c0_114 = arith.constant 0 : index
    %c0_115 = arith.constant 0 : index
    %372 = vector.load %arg0[%371, %c0_114, %c0_115] : memref<8x2x768xbf16, #tpu.memory_space<vmem>>, vector<1x2x768xbf16>
    %373 = vector.shape_cast %372 : vector<1x2x768xbf16> to vector<2x768xbf16>
    %c0_116 = arith.constant 0 : index
    %c0_117 = arith.constant 0 : index
    %374 = vector.load %arg1[%c0_116, %c0_117] : memref<768x128xbf16, #tpu.memory_space<vmem>>, vector<768x128xbf16>
    %cst_118 = arith.constant dense<0.000000e+00> : vector<2x128xf32>
    %375 = tpu.matmul %373, %374, %cst_118 {dimension_numbers = #tpu.dot_dimension_numbers<[1], [0], [0], [1], [0, 0, 1, 1], [], []>} : vector<2x768xbf16>, vector<768x128xbf16>, vector<2x128xf32> -> vector<2x128xf32>
    %c0_119 = arith.constant 0 : index
    %c0_120 = arith.constant 0 : index
    %376 = vector.load %arg2[%c0_119, %c0_120] : memref<1x128xf32, #tpu.memory_space<vmem>>, vector<1x128xf32>
    %377 = vector.broadcast %376 : vector<1x128xf32> to vector<2x128xf32>
    %378 = arith.addf %375, %377 : vector<2x128xf32>
    %379 = arith.truncf %378 : vector<2x128xf32> to vector<2x128xbf16>
    %380 = arith.truncf %337 : vector<2x128xf32> to vector<2x128xbf16>
    %381 = tpu.concatenate %379, %380 in 1 : vector<2x128xbf16>, vector<2x128xbf16> -> vector<2x256xbf16>
    %c0_121 = arith.constant 0 : index
    %c0_122 = arith.constant 0 : index
    %382 = vector.load %arg3[%c0_121, %c0_122] : memref<256x512xbf16, #tpu.memory_space<vmem>>, vector<256x512xbf16>
    %cst_123 = arith.constant dense<0.000000e+00> : vector<2x512xf32>
    %383 = tpu.matmul %381, %382, %cst_123 {dimension_numbers = #tpu.dot_dimension_numbers<[1], [0], [0], [1], [0, 0, 1, 1], [], []>} : vector<2x256xbf16>, vector<256x512xbf16>, vector<2x512xf32> -> vector<2x512xf32>
    %c0_124 = arith.constant 0 : index
    %c0_125 = arith.constant 0 : index
    %384 = vector.load %arg4[%c0_124, %c0_125] : memref<1x512xf32, #tpu.memory_space<vmem>>, vector<1x512xf32>
    %385 = vector.broadcast %384 : vector<1x512xf32> to vector<2x512xf32>
    %386 = arith.addf %383, %385 : vector<2x512xf32>
    %387 = vector.extract_strided_slice %386 {offsets = [0, 0], sizes = [2, 128], strides = [1, 1]} : vector<2x512xf32> to vector<2x128xf32>
    %388 = arith.negf %387 : vector<2x128xf32>
    %389 = math.exp %388 : vector<2x128xf32>
    %cst_126 = arith.constant 1.000000e+00 : f32
    %390 = vector.broadcast %cst_126 : f32 to vector<2x128xf32>
    %391 = arith.addf %390, %389 : vector<2x128xf32>
    %392 = arith.divf %390, %391 : vector<2x128xf32>
    %393 = vector.extract_strided_slice %386 {offsets = [0, 128], sizes = [2, 128], strides = [1, 1]} : vector<2x512xf32> to vector<2x128xf32>
    %394 = arith.negf %393 : vector<2x128xf32>
    %395 = math.exp %394 : vector<2x128xf32>
    %cst_127 = arith.constant 1.000000e+00 : f32
    %396 = vector.broadcast %cst_127 : f32 to vector<2x128xf32>
    %397 = arith.addf %396, %395 : vector<2x128xf32>
    %398 = arith.divf %396, %397 : vector<2x128xf32>
    %399 = vector.extract_strided_slice %386 {offsets = [0, 256], sizes = [2, 128], strides = [1, 1]} : vector<2x512xf32> to vector<2x128xf32>
    %400 = math.tanh %399 : vector<2x128xf32>
    %401 = vector.extract_strided_slice %386 {offsets = [0, 384], sizes = [2, 128], strides = [1, 1]} : vector<2x512xf32> to vector<2x128xf32>
    %402 = arith.negf %401 : vector<2x128xf32>
    %403 = math.exp %402 : vector<2x128xf32>
    %cst_128 = arith.constant 1.000000e+00 : f32
    %404 = vector.broadcast %cst_128 : f32 to vector<2x128xf32>
    %405 = arith.addf %404, %403 : vector<2x128xf32>
    %406 = arith.divf %404, %405 : vector<2x128xf32>
    %407 = arith.mulf %398, %335 : vector<2x128xf32>
    %408 = arith.mulf %392, %400 : vector<2x128xf32>
    %409 = arith.addf %407, %408 : vector<2x128xf32>
    %410 = math.tanh %409 : vector<2x128xf32>
    %411 = arith.mulf %406, %410 : vector<2x128xf32>
    %412 = arith.truncf %411 : vector<2x128xf32> to vector<2x128xbf16>
    %413 = arith.truncf %370 : vector<2x128xf32> to vector<2x128xbf16>
    %414 = tpu.concatenate %412, %413 in 1 : vector<2x128xbf16>, vector<2x128xbf16> -> vector<2x256xbf16>
    %c0_129 = arith.constant 0 : index
    %c0_130 = arith.constant 0 : index
    %415 = vector.load %arg5[%c0_129, %c0_130] : memref<256x512xbf16, #tpu.memory_space<vmem>>, vector<256x512xbf16>
    %cst_131 = arith.constant dense<0.000000e+00> : vector<2x512xf32>
    %416 = tpu.matmul %414, %415, %cst_131 {dimension_numbers = #tpu.dot_dimension_numbers<[1], [0], [0], [1], [0, 0, 1, 1], [], []>} : vector<2x256xbf16>, vector<256x512xbf16>, vector<2x512xf32> -> vector<2x512xf32>
    %c0_132 = arith.constant 0 : index
    %c0_133 = arith.constant 0 : index
    %417 = vector.load %arg6[%c0_132, %c0_133] : memref<1x512xf32, #tpu.memory_space<vmem>>, vector<1x512xf32>
    %418 = vector.broadcast %417 : vector<1x512xf32> to vector<2x512xf32>
    %419 = arith.addf %416, %418 : vector<2x512xf32>
    %420 = vector.extract_strided_slice %419 {offsets = [0, 0], sizes = [2, 128], strides = [1, 1]} : vector<2x512xf32> to vector<2x128xf32>
    %421 = arith.negf %420 : vector<2x128xf32>
    %422 = math.exp %421 : vector<2x128xf32>
    %cst_134 = arith.constant 1.000000e+00 : f32
    %423 = vector.broadcast %cst_134 : f32 to vector<2x128xf32>
    %424 = arith.addf %423, %422 : vector<2x128xf32>
    %425 = arith.divf %423, %424 : vector<2x128xf32>
    %426 = vector.extract_strided_slice %419 {offsets = [0, 128], sizes = [2, 128], strides = [1, 1]} : vector<2x512xf32> to vector<2x128xf32>
    %427 = arith.negf %426 : vector<2x128xf32>
    %428 = math.exp %427 : vector<2x128xf32>
    %cst_135 = arith.constant 1.000000e+00 : f32
    %429 = vector.broadcast %cst_135 : f32 to vector<2x128xf32>
    %430 = arith.addf %429, %428 : vector<2x128xf32>
    %431 = arith.divf %429, %430 : vector<2x128xf32>
    %432 = vector.extract_strided_slice %419 {offsets = [0, 256], sizes = [2, 128], strides = [1, 1]} : vector<2x512xf32> to vector<2x128xf32>
    %433 = math.tanh %432 : vector<2x128xf32>
    %434 = vector.extract_strided_slice %419 {offsets = [0, 384], sizes = [2, 128], strides = [1, 1]} : vector<2x512xf32> to vector<2x128xf32>
    %435 = arith.negf %434 : vector<2x128xf32>
    %436 = math.exp %435 : vector<2x128xf32>
    %cst_136 = arith.constant 1.000000e+00 : f32
    %437 = vector.broadcast %cst_136 : f32 to vector<2x128xf32>
    %438 = arith.addf %437, %436 : vector<2x128xf32>
    %439 = arith.divf %437, %438 : vector<2x128xf32>
    %440 = arith.mulf %431, %368 : vector<2x128xf32>
    %441 = arith.mulf %425, %433 : vector<2x128xf32>
    %442 = arith.addf %440, %441 : vector<2x128xf32>
    %443 = math.tanh %442 : vector<2x128xf32>
    %444 = arith.mulf %439, %443 : vector<2x128xf32>
    %c6_i32 = arith.constant 6 : i32
    %445 = arith.index_cast %c6_i32 : i32 to index
    %c0_137 = arith.constant 0 : index
    %c0_138 = arith.constant 0 : index
    %446 = vector.load %arg0[%445, %c0_137, %c0_138] : memref<8x2x768xbf16, #tpu.memory_space<vmem>>, vector<1x2x768xbf16>
    %447 = vector.shape_cast %446 : vector<1x2x768xbf16> to vector<2x768xbf16>
    %c0_139 = arith.constant 0 : index
    %c0_140 = arith.constant 0 : index
    %448 = vector.load %arg1[%c0_139, %c0_140] : memref<768x128xbf16, #tpu.memory_space<vmem>>, vector<768x128xbf16>
    %cst_141 = arith.constant dense<0.000000e+00> : vector<2x128xf32>
    %449 = tpu.matmul %447, %448, %cst_141 {dimension_numbers = #tpu.dot_dimension_numbers<[1], [0], [0], [1], [0, 0, 1, 1], [], []>} : vector<2x768xbf16>, vector<768x128xbf16>, vector<2x128xf32> -> vector<2x128xf32>
    %c0_142 = arith.constant 0 : index
    %c0_143 = arith.constant 0 : index
    %450 = vector.load %arg2[%c0_142, %c0_143] : memref<1x128xf32, #tpu.memory_space<vmem>>, vector<1x128xf32>
    %451 = vector.broadcast %450 : vector<1x128xf32> to vector<2x128xf32>
    %452 = arith.addf %449, %451 : vector<2x128xf32>
    %453 = arith.truncf %452 : vector<2x128xf32> to vector<2x128xbf16>
    %454 = arith.truncf %411 : vector<2x128xf32> to vector<2x128xbf16>
    %455 = tpu.concatenate %453, %454 in 1 : vector<2x128xbf16>, vector<2x128xbf16> -> vector<2x256xbf16>
    %c0_144 = arith.constant 0 : index
    %c0_145 = arith.constant 0 : index
    %456 = vector.load %arg3[%c0_144, %c0_145] : memref<256x512xbf16, #tpu.memory_space<vmem>>, vector<256x512xbf16>
    %cst_146 = arith.constant dense<0.000000e+00> : vector<2x512xf32>
    %457 = tpu.matmul %455, %456, %cst_146 {dimension_numbers = #tpu.dot_dimension_numbers<[1], [0], [0], [1], [0, 0, 1, 1], [], []>} : vector<2x256xbf16>, vector<256x512xbf16>, vector<2x512xf32> -> vector<2x512xf32>
    %c0_147 = arith.constant 0 : index
    %c0_148 = arith.constant 0 : index
    %458 = vector.load %arg4[%c0_147, %c0_148] : memref<1x512xf32, #tpu.memory_space<vmem>>, vector<1x512xf32>
    %459 = vector.broadcast %458 : vector<1x512xf32> to vector<2x512xf32>
    %460 = arith.addf %457, %459 : vector<2x512xf32>
    %461 = vector.extract_strided_slice %460 {offsets = [0, 0], sizes = [2, 128], strides = [1, 1]} : vector<2x512xf32> to vector<2x128xf32>
    %462 = arith.negf %461 : vector<2x128xf32>
    %463 = math.exp %462 : vector<2x128xf32>
    %cst_149 = arith.constant 1.000000e+00 : f32
    %464 = vector.broadcast %cst_149 : f32 to vector<2x128xf32>
    %465 = arith.addf %464, %463 : vector<2x128xf32>
    %466 = arith.divf %464, %465 : vector<2x128xf32>
    %467 = vector.extract_strided_slice %460 {offsets = [0, 128], sizes = [2, 128], strides = [1, 1]} : vector<2x512xf32> to vector<2x128xf32>
    %468 = arith.negf %467 : vector<2x128xf32>
    %469 = math.exp %468 : vector<2x128xf32>
    %cst_150 = arith.constant 1.000000e+00 : f32
    %470 = vector.broadcast %cst_150 : f32 to vector<2x128xf32>
    %471 = arith.addf %470, %469 : vector<2x128xf32>
    %472 = arith.divf %470, %471 : vector<2x128xf32>
    %473 = vector.extract_strided_slice %460 {offsets = [0, 256], sizes = [2, 128], strides = [1, 1]} : vector<2x512xf32> to vector<2x128xf32>
    %474 = math.tanh %473 : vector<2x128xf32>
    %475 = vector.extract_strided_slice %460 {offsets = [0, 384], sizes = [2, 128], strides = [1, 1]} : vector<2x512xf32> to vector<2x128xf32>
    %476 = arith.negf %475 : vector<2x128xf32>
    %477 = math.exp %476 : vector<2x128xf32>
    %cst_151 = arith.constant 1.000000e+00 : f32
    %478 = vector.broadcast %cst_151 : f32 to vector<2x128xf32>
    %479 = arith.addf %478, %477 : vector<2x128xf32>
    %480 = arith.divf %478, %479 : vector<2x128xf32>
    %481 = arith.mulf %472, %409 : vector<2x128xf32>
    %482 = arith.mulf %466, %474 : vector<2x128xf32>
    %483 = arith.addf %481, %482 : vector<2x128xf32>
    %484 = math.tanh %483 : vector<2x128xf32>
    %485 = arith.mulf %480, %484 : vector<2x128xf32>
    %486 = arith.truncf %485 : vector<2x128xf32> to vector<2x128xbf16>
    %487 = arith.truncf %444 : vector<2x128xf32> to vector<2x128xbf16>
    %488 = tpu.concatenate %486, %487 in 1 : vector<2x128xbf16>, vector<2x128xbf16> -> vector<2x256xbf16>
    %c0_152 = arith.constant 0 : index
    %c0_153 = arith.constant 0 : index
    %489 = vector.load %arg5[%c0_152, %c0_153] : memref<256x512xbf16, #tpu.memory_space<vmem>>, vector<256x512xbf16>
    %cst_154 = arith.constant dense<0.000000e+00> : vector<2x512xf32>
    %490 = tpu.matmul %488, %489, %cst_154 {dimension_numbers = #tpu.dot_dimension_numbers<[1], [0], [0], [1], [0, 0, 1, 1], [], []>} : vector<2x256xbf16>, vector<256x512xbf16>, vector<2x512xf32> -> vector<2x512xf32>
    %c0_155 = arith.constant 0 : index
    %c0_156 = arith.constant 0 : index
    %491 = vector.load %arg6[%c0_155, %c0_156] : memref<1x512xf32, #tpu.memory_space<vmem>>, vector<1x512xf32>
    %492 = vector.broadcast %491 : vector<1x512xf32> to vector<2x512xf32>
    %493 = arith.addf %490, %492 : vector<2x512xf32>
    %494 = vector.extract_strided_slice %493 {offsets = [0, 0], sizes = [2, 128], strides = [1, 1]} : vector<2x512xf32> to vector<2x128xf32>
    %495 = arith.negf %494 : vector<2x128xf32>
    %496 = math.exp %495 : vector<2x128xf32>
    %cst_157 = arith.constant 1.000000e+00 : f32
    %497 = vector.broadcast %cst_157 : f32 to vector<2x128xf32>
    %498 = arith.addf %497, %496 : vector<2x128xf32>
    %499 = arith.divf %497, %498 : vector<2x128xf32>
    %500 = vector.extract_strided_slice %493 {offsets = [0, 128], sizes = [2, 128], strides = [1, 1]} : vector<2x512xf32> to vector<2x128xf32>
    %501 = arith.negf %500 : vector<2x128xf32>
    %502 = math.exp %501 : vector<2x128xf32>
    %cst_158 = arith.constant 1.000000e+00 : f32
    %503 = vector.broadcast %cst_158 : f32 to vector<2x128xf32>
    %504 = arith.addf %503, %502 : vector<2x128xf32>
    %505 = arith.divf %503, %504 : vector<2x128xf32>
    %506 = vector.extract_strided_slice %493 {offsets = [0, 256], sizes = [2, 128], strides = [1, 1]} : vector<2x512xf32> to vector<2x128xf32>
    %507 = math.tanh %506 : vector<2x128xf32>
    %508 = vector.extract_strided_slice %493 {offsets = [0, 384], sizes = [2, 128], strides = [1, 1]} : vector<2x512xf32> to vector<2x128xf32>
    %509 = arith.negf %508 : vector<2x128xf32>
    %510 = math.exp %509 : vector<2x128xf32>
    %cst_159 = arith.constant 1.000000e+00 : f32
    %511 = vector.broadcast %cst_159 : f32 to vector<2x128xf32>
    %512 = arith.addf %511, %510 : vector<2x128xf32>
    %513 = arith.divf %511, %512 : vector<2x128xf32>
    %514 = arith.mulf %505, %442 : vector<2x128xf32>
    %515 = arith.mulf %499, %507 : vector<2x128xf32>
    %516 = arith.addf %514, %515 : vector<2x128xf32>
    %517 = math.tanh %516 : vector<2x128xf32>
    %518 = arith.mulf %513, %517 : vector<2x128xf32>
    %c7_i32 = arith.constant 7 : i32
    %519 = arith.index_cast %c7_i32 : i32 to index
    %c0_160 = arith.constant 0 : index
    %c0_161 = arith.constant 0 : index
    %520 = vector.load %arg0[%519, %c0_160, %c0_161] : memref<8x2x768xbf16, #tpu.memory_space<vmem>>, vector<1x2x768xbf16>
    %521 = vector.shape_cast %520 : vector<1x2x768xbf16> to vector<2x768xbf16>
    %c0_162 = arith.constant 0 : index
    %c0_163 = arith.constant 0 : index
    %522 = vector.load %arg1[%c0_162, %c0_163] : memref<768x128xbf16, #tpu.memory_space<vmem>>, vector<768x128xbf16>
    %cst_164 = arith.constant dense<0.000000e+00> : vector<2x128xf32>
    %523 = tpu.matmul %521, %522, %cst_164 {dimension_numbers = #tpu.dot_dimension_numbers<[1], [0], [0], [1], [0, 0, 1, 1], [], []>} : vector<2x768xbf16>, vector<768x128xbf16>, vector<2x128xf32> -> vector<2x128xf32>
    %c0_165 = arith.constant 0 : index
    %c0_166 = arith.constant 0 : index
    %524 = vector.load %arg2[%c0_165, %c0_166] : memref<1x128xf32, #tpu.memory_space<vmem>>, vector<1x128xf32>
    %525 = vector.broadcast %524 : vector<1x128xf32> to vector<2x128xf32>
    %526 = arith.addf %523, %525 : vector<2x128xf32>
    %527 = arith.truncf %526 : vector<2x128xf32> to vector<2x128xbf16>
    %528 = arith.truncf %485 : vector<2x128xf32> to vector<2x128xbf16>
    %529 = tpu.concatenate %527, %528 in 1 : vector<2x128xbf16>, vector<2x128xbf16> -> vector<2x256xbf16>
    %c0_167 = arith.constant 0 : index
    %c0_168 = arith.constant 0 : index
    %530 = vector.load %arg3[%c0_167, %c0_168] : memref<256x512xbf16, #tpu.memory_space<vmem>>, vector<256x512xbf16>
    %cst_169 = arith.constant dense<0.000000e+00> : vector<2x512xf32>
    %531 = tpu.matmul %529, %530, %cst_169 {dimension_numbers = #tpu.dot_dimension_numbers<[1], [0], [0], [1], [0, 0, 1, 1], [], []>} : vector<2x256xbf16>, vector<256x512xbf16>, vector<2x512xf32> -> vector<2x512xf32>
    %c0_170 = arith.constant 0 : index
    %c0_171 = arith.constant 0 : index
    %532 = vector.load %arg4[%c0_170, %c0_171] : memref<1x512xf32, #tpu.memory_space<vmem>>, vector<1x512xf32>
    %533 = vector.broadcast %532 : vector<1x512xf32> to vector<2x512xf32>
    %534 = arith.addf %531, %533 : vector<2x512xf32>
    %535 = vector.extract_strided_slice %534 {offsets = [0, 0], sizes = [2, 128], strides = [1, 1]} : vector<2x512xf32> to vector<2x128xf32>
    %536 = arith.negf %535 : vector<2x128xf32>
    %537 = math.exp %536 : vector<2x128xf32>
    %cst_172 = arith.constant 1.000000e+00 : f32
    %538 = vector.broadcast %cst_172 : f32 to vector<2x128xf32>
    %539 = arith.addf %538, %537 : vector<2x128xf32>
    %540 = arith.divf %538, %539 : vector<2x128xf32>
    %541 = vector.extract_strided_slice %534 {offsets = [0, 128], sizes = [2, 128], strides = [1, 1]} : vector<2x512xf32> to vector<2x128xf32>
    %542 = arith.negf %541 : vector<2x128xf32>
    %543 = math.exp %542 : vector<2x128xf32>
    %cst_173 = arith.constant 1.000000e+00 : f32
    %544 = vector.broadcast %cst_173 : f32 to vector<2x128xf32>
    %545 = arith.addf %544, %543 : vector<2x128xf32>
    %546 = arith.divf %544, %545 : vector<2x128xf32>
    %547 = vector.extract_strided_slice %534 {offsets = [0, 256], sizes = [2, 128], strides = [1, 1]} : vector<2x512xf32> to vector<2x128xf32>
    %548 = math.tanh %547 : vector<2x128xf32>
    %549 = vector.extract_strided_slice %534 {offsets = [0, 384], sizes = [2, 128], strides = [1, 1]} : vector<2x512xf32> to vector<2x128xf32>
    %550 = arith.negf %549 : vector<2x128xf32>
    %551 = math.exp %550 : vector<2x128xf32>
    %cst_174 = arith.constant 1.000000e+00 : f32
    %552 = vector.broadcast %cst_174 : f32 to vector<2x128xf32>
    %553 = arith.addf %552, %551 : vector<2x128xf32>
    %554 = arith.divf %552, %553 : vector<2x128xf32>
    %555 = arith.mulf %546, %483 : vector<2x128xf32>
    %556 = arith.mulf %540, %548 : vector<2x128xf32>
    %557 = arith.addf %555, %556 : vector<2x128xf32>
    %558 = math.tanh %557 : vector<2x128xf32>
    %559 = arith.mulf %554, %558 : vector<2x128xf32>
    %560 = arith.truncf %559 : vector<2x128xf32> to vector<2x128xbf16>
    %561 = arith.truncf %518 : vector<2x128xf32> to vector<2x128xbf16>
    %562 = tpu.concatenate %560, %561 in 1 : vector<2x128xbf16>, vector<2x128xbf16> -> vector<2x256xbf16>
    %c0_175 = arith.constant 0 : index
    %c0_176 = arith.constant 0 : index
    %563 = vector.load %arg5[%c0_175, %c0_176] : memref<256x512xbf16, #tpu.memory_space<vmem>>, vector<256x512xbf16>
    %cst_177 = arith.constant dense<0.000000e+00> : vector<2x512xf32>
    %564 = tpu.matmul %562, %563, %cst_177 {dimension_numbers = #tpu.dot_dimension_numbers<[1], [0], [0], [1], [0, 0, 1, 1], [], []>} : vector<2x256xbf16>, vector<256x512xbf16>, vector<2x512xf32> -> vector<2x512xf32>
    %c0_178 = arith.constant 0 : index
    %c0_179 = arith.constant 0 : index
    %565 = vector.load %arg6[%c0_178, %c0_179] : memref<1x512xf32, #tpu.memory_space<vmem>>, vector<1x512xf32>
    %566 = vector.broadcast %565 : vector<1x512xf32> to vector<2x512xf32>
    %567 = arith.addf %564, %566 : vector<2x512xf32>
    %568 = vector.extract_strided_slice %567 {offsets = [0, 0], sizes = [2, 128], strides = [1, 1]} : vector<2x512xf32> to vector<2x128xf32>
    %569 = arith.negf %568 : vector<2x128xf32>
    %570 = math.exp %569 : vector<2x128xf32>
    %cst_180 = arith.constant 1.000000e+00 : f32
    %571 = vector.broadcast %cst_180 : f32 to vector<2x128xf32>
    %572 = arith.addf %571, %570 : vector<2x128xf32>
    %573 = arith.divf %571, %572 : vector<2x128xf32>
    %574 = vector.extract_strided_slice %567 {offsets = [0, 128], sizes = [2, 128], strides = [1, 1]} : vector<2x512xf32> to vector<2x128xf32>
    %575 = arith.negf %574 : vector<2x128xf32>
    %576 = math.exp %575 : vector<2x128xf32>
    %cst_181 = arith.constant 1.000000e+00 : f32
    %577 = vector.broadcast %cst_181 : f32 to vector<2x128xf32>
    %578 = arith.addf %577, %576 : vector<2x128xf32>
    %579 = arith.divf %577, %578 : vector<2x128xf32>
    %580 = vector.extract_strided_slice %567 {offsets = [0, 256], sizes = [2, 128], strides = [1, 1]} : vector<2x512xf32> to vector<2x128xf32>
    %581 = math.tanh %580 : vector<2x128xf32>
    %582 = vector.extract_strided_slice %567 {offsets = [0, 384], sizes = [2, 128], strides = [1, 1]} : vector<2x512xf32> to vector<2x128xf32>
    %583 = arith.negf %582 : vector<2x128xf32>
    %584 = math.exp %583 : vector<2x128xf32>
    %cst_182 = arith.constant 1.000000e+00 : f32
    %585 = vector.broadcast %cst_182 : f32 to vector<2x128xf32>
    %586 = arith.addf %585, %584 : vector<2x128xf32>
    %587 = arith.divf %585, %586 : vector<2x128xf32>
    %588 = arith.mulf %579, %516 : vector<2x128xf32>
    %589 = arith.mulf %573, %581 : vector<2x128xf32>
    %590 = arith.addf %588, %589 : vector<2x128xf32>
    %591 = math.tanh %590 : vector<2x128xf32>
    %592 = arith.mulf %587, %591 : vector<2x128xf32>
    %c8_i32 = arith.constant 8 : i32
    %c0_183 = arith.constant 0 : index
    %c0_184 = arith.constant 0 : index
    %593 = vector.load %arg7[%c0_183, %c0_184] : memref<1x128xf32, #tpu.memory_space<vmem>>, vector<1x128xf32>
    %594 = vector.broadcast %593 : vector<1x128xf32> to vector<2x128xf32>
    %595 = arith.mulf %592, %594 : vector<2x128xf32>
    %c0_185 = arith.constant 0 : index
    %c0_186 = arith.constant 0 : index
    %596 = vector.load %arg8[%c0_185, %c0_186] : memref<1x128xf32, #tpu.memory_space<vmem>>, vector<1x128xf32>
    %597 = vector.broadcast %596 : vector<1x128xf32> to vector<2x128xf32>
    %598 = arith.addf %595, %597 : vector<2x128xf32>
    %599 = arith.truncf %598 : vector<2x128xf32> to vector<2x128xbf16>
    %c0_187 = arith.constant 0 : index
    %c0_188 = arith.constant 0 : index
    %600 = vector.load %arg9[%c0_187, %c0_188] : memref<128x128xbf16, #tpu.memory_space<vmem>>, vector<128x128xbf16>
    %cst_189 = arith.constant dense<0.000000e+00> : vector<2x128xf32>
    %601 = tpu.matmul %599, %600, %cst_189 {dimension_numbers = #tpu.dot_dimension_numbers<[1], [0], [0], [1], [0, 0, 1, 1], [], []>} : vector<2x128xbf16>, vector<128x128xbf16>, vector<2x128xf32> -> vector<2x128xf32>
    %c0_190 = arith.constant 0 : index
    %c0_191 = arith.constant 0 : index
    %602 = vector.load %arg10[%c0_190, %c0_191] : memref<1x128xf32, #tpu.memory_space<vmem>>, vector<1x128xf32>
    %603 = vector.broadcast %602 : vector<1x128xf32> to vector<2x128xf32>
    %604 = arith.addf %601, %603 : vector<2x128xf32>
    %c0_192 = arith.constant 0 : index
    %c0_193 = arith.constant 0 : index
    %605 = vector.load %arg11[%c0_192, %c0_193] : memref<1x128xf32, #tpu.memory_space<vmem>>, vector<1x128xf32>
    %606 = vector.broadcast %605 : vector<1x128xf32> to vector<2x128xf32>
    %607 = arith.mulf %604, %606 : vector<2x128xf32>
    %c0_194 = arith.constant 0 : index
    %c0_195 = arith.constant 0 : index
    %608 = vector.load %arg12[%c0_194, %c0_195] : memref<1x128xf32, #tpu.memory_space<vmem>>, vector<1x128xf32>
    %609 = vector.broadcast %608 : vector<1x128xf32> to vector<2x128xf32>
    %610 = arith.addf %607, %609 : vector<2x128xf32>
    %cst_196 = arith.constant 0.000000e+00 : f32
    %611 = vector.broadcast %cst_196 : f32 to vector<2x128xf32>
    %612 = arith.maximumf %610, %611 : vector<2x128xf32>
    %613 = arith.truncf %612 : vector<2x128xf32> to vector<2x128xbf16>
    %c0_197 = arith.constant 0 : index
    %c0_198 = arith.constant 0 : index
    %614 = vector.load %arg13[%c0_197, %c0_198] : memref<128x64xbf16, #tpu.memory_space<vmem>>, vector<128x64xbf16>
    %cst_199 = arith.constant dense<0.000000e+00> : vector<2x64xf32>
    %615 = tpu.matmul %613, %614, %cst_199 {dimension_numbers = #tpu.dot_dimension_numbers<[1], [0], [0], [1], [0, 0, 1, 1], [], []>} : vector<2x128xbf16>, vector<128x64xbf16>, vector<2x64xf32> -> vector<2x64xf32>
    %c0_200 = arith.constant 0 : index
    %c0_201 = arith.constant 0 : index
    %616 = vector.load %arg14[%c0_200, %c0_201] : memref<1x64xf32, #tpu.memory_space<vmem>>, vector<1x64xf32>
    %617 = vector.broadcast %616 : vector<1x64xf32> to vector<2x64xf32>
    %618 = arith.addf %615, %617 : vector<2x64xf32>
    %cst_202 = arith.constant 0.000000e+00 : f32
    %619 = vector.broadcast %cst_202 : f32 to vector<2x64xf32>
    %620 = arith.maximumf %618, %619 : vector<2x64xf32>
    %621 = arith.truncf %620 : vector<2x64xf32> to vector<2x64xbf16>
    %c0_203 = arith.constant 0 : index
    %c0_204 = arith.constant 0 : index
    %622 = vector.load %arg15[%c0_203, %c0_204] : memref<64x60xbf16, #tpu.memory_space<vmem>>, vector<64x60xbf16>
    %cst_205 = arith.constant dense<0.000000e+00> : vector<2x60xf32>
    %623 = tpu.matmul %621, %622, %cst_205 {dimension_numbers = #tpu.dot_dimension_numbers<[1], [0], [0], [1], [0, 0, 1, 1], [], []>} : vector<2x64xbf16>, vector<64x60xbf16>, vector<2x60xf32> -> vector<2x60xf32>
    %c0_206 = arith.constant 0 : index
    %c0_207 = arith.constant 0 : index
    %624 = vector.load %arg16[%c0_206, %c0_207] : memref<1x60xf32, #tpu.memory_space<vmem>>, vector<1x60xf32>
    %625 = vector.broadcast %624 : vector<1x60xf32> to vector<2x60xf32>
    %626 = arith.addf %623, %625 : vector<2x60xf32>
    %c0_208 = arith.constant 0 : index
    %c0_209 = arith.constant 0 : index
    %627 = vector.load %arg17[%c0_208, %c0_209] : memref<2x60xf32, #tpu.memory_space<vmem>>, vector<2x60xf32>
    tpu.vector_store %arg17[%c0_208, %c0_209], %626 {strides = array<i32>} : memref<2x60xf32, #tpu.memory_space<vmem>>, vector<2x60xf32>,
    return
  }
}

</mosaic_0001>

<bundles_post_ra>
// kernel: skim_network_forward.1
= control target key start
LH: loop header
LB: loop body
LE: loop exit
PB: predicated region body
PF: predicated region fallthrough
CT: control target
= control target key end

     0   :  { %s10537_s0 = inlined_call_operand.vmem [shape: bf16[8,2,768], index: 0, kind: input, shape index: {}]   ;;  %s10538_s1 = inlined_call_operand.vmem [shape: bf16[768,128], index: 1, kind: input, shape index: {}]   ;;  %s10539_s2 = inlined_call_operand.vmem [shape: f32[1,128], index: 2, kind: input, shape index: {}]   ;;  %s10540_s3 = inlined_call_operand.vmem [shape: bf16[256,512], index: 3, kind: input, shape index: {}]   ;;  %s10541_s4 = inlined_call_operand.vmem [shape: f32[1,512], index: 4, kind: input, shape index: {}]   ;;  %s10542_s5 = inlined_call_operand.vmem [shape: bf16[256,512], index: 5, kind: input, shape index: {}]   ;;  %s10543_s6 = inlined_call_operand.vmem [shape: f32[1,512], index: 6, kind: input, shape index: {}]   ;;  %s10544_s7 = inlined_call_operand.vmem [shape: f32[1,128], index: 7, kind: input, shape index: {}]   ;;  %s10545_s8 = inlined_call_operand.vmem [shape: f32[1,128], index: 8, kind: input, shape index: {}]   ;;  %s10546_s9 = inlined_call_operand.vmem [shape: bf16[128,128], index: 9, kind: input, shape index: {}]   ;;  %s10547_s10 = inlined_call_operand.vmem [shape: f32[1,128], index: 10, kind: input, shape index: {}]   ;;  %s10548_s11 = inlined_call_operand.vmem [shape: f32[1,128], index: 11, kind: input, shape index: {}]   ;;  %s10549_s12 = inlined_call_operand.vmem [shape: f32[1,128], index: 12, kind: input, shape index: {}]   ;;  %s10550_s13 = inlined_call_operand.vmem [shape: bf16[128,64], index: 13, kind: input, shape index: {}]   ;;  %s10551_s14 = inlined_call_operand.vmem [shape: f32[1,64], index: 14, kind: input, shape index: {}]   ;;  %s10552_s15 = inlined_call_operand.vmem [shape: bf16[64,60], index: 15, kind: input, shape index: {}]   ;;  %s10553_s16 = inlined_call_operand.vmem [shape: f32[1,60], index: 16, kind: input, shape index: {}]   ;;  %s10554_s17 = inlined_call_operand.hbm [shape: f32[2,60], index: 17, kind: output, shape index: {}]  }
   0x1   :  { %10901 = sst [smem:[#allocation155_spill]] %s10537_s0 }
   0x2   :  { %10902 = sst [smem:[#allocation156_spill]] %s10538_s1 }
   0x3   :  { %s10903_s26 = sld [smem:[#allocation156_spill]] }
   0x4   :  { %s10904_s27 = sld [smem:[#allocation155_spill]] }
   0x9   :  { %v5785_v0 = vld [vmem:[%s10903_s26 + $0x38] sm:$0xff]  ;;  %v5784_v2 = vld [vmem:[%s10903_s26 + $0x30] sm:$0xff]  ;;  %v5783_v8 = vld [vmem:[%s10903_s26 + $0x28] sm:$0xff] }
   0xa   :  { %v5793_v1 = vld [vmem:[%s10903_s26 + $0x78] sm:$0xff]  ;;  %461 = vmatpush.bf16.msra.mxu0 %v5785_v0  ;;  %v5792_v3 = vld [vmem:[%s10903_s26 + $0x70] sm:$0xff]  ;;  %v5791_v9 = vld [vmem:[%s10903_s26 + $0x68] sm:$0xff] }
   0xb   :  { %474 = vmatpush.bf16.msra.mxu1 %v5793_v1  ;;  %v5801_v4 = vld [vmem:[%s10903_s26 + $0xb8] sm:$0xff]  ;;  %v5800_v6 = vld [vmem:[%s10903_s26 + $0xb0] sm:$0xff]  ;;  %v5799_v10 = vld [vmem:[%s10903_s26 + $0xa8] sm:$0xff] }
   0xc   :  { %v5809_v5 = vld [vmem:[%s10903_s26 + $0xf8] sm:$0xff]  ;;  %487 = vmatpush.bf16.msra.mxu2 %v5801_v4  ;;  %v5808_v7 = vld [vmem:[%s10903_s26 + $0xf0] sm:$0xff]  ;;  %v5807_v11 = vld [vmem:[%s10903_s26 + $0xe8] sm:$0xff] }
   0xd   :  { %500 = vmatpush.bf16.msra.mxu3 %v5809_v5  ;;  %v5782_v12 = vld [vmem:[%s10903_s26 + $0x20] sm:$0xff]  ;;  %v5781_v16 = vld [vmem:[%s10903_s26 + $0x18] sm:$0xff] }
   0xe   :  { %462 = vmatpush.bf16.msra.mxu0 %v5784_v2  ;;  %v5790_v13 = vld [vmem:[%s10903_s26 + $0x60] sm:$0xff]  ;;  %v5789_v18 = vld [vmem:[%s10903_s26 + $0x58] sm:$0xff] }
   0xf   :  { %475 = vmatpush.bf16.msra.mxu1 %v5792_v3  ;;  %v58_v14 = vld [vmem:[%s10904_s27] sm:$0x3f]  ;;  %v5797_v19 = vld [vmem:[%s10903_s26 + $0x98] sm:$0xff] }
  0x10   :  { %488 = vmatpush.bf16.msra.mxu2 %v5800_v6  ;;  %v5798_v15 = vld [vmem:[%s10903_s26 + $0xa0] sm:$0xff]  ;;  %160 = vst [vmem:[#allocation1] ss:$9 sm:$0xff] %v58_v14  ;;  %v6602_v20 = vld [vmem:[%s10903_s26 + $0xd8] sm:$0xff] }
  0x11   :  { %501 = vmatpush.bf16.msra.mxu3 %v5808_v7  ;;  %v5806_v17 = vld [vmem:[%s10903_s26 + $0xe0] sm:$0xff] }
  0x12   :  { %463 = vmatpush.bf16.msra.mxu0 %v5783_v8 }
  0x13   :  { %476 = vmatpush.bf16.msra.mxu1 %v5791_v9 }
  0x14   :  { %489 = vmatpush.bf16.msra.mxu2 %v5799_v10 }
  0x15   :  { %502 = vmatpush.bf16.msra.mxu3 %v5807_v11 }
  0x16   :  { %464 = vmatpush.bf16.msra.mxu0 %v5782_v12 }
  0x17   :  { %477 = vmatpush.bf16.msra.mxu1 %v5790_v13 }
  0x18   :  { %490 = vmatpush.bf16.msra.mxu2 %v5798_v15 }
  0x19   :  { %503 = vmatpush.bf16.msra.mxu3 %v5806_v17 }
  0x1a   :  { %22 = vsyncpa [#allocation3], 0  ;;  %465 = vmatpush.bf16.msra.mxu0 %v5781_v16  ;;  %v5780_v21 = vld [vmem:[%s10903_s26 + $0x10] sm:$0xff]  ;;  %v5779_v25 = vld [vmem:[%s10903_s26 + $0x8] sm:$0xff]  ;;  %s4929_s25 = sshll.u32 %s10554_s17, 4  ;;  %s4930_s25 = int_to_ptr.hbm [resolvable:$true] %s4929_s25 }
  0x1b   :  { %478 = vmatpush.bf16.msra.mxu1 %v5789_v18  ;;  %v6610_v22 = vld [vmem:[%s10903_s26 + $0x50] sm:$0xff]  ;;  %v6628_v26 = vld [vmem:[%s10903_s26 + $0x48] sm:$0xff]  ;;  %v5778_v29 = vld [vmem:[%s10903_s26] sm:$0xff] }
  0x1c   :  { %491 = vmatpush.bf16.msra.mxu2 %v5797_v19  ;;  %v5796_v23 = vld [vmem:[%s10903_s26 + $0x90] sm:$0xff]  ;;  %v5795_v27 = vld [vmem:[%s10903_s26 + $0x88] sm:$0xff]  ;;  %v6646_v30 = vld [vmem:[%s10903_s26 + $0x40] sm:$0xff] }
  0x1d   :  { %504 = vmatpush.bf16.msra.mxu3 %v6602_v20  ;;  %v6619_v24 = vld [vmem:[%s10903_s26 + $0xd0] sm:$0xff]  ;;  %v6637_v28 = vld [vmem:[%s10903_s26 + $0xc8] sm:$0xff]  ;;  %v5817_v31 = vld [vmem:[%s10903_s26 + $0x138] sm:$0xff] }
  0x1e   :  { %466 = vmatpush.bf16.msra.mxu0 %v5780_v21  ;;  %v6654_v32 = vld [vmem:[%s10903_s26 + $0x178] sm:$0xff]  ;;  %v161_v33 = vld [vmem:[#allocation1] sm:$0xff]  ;;  %v5816_v36 = vld [vmem:[%s10903_s26 + $0x130] sm:$0xff] }
  0x1f   :  { %479 = vmatpush.bf16.msra.mxu1 %v6610_v22  ;;  %v5794_v34 = vld [vmem:[%s10903_s26 + $0x80] sm:$0xff]  ;;  %v6670_v37 = vld [vmem:[%s10903_s26 + $0x170] sm:$0xff]  ;;  %v5815_v52 = vld [vmem:[%s10903_s26 + $0x128] sm:$0xff] }
  0x20   :  { %492 = vmatpush.bf16.msra.mxu2 %v5796_v23  ;;  %v6662_v35 = vld [vmem:[%s10903_s26 + $0xc0] sm:$0xff]  ;;  %v162_v38 = vld [vmem:[#allocation1 + $0x9] sm:$0xff]  ;;  %v163_v39 = vld [vmem:[#allocation1 + $0x12] sm:$0xff] }
  0x21   :  { %505 = vmatpush.bf16.msra.mxu3 %v6619_v24  ;;  %v164_v40 = vld [vmem:[#allocation1 + $0x1b] sm:$0xff]  ;;  %v6674_v41 = vld [vmem:[#allocation1 + $0x24] sm:$0xff]  ;;  %v6676_v42 = vld [vmem:[#allocation1 + $0x2d] sm:$0xff] }
  0x22   :  { %467 = vmatpush.bf16.msra.mxu0 %v5779_v25  ;;  %v5648_v43 = vld [vmem:[%s10904_s27 + $0x6] sm:$0x3f]  ;;  %v5372_v44 = vld [vmem:[%s10540_s3 + $0x1e0] sm:$0xf]  ;;  %v5888_v45 = vld [vmem:[%s10540_s3 + $0x1ec] sm:$0xf0] }
  0x23   :  { %480 = vmatpush.bf16.msra.mxu1 %v6628_v26  ;;  %1666 = vst [vmem:[#allocation1] ss:$9 sm:$0xff] %v5648_v43  ;;  %v6688_v46 = vor.u32 %v5888_v45, %v5372_v44  ;;  %v5244_v47 = vld [vmem:[%s10540_s3 + $0xe0] sm:$0xf]  ;;  %v5856_v48 = vld [vmem:[%s10540_s3 + $0xec] sm:$0xf0] }
  0x24   :  { %493 = vmatpush.bf16.msra.mxu2 %v5795_v27  ;;  %v6697_v49 = vor.u32 %v5856_v48, %v5244_v47  ;;  %v5356_v50 = vld [vmem:[%s10540_s3 + $0x1c0] sm:$0xf]  ;;  %v5884_v51 = vld [vmem:[%s10540_s3 + $0x1cc] sm:$0xf0]  ;;  %v6712_v53 = vld [vmem:[%s10903_s26 + $0x168] sm:$0xff] }
  0x25   :  { %506 = vmatpush.bf16.msra.mxu3 %v6637_v28  ;;  %v6715_v54 = vor.u32 %v5884_v51, %v5356_v50  ;;  %v5228_v55 = vld [vmem:[%s10540_s3 + $0xc0] sm:$0xf]  ;;  %v5852_v56 = vld [vmem:[%s10540_s3 + $0xcc] sm:$0xf0]  ;;  %v5813_v4 = vld [vmem:[%s10903_s26 + $0x118] sm:$0xff] }
  0x26   :  { %468 = vmatpush.bf16.msra.mxu0 %v5778_v29  ;;  %10905 = vst [vmem:[#allocation5_spill] sm:$0xff] %v6697_v49  ;;  %v6724_v57 = vor.u32 %v5852_v56, %v5228_v55  ;;  %v5340_v58 = vld [vmem:[%s10540_s3 + $0x1a0] sm:$0xf]  ;;  %v5880_v59 = vld [vmem:[%s10540_s3 + $0x1ac] sm:$0xf0]  ;;  %v6766_v5 = vld [vmem:[%s10903_s26 + $0x158] sm:$0xff] }
  0x27   :  { %481 = vmatpush.bf16.msra.mxu1 %v6646_v30  ;;  %v5814_v60 = vld [vmem:[%s10903_s26 + $0x120] sm:$0xff]  ;;  %v6742_v62 = vor.u32 %v5880_v59, %v5340_v58  ;;  %v5848_v0 = vld [vmem:[%s10540_s3 + $0xac] sm:$0xf0]  ;;  %v5811_v12 = vld [vmem:[%s10903_s26 + $0x108] sm:$0xff] }
  0x28   :  { %494 = vmatpush.bf16.msra.mxu2 %v5794_v34  ;;  %10906 = vst [vmem:[#allocation6_spill] sm:$0xff] %v6724_v57  ;;  %v6739_v61 = vld [vmem:[%s10903_s26 + $0x160] sm:$0xff]  ;;  %v5876_v3 = vld [vmem:[%s10540_s3 + $0x18c] sm:$0xf0]  ;;  %v6798_v13 = vld [vmem:[%s10903_s26 + $0x148] sm:$0xff] }
  0x29   :  { %469 = vmatmul.bf16.vlgmr.msra.gmra.mxu0 %v161_v33  ;;  %507 = vmatpush.bf16.msra.mxu3 %v6662_v35  ;;  %v5212_v63 = vld [vmem:[%s10540_s3 + $0xa0] sm:$0xf]  ;;  %v5844_v8 = vld [vmem:[%s10540_s3 + $0x8c] sm:$0xf0]  ;;  %v5886_v14 = vld [vmem:[%s10540_s3 + $0x1e4] sm:$0xf] }
  0x2a   :  { %513 = vmatpush.bf16.msrb.mxu0 %v5817_v31  ;;  %482 = vmatmul.bf16.vlgmr.msra.gmra.mxu1 %v162_v38  ;;  %v6751_v1 = vor.u32 %v5848_v0, %v5212_v63  ;;  %v5324_v2 = vld [vmem:[%s10540_s3 + $0x180] sm:$0xf]  ;;  %v5812_v10 = vld [vmem:[%s10903_s26 + $0x110] sm:$0xff]  ;;  %v5854_v16 = vld [vmem:[%s10540_s3 + $0xe4] sm:$0xf] }
  0x2b   :  { %526 = vmatpush.bf16.msrb.mxu1 %v6654_v32  ;;  %495 = vmatmul.bf16.vlgmr.msra.gmra.mxu2 %v163_v39  ;;  %v6769_v6 = vor.u32 %v5876_v3, %v5324_v2  ;;  %v5196_v7 = vld [vmem:[%s10540_s3 + $0x80] sm:$0xf]  ;;  %v6787_v11 = vld [vmem:[%s10903_s26 + $0x150] sm:$0xff]  ;;  %v5882_v23 = vld [vmem:[%s10540_s3 + $0x1c4] sm:$0xf] }
  0x2c   :  { %508 = vmatmul.bf16.vlgmr.msra.gmra.mxu3 %v164_v40  ;;  %934 = vmatpush.bf16.msrb.mxu2 %v6697_v49  ;;  %10907 = vst [vmem:[#allocation7_spill] sm:$0xff] %v6751_v1  ;;  %v6778_v9 = vor.u32 %v5844_v8, %v5196_v7  ;;  %v5374_v15 = vld [vmem:[%s10540_s3 + $0x1f0] sm:$0xf0]  ;;  %v5810_v18 = vld [vmem:[%s10903_s26 + $0x100] sm:$0xff]  ;;  %v5872_v58 = vld [vmem:[%s10540_s3 + $0x16c] sm:$0xf0] }
  0x2d   :  { %947 = vmatpush.bf16.msrb.mxu3 %v6688_v46  ;;  %10908 = vst [vmem:[#allocation8_spill] sm:$0xff] %v6769_v6  ;;  %v5246_v17 = vld [vmem:[%s10540_s3 + $0xf0] sm:$0xf0]  ;;  %v6819_v19 = vld [vmem:[%s10903_s26 + $0x140] sm:$0xff]  ;;  %v6821_v21 = vor.u32 %v5886_v14, %v5374_v15  ;;  %v5840_v2 = vld [vmem:[%s10540_s3 + $0x6c] sm:$0xf0] }
  0x2e   :  { %514 = vmatpush.bf16.msrb.mxu0 %v5816_v36  ;;  %10909 = vst [vmem:[#allocation9_spill] sm:$0xff] %v6778_v9  ;;  %v6826_v25 = vor.u32 %v5854_v16, %v5246_v17  ;;  %v5358_v27 = vld [vmem:[%s10540_s3 + $0x1d0] sm:$0xf0]  ;;  %v5850_v29 = vld [vmem:[%s10540_s3 + $0xc4] sm:$0xf]  ;;  %v10966_v49 = vmov 0  }
  0x2f   :  { %527 = vmatpush.bf16.msrb.mxu1 %v6670_v37  ;;  %10910 = vst [vmem:[#allocation10_spill] sm:$0xff] %v6821_v21  ;;  %v5230_v31 = vld [vmem:[%s10540_s3 + $0xd0] sm:$0xf0]  ;;  %v6839_v33 = vor.u32 %v5882_v23, %v5358_v27  ;;  %v5878_v34 = vld [vmem:[%s10540_s3 + $0x1a4] sm:$0xf] }
  0x30   :  { %935 = vmatpush.bf16.msrb.mxu2 %v6724_v57  ;;  %10911 = vst [vmem:[#allocation11_spill] sm:$0xff] %v6826_v25  ;;  %v6845_v36 = vor.u32 %v5850_v29, %v5230_v31  ;;  %v5342_v38 = vld [vmem:[%s10540_s3 + $0x1b0] sm:$0xf0]  ;;  %v5846_v39 = vld [vmem:[%s10540_s3 + $0xa4] sm:$0xf] }
  0x31   :  { %948 = vmatpush.bf16.msrb.mxu3 %v6715_v54  ;;  %10912 = vst [vmem:[#allocation12_spill] sm:$0xff] %v6839_v33  ;;  %v5214_v40 = vld [vmem:[%s10540_s3 + $0xb0] sm:$0xf0]  ;;  %v6859_v43 = vor.u32 %v5878_v34, %v5342_v38  ;;  %v5874_v44 = vld [vmem:[%s10540_s3 + $0x184] sm:$0xf] }
  0x32   :  { %515 = vmatpush.bf16.msrb.mxu0 %v5815_v52  ;;  %10913 = vst [vmem:[#allocation13_spill] sm:$0xff] %v6845_v36  ;;  %v6865_v45 = vor.u32 %v5846_v39, %v5214_v40  ;;  %v5326_v47 = vld [vmem:[%s10540_s3 + $0x190] sm:$0xf0]  ;;  %v5870_v51 = vld [vmem:[%s10540_s3 + $0x164] sm:$0xf] }
  0x33   :  { %528 = vmatpush.bf16.msrb.mxu1 %v6712_v53  ;;  %10914 = vst [vmem:[#allocation14_spill] sm:$0xff] %v6859_v43  ;;  %v6877_v48 = vor.u32 %v5874_v44, %v5326_v47  ;;  %v5310_v52 = vld [vmem:[%s10540_s3 + $0x170] sm:$0xf0]  ;;  %v5308_v56 = vld [vmem:[%s10540_s3 + $0x160] sm:$0xf] }
  0x34   :  { %936 = vmatpush.bf16.msrb.mxu2 %v6751_v1  ;;  %10915 = vst [vmem:[#allocation15_spill] sm:$0xff] %v6865_v45  ;;  %v6889_v55 = vor.u32 %v5870_v51, %v5310_v52  ;;  %v5866_v59 = vld [vmem:[%s10540_s3 + $0x144] sm:$0xf]  ;;  %v5294_v63 = vld [vmem:[%s10540_s3 + $0x150] sm:$0xf0] }
  0x35   :  { %949 = vmatpush.bf16.msrb.mxu3 %v6742_v62  ;;  %10916 = vst [vmem:[#allocation16_spill] sm:$0xff] %v6877_v48  ;;  %v5180_v0 = vld [vmem:[%s10540_s3 + $0x60] sm:$0xf]  ;;  %v6913_v3 = vor.u32 %v5866_v59, %v5294_v63  ;;  %v5838_v7 = vld [vmem:[%s10540_s3 + $0x64] sm:$0xf] }
  0x36   :  { %516 = vmatpush.bf16.msrb.mxu0 %v5814_v60  ;;  %10918 = vst [vmem:[#allocation18_spill] sm:$0xff] %v6889_v55  ;;  %v6902_v60 = vor.u32 %v5872_v58, %v5308_v56  ;;  %v5182_v8 = vld [vmem:[%s10540_s3 + $0x70] sm:$0xf0]  ;;  %v5868_v14 = vld [vmem:[%s10540_s3 + $0x14c] sm:$0xf0] }
  0x37   :  { %529 = vmatpush.bf16.msrb.mxu1 %v6739_v61  ;;  %10920 = vst [vmem:[#allocation20_spill] sm:$0xff] %v6913_v3  ;;  %v5862_v15 = vld [vmem:[%s10540_s3 + $0x124] sm:$0xf]  ;;  %v5278_v16 = vld [vmem:[%s10540_s3 + $0x130] sm:$0xf0] }
  0x38   :  { %937 = vmatpush.bf16.msrb.mxu2 %v6778_v9  ;;  %10919 = vst [vmem:[#allocation19_spill] sm:$0xff] %v6902_v60  ;;  %v5164_v23 = vld [vmem:[%s10540_s3 + $0x40] sm:$0xf]  ;;  %v5836_v27 = vld [vmem:[%s10540_s3 + $0x4c] sm:$0xf0] }
  0x39   :  { %950 = vmatpush.bf16.msrb.mxu3 %v6769_v6  ;;  %v5834_v29 = vld [vmem:[%s10540_s3 + $0x44] sm:$0xf]  ;;  %v6954_v31 = vor.u32 %v5836_v27, %v5164_v23  ;;  %v5166_v34 = vld [vmem:[%s10540_s3 + $0x50] sm:$0xf0]  ;;  %v5276_v38 = vld [vmem:[%s10540_s3 + $0x120] sm:$0xf] }
  0x3a   :  { %517 = vmatpush.bf16.msrb.mxu0 %v5813_v4  ;;  %v6915_v4 = vor.u32 %v5840_v2, %v5180_v0  ;;  %v5864_v39 = vld [vmem:[%s10540_s3 + $0x12c] sm:$0xf0]  ;;  %v6965_v40 = vor.u32 %v5834_v29, %v5166_v34  ;;  %v5858_v44 = vld [vmem:[%s10540_s3 + $0x104] sm:$0xf]  ;;  %v5262_v47 = vld [vmem:[%s10540_s3 + $0x110] sm:$0xf0] }
  0x3b   :  { %530 = vmatpush.bf16.msrb.mxu1 %v6766_v5  ;;  %10925 = vst [vmem:[#allocation25_spill] sm:$0xff] %v6954_v31  ;;  %v5832_v51 = vld [vmem:[%s10540_s3 + $0x2c] sm:$0xf0]  ;;  %v5830_v52 = vld [vmem:[%s10540_s3 + $0x24] sm:$0xf]  ;;  %v6990_v58 = vor.u32 %v5858_v44, %v5262_v47 }
  0x3c   :  { %10921 = vst [vmem:[#allocation21_spill] sm:$0xff] %v6915_v4  ;;  %938 = vmatpush.bf16.msrb.mxu2 %v6915_v4  ;;  %v5150_v56 = vld [vmem:[%s10540_s3 + $0x30] sm:$0xf0]  ;;  %v5887_v63 = vld [vmem:[%s10540_s3 + $0x1ec] sm:$0xf] }
  0x3d   :  { %951 = vmatpush.bf16.msrb.mxu3 %v6902_v60  ;;  %10926 = vst [vmem:[#allocation26_spill] sm:$0xff] %v6965_v40  ;;  %v5382_v0 = vld [vmem:[%s10540_s3 + $0x1f8] sm:$0xf0]  ;;  %v7001_v2 = vor.u32 %v5830_v52, %v5150_v56  ;;  %v5134_v23 = vld [vmem:[%s10540_s3 + $0x10] sm:$0xf0] }
  0x3e   :  { %518 = vmatpush.bf16.msrb.mxu0 %v5812_v10  ;;  %v5292_v10 = vld [vmem:[%s10540_s3 + $0x140] sm:$0xf]  ;;  %10928 = vst [vmem:[#allocation28_spill] sm:$0xff] %v6990_v58  ;;  %v5380_v29 = vld [vmem:[%s10540_s3 + $0x1e8] sm:$0xf] }
  0x3f   :  { %531 = vmatpush.bf16.msrb.mxu1 %v6787_v11  ;;  %v6940_v17 = vor.u32 %v5868_v14, %v5292_v10  ;;  %10930 = vst [vmem:[#allocation30_spill] sm:$0xff] %v7001_v2  ;;  %v5860_v10 = vld [vmem:[%s10540_s3 + $0x10c] sm:$0xf0]  ;;  %v5132_v14 = vld [vmem:[%s10540_s3] sm:$0xf] }
  0x40   :  { %939 = vmatpush.bf16.msrb.mxu2 %v6954_v31  ;;  %v5889_v34 = vld [vmem:[%s10540_s3 + $0x1f4] sm:$0xf0]  ;;  %v5366_v47 = vld [vmem:[%s10540_s3 + $0x1d8] sm:$0xf0] }
  0x41   :  { %10923 = vst [vmem:[#allocation23_spill] sm:$0xff] %v6940_v17  ;;  %952 = vmatpush.bf16.msrb.mxu3 %v6940_v17  ;;  %v7039_v44 = vor.u32 %v5889_v34, %v5380_v29  ;;  %v5236_v29 = vld [vmem:[%s10540_s3 + $0xc8] sm:$0xf]  ;;  %v5853_v34 = vld [vmem:[%s10540_s3 + $0xd4] sm:$0xf0] }
  0x42   :  { %519 = vmatpush.bf16.msrb.mxu0 %v5811_v12  ;;  %v6927_v12 = vor.u32 %v5838_v7, %v5182_v8  ;;  %v7003_v7 = vor.u32 %v5887_v63, %v5382_v0  ;;  %v5260_v8 = vld [vmem:[%s10540_s3 + $0x100] sm:$0xf]  ;;  %v5855_v63 = vld [vmem:[%s10540_s3 + $0xec] sm:$0xf]  ;;  %v5254_v0 = vld [vmem:[%s10540_s3 + $0xf8] sm:$0xf0] }
  0x43   :  { %532 = vmatpush.bf16.msrb.mxu1 %v6798_v13  ;;  %v7024_v27 = vor.u32 %v5860_v10, %v5260_v8  ;;  %10934 = vst [vmem:[#allocation34_spill] sm:$0xff] %v7039_v44  ;;  %v5364_v8 = vld [vmem:[%s10540_s3 + $0x1c8] sm:$0xf] }
  0x44   :  { %10922 = vst [vmem:[#allocation22_spill] sm:$0xff] %v6927_v12 }
  0x45   :  { %10931 = vst [vmem:[#allocation31_spill] sm:$0xff] %v7003_v7 }
  0x46   :  { %520 = vmatpush.bf16.msrb.mxu0 %v5810_v18  ;;  %v6942_v18 = vor.u32 %v5862_v15, %v5278_v16  ;;  %v5828_v15 = vld [vmem:[%s10540_s3 + $0xc] sm:$0xf0]  ;;  %v5826_v16 = vld [vmem:[%s10540_s3 + $0x4] sm:$0xf]  ;;  %10932 = vst [vmem:[#allocation32_spill] sm:$0xff] %v7024_v27 }
  0x47   :  { %533 = vmatpush.bf16.msrb.mxu1 %v6819_v19  ;;  %v7052_v52 = vor.u32 %v5826_v16, %v5134_v23  ;;  %v5879_v16 = vld [vmem:[%s10540_s3 + $0x1ac] sm:$0xf]  ;;  %v5350_v23 = vld [vmem:[%s10540_s3 + $0x1b8] sm:$0xf0] }
  0x48   :  { %10924 = vst [vmem:[#allocation24_spill] sm:$0xff] %v6942_v18 }
  0x49   :  { %521 = vmatmul.bf16.vlgmr.msrb.gmra.mxu0 %v6674_v41  ;;  %v5842_v41 = vld [vmem:[%s10540_s3 + $0x84] sm:$0xf]  ;;  %10935 = vst [vmem:[#allocation35_spill] sm:$0xff] %v7052_v52 }
  0x4a   :  { %960 = vmatpush.bf16.msra.mxu0 %v6826_v25  ;;  %534 = vmatmul.bf16.vlgmr.msrb.gmra.mxu1 %v6676_v42  ;;  %v5198_v42 = vld [vmem:[%s10540_s3 + $0x90] sm:$0xf0] }
  0x4b   :  { %973 = vmatpush.bf16.msra.mxu1 %v6821_v21  ;;  %v6880_v50 = vor.u32 %v5842_v41, %v5198_v42  ;;  %v5148_v41 = vld [vmem:[%s10540_s3 + $0x20] sm:$0xf]  ;;  %v6977_v42 = vor.u32 %v5864_v39, %v5276_v38  ;;  %v5883_v38 = vld [vmem:[%s10540_s3 + $0x1cc] sm:$0xf]  ;;  %v7037_v39 = vor.u32 %v5828_v15, %v5132_v14  ;;  %v7067_v14 = vor.u32 %v5855_v63, %v5254_v0  ;;  %v5885_v15 = vld [vmem:[%s10540_s3 + $0x1d4] sm:$0xf0] }
  0x4c   :  { %v6992_v59 = vor.u32 %v5832_v51, %v5148_v41  ;;  %v5252_v41 = vld [vmem:[%s10540_s3 + $0xe8] sm:$0xf]  ;;  %v5857_v51 = vld [vmem:[%s10540_s3 + $0xf4] sm:$0xf0]  ;;  %v7054_v56 = vor.u32 %v5883_v38, %v5366_v47  ;;  %v5851_v38 = vld [vmem:[%s10540_s3 + $0xcc] sm:$0xf]  ;;  %v7090_v47 = vor.u32 %v5885_v15, %v5364_v8  ;;  %v7107_v8 = vor.u32 %v5853_v34, %v5236_v29 }
  0x4d   :  { %10917 = vst [vmem:[#allocation17_spill] sm:$0xff] %v6880_v50  ;;  %953 = vmatpush.bf16.msrb.mxu3 %v6977_v42  ;;  %v7065_v10 = vor.u32 %v5857_v51, %v5252_v41  ;;  %v5238_v41 = vld [vmem:[%s10540_s3 + $0xd8] sm:$0xf0]  ;;  %v7097_v51 = vor.u32 %v5879_v16, %v5350_v23  ;;  %v5348_v63 = vld [vmem:[%s10540_s3 + $0x1a8] sm:$0xf] }
  0x4e   :  { %961 = vmatpush.bf16.msra.mxu0 %v6845_v36  ;;  %10927 = vst [vmem:[#allocation27_spill] sm:$0xff] %v6977_v42  ;;  %940 = vmatpush.bf16.msrb.mxu2 %v6992_v59  ;;  %v5881_v0 = vld [vmem:[%s10540_s3 + $0x1b4] sm:$0xf0]  ;;  %v7109_v15 = vor.u32 %v5851_v38, %v5238_v41  ;;  %v5875_v16 = vld [vmem:[%s10540_s3 + $0x18c] sm:$0xf] }
  0x4f   :  { %974 = vmatpush.bf16.msra.mxu1 %v6839_v33  ;;  %10929 = vst [vmem:[#allocation29_spill] sm:$0xff] %v6992_v59  ;;  %v5334_v23 = vld [vmem:[%s10540_s3 + $0x198] sm:$0xf0]  ;;  %v5220_v29 = vld [vmem:[%s10540_s3 + $0xa8] sm:$0xf] }
  0x50   :  { %10933 = vst [vmem:[#allocation33_spill] sm:$0xff] %v7037_v39  ;;  %v5849_v34 = vld [vmem:[%s10540_s3 + $0xb4] sm:$0xf0]  ;;  %v5847_v38 = vld [vmem:[%s10540_s3 + $0xac] sm:$0xf] }
  0x51   :  { %10936 = vst [vmem:[#allocation36_spill] sm:$0xff] %v7054_v56  ;;  %954 = vmatpush.bf16.msrb.mxu3 %v7024_v27  ;;  %v7135_v41 = vor.u32 %v5849_v34, %v5220_v29  ;;  %v10571_v29 = vmov 0   ;;  %v5831_v59 = vld [vmem:[%s10540_s3 + $0x2c] sm:$0xf] }
  0x52   :  { %962 = vmatpush.bf16.msra.mxu0 %v6865_v45  ;;  %10937 = vst [vmem:[#allocation37_spill] sm:$0xff] %v7065_v10  ;;  %941 = vmatpush.bf16.msrb.mxu2 %v7037_v39 }
  0x53   :  { %975 = vmatpush.bf16.msra.mxu1 %v6859_v43  ;;  %10938 = vst [vmem:[#allocation38_spill] sm:$0xff] %v7067_v14 }
  0x54   :  { %10939 = vst [vmem:[#allocation39_spill] sm:$0xff] %v7090_v47  ;;  %955 = vmatmul.bf16.vlgmr.msrb.gmra.mxu3 %v10571_v29 }
  0x55   :  { %999 = vmatpush.bf16.msra.mxu3 %v7039_v44  ;;  %10940 = vst [vmem:[#allocation40_spill] sm:$0xff] %v7097_v51 }
  0x56   :  { %963 = vmatpush.bf16.msra.mxu0 %v6880_v50  ;;  %986 = vmatpush.bf16.msra.mxu2 %v7065_v10  ;;  %10941 = vst [vmem:[#allocation41_spill] sm:$0xff] %v7107_v8  ;;  %v5873_v50 = vld [vmem:[%s10540_s3 + $0x174] sm:$0xf0] }
  0x57   :  { %976 = vmatpush.bf16.msra.mxu1 %v6877_v48  ;;  %10942 = vst [vmem:[#allocation42_spill] sm:$0xff] %v7109_v15 }
  0x58   :  { %10945 = vst [vmem:[#allocation45_spill] sm:$0xff] %v7135_v41 }
  0x59   :  { %1000 = vmatpush.bf16.msra.mxu3 %v7090_v47 }
  0x5a   :  { %964 = vmatpush.bf16.msra.mxu0 %v6927_v12  ;;  %987 = vmatpush.bf16.msra.mxu2 %v7107_v8 }
  0x5b   :  { %977 = vmatpush.bf16.msra.mxu1 %v6889_v55 }
  0x5e   :  { %965 = vmatpush.bf16.msra.mxu0 %v6965_v40  ;;  %988 = vmatpush.bf16.msra.mxu2 %v7135_v41  ;;  %v5867_v41 = vld [vmem:[%s10540_s3 + $0x14c] sm:$0xf] }
  0x5f   :  { %978 = vmatpush.bf16.msra.mxu1 %v6913_v3 }
  0x62   :  { %966 = vmatpush.bf16.msra.mxu0 %v7001_v2  ;;  %v7121_v2 = vor.u32 %v5875_v16, %v5334_v23  ;;  %v5332_v16 = vld [vmem:[%s10540_s3 + $0x188] sm:$0xf]  ;;  %v5877_v23 = vld [vmem:[%s10540_s3 + $0x194] sm:$0xf0] }
  0x63   :  { %979 = vmatpush.bf16.msra.mxu1 %v6942_v18  ;;  %v7152_v34 = vor.u32 %v5877_v23, %v5332_v16  ;;  %v5845_v16 = vld [vmem:[%s10540_s3 + $0x94] sm:$0xf0]  ;;  %v5843_v23 = vld [vmem:[%s10540_s3 + $0x8c] sm:$0xf] }
  0x64   :  { %10944 = vst [vmem:[#allocation44_spill] sm:$0xff] %v7121_v2 }
  0x65   :  { %10947 = vst [vmem:[#allocation47_spill] sm:$0xff] %v7152_v34 }
  0x66   :  { %967 = vmatpush.bf16.msra.mxu0 %v7052_v52  ;;  %v7118_v52 = vor.u32 %v5881_v0, %v5348_v63  ;;  %v5222_v63 = vld [vmem:[%s10540_s3 + $0xb8] sm:$0xf0] }
  0x67   :  { %980 = vmatpush.bf16.msra.mxu1 %v6990_v58  ;;  %v7141_v0 = vor.u32 %v5847_v38, %v5222_v63  ;;  %v5871_v38 = vld [vmem:[%s10540_s3 + $0x16c] sm:$0xf]  ;;  %v5318_v63 = vld [vmem:[%s10540_s3 + $0x178] sm:$0xf0] }
  0x68   :  { %10943 = vst [vmem:[#allocation43_spill] sm:$0xff] %v7118_v52  ;;  %1001 = vmatpush.bf16.msra.mxu3 %v7118_v52 }
  0x69   :  { %10946 = vst [vmem:[#allocation46_spill] sm:$0xff] %v7141_v0 }
  0x6a   :  { %1012 = vmatpush.bf16.msrb.mxu0 %v7067_v14  ;;  %981 = vmatmul.bf16.vlgmr.msra.gmra.mxu1 %v10571_v29  ;;  %v5206_v14 = vld [vmem:[%s10540_s3 + $0x98] sm:$0xf0]  ;;  %v5316_v29 = vld [vmem:[%s10540_s3 + $0x168] sm:$0xf] }
  0x6b   :  { %1025 = vmatpush.bf16.msrb.mxu1 %v7003_v7 }
  0x6c   :  { %1002 = vmatpush.bf16.msra.mxu3 %v7152_v34 }
  0x6e   :  { %1013 = vmatpush.bf16.msrb.mxu0 %v7109_v15  ;;  %v5204_v15 = vld [vmem:[%s10540_s3 + $0x88] sm:$0xf] }
  0x6f   :  { %1026 = vmatpush.bf16.msrb.mxu1 %v7054_v56 }
  0x72   :  { %1014 = vmatpush.bf16.msrb.mxu0 %v7141_v0  ;;  %v7164_v0 = vor.u32 %v5871_v38, %v5318_v63  ;;  %v7180_v38 = vor.u32 %v5845_v16, %v5204_v15  ;;  %v7182_v63 = vor.u32 %v5843_v23, %v5206_v14  ;;  %v7196_v14 = vor.u32 %v5873_v50, %v5316_v29  ;;  %v5302_v15 = vld [vmem:[%s10540_s3 + $0x158] sm:$0xf0]  ;;  %v5188_v16 = vld [vmem:[%s10540_s3 + $0x68] sm:$0xf]  ;;  %v5841_v23 = vld [vmem:[%s10540_s3 + $0x74] sm:$0xf0] }
  0x73   :  { %1027 = vmatpush.bf16.msrb.mxu1 %v7097_v51  ;;  %v7207_v45 = vor.u32 %v5867_v41, %v5302_v15  ;;  %v7209_v8 = vor.u32 %v5841_v23, %v5188_v16  ;;  %v5839_v50 = vld [vmem:[%s10540_s3 + $0x6c] sm:$0xf]  ;;  %v5190_v29 = vld [vmem:[%s10540_s3 + $0x78] sm:$0xf0]  ;;  %v5300_v41 = vld [vmem:[%s10540_s3 + $0x148] sm:$0xf] }
  0x74   :  { %10948 = vst [vmem:[#allocation48_spill] sm:$0xff] %v7164_v0  ;;  %989 = vmatpush.bf16.msra.mxu2 %v7180_v38  ;;  %1003 = vmatpush.bf16.msra.mxu3 %v7196_v14  ;;  %v5869_v15 = vld [vmem:[%s10540_s3 + $0x154] sm:$0xf0]  ;;  %v5863_v16 = vld [vmem:[%s10540_s3 + $0x12c] sm:$0xf] }
  0x75   :  { %10949 = vst [vmem:[#allocation49_spill] sm:$0xff] %v7180_v38  ;;  %v7232_v23 = vor.u32 %v5869_v15, %v5300_v41  ;;  %v5837_v38 = vld [vmem:[%s10540_s3 + $0x54] sm:$0xf0]  ;;  %v5835_v41 = vld [vmem:[%s10540_s3 + $0x4c] sm:$0xf] }
  0x76   :  { %10950 = vst [vmem:[#allocation50_spill] sm:$0xff] %v7182_v63  ;;  %1015 = vmatpush.bf16.msrb.mxu0 %v7182_v63  ;;  %v7218_v63 = vor.u32 %v5839_v50, %v5190_v29  ;;  %v5286_v50 = vld [vmem:[%s10540_s3 + $0x138] sm:$0xf0]  ;;  %v5172_v29 = vld [vmem:[%s10540_s3 + $0x48] sm:$0xf] }
  0x77   :  { %1028 = vmatpush.bf16.msrb.mxu1 %v7121_v2  ;;  %10951 = vst [vmem:[#allocation51_spill] sm:$0xff] %v7196_v14  ;;  %v7243_v36 = vor.u32 %v5863_v16, %v5286_v50  ;;  %v7245_v10 = vor.u32 %v5837_v38, %v5172_v29  ;;  %v5174_v15 = vld [vmem:[%s10540_s3 + $0x58] sm:$0xf0]  ;;  %v5865_v38 = vld [vmem:[%s10540_s3 + $0x134] sm:$0xf0] }
  0x78   :  { %10952 = vst [vmem:[#allocation52_spill] sm:$0xff] %v7207_v45  ;;  %990 = vmatpush.bf16.msra.mxu2 %v7209_v8  ;;  %1004 = vmatpush.bf16.msra.mxu3 %v7232_v23  ;;  %v7257_v16 = vor.u32 %v5835_v41, %v5174_v15  ;;  %v5859_v50 = vld [vmem:[%s10540_s3 + $0x10c] sm:$0xf]  ;;  %v5270_v29 = vld [vmem:[%s10540_s3 + $0x118] sm:$0xf0] }
  0x79   :  { %10953 = vst [vmem:[#allocation53_spill] sm:$0xff] %v7209_v8  ;;  %v5156_v41 = vld [vmem:[%s10540_s3 + $0x28] sm:$0xf]  ;;  %v5833_v15 = vld [vmem:[%s10540_s3 + $0x34] sm:$0xf0] }
  0x7a   :  { %10954 = vst [vmem:[#allocation54_spill] sm:$0xff] %v7218_v63  ;;  %1016 = vmatpush.bf16.msrb.mxu0 %v7218_v63  ;;  %v5284_v63 = vld [vmem:[%s10540_s3 + $0x128] sm:$0xf] }
  0x7b   :  { %1029 = vmatpush.bf16.msrb.mxu1 %v7164_v0  ;;  %10955 = vst [vmem:[#allocation55_spill] sm:$0xff] %v7232_v23 }
  0x7c   :  { %10956 = vst [vmem:[#allocation56_spill] sm:$0xff] %v7243_v36  ;;  %991 = vmatpush.bf16.msra.mxu2 %v7245_v10 }
  0x7d   :  { %10957 = vst [vmem:[#allocation57_spill] sm:$0xff] %v7245_v10  ;;  %v5976_v10 = vld [vmem:[%s10539_s2] ss:$0 sm:$0xff] }
  0x7e   :  { %10958 = vst [vmem:[#allocation58_spill] sm:$0xff] %v7257_v16  ;;  %1017 = vmatpush.bf16.msrb.mxu0 %v7257_v16  ;;  %v5140_v16 = vld [vmem:[%s10540_s3 + $0x8] sm:$0xf] }
  0x7f   :  { %1030 = vmatpush.bf16.msrb.mxu1 %v7207_v45 }
  0x83   :  { %1031 = vmatpush.bf16.msrb.mxu1 %v7243_v36 }
  0xa6   :  { %v7175_v40 = vpop.f32.mrf.mxu0 }
  0xa7   :  { %v7177_v12 = vpop.f32.mrf.mxu1  ;;  %v471_v57 = vadd.f32 %v5976_v10, %v7175_v40  ;;  %v5952_v40 = vld [vmem:[%s10542_s5 + $0x1ec] sm:$0xf0]  ;;  %v5615_v10 = vld [vmem:[%s10542_s5 + $0x1c0] sm:$0xf] }
  0xae   :  { %v472_v8 = vpop.f32.mrf.mxu0  ;;  %v496_v25 = vpop.f32.mrf.mxu2 }
  0xaf   :  { %v485_v39 = vpop.f32.mrf.mxu1  ;;  %v7271_v8 = vor.u32 %v5859_v50, %v5270_v29  ;;  %v509_v31 = vpop.f32.mrf.mxu3  ;;  %v5268_v50 = vld [vmem:[%s10540_s3 + $0x108] sm:$0xf]  ;;  %v5861_v29 = vld [vmem:[%s10540_s3 + $0x114] sm:$0xf0] }
  0xb0   :  { %v7269_v39 = vor.u32 %v5865_v38, %v5284_v63  ;;  %v7284_v63 = vor.u32 %v5833_v15, %v5156_v41  ;;  %v5158_v38 = vld [vmem:[%s10540_s3 + $0x38] sm:$0xf0]  ;;  %v5829_v41 = vld [vmem:[%s10540_s3 + $0x14] sm:$0xf0]  ;;  %v5827_v15 = vld [vmem:[%s10540_s3 + $0xc] sm:$0xf] }
  0xb1   :  { %10960 = vst [vmem:[#allocation60_spill] sm:$0xff] %v7271_v8  ;;  %v7295_v4 = vor.u32 %v5831_v59, %v5158_v38  ;;  %v7310_v59 = vor.u32 %v5861_v29, %v5268_v50  ;;  %v5142_v38 = vld [vmem:[%s10540_s3 + $0x18] sm:$0xf0]  ;;  %1032 = vmatpush.bf16.msrb.mxu1 %v7271_v8  ;;  %v7318_v9 = vor.u32 %v5829_v41, %v5140_v16  ;;  %v5631_v16 = vld [vmem:[%s10542_s5 + $0x1e0] sm:$0xf] }
  0xb2   :  { %10959 = vst [vmem:[#allocation59_spill] sm:$0xff] %v7269_v39  ;;  %1005 = vmatpush.bf16.msra.mxu3 %v7269_v39  ;;  %992 = vmatpush.bf16.msra.mxu2 %v7284_v63  ;;  %v7320_v1 = vor.u32 %v5827_v15, %v5142_v38  ;;  %v7338_v41 = vor.u32 %v5952_v40, %v5631_v16  ;;  %v5948_v15 = vld [vmem:[%s10542_s5 + $0x1cc] sm:$0xf0]  ;;  %v5599_v38 = vld [vmem:[%s10542_s5 + $0x1a0] sm:$0xf] }
  0xb3   :  { %10961 = vst [vmem:[#allocation61_spill] sm:$0xff] %v7284_v63  ;;  %1018 = vmatpush.bf16.msrb.mxu0 %v7295_v4  ;;  %v5633_v16 = vld [vmem:[%s10542_s5 + $0x1f0] sm:$0xf0]  ;;  %v5942_v63 = vld [vmem:[%s10542_s5 + $0x1a4] sm:$0xf] }
  0xb4   :  { %10962 = vst [vmem:[#allocation62_spill] sm:$0xff] %v7295_v4  ;;  %1033 = vmatmul.bf16.vlgmr.msrb.gmra.mxu1 %v10966_v49  ;;  %v484_v4 = vadd.f32 %v7177_v12, %v471_v57  ;;  %v7344_v57 = vor.u32 %v5948_v15, %v5615_v10  ;;  %v5617_v10 = vld [vmem:[%s10542_s5 + $0x1d0] sm:$0xf0] }
  0xb5   :  { %10963 = vst [vmem:[#allocation63_spill] sm:$0xff] %v7310_v59 }
  0xb6   :  { %10964 = vst [vmem:[#allocation64_spill] sm:$0xff] %v7318_v9  ;;  %1006 = vmatpush.bf16.msra.mxu3 %v7310_v59  ;;  %v498_v50 = vpop.f32.mrf.mxu2  ;;  %993 = vmatpush.bf16.msra.mxu2 %v7318_v9  ;;  %v497_v12 = vadd.f32 %v496_v25, %v484_v4  ;;  %v5946_v25 = vld [vmem:[%s10542_s5 + $0x1c4] sm:$0xf] }
  0xb7   :  { %10965 = vst [vmem:[#allocation65_spill] sm:$0xff] %v7320_v1  ;;  %v511_v29 = vpop.f32.mrf.mxu3  ;;  %1019 = vmatpush.bf16.msrb.mxu0 %v7320_v1  ;;  %v5944_v50 = vld [vmem:[%s10542_s5 + $0x1ac] sm:$0xf0]  ;;  %v5583_v1 = vld [vmem:[%s10542_s5 + $0x180] sm:$0xf] }
  0xb8   :  { %10967 = vst [vmem:[#allocation66_spill] sm:$0xff] %v7338_v41  ;;  %v5950_v29 = vld [vmem:[%s10542_s5 + $0x1e4] sm:$0xf]  ;;  %v7364_v4 = vor.u32 %v5944_v50, %v5599_v38  ;;  %v510_v15 = vadd.f32 %v509_v31, %v497_v12  ;;  %v5601_v31 = vld [vmem:[%s10542_s5 + $0x1b0] sm:$0xf0] }
  0xb9   :  { %1007 = vmatmul.bf16.vlgmr.msra.gmra.mxu3 %v10966_v49  ;;  %10968 = vst [vmem:[#allocation67_spill] sm:$0xff] %v7344_v57  ;;  %v7358_v40 = vor.u32 %v5950_v29, %v5633_v16  ;;  %v5940_v29 = vld [vmem:[%s10542_s5 + $0x18c] sm:$0xf0]  ;;  %v7376_v16 = vor.u32 %v5946_v25, %v5617_v10  ;;  %v5567_v25 = vld [vmem:[%s10542_s5 + $0x160] sm:$0xf]  ;;  %v7394_v10 = vor.u32 %v5942_v63, %v5601_v31 }
  0xba   :  { %1509 = vmatpush.bf16.msrb.mxu3 %v7338_v41  ;;  %10970 = vst [vmem:[#allocation69_spill] sm:$0xff] %v7364_v4  ;;  %v7385_v12 = vor.u32 %v5940_v29, %v5583_v1  ;;  %v5585_v1 = vld [vmem:[%s10542_s5 + $0x190] sm:$0xf0]  ;;  %v5551_v63 = vld [vmem:[%s10542_s5 + $0x140] sm:$0xf] }
  0xbb   :  { %10969 = vst [vmem:[#allocation68_spill] sm:$0xff] %v7358_v40  ;;  %1535 = vmatpush.bf16.msra.mxu1 %v7358_v40 }
  0xbc   :  { %10971 = vst [vmem:[#allocation70_spill] sm:$0xff] %v7376_v16 }
  0xbd   :  { %10972 = vst [vmem:[#allocation71_spill] sm:$0xff] %v7385_v12 }
  0xbe   :  { %1510 = vmatpush.bf16.msrb.mxu3 %v7344_v57  ;;  %10973 = vst [vmem:[#allocation72_spill] sm:$0xff] %v7394_v10 }
  0xbf   :  { %1536 = vmatpush.bf16.msra.mxu1 %v7376_v16 }
  0xc2   :  { %1511 = vmatpush.bf16.msrb.mxu3 %v7364_v4  ;;  %v5938_v4 = vld [vmem:[%s10542_s5 + $0x184] sm:$0xf] }
  0xc3   :  { %1537 = vmatpush.bf16.msra.mxu1 %v7394_v10  ;;  %v7412_v31 = vor.u32 %v5938_v4, %v5585_v1  ;;  %v5928_v4 = vld [vmem:[%s10542_s5 + $0x12c] sm:$0xf0] }
  0xc5   :  { %10975 = vst [vmem:[#allocation74_spill] sm:$0xff] %v7412_v31 }
  0xc6   :  { %v522_v9 = vpop.f32.mrf.mxu0  ;;  %1512 = vmatpush.bf16.msrb.mxu3 %v7385_v12 }
  0xc7   :  { %v535_v38 = vpop.f32.mrf.mxu1  ;;  %v523_v50 = vadd.f32 %v522_v9, %v510_v15  ;;  %v5936_v9 = vld [vmem:[%s10542_s5 + $0x16c] sm:$0xf0]  ;;  %1538 = vmatpush.bf16.msra.mxu1 %v7412_v31 }
  0xc8   :  { %v7403_v29 = vor.u32 %v5936_v9, %v5567_v25  ;;  %v5934_v25 = vld [vmem:[%s10542_s5 + $0x164] sm:$0xf]  ;;  %v5569_v9 = vld [vmem:[%s10542_s5 + $0x170] sm:$0xf0] }
  0xc9   :  { %v536_v57 = vadd.f32 %v535_v38, %v523_v50  ;;  %v7430_v1 = vor.u32 %v5934_v25, %v5569_v9  ;;  %v5924_v25 = vld [vmem:[%s10542_s5 + $0x10c] sm:$0xf0]  ;;  %v5639_v9 = vld [vmem:[%s10542_s5 + $0x1e8] sm:$0xf] }
  0xca   :  { %10974 = vst [vmem:[#allocation73_spill] sm:$0xff] %v7403_v29  ;;  %1513 = vmatpush.bf16.msrb.mxu3 %v7403_v29  ;;  %v5519_v29 = vld [vmem:[%s10542_s5 + $0x100] sm:$0xf] }
  0xcb   :  { %v539_v15 = vpack.c.bf16 %v536_v57, %v536_v57  ;;  %v5932_v57 = vld [vmem:[%s10542_s5 + $0x14c] sm:$0xf0]  ;;  %10977 = vst [vmem:[#allocation76_spill] sm:$0xff] %v7430_v1  ;;  %1539 = vmatpush.bf16.msra.mxu1 %v7430_v1  ;;  %v7463_v10 = vor.u32 %v5924_v25, %v5519_v29  ;;  %v5949_v1 = vld [vmem:[%s10542_s5 + $0x1d4] sm:$0xf0] }
  0xcc   :  { %v7421_v12 = vor.u32 %v5932_v57, %v5551_v63  ;;  %v5553_v63 = vld [vmem:[%s10542_s5 + $0x150] sm:$0xf0]  ;;  %v5951_v25 = vld [vmem:[%s10542_s5 + $0x1ec] sm:$0xf] }
  0xcd   :  { %942 = vmatmul.bf16.vlgmr.msrb.gmra.mxu2 %v539_v15  ;;  %968 = vmatmul.bf16.vlgmr.msra.gmra.mxu0 %v539_v15  ;;  %10980 = vst [vmem:[#allocation79_spill] sm:$0xff] %v7463_v10  ;;  %v5521_v29 = vld [vmem:[%s10542_s5 + $0x110] sm:$0xf0] }
  0xce   :  { %v524_v38 = vpop.f32.mrf.mxu0  ;;  %10976 = vst [vmem:[#allocation75_spill] sm:$0xff] %v7421_v12  ;;  %1514 = vmatpush.bf16.msrb.mxu3 %v7421_v12  ;;  %v5537_v12 = vld [vmem:[%s10542_s5 + $0x130] sm:$0xf0] }
  0xcf   :  { %v537_v50 = vpop.f32.mrf.mxu1  ;;  %v5535_v38 = vld [vmem:[%s10542_s5 + $0x120] sm:$0xf] }
  0xd0   :  { %v5930_v50 = vld [vmem:[%s10542_s5 + $0x144] sm:$0xf]  ;;  %v7439_v57 = vor.u32 %v5928_v4, %v5535_v38  ;;  %v5953_v38 = vld [vmem:[%s10542_s5 + $0x1f4] sm:$0xf0] }
  0xd1   :  { %v7451_v31 = vor.u32 %v5930_v50, %v5553_v63  ;;  %v5926_v4 = vld [vmem:[%s10542_s5 + $0x124] sm:$0xf]  ;;  %v7465_v16 = vor.u32 %v5953_v38, %v5639_v9  ;;  %v5623_v50 = vld [vmem:[%s10542_s5 + $0x1c8] sm:$0xf] }
  0xd2   :  { %10978 = vst [vmem:[#allocation77_spill] sm:$0xff] %v7439_v57  ;;  %1515 = vmatpush.bf16.msrb.mxu3 %v7439_v57  ;;  %v7471_v63 = vor.u32 %v5926_v4, %v5537_v12  ;;  %v5922_v57 = vld [vmem:[%s10542_s5 + $0x104] sm:$0xf]  ;;  %v5641_v12 = vld [vmem:[%s10542_s5 + $0x1f8] sm:$0xf0]  ;;  %v7490_v9 = vor.u32 %v5949_v1, %v5623_v50 }
  0xd3   :  { %10979 = vst [vmem:[#allocation78_spill] sm:$0xff] %v7451_v31  ;;  %1540 = vmatpush.bf16.msra.mxu1 %v7451_v31  ;;  %v7493_v38 = vor.u32 %v5922_v57, %v5521_v29  ;;  %v5607_v4 = vld [vmem:[%s10542_s5 + $0x1a8] sm:$0xf]  ;;  %v7502_v31 = vor.u32 %v5951_v25, %v5641_v12  ;;  %v5625_v1 = vld [vmem:[%s10542_s5 + $0x1d8] sm:$0xf0] }
  0xd4   :  { %10981 = vst [vmem:[#allocation80_spill] sm:$0xff] %v7465_v16  ;;  %v5591_v50 = vld [vmem:[%s10542_s5 + $0x188] sm:$0xf]  ;;  %v5941_v29 = vld [vmem:[%s10542_s5 + $0x194] sm:$0xf0] }
  0xd5   :  { %10982 = vst [vmem:[#allocation81_spill] sm:$0xff] %v7471_v63  ;;  %v5943_v12 = vld [vmem:[%s10542_s5 + $0x1ac] sm:$0xf] }
  0xd6   :  { %1516 = vmatpush.bf16.msrb.mxu3 %v7463_v10  ;;  %10983 = vst [vmem:[#allocation82_spill] sm:$0xff] %v7490_v9  ;;  %v5945_v10 = vld [vmem:[%s10542_s5 + $0x1b4] sm:$0xf0] }
  0xd7   :  { %1541 = vmatpush.bf16.msra.mxu1 %v7471_v63  ;;  %10984 = vst [vmem:[#allocation83_spill] sm:$0xff] %v7493_v38  ;;  %v7511_v57 = vor.u32 %v5945_v10, %v5607_v4  ;;  %v5609_v10 = vld [vmem:[%s10542_s5 + $0x1b8] sm:$0xf0]  ;;  %v7531_v4 = vor.u32 %v5941_v29, %v5591_v50 }
  0xd8   :  { %10985 = vst [vmem:[#allocation84_spill] sm:$0xff] %v7502_v31  ;;  %v5593_v50 = vld [vmem:[%s10542_s5 + $0x198] sm:$0xf0] }
  0xd9   :  { %1517 = vmatmul.bf16.vlgmr.msrb.gmra.mxu3 %v10966_v49  ;;  %10986 = vst [vmem:[#allocation85_spill] sm:$0xff] %v7511_v57 }
  0xda   :  { %1561 = vmatpush.bf16.msra.mxu3 %v7465_v16  ;;  %10988 = vst [vmem:[#allocation87_spill] sm:$0xff] %v7531_v4 }
  0xdb   :  { %1542 = vmatpush.bf16.msra.mxu1 %v7493_v38 }
  0xdd   :  { %994 = vmatmul.bf16.vlgmr.msra.gmra.mxu2 %v539_v15  ;;  %1020 = vmatmul.bf16.vlgmr.msrb.gmra.mxu0 %v539_v15  ;;  %v5947_v15 = vld [vmem:[%s10542_s5 + $0x1cc] sm:$0xf] }
  0xde   :  { %1562 = vmatpush.bf16.msra.mxu3 %v7490_v9  ;;  %v7521_v25 = vor.u32 %v5947_v15, %v5625_v1  ;;  %1543 = vmatmul.bf16.vlgmr.msra.gmra.mxu1 %v10966_v49  ;;  %v5575_v9 = vld [vmem:[%s10542_s5 + $0x168] sm:$0xf]  ;;  %v5937_v15 = vld [vmem:[%s10542_s5 + $0x174] sm:$0xf0]  ;;  %v7540_v1 = vor.u32 %v5943_v12, %v5609_v10 }
  0xdf   :  { %1587 = vmatpush.bf16.msrb.mxu1 %v7502_v31  ;;  %v5939_v31 = vld [vmem:[%s10542_s5 + $0x18c] sm:$0xf]  ;;  %v7549_v29 = vor.u32 %v5937_v15, %v5575_v9  ;;  %v5933_v12 = vld [vmem:[%s10542_s5 + $0x154] sm:$0xf0]  ;;  %v5577_v9 = vld [vmem:[%s10542_s5 + $0x178] sm:$0xf0] }
  0xe0   :  { %10987 = vst [vmem:[#allocation86_spill] sm:$0xff] %v7521_v25  ;;  %v7558_v10 = vor.u32 %v5939_v31, %v5593_v50  ;;  %v5929_v31 = vld [vmem:[%s10542_s5 + $0x134] sm:$0xf0] }
  0xe1   :  { %10989 = vst [vmem:[#allocation88_spill] sm:$0xff] %v7540_v1 }
  0xe2   :  { %1563 = vmatpush.bf16.msra.mxu3 %v7511_v57  ;;  %10990 = vst [vmem:[#allocation89_spill] sm:$0xff] %v7549_v29  ;;  %v5559_v57 = vld [vmem:[%s10542_s5 + $0x148] sm:$0xf] }
  0xe3   :  { %1588 = vmatpush.bf16.msrb.mxu1 %v7521_v25  ;;  %10991 = vst [vmem:[#allocation90_spill] sm:$0xff] %v7558_v10  ;;  %v5935_v25 = vld [vmem:[%s10542_s5 + $0x16c] sm:$0xf]  ;;  %v7567_v15 = vor.u32 %v5933_v12, %v5559_v57  ;;  %v5561_v57 = vld [vmem:[%s10542_s5 + $0x158] sm:$0xf0] }
  0xe4   :  { %v7576_v50 = vor.u32 %v5935_v25, %v5577_v9  ;;  %v5925_v25 = vld [vmem:[%s10542_s5 + $0x114] sm:$0xf0] }
  0xe5   :  { %10992 = vst [vmem:[#allocation91_spill] sm:$0xff] %v7567_v15 }
  0xe6   :  { %1564 = vmatpush.bf16.msra.mxu3 %v7531_v4  ;;  %v5543_v4 = vld [vmem:[%s10542_s5 + $0x128] sm:$0xf]  ;;  %10993 = vst [vmem:[#allocation92_spill] sm:$0xff] %v7576_v50 }
  0xe7   :  { %1589 = vmatpush.bf16.msrb.mxu1 %v7540_v1  ;;  %v5931_v1 = vld [vmem:[%s10542_s5 + $0x14c] sm:$0xf]  ;;  %v7585_v12 = vor.u32 %v5929_v31, %v5543_v4  ;;  %v5545_v4 = vld [vmem:[%s10542_s5 + $0x138] sm:$0xf0] }
  0xe8   :  { %v7594_v9 = vor.u32 %v5931_v1, %v5561_v57  ;;  %v5923_v1 = vld [vmem:[%s10542_s5 + $0x10c] sm:$0xf]  ;;  %v5529_v57 = vld [vmem:[%s10542_s5 + $0x118] sm:$0xf0] }
  0xe9   :  { %10994 = vst [vmem:[#allocation93_spill] sm:$0xff] %v7585_v12 }
  0xea   :  { %1565 = vmatpush.bf16.msra.mxu3 %v7549_v29  ;;  %v5527_v29 = vld [vmem:[%s10542_s5 + $0x108] sm:$0xf]  ;;  %10995 = vst [vmem:[#allocation94_spill] sm:$0xff] %v7594_v9 }
  0xeb   :  { %1590 = vmatpush.bf16.msrb.mxu1 %v7558_v10  ;;  %v5927_v10 = vld [vmem:[%s10542_s5 + $0x12c] sm:$0xf]  ;;  %v7603_v31 = vor.u32 %v5925_v25, %v5527_v29  ;;  %v7622_v29 = vor.u32 %v5923_v1, %v5529_v57  ;;  %v7635_v25 = vld [vmem:[%s10903_s26 + $0xf8] sm:$0xff]  ;;  %v7648_v1 = vld [vmem:[%s10903_s26 + $0xf0] sm:$0xff] }
  0xec   :  { %11001 = vst [vmem:[#allocation100_spill] sm:$0xff] %v7648_v1  ;;  %v5503_v57 = vld [vmem:[%s10542_s5 + $0xe0] sm:$0xf] }
  0xed   :  { %10996 = vst [vmem:[#allocation95_spill] sm:$0xff] %v7603_v31 }
  0xee   :  { %1566 = vmatpush.bf16.msra.mxu3 %v7567_v15  ;;  %v7606_v15 = vor.u32 %v5927_v10, %v5545_v4  ;;  %10998 = vst [vmem:[#allocation97_spill] sm:$0xff] %v7622_v29  ;;  %v7628_v10 = vld [vmem:[%s10903_s26 + $0x70] sm:$0xff]  ;;  %v7642_v4 = vld [vmem:[%s10903_s26 + $0x68] sm:$0xff] }
  0xef   :  { %1591 = vmatpush.bf16.msrb.mxu1 %v7576_v50  ;;  %10999 = vst [vmem:[#allocation98_spill] sm:$0xff] %v7628_v10 }
  0xf0   :  { %10997 = vst [vmem:[#allocation96_spill] sm:$0xff] %v7606_v15 }
  0xf1   :  { %11000 = vst [vmem:[#allocation99_spill] sm:$0xff] %v7642_v4 }
  0xf2   :  { %1567 = vmatpush.bf16.msra.mxu3 %v7585_v12  ;;  %v7618_v12 = vld [vmem:[%s10903_s26 + $0x78] sm:$0xff] }
  0xf3   :  { %1592 = vmatpush.bf16.msrb.mxu1 %v7594_v9 }
  0xf6   :  { %1568 = vmatpush.bf16.msra.mxu3 %v7603_v31 }
  0xf7   :  { %1593 = vmatpush.bf16.msrb.mxu1 %v7606_v15 }
  0xf9   :  { %1569 = vmatmul.bf16.vlgmr.msra.gmra.mxu3 %v10966_v49 }
  0xfa   :  { %1692 = vmatpush.bf16.msrb.mxu3 %v7618_v12 }
  0xfb   :  { %1594 = vmatpush.bf16.msrb.mxu1 %v7622_v29 }
  0xfe   :  { %1693 = vmatpush.bf16.msrb.mxu3 %v7628_v10  ;;  %1595 = vmatmul.bf16.vlgmr.msrb.gmra.mxu1 %v10966_v49  ;;  %v5920_v49 = vld [vmem:[%s10542_s5 + $0xec] sm:$0xf0] }
  0xff   :  { %1718 = vmatpush.bf16.msra.mxu1 %v7635_v25  ;;  %v7657_v10 = vor.u32 %v5920_v49, %v5503_v57  ;;  %v7675_v57 = vld [vmem:[%s10903_s26 + $0x58] sm:$0xff]  ;;  %v7681_v49 = vld [vmem:[%s10903_s26 + $0xe0] sm:$0xff] }
 0x101   :  { %1496 = vmatpush.bf16.msrb.mxu2 %v7657_v10 }
 0x102   :  { %1694 = vmatpush.bf16.msrb.mxu3 %v7642_v4  ;;  %v7662_v4 = vld [vmem:[%s10903_s26 + $0x60] sm:$0xff] }
 0x103   :  { %1719 = vmatpush.bf16.msra.mxu1 %v7648_v1  ;;  %v7668_v1 = vld [vmem:[%s10903_s26 + $0xe8] sm:$0xff] }
 0x106   :  { %1695 = vmatpush.bf16.msrb.mxu3 %v7662_v4 }
 0x107   :  { %1720 = vmatpush.bf16.msra.mxu1 %v7668_v1 }
 0x10a   :  { %1696 = vmatpush.bf16.msrb.mxu3 %v7675_v57 }
 0x10b   :  { %1721 = vmatpush.bf16.msra.mxu1 %v7681_v49 }
 0x10e   :  { %1697 = vmatpush.bf16.msrb.mxu3 %v6610_v22  ;;  %v5487_v22 = vld [vmem:[%s10542_s5 + $0xc0] sm:$0xf] }
 0x10f   :  { %1722 = vmatpush.bf16.msra.mxu1 %v6602_v20  ;;  %v7697_v20 = vpop.f32.mrf.mxu1 }
 0x112   :  { %1698 = vmatpush.bf16.msrb.mxu3 %v6628_v26 }
 0x113   :  { %1723 = vmatpush.bf16.msra.mxu1 %v6619_v24  ;;  %v5916_v24 = vld [vmem:[%s10542_s5 + $0xcc] sm:$0xf0] }
 0x114   :  { %v7707_v26 = vor.u32 %v5916_v24, %v5487_v22  ;;  %v5505_v22 = vld [vmem:[%s10542_s5 + $0xf0] sm:$0xf0] }
 0x116   :  { %1699 = vmatpush.bf16.msrb.mxu3 %v6646_v30  ;;  %1497 = vmatpush.bf16.msrb.mxu2 %v7707_v26  ;;  %v5471_v30 = vld [vmem:[%s10542_s5 + $0xa0] sm:$0xf] }
 0x117   :  { %1724 = vmatpush.bf16.msra.mxu1 %v6637_v28  ;;  %v7710_v28 = vpop.f32.mrf.mxu3 }
 0x11a   :  { %1744 = vmatpush.bf16.msra.mxu3 %v6654_v32  ;;  %v5912_v32 = vld [vmem:[%s10542_s5 + $0xac] sm:$0xf0] }
 0x11b   :  { %1725 = vmatpush.bf16.msra.mxu1 %v6662_v35  ;;  %v7720_v35 = vor.u32 %v5912_v32, %v5471_v30  ;;  %v1668_v32 = vld [vmem:[#allocation1 + $0x9] sm:$0xff] }
 0x11c   :  { %1700 = vmatmul.bf16.vlgmr.msrb.gmra.mxu3 %v1668_v32  ;;  %v5900_v32 = vld [vmem:[%s10542_s5 + $0x4c] sm:$0xf0] }
 0x11d   :  { %1498 = vmatpush.bf16.msrb.mxu2 %v7720_v35 }
 0x11e   :  { %1745 = vmatpush.bf16.msra.mxu3 %v6670_v37  ;;  %v984_v37 = vpop.f32.mrf.mxu1 }
 0x11f   :  { %1771 = vmatpush.bf16.msrb.mxu1 %v6688_v46  ;;  %v958_v24 = vpop.f32.mrf.mxu3  ;;  %v5904_v37 = vld [vmem:[%s10542_s5 + $0x6c] sm:$0xf0] }
 0x120   :  { %v5423_v24 = vld [vmem:[%s10542_s5 + $0x40] sm:$0xf] }
 0x122   :  { %1746 = vmatpush.bf16.msra.mxu3 %v6712_v53  ;;  %v5455_v53 = vld [vmem:[%s10542_s5 + $0x80] sm:$0xf] }
 0x123   :  { %1772 = vmatpush.bf16.msrb.mxu1 %v6715_v54 }
 0x126   :  { %1747 = vmatpush.bf16.msra.mxu3 %v6739_v61  ;;  %v5908_v61 = vld [vmem:[%s10542_s5 + $0x8c] sm:$0xf0] }
 0x127   :  { %1773 = vmatpush.bf16.msrb.mxu1 %v6742_v62 }
 0x12a   :  { %1748 = vmatpush.bf16.msra.mxu3 %v6766_v5  ;;  %v7731_v5 = vor.u32 %v5908_v61, %v5455_v53  ;;  %v5914_v61 = vld [vmem:[%s10542_s5 + $0xc4] sm:$0xf] }
 0x12b   :  { %1774 = vmatpush.bf16.msrb.mxu1 %v6769_v6 }
 0x12c   :  { %1499 = vmatpush.bf16.msrb.mxu2 %v7731_v5 }
 0x12e   :  { %1749 = vmatpush.bf16.msra.mxu3 %v6787_v11  ;;  %v5918_v11 = vld [vmem:[%s10542_s5 + $0xe4] sm:$0xf] }
 0x12f   :  { %1775 = vmatpush.bf16.msrb.mxu1 %v6902_v60  ;;  %v7741_v30 = vor.u32 %v5918_v11, %v5505_v22  ;;  %v5489_v11 = vld [vmem:[%s10542_s5 + $0xd0] sm:$0xf0]  ;;  %v7837_v60 = vld [vmem:[%s10541_s4] sm:$0xf] }
 0x131   :  { %1522 = vmatpush.bf16.msra.mxu0 %v7741_v30  ;;  %v7761_v22 = vpop.f32.mrf.mxu1 }
 0x132   :  { %1750 = vmatpush.bf16.msra.mxu3 %v6798_v13  ;;  %v5439_v13 = vld [vmem:[%s10542_s5 + $0x60] sm:$0xf] }
 0x133   :  { %1776 = vmatpush.bf16.msrb.mxu1 %v6940_v17  ;;  %v7751_v53 = vor.u32 %v5904_v37, %v5439_v13  ;;  %v7773_v13 = vor.u32 %v5900_v32, %v5423_v24  ;;  %v5910_v37 = vld [vmem:[%s10542_s5 + $0xa4] sm:$0xf]  ;;  %v5407_v24 = vld [vmem:[%s10542_s5 + $0x20] sm:$0xf]  ;;  %v5896_v32 = vld [vmem:[%s10542_s5 + $0x2c] sm:$0xf0] }
 0x134   :  { %v5902_v17 = vld [vmem:[%s10542_s5 + $0x64] sm:$0xf] }
 0x135   :  { %1500 = vmatpush.bf16.msrb.mxu2 %v7751_v53  ;;  %11002 = vst [vmem:[#allocation101_spill] sm:$0xff] %v7773_v13 }
 0x136   :  { %1751 = vmatpush.bf16.msra.mxu3 %v6819_v19  ;;  %v7764_v19 = vor.u32 %v5914_v61, %v5489_v11  ;;  %v5473_v61 = vld [vmem:[%s10542_s5 + $0xb0] sm:$0xf0] }
 0x137   :  { %1777 = vmatpush.bf16.msrb.mxu1 %v6977_v42  ;;  %v7784_v11 = vor.u32 %v5910_v37, %v5473_v61  ;;  %v5906_v37 = vld [vmem:[%s10542_s5 + $0x84] sm:$0xf]  ;;  %v5457_v61 = vld [vmem:[%s10542_s5 + $0x90] sm:$0xf0] }
 0x138   :  { %1523 = vmatpush.bf16.msra.mxu0 %v7764_v19  ;;  %v7805_v42 = vor.u32 %v5906_v37, %v5457_v61  ;;  %v5921_v37 = vld [vmem:[%s10542_s5 + $0xf4] sm:$0xf0] }
 0x139   :  { %1501 = vmatpush.bf16.msrb.mxu2 %v7773_v13 }
 0x13a   :  { %1797 = vmatpush.bf16.msrb.mxu3 %v6821_v21  ;;  %v7793_v21 = vor.u32 %v5896_v32, %v5407_v24  ;;  %v5391_v24 = vld [vmem:[%s10542_s5] sm:$0xf] }
 0x13b   :  { %1778 = vmatpush.bf16.msrb.mxu1 %v7024_v27  ;;  %v1036_v27 = vpop.f32.mrf.mxu1 }
 0x13c   :  { %1524 = vmatpush.bf16.msra.mxu0 %v7784_v11  ;;  %11003 = vst [vmem:[#allocation102_spill] sm:$0xff] %v7793_v21  ;;  %v5892_v27 = vld [vmem:[%s10542_s5 + $0xc] sm:$0xf0] }
 0x13d   :  { %1502 = vmatpush.bf16.msrb.mxu2 %v7793_v21  ;;  %v7814_v32 = vor.u32 %v5892_v27, %v5391_v24  ;;  %v5441_v24 = vld [vmem:[%s10542_s5 + $0x70] sm:$0xf0] }
 0x13e   :  { %1798 = vmatpush.bf16.msrb.mxu3 %v6839_v33  ;;  %v7803_v33 = vpop.f32.mrf.mxu3  ;;  %v7832_v27 = vor.u32 %v5902_v17, %v5441_v24  ;;  %v5898_v24 = vld [vmem:[%s10542_s5 + $0x44] sm:$0xf] }
 0x13f   :  { %11004 = vst [vmem:[#allocation103_spill] sm:$0xff] %v7814_v32 }
 0x140   :  { %1525 = vmatpush.bf16.msra.mxu0 %v7805_v42 }
 0x141   :  { %1503 = vmatpush.bf16.msrb.mxu2 %v7814_v32 }
 0x142   :  { %1799 = vmatpush.bf16.msrb.mxu3 %v6859_v43  ;;  %v5511_v43 = vld [vmem:[%s10542_s5 + $0xe8] sm:$0xf] }
 0x143   :  { %v7823_v61 = vor.u32 %v5921_v37, %v5511_v43  ;;  %v5495_v43 = vld [vmem:[%s10542_s5 + $0xc8] sm:$0xf]  ;;  %v5917_v37 = vld [vmem:[%s10542_s5 + $0xd4] sm:$0xf0] }
 0x144   :  { %1526 = vmatpush.bf16.msra.mxu0 %v7832_v27  ;;  %v7848_v17 = vor.u32 %v5917_v37, %v5495_v43  ;;  %v5479_v43 = vld [vmem:[%s10542_s5 + $0xa8] sm:$0xf]  ;;  %v5913_v37 = vld [vmem:[%s10542_s5 + $0xb4] sm:$0xf0] }
 0x145   :  { %11005 = vst [vmem:[#allocation104_spill] sm:$0xff] %v7823_v61  ;;  %1548 = vmatpush.bf16.msra.mxu2 %v7823_v61  ;;  %v7857_v61 = vperm.slane %v7837_v60, 1  ;;  %v7870_v6 = vor.u32 %v5913_v37, %v5479_v43  ;;  %v5463_v43 = vld [vmem:[%s10542_s5 + $0x88] sm:$0xf]  ;;  %v5909_v37 = vld [vmem:[%s10542_s5 + $0x94] sm:$0xf0] }
 0x146   :  { %1800 = vmatpush.bf16.msrb.mxu3 %v6877_v48  ;;  %11006 = vst [vmem:[#allocation105_spill] sm:$0xff] %v7848_v17  ;;  %v5425_v48 = vld [vmem:[%s10542_s5 + $0x50] sm:$0xf0]  ;;  %v1010_v32 = vpop.f32.mrf.mxu3 }
 0x147   :  { %11007 = vst [vmem:[#allocation106_spill] sm:$0xff] %v7857_v61  ;;  %v7859_v21 = vor.u32 %v5898_v24, %v5425_v48  ;;  %v5894_v48 = vld [vmem:[%s10542_s5 + $0x24] sm:$0xf]  ;;  %v5409_v32 = vld [vmem:[%s10542_s5 + $0x30] sm:$0xf0] }
 0x148   :  { %11009 = vst [vmem:[#allocation108_spill] sm:$0xff] %v7870_v6 }
 0x149   :  { %11008 = vst [vmem:[#allocation107_spill] sm:$0xff] %v7859_v21  ;;  %1549 = vmatpush.bf16.msra.mxu2 %v7848_v17  ;;  %1527 = vmatpush.bf16.msra.mxu0 %v7859_v21  ;;  %v7879_v17 = vor.u32 %v5894_v48, %v5409_v32  ;;  %v5393_v48 = vld [vmem:[%s10542_s5 + $0x10] sm:$0xf0] }
 0x14a   :  { %1801 = vmatpush.bf16.msrb.mxu3 %v6889_v55  ;;  %v969_v55 = vpop.f32.mrf.mxu0 }
 0x14b   :  { %v970_v24 = vadd.f32 %v969_v55, %v7857_v61  ;;  %11010 = vst [vmem:[#allocation109_spill] sm:$0xff] %v7879_v17  ;;  %v7894_v55 = vor.u32 %v5909_v37, %v5463_v43  ;;  %v5919_v61 = vld [vmem:[%s10542_s5 + $0xec] sm:$0xf]  ;;  %v5513_v43 = vld [vmem:[%s10542_s5 + $0xf8] sm:$0xf0] }
 0x14d   :  { %1550 = vmatpush.bf16.msra.mxu2 %v7870_v6  ;;  %v983_v21 = vadd.f32 %v7697_v20, %v970_v24  ;;  %1528 = vmatpush.bf16.msra.mxu0 %v7879_v17  ;;  %11012 = vst [vmem:[#allocation111_spill] sm:$0xff] %v7894_v55  ;;  %v5890_v20 = vld [vmem:[%s10542_s5 + $0x4] sm:$0xf]  ;;  %v1672_v6 = vld [vmem:[#allocation1 + $0x2d] sm:$0xff]  ;;  %v7911_v17 = vor.u32 %v5919_v61, %v5513_v43  ;;  %v5497_v43 = vld [vmem:[%s10542_s5 + $0xd8] sm:$0xf0] }
 0x14e   :  { %1802 = vmatpush.bf16.msrb.mxu3 %v6913_v3  ;;  %v7884_v3 = vperm.slane %v7837_v60, 0  ;;  %v7902_v24 = vor.u32 %v5890_v20, %v5393_v48  ;;  %v5447_v20 = vld [vmem:[%s10542_s5 + $0x68] sm:$0xf]  ;;  %v5905_v48 = vld [vmem:[%s10542_s5 + $0x74] sm:$0xf0] }
 0x14f   :  { %v5387_v32 = vmul.f32 -1.442695, %v983_v21  ;;  %1752 = vmatmul.bf16.vlgmr.msra.gmra.mxu3 %v1672_v6  ;;  %v7922_v61 = vor.u32 %v5905_v48, %v5447_v20  ;;  %v7947_v48 = vperm.slane %v7837_v60, 3 }
 0x150   :  { %11011 = vst [vmem:[#allocation110_spill] sm:$0xff] %v7884_v3  ;;  %v943_v37 = vpop.f32.mrf.mxu2 }
 0x151   :  { %1551 = vmatpush.bf16.msra.mxu2 %v7894_v55  ;;  %5984 = vpow2.f32 %v5387_v32  ;;  %v944_v21 = vadd.f32 %v943_v37, %v7884_v3  ;;  %1529 = vmatpush.bf16.msra.mxu0 %v7902_v24  ;;  %11013 = vst [vmem:[#allocation112_spill] sm:$0xff] %v7922_v61  ;;  %v5901_v37 = vld [vmem:[%s10542_s5 + $0x54] sm:$0xf0] }
 0x152   :  { %1803 = vmatpush.bf16.msrb.mxu3 %v6942_v18  ;;  %v1670_v18 = vld [vmem:[#allocation1 + $0x1b] sm:$0xff]  ;;  %v971_v13 = vpop.f32.mrf.mxu0  ;;  %11016 = vst [vmem:[#allocation115_spill] sm:$0xff] %v7947_v48 }
 0x153   :  { %1726 = vmatmul.bf16.vlgmr.msra.gmra.mxu1 %v1670_v18  ;;  %v957_v32 = vadd.f32 %v7710_v28, %v944_v21  ;;  %v5915_v18 = vld [vmem:[%s10542_s5 + $0xcc] sm:$0xf]  ;;  %v5431_v28 = vld [vmem:[%s10542_s5 + $0x48] sm:$0xf] }
 0x154   :  { %1823 = vmatpush.bf16.msra.mxu1 %v7039_v44  ;;  %v7935_v6 = vor.u32 %v5915_v18, %v5497_v43  ;;  %v7944_v21 = vor.u32 %v5901_v37, %v5431_v28  ;;  %v5481_v18 = vld [vmem:[%s10542_s5 + $0xb8] sm:$0xf0]  ;;  %v5415_v28 = vld [vmem:[%s10542_s5 + $0x28] sm:$0xf]  ;;  %v5897_v37 = vld [vmem:[%s10542_s5 + $0x34] sm:$0xf0] }
 0x155   :  { %1574 = vmatpush.bf16.msrb.mxu0 %v7911_v17  ;;  %1552 = vmatpush.bf16.msra.mxu2 %v7922_v61  ;;  %v5386_v13 = vmul.f32 -1.442695, %v957_v32  ;;  %v5911_v32 = vld [vmem:[%s10542_s5 + $0xac] sm:$0xf] }
 0x156   :  { %1804 = vmatpush.bf16.msrb.mxu3 %v6990_v58  ;;  %11014 = vst [vmem:[#allocation113_spill] sm:$0xff] %v7935_v6 }
 0x157   :  { %11015 = vst [vmem:[#allocation114_spill] sm:$0xff] %v7944_v21  ;;  %v5985_v20 = vpop.eup %5984  ;;  %5986 = vpow2.f32 %v5386_v13  ;;  %v7960_v13 = vor.u32 %v5911_v32, %v5481_v18  ;;  %v5907_v32 = vld [vmem:[%s10542_s5 + $0x8c] sm:$0xf]  ;;  %v5465_v18 = vld [vmem:[%s10542_s5 + $0x98] sm:$0xf0] }
 0x158   :  { %1824 = vmatpush.bf16.msra.mxu1 %v7090_v47  ;;  %v7956_v43 = vadd.f32 1.0, %v5985_v20  ;;  %v7972_v20 = vor.u32 %v5897_v37, %v5415_v28  ;;  %v5399_v28 = vld [vmem:[%s10542_s5 + $0x8] sm:$0xf]  ;;  %v5893_v37 = vld [vmem:[%s10542_s5 + $0x14] sm:$0xf0] }
 0x159   :  { %1575 = vmatpush.bf16.msrb.mxu0 %v7935_v6  ;;  %1553 = vmatpush.bf16.msra.mxu2 %v7944_v21  ;;  %11017 = vst [vmem:[#allocation116_spill] sm:$0xff] %v7960_v13 }
 0x15a   :  { %1849 = vmatpush.bf16.msra.mxu3 %v7003_v7  ;;  %v945_v7 = vpop.f32.mrf.mxu2  ;;  %5988 = vrcp.f32 %v7956_v43  ;;  %v1021_v47 = vpop.f32.mrf.mxu0  ;;  %11018 = vst [vmem:[#allocation117_spill] sm:$0xff] %v7972_v20  ;;  %vm1066_vm1 = vweird.f32 %v7956_v43 }
 0x15b   :  { %v1022_v7 = vadd.f32 %v1021_v47, %v7947_v48  ;;  %v7985_v47 = vperm.slane %v7837_v60, 2 }
 0x15c   :  { %1825 = vmatpush.bf16.msra.mxu1 %v7118_v52 }
 0x15d   :  { %1576 = vmatpush.bf16.msrb.mxu0 %v7960_v13  ;;  %v5987_v44 = vpop.eup %5986  ;;  %v1035_v58 = vadd.f32 %v7761_v22, %v1022_v7  ;;  %11020 = vst [vmem:[#allocation119_spill] sm:$0xff] %v7985_v47  ;;  %1554 = vmatpush.bf16.msra.mxu2 %v7972_v20 }
 0x15e   :  { %1850 = vmatpush.bf16.msra.mxu3 %v7054_v56  ;;  %v7981_v56 = vor.u32 %v5907_v32, %v5465_v18  ;;  %v7994_v48 = vadd.f32 1.0, %v5987_v44  ;;  %v7997_v32 = vor.u32 %v5893_v37, %v5399_v28  ;;  %v5903_v18 = vld [vmem:[%s10542_s5 + $0x6c] sm:$0xf] }
 0x15f   :  { %v5388_v22 = vmul.f32 -1.442695, %v1035_v58  ;;  %v5449_v58 = vld [vmem:[%s10542_s5 + $0x78] sm:$0xf0] }
 0x160   :  { %11019 = vst [vmem:[#allocation118_spill] sm:$0xff] %v7981_v56  ;;  %1826 = vmatpush.bf16.msra.mxu1 %v7152_v34  ;;  %v5989_v60 = vpop.eup %5988  ;;  %5990 = vrcp.f32 %v7994_v48  ;;  %v8011_v37 = vor.u32 %v5903_v18, %v5449_v58  ;;  %vm1047_vm4 = vweird.f32 %v7994_v48 }
 0x161   :  { %1577 = vmatpush.bf16.msrb.mxu0 %v7981_v56  ;;  %11021 = vst [vmem:[#allocation120_spill] sm:$0xff] %v7997_v32  ;;  %v1062_v44 = vmul.f32 %v5989_v60, %v7956_v43  ;;  %5992 = vpow2.f32 %v5388_v22  ;;  %1555 = vmatpush.bf16.msra.mxu2 %v7997_v32  ;;  %v5899_v22 = vld [vmem:[%s10542_s5 + $0x4c] sm:$0xf]  ;;  %vm1067_vm0 = vweird.f32 %v5989_v60 }
 0x162   :  { %1851 = vmatpush.bf16.msra.mxu3 %v7097_v51  ;;  %v995_v7 = vpop.f32.mrf.mxu2  ;;  %v1023_v28 = vpop.f32.mrf.mxu0  ;;  %11022 = vst [vmem:[#allocation121_spill] sm:$0xff] %v8011_v37  ;;  %vm8042_vm2 = vmor %vm1066_vm1, %vm1067_vm0 }
 0x163   :  { %v996_v51 = vadd.f32 %v995_v7, %v7985_v47  ;;  %v1063_v34 = vsub.f32 1.0, %v1062_v44  ;;  %v5433_v7 = vld [vmem:[%s10542_s5 + $0x58] sm:$0xf0] }
 0x164   :  { %1827 = vmatpush.bf16.msra.mxu1 %v7196_v14  ;;  %v8023_v18 = vor.u32 %v5899_v22, %v5433_v7 }
 0x165   :  { %1578 = vmatpush.bf16.msrb.mxu0 %v8011_v37  ;;  %v1064_v47 = vmul.f32 %v5989_v60, %v1063_v34  ;;  %v1009_v28 = vadd.f32 %v7803_v33, %v996_v51  ;;  %v5895_v33 = vld [vmem:[%s10542_s5 + $0x2c] sm:$0xf]  ;;  %v5417_v51 = vld [vmem:[%s10542_s5 + $0x38] sm:$0xf0] }
 0x166   :  { %1852 = vmatpush.bf16.msra.mxu3 %v7121_v2  ;;  %11023 = vst [vmem:[#allocation122_spill] sm:$0xff] %v8023_v18  ;;  %v5991_v44 = vpop.eup %5990  ;;  %v8038_v22 = vor.u32 %v5895_v33, %v5417_v51  ;;  %v5401_v51 = vld [vmem:[%s10542_s5 + $0x18] sm:$0xf0] }
 0x167   :  { %v5993_v58 = vpop.eup %5992  ;;  %v1043_v14 = vmul.f32 %v5991_v44, %v7994_v48  ;;  %v1065_v2 = vadd.f32 %v5989_v60, %v1064_v47  ;;  %v1070_v47 = vand.u32 2147483647, %v7956_v43  ;;  %5994 = vtanh.f32 %v1009_v28  ;;  %v5891_v28 = vld [vmem:[%s10542_s5 + $0xc] sm:$0xf] }
 0x168   :  { %1828 = vmatpush.bf16.msra.mxu1 %v7232_v23  ;;  %v1080_v52 = vadd.f32 1.0, %v5993_v58  ;;  %11024 = vst [vmem:[#allocation123_spill] sm:$0xff] %v8038_v22  ;;  %vm1048_vm3 = vweird.f32 %v5991_v44 }
 0x169   :  { %1579 = vmatpush.bf16.msrb.mxu0 %v8023_v18  ;;  %v1044_v34 = vsub.f32 1.0, %v1043_v14  ;;  %v1069_v14 = vsel %vm8042_vm2, %v5989_v60, %v1065_v2  ;;  %vm1071_vm5 = vcmp.eq.f32.partialorder %v1070_v47, 8.507059e+37  ;;  %vm1049_vm6 = vmor %vm1047_vm4, %vm1048_vm3 }
 0x16a   :  { %1853 = vmatpush.bf16.msra.mxu3 %v7164_v0  ;;  %v1072_v0 = vand.u32 2147483648, %v7956_v43  ;;  %v997_v3 = vpop.f32.mrf.mxu2  ;;  %5996 = vrcp.f32 %v1080_v52  ;;  %vm1086_vm9 = vweird.f32 %v1080_v52 }
 0x16b   :  { %v1053_v3 = vand.u32 2147483648, %v7994_v48  ;;  %v1045_v58 = vmul.f32 %v5991_v44, %v1044_v34 }
 0x16c   :  { %1829 = vmatpush.bf16.msra.mxu1 %v7269_v39  ;;  %v1073_v43 = vor.u32 1.1754944e-38, %v1072_v0  ;;  %v8059_v0 = vor.u32 %v5891_v28, %v5401_v51 }
 0x16d   :  { %1580 = vmatpush.bf16.msrb.mxu0 %v8038_v22  ;;  %v1046_v33 = vadd.f32 %v5991_v44, %v1045_v58  ;;  %v1054_v2 = vor.u32 1.1754944e-38, %v1053_v3  ;;  %v5995_v34 = vpop.eup %5994  ;;  %v1092_v3 = vand.u32 2147483648, %v1080_v52 }
 0x16e   :  { %1854 = vmatpush.bf16.msra.mxu3 %v7207_v45  ;;  %v1051_v45 = vand.u32 2147483647, %v7994_v48  ;;  %v1074_v60 = vsel %vm1071_vm5, %v1073_v43, %v1069_v14  ;;  %11027 = vst [vmem:[#allocation124_spill] sm:$0xff] %v8059_v0  ;;  %v1090_v43 = vand.u32 2147483647, %v1080_v52 }
 0x16f   :  { %v1050_v7 = vsel %vm1049_vm6, %v5991_v44, %v1046_v33  ;;  %v1096_v47 = vmul.f32 0.0, %v1074_v60  ;;  %v1093_v44 = vor.u32 1.1754944e-38, %v1092_v3  ;;  %v11038_v3 = vld [vmem:[#allocation72_spill] sm:$0xff] }
 0x170   :  { %vm1052_vm7 = vcmp.eq.f32.partialorder %v1051_v45, 8.507059e+37  ;;  %1830 = vmatpush.bf16.msra.mxu1 %v7310_v59  ;;  %vm1091_vm11 = vcmp.eq.f32.partialorder %v1090_v43, 8.507059e+37  ;;  %v8118_v43 = vld [vmem:[%s10903_s26 + $0xa0] sm:$0xff] }
 0x171   :  { %v1055_v39 = vsel %vm1052_vm7, %v1054_v2, %v1050_v7  ;;  %1581 = vmatpush.bf16.msrb.mxu0 %v8059_v0  ;;  %v11034_v7 = vld [vmem:[#allocation70_spill] sm:$0xff]  ;;  %11040 = vst [vmem:[#allocation133_spill] sm:$0xff] %v8118_v43 }
 0x172   :  { %1855 = vmatpush.bf16.msra.mxu3 %v7243_v36  ;;  %v5997_v36 = vpop.eup %5996  ;;  %v1097_v58 = vmul.f32 %v5995_v34, %v1055_v39  ;;  %v8090_v39 = vld [vmem:[%s10903_s26 + $0xb0] sm:$0xff]  ;;  %v11033_v34 = vld [vmem:[#allocation67_spill] sm:$0xff] }
 0x173   :  { %v1082_v48 = vmul.f32 %v5997_v36, %v1080_v52  ;;  %vm1087_vm8 = vweird.f32 %v5997_v36  ;;  %v8084_v52 = vld [vmem:[%s10903_s26 + $0x30] sm:$0xff]  ;;  %11032 = vst [vmem:[#allocation129_spill] sm:$0xff] %v8090_v39 }
 0x174   :  { %v8064_v32 = vadd.f32 %v1097_v58, %v1096_v47  ;;  %vm1088_vm10 = vmor %vm1086_vm9, %vm1087_vm8  ;;  %11031 = vst [vmem:[#allocation128_spill] sm:$0xff] %v8084_v52  ;;  %v8104_v47 = vld [vmem:[%s10903_s26 + $0xa8] sm:$0xff] }
 0x175   :  { %v1083_v23 = vsub.f32 1.0, %v1082_v48  ;;  %v8098_v48 = vld [vmem:[%s10903_s26 + $0x28] sm:$0xff]  ;;  %11036 = vst [vmem:[#allocation131_spill] sm:$0xff] %v8104_v47 }
 0x176   :  { %1856 = vmatpush.bf16.msra.mxu3 %v7271_v8  ;;  %11028 = vst [vmem:[#allocation125_spill] sm:$0xff] %v8064_v32  ;;  %5998 = vtanh.f32 %v8064_v32  ;;  %v11037_v58 = vld [vmem:[#allocation69_spill] sm:$0xff] }
 0x177   :  { %v1084_v14 = vmul.f32 %v5997_v36, %v1083_v23  ;;  %v8070_v23 = vld [vmem:[%s10903_s26 + $0x38] sm:$0xff]  ;;  %11035 = vst [vmem:[#allocation130_spill] sm:$0xff] %v8098_v48 }
 0x178   :  { %11029 = vst [vmem:[#allocation126_spill] sm:$0xff] %v8070_v23 }
 0x179   :  { %v1085_v45 = vadd.f32 %v5997_v36, %v1084_v14  ;;  %v8112_v14 = vld [vmem:[%s10903_s26 + $0x20] sm:$0xff] }
 0x17a   :  { %11039 = vst [vmem:[#allocation132_spill] sm:$0xff] %v8112_v14 }
 0x17b   :  { %v1089_v28 = vsel %vm1088_vm10, %v5997_v36, %v1085_v45  ;;  %v8076_v36 = vld [vmem:[%s10903_s26 + $0xb8] sm:$0xff] }
 0x17c   :  { %v1094_v33 = vsel %vm1091_vm11, %v1093_v44, %v1089_v28  ;;  %v5999_v51 = vpop.eup %5998  ;;  %11030 = vst [vmem:[#allocation127_spill] sm:$0xff] %v8076_v36  ;;  %v11041_v45 = vld [vmem:[#allocation71_spill] sm:$0xff]  ;;  %v11042_v44 = vld [vmem:[#allocation74_spill] sm:$0xff] }
 0x17d   :  { %v1100_v2 = vmul.f32 %v5999_v51, %v1094_v33  ;;  %v8126_v28 = vld [vmem:[%s10903_s26 + $0x18] sm:$0xff]  ;;  %v11045_v51 = vld [vmem:[#allocation73_spill] sm:$0xff] }
 0x17e   :  { %11043 = vst [vmem:[#allocation134_spill] sm:$0xff] %v8126_v28  ;;  %v8132_v33 = vld [vmem:[%s10903_s26 + $0x98] sm:$0xff] }
 0x17f   :  { %v1101_v60 = vpack.c.bf16 %v1100_v2, %v1100_v2  ;;  %11044 = vst [vmem:[#allocation135_spill] sm:$0xff] %v8132_v33  ;;  %v11046_v2 = vld [vmem:[#allocation76_spill] sm:$0xff] }
 0x181   :  { %1504 = vmatmul.bf16.vlgmr.msrb.gmra.mxu2 %v1101_v60  ;;  %1530 = vmatmul.bf16.vlgmr.msra.gmra.mxu0 %v1101_v60 }
 0x182   :  { %1679 = vmatpush.bf16.msrb.mxu2 %v8070_v23  ;;  %1779 = vmatmul.bf16.vlgmr.msrb.gmra.mxu1 %v1101_v60 }
 0x183   :  { %1805 = vmatmul.bf16.vlgmr.msrb.gmra.mxu3 %v1101_v60  ;;  %1705 = vmatpush.bf16.msra.mxu0 %v8076_v36 }
 0x184   :  { %1940 = vmatpush.bf16.msrb.mxu1 %v7338_v41  ;;  %1966 = vmatpush.bf16.msrb.mxu3 %v7358_v40 }
 0x186   :  { %1680 = vmatpush.bf16.msrb.mxu2 %v8084_v52 }
 0x187   :  { %1706 = vmatpush.bf16.msra.mxu0 %v8090_v39 }
 0x188   :  { %1941 = vmatpush.bf16.msrb.mxu1 %v11033_v34  ;;  %1967 = vmatpush.bf16.msrb.mxu3 %v11034_v7 }
 0x18a   :  { %1681 = vmatpush.bf16.msrb.mxu2 %v8098_v48 }
 0x18b   :  { %1707 = vmatpush.bf16.msra.mxu0 %v8104_v47 }
 0x18c   :  { %1942 = vmatpush.bf16.msrb.mxu1 %v11037_v58  ;;  %1968 = vmatpush.bf16.msrb.mxu3 %v11038_v3  ;;  %v11101_v3 = vld [vmem:[#allocation46_spill] sm:$0xff] }
 0x18e   :  { %1682 = vmatpush.bf16.msrb.mxu2 %v8112_v14 }
 0x18f   :  { %1708 = vmatpush.bf16.msra.mxu0 %v8118_v43  ;;  %v11060_v43 = vld [vmem:[#allocation84_spill] sm:$0xff] }
 0x190   :  { %1943 = vmatpush.bf16.msrb.mxu1 %v11041_v45  ;;  %1969 = vmatpush.bf16.msrb.mxu3 %v11042_v44  ;;  %v8140_v44 = vld [vmem:[%s10903_s26 + $0x10] sm:$0xff]  ;;  %v11058_v45 = vld [vmem:[#allocation79_spill] sm:$0xff] }
 0x191   :  { %1556 = vmatmul.bf16.vlgmr.msra.gmra.mxu2 %v1101_v60  ;;  %1582 = vmatmul.bf16.vlgmr.msrb.gmra.mxu0 %v1101_v60  ;;  %11047 = vst [vmem:[#allocation136_spill] sm:$0xff] %v8140_v44 }
 0x192   :  { %1683 = vmatpush.bf16.msrb.mxu2 %v8126_v28  ;;  %1831 = vmatmul.bf16.vlgmr.msra.gmra.mxu1 %v1101_v60  ;;  %v11049_v28 = vld [vmem:[#allocation75_spill] sm:$0xff] }
 0x193   :  { %1857 = vmatmul.bf16.vlgmr.msra.gmra.mxu3 %v1101_v60  ;;  %1709 = vmatpush.bf16.msra.mxu0 %v8132_v33  ;;  %v8146_v60 = vld [vmem:[%s10903_s26 + $0x90] sm:$0xff] }
 0x194   :  { %1944 = vmatpush.bf16.msrb.mxu1 %v11045_v51  ;;  %1970 = vmatpush.bf16.msrb.mxu3 %v11046_v2  ;;  %11048 = vst [vmem:[#allocation137_spill] sm:$0xff] %v8146_v60  ;;  %v11050_v33 = vld [vmem:[#allocation78_spill] sm:$0xff]  ;;  %v8154_v2 = vld [vmem:[%s10903_s26 + $0x8] sm:$0xff] }
 0x195   :  { %11051 = vst [vmem:[#allocation138_spill] sm:$0xff] %v8154_v2  ;;  %v11053_v51 = vld [vmem:[#allocation77_spill] sm:$0xff] }
 0x196   :  { %1684 = vmatpush.bf16.msrb.mxu2 %v8140_v44  ;;  %v8160_v44 = vld [vmem:[%s10903_s26 + $0x88] sm:$0xff] }
 0x197   :  { %1710 = vmatpush.bf16.msra.mxu0 %v8146_v60  ;;  %11052 = vst [vmem:[#allocation139_spill] sm:$0xff] %v8160_v44  ;;  %v8173_v60 = vpop.f32.mrf.mxu1 }
 0x198   :  { %1945 = vmatpush.bf16.msrb.mxu1 %v11049_v28  ;;  %1971 = vmatpush.bf16.msrb.mxu3 %v11050_v33  ;;  %v8168_v33 = vld [vmem:[%s10903_s26] sm:$0xff] }
 0x199   :  { %11054 = vst [vmem:[#allocation140_spill] sm:$0xff] %v8168_v33  ;;  %v1667_v28 = vld [vmem:[#allocation1] sm:$0xff] }
 0x19a   :  { %1685 = vmatpush.bf16.msrb.mxu2 %v8154_v2  ;;  %v8171_v2 = vpop.f32.mrf.mxu3 }
 0x19b   :  { %1711 = vmatpush.bf16.msra.mxu0 %v8160_v44  ;;  %v8178_v44 = vld [vmem:[%s10903_s26 + $0x138] sm:$0xff] }
 0x19c   :  { %1946 = vmatpush.bf16.msrb.mxu1 %v11053_v51  ;;  %1972 = vmatpush.bf16.msrb.mxu3 %v7471_v63  ;;  %11055 = vst [vmem:[#allocation141_spill] sm:$0xff] %v8178_v44  ;;  %v8184_v63 = vld [vmem:[%s10903_s26 + $0x80] sm:$0xff]  ;;  %v11057_v51 = vld [vmem:[#allocation5_spill] sm:$0xff] }
 0x19d   :  { %11056 = vst [vmem:[#allocation142_spill] sm:$0xff] %v8184_v63 }
 0x19e   :  { %1686 = vmatpush.bf16.msrb.mxu2 %v8168_v33  ;;  %v1669_v33 = vld [vmem:[#allocation1 + $0x12] sm:$0xff] }
 0x19f   :  { %1712 = vmatpush.bf16.msra.mxu0 %v8184_v63  ;;  %v11061_v63 = vld [vmem:[#allocation6_spill] sm:$0xff]  ;;  %v1546_v14 = vpop.f32.mrf.mxu1 }
 0x1a0   :  { %1947 = vmatpush.bf16.msrb.mxu1 %v11058_v45  ;;  %1973 = vmatpush.bf16.msrb.mxu3 %v7493_v38  ;;  %v11062_v45 = vld [vmem:[#allocation82_spill] sm:$0xff]  ;;  %v11068_v14 = vld [vmem:[#allocation88_spill] sm:$0xff] }
 0x1a1   :  { %1687 = vmatmul.bf16.vlgmr.msrb.gmra.mxu2 %v1667_v28  ;;  %v8203_v28 = vld [vmem:[%s10903_s26 + $0x128] sm:$0xff] }
 0x1a2   :  { %1731 = vmatpush.bf16.msra.mxu2 %v8178_v44  ;;  %1713 = vmatmul.bf16.vlgmr.msra.gmra.mxu0 %v1669_v33  ;;  %v8194_v44 = vld [vmem:[%s10903_s26 + $0x130] sm:$0xff]  ;;  %11063 = vst [vmem:[#allocation144_spill] sm:$0xff] %v8203_v28 }
 0x1a3   :  { %1758 = vmatpush.bf16.msrb.mxu0 %v11057_v51  ;;  %11059 = vst [vmem:[#allocation143_spill] sm:$0xff] %v8194_v44  ;;  %v1520_v51 = vpop.f32.mrf.mxu3  ;;  %v11064_v33 = vld [vmem:[#allocation86_spill] sm:$0xff] }
 0x1a4   :  { %1992 = vmatpush.bf16.msra.mxu1 %v7465_v16  ;;  %2018 = vmatpush.bf16.msra.mxu3 %v11060_v43  ;;  %v11065_v16 = vld [vmem:[#allocation7_spill] sm:$0xff] }
 0x1a5   :  { %v8212_v51 = vld [vmem:[%s10903_s26 + $0x120] sm:$0xff] }
 0x1a6   :  { %1732 = vmatpush.bf16.msra.mxu2 %v8194_v44  ;;  %v11066_v44 = vld [vmem:[#allocation85_spill] sm:$0xff]  ;;  %11067 = vst [vmem:[#allocation145_spill] sm:$0xff] %v8212_v51 }
 0x1a7   :  { %1759 = vmatpush.bf16.msrb.mxu0 %v11061_v63 }
 0x1a8   :  { %1993 = vmatpush.bf16.msra.mxu1 %v11062_v45  ;;  %2019 = vmatpush.bf16.msra.mxu3 %v11064_v33  ;;  %v11069_v45 = vld [vmem:[#allocation9_spill] sm:$0xff]  ;;  %v11070_v33 = vld [vmem:[#allocation87_spill] sm:$0xff] }
 0x1aa   :  { %1733 = vmatpush.bf16.msra.mxu2 %v8203_v28  ;;  %v8219_v28 = vpop.f32.mrf.mxu1 }
 0x1ab   :  { %1760 = vmatpush.bf16.msrb.mxu0 %v11065_v16  ;;  %v8217_v63 = vpop.f32.mrf.mxu3  ;;  %v11072_v16 = vld [vmem:[#allocation90_spill] sm:$0xff] }
 0x1ac   :  { %1994 = vmatpush.bf16.msra.mxu1 %v11066_v44  ;;  %2020 = vmatpush.bf16.msra.mxu3 %v11068_v14  ;;  %v8225_v44 = vld [vmem:[%s10903_s26 + $0x118] sm:$0xff]  ;;  %v11074_v14 = vld [vmem:[#allocation89_spill] sm:$0xff] }
 0x1ad   :  { %11071 = vst [vmem:[#allocation146_spill] sm:$0xff] %v8225_v44 }
 0x1ae   :  { %1734 = vmatpush.bf16.msra.mxu2 %v8212_v51  ;;  %v11073_v51 = vld [vmem:[#allocation21_spill] sm:$0xff] }
 0x1af   :  { %1761 = vmatpush.bf16.msrb.mxu0 %v11069_v45  ;;  %v8234_v45 = vld [vmem:[%s10903_s26 + $0x110] sm:$0xff] }
 0x1b0   :  { %1995 = vmatpush.bf16.msra.mxu1 %v11070_v33  ;;  %2021 = vmatpush.bf16.msra.mxu3 %v11072_v16  ;;  %11075 = vst [vmem:[#allocation147_spill] sm:$0xff] %v8234_v45  ;;  %v11076_v33 = vld [vmem:[#allocation25_spill] sm:$0xff] }
 0x1b2   :  { %1735 = vmatpush.bf16.msra.mxu2 %v8225_v44  ;;  %v1598_v38 = vpop.f32.mrf.mxu1  ;;  %v11077_v44 = vld [vmem:[#allocation91_spill] sm:$0xff] }
 0x1b3   :  { %1762 = vmatpush.bf16.msrb.mxu0 %v11073_v51  ;;  %v1572_v43 = vpop.f32.mrf.mxu3  ;;  %v8243_v51 = vld [vmem:[%s10903_s26 + $0x108] sm:$0xff] }
 0x1b4   :  { %1996 = vmatpush.bf16.msra.mxu1 %v11074_v14  ;;  %2022 = vmatpush.bf16.msra.mxu3 %v7576_v50  ;;  %11078 = vst [vmem:[#allocation148_spill] sm:$0xff] %v8243_v51  ;;  %v11079_v14 = vld [vmem:[#allocation29_spill] sm:$0xff]  ;;  %v8252_v43 = vld [vmem:[%s10903_s26 + $0x100] sm:$0xff] }
 0x1b5   :  { %11081 = vst [vmem:[#allocation149_spill] sm:$0xff] %v8252_v43  ;;  %v1671_v38 = vld [vmem:[#allocation1 + $0x24] sm:$0xff] }
 0x1b6   :  { %1736 = vmatpush.bf16.msra.mxu2 %v8234_v45  ;;  %v11080_v45 = vld [vmem:[#allocation93_spill] sm:$0xff] }
 0x1b7   :  { %1763 = vmatpush.bf16.msrb.mxu0 %v11076_v33  ;;  %v11083_v33 = vld [vmem:[#allocation33_spill] sm:$0xff] }
 0x1b8   :  { %1997 = vmatpush.bf16.msra.mxu1 %v11077_v44  ;;  %2023 = vmatpush.bf16.msra.mxu3 %v7594_v9  ;;  %v11082_v44 = vld [vmem:[#allocation11_spill] sm:$0xff]  ;;  %v11086_v9 = vld [vmem:[#allocation41_spill] sm:$0xff] }
 0x1b9   :  { %v11089_v50 = vld [vmem:[#allocation17_spill] sm:$0xff] }
 0x1ba   :  { %1737 = vmatpush.bf16.msra.mxu2 %v8243_v51  ;;  %v11084_v51 = vld [vmem:[#allocation37_spill] sm:$0xff] }
 0x1bb   :  { %1764 = vmatpush.bf16.msrb.mxu0 %v11079_v14  ;;  %v8259_v14 = vpop.f32.mrf.mxu3 }
 0x1bc   :  { %1998 = vmatpush.bf16.msra.mxu1 %v11080_v45  ;;  %2024 = vmatpush.bf16.msra.mxu3 %v7606_v15  ;;  %v11085_v45 = vld [vmem:[#allocation13_spill] sm:$0xff] }
 0x1bd   :  { %v11088_v15 = vld [vmem:[#allocation45_spill] sm:$0xff] }
 0x1be   :  { %1738 = vmatpush.bf16.msra.mxu2 %v8252_v43  ;;  %v11087_v43 = vld [vmem:[#allocation15_spill] sm:$0xff] }
 0x1bf   :  { %1765 = vmatpush.bf16.msrb.mxu0 %v11083_v33  ;;  %v11090_v33 = vld [vmem:[#allocation49_spill] sm:$0xff] }
 0x1c0   :  { %1999 = vmatpush.bf16.msra.mxu1 %v7603_v31  ;;  %2025 = vmatpush.bf16.msra.mxu3 %v7622_v29  ;;  %v11093_v29 = vld [vmem:[#allocation26_spill] sm:$0xff] }
 0x1c1   :  { %1739 = vmatmul.bf16.vlgmr.msra.gmra.mxu2 %v1671_v38  ;;  %v11091_v38 = vld [vmem:[#allocation22_spill] sm:$0xff] }
 0x1c2   :  { %1784 = vmatpush.bf16.msrb.mxu2 %v11082_v44 }
 0x1c3   :  { %1810 = vmatpush.bf16.msra.mxu0 %v11084_v51  ;;  %v1703_v44 = vpop.f32.mrf.mxu3  ;;  %v11092_v51 = vld [vmem:[#allocation53_spill] sm:$0xff] }
 0x1c6   :  { %1785 = vmatpush.bf16.msrb.mxu2 %v11085_v45  ;;  %v11094_v45 = vld [vmem:[#allocation57_spill] sm:$0xff] }
 0x1c7   :  { %1811 = vmatpush.bf16.msra.mxu0 %v11086_v9  ;;  %v11095_v9 = vld [vmem:[#allocation30_spill] sm:$0xff] }
 0x1ca   :  { %1786 = vmatpush.bf16.msrb.mxu2 %v11087_v43  ;;  %v11096_v43 = vld [vmem:[#allocation61_spill] sm:$0xff] }
 0x1cb   :  { %1812 = vmatpush.bf16.msra.mxu0 %v11088_v15 }
 0x1ce   :  { %1787 = vmatpush.bf16.msrb.mxu2 %v11089_v50  ;;  %v11097_v50 = vld [vmem:[#allocation35_spill] sm:$0xff] }
 0x1cf   :  { %1813 = vmatpush.bf16.msra.mxu0 %v11090_v33  ;;  %v11098_v33 = vld [vmem:[#allocation38_spill] sm:$0xff] }
 0x1d0   :  { %v8271_v31 = vpop.f32.mrf.mxu1 }
 0x1d2   :  { %1788 = vmatpush.bf16.msrb.mxu2 %v11091_v38  ;;  %v8277_v15 = vpop.f32.mrf.mxu3  ;;  %v11099_v38 = vld [vmem:[#allocation64_spill] sm:$0xff] }
 0x1d3   :  { %1814 = vmatpush.bf16.msra.mxu0 %v11092_v51  ;;  %v11100_v51 = vld [vmem:[#allocation42_spill] sm:$0xff] }
 0x1d6   :  { %1789 = vmatpush.bf16.msrb.mxu2 %v11093_v29  ;;  %v11102_v29 = vld [vmem:[#allocation50_spill] sm:$0xff] }
 0x1d7   :  { %1815 = vmatpush.bf16.msra.mxu0 %v11094_v45  ;;  %v11103_v45 = vld [vmem:[#allocation54_spill] sm:$0xff] }
 0x1d8   :  { %v1729_v44 = vpop.f32.mrf.mxu1 }
 0x1d9   :  { %v11106_v44 = vld [vmem:[#allocation65_spill] sm:$0xff] }
 0x1da   :  { %1790 = vmatpush.bf16.msrb.mxu2 %v11095_v9  ;;  %v1755_v16 = vpop.f32.mrf.mxu3  ;;  %v11104_v9 = vld [vmem:[#allocation58_spill] sm:$0xff] }
 0x1db   :  { %1816 = vmatpush.bf16.msra.mxu0 %v11096_v43  ;;  %v11105_v43 = vld [vmem:[#allocation62_spill] sm:$0xff] }
 0x1de   :  { %1791 = vmatpush.bf16.msrb.mxu2 %v11097_v50 }
 0x1df   :  { %1817 = vmatpush.bf16.msra.mxu0 %v11099_v38 }
 0x1e2   :  { %1836 = vmatpush.bf16.msra.mxu2 %v11098_v33  ;;  %v1166_v33 = vld [vmem:[%s10543_s6] sm:$0xf] }
 0x1e3   :  { %v8292_v38 = vperm.slane %v1166_v33, 1 }
 0x1e5   :  { %11107 = vst [vmem:[#allocation150_spill] sm:$0xff] %v8292_v38 }
 0x1e6   :  { %1837 = vmatpush.bf16.msra.mxu2 %v11100_v51 }
 0x1ea   :  { %1838 = vmatpush.bf16.msra.mxu2 %v11101_v3 }
 0x1ee   :  { %1839 = vmatpush.bf16.msra.mxu2 %v11102_v29 }
 0x1f2   :  { %1840 = vmatpush.bf16.msra.mxu2 %v11103_v45  ;;  %v8298_v45 = vperm.slane %v1166_v33, 0 }
 0x1f4   :  { %11108 = vst [vmem:[#allocation151_spill] sm:$0xff] %v8298_v45 }
 0x1f6   :  { %1841 = vmatpush.bf16.msra.mxu2 %v11104_v9 }
 0x1fa   :  { %1842 = vmatpush.bf16.msra.mxu2 %v11105_v43 }
 0x1fe   :  { %1843 = vmatpush.bf16.msra.mxu2 %v11106_v44  ;;  %v1531_v51 = vpop.f32.mrf.mxu0 }
 0x1ff   :  { %v1532_v16 = vadd.f32 %v1531_v51, %v8292_v38  ;;  %v8295_v3 = vpop.f32.mrf.mxu1  ;;  %v8304_v51 = vperm.slane %v1166_v33, 3 }
 0x201   :  { %v1545_v29 = vadd.f32 %v8173_v60, %v1532_v16  ;;  %11109 = vst [vmem:[#allocation152_spill] sm:$0xff] %v8304_v51 }
 0x203   :  { %v5646_v9 = vmul.f32 -1.442695, %v1545_v29 }
 0x204   :  { %v1505_v50 = vpop.f32.mrf.mxu2 }
 0x205   :  { %6000 = vpow2.f32 %v5646_v9  ;;  %v1506_v44 = vadd.f32 %v1505_v50, %v8298_v45  ;;  %v8310_v45 = vperm.slane %v1166_v33, 2 }
 0x206   :  { %v8301_v43 = vpop.f32.mrf.mxu3  ;;  %v1533_v58 = vpop.f32.mrf.mxu0 }
 0x207   :  { %v1519_v47 = vadd.f32 %v8171_v2, %v1506_v44  ;;  %v1782_v48 = vpop.f32.mrf.mxu1  ;;  %11111 = vst [vmem:[#allocation154_spill] sm:$0xff] %v8310_v45 }
 0x209   :  { %v5645_v7 = vmul.f32 -1.442695, %v1519_v47 }
 0x20b   :  { %v6001_v34 = vpop.eup %6000  ;;  %6002 = vpow2.f32 %v5645_v7 }
 0x20c   :  { %v1622_v38 = vadd.f32 1.0, %v6001_v34  ;;  %v1507_v60 = vpop.f32.mrf.mxu2 }
 0x20e   :  { %6004 = vrcp.f32 %v1622_v38  ;;  %v1808_v16 = vpop.f32.mrf.mxu3  ;;  %v1583_v29 = vpop.f32.mrf.mxu0  ;;  %vm1628_vm13 = vweird.f32 %v1622_v38  ;;  %v1632_v23 = vand.u32 2147483647, %v1622_v38 }
 0x20f   :  { %v1584_v9 = vadd.f32 %v1583_v29, %v8304_v51  ;;  %v8307_v39 = vpop.f32.mrf.mxu1 }
 0x210   :  { %11110 = vst [vmem:[#allocation153_spill] sm:$0xff] %v8307_v39  ;;  %vm1633_vm1 = vcmp.eq.f32.partialorder %v1632_v23, 8.507059e+37 }
 0x211   :  { %v6003_v50 = vpop.eup %6002  ;;  %v1597_v58 = vadd.f32 %v8219_v28, %v1584_v9 }
 0x212   :  { %v1603_v48 = vadd.f32 1.0, %v6003_v50 }
 0x213   :  { %v5647_v47 = vmul.f32 -1.442695, %v1597_v58  ;;  %v1634_v58 = vand.u32 2147483648, %v1622_v38 }
 0x214   :  { %v6005_v2 = vpop.eup %6004  ;;  %6006 = vrcp.f32 %v1603_v48  ;;  %v1557_v7 = vpop.f32.mrf.mxu2  ;;  %vm1609_vm0 = vweird.f32 %v1603_v48 }
 0x215   :  { %v1624_v44 = vmul.f32 %v6005_v2, %v1622_v38  ;;  %6008 = vpow2.f32 %v5647_v47  ;;  %v1558_v34 = vadd.f32 %v1557_v7, %v8310_v45  ;;  %vm1629_vm12 = vweird.f32 %v6005_v2 }
 0x216   :  { %v8313_v60 = vpop.f32.mrf.mxu3  ;;  %v1585_v16 = vpop.f32.mrf.mxu0  ;;  %v1615_v7 = vand.u32 2147483648, %v1603_v48  ;;  %vm1630_vm14 = vmor %vm1628_vm13, %vm1629_vm12 }
 0x217   :  { %v1625_v29 = vsub.f32 1.0, %v1624_v44  ;;  %v1834_v51 = vpop.f32.mrf.mxu1  ;;  %v1571_v40 = vadd.f32 %v8217_v63, %v1558_v34  ;;  %v1613_v16 = vand.u32 2147483647, %v1603_v48 }
 0x219   :  { %v1626_v52 = vmul.f32 %v6005_v2, %v1625_v29  ;;  %6010 = vtanh.f32 %v1571_v40  ;;  %v1635_v29 = vor.u32 1.1754944e-38, %v1634_v58  ;;  %vm1614_vm3 = vcmp.eq.f32.partialorder %v1613_v16, 8.507059e+37 }
 0x21a   :  { %v6007_v28 = vpop.eup %6006 }
 0x21b   :  { %v6009_v33 = vpop.eup %6008  ;;  %v1605_v9 = vmul.f32 %v6007_v28, %v1603_v48  ;;  %v1627_v50 = vadd.f32 %v6005_v2, %v1626_v52  ;;  %vm1610_vm15 = vweird.f32 %v6007_v28  ;;  %v1616_v52 = vor.u32 1.1754944e-38, %v1615_v7 }
 0x21c   :  { %v1642_v41 = vadd.f32 1.0, %v6009_v33  ;;  %v1559_v36 = vpop.f32.mrf.mxu2  ;;  %vm1611_vm2 = vmor %vm1609_vm0, %vm1610_vm15 }
 0x21d   :  { %v1606_v47 = vsub.f32 1.0, %v1605_v9  ;;  %v1631_v63 = vsel %vm1630_vm14, %v6005_v2, %v1627_v50 }
 0x21e   :  { %6012 = vrcp.f32 %v1642_v41  ;;  %v1860_v44 = vpop.f32.mrf.mxu3  ;;  %v1636_v36 = vsel %vm1633_vm1, %v1635_v29, %v1631_v63  ;;  %v1654_v50 = vand.u32 2147483648, %v1642_v41  ;;  %v1652_v48 = vand.u32 2147483647, %v1642_v41  ;;  %v8322_v29 = vld [vmem:[%s10539_s2] ss:$0 sm:$0xff] }
 0x21f   :  { %v1607_v51 = vmul.f32 %v6007_v28, %v1606_v47  ;;  %v1714_v34 = vpop.f32.mrf.mxu0  ;;  %v6011_v33 = vpop.eup %6010  ;;  %v1658_v44 = vmul.f32 0.0, %v1636_v36  ;;  %vm1648_vm5 = vweird.f32 %v1642_v41  ;;  %v11113_v36 = vld [vmem:[#allocation100_spill] sm:$0xff] }
 0x220   :  { %vm1653_vm7 = vcmp.eq.f32.partialorder %v1652_v48, 8.507059e+37  ;;  %v11116_v48 = vld [vmem:[#allocation8_spill] sm:$0xff] }
 0x221   :  { %v1608_v45 = vadd.f32 %v6007_v28, %v1607_v51 }
 0x223   :  { %v1612_v9 = vsel %vm1611_vm2, %v6007_v28, %v1608_v45  ;;  %v1655_v28 = vor.u32 1.1754944e-38, %v1654_v50  ;;  %v11115_v50 = vld [vmem:[#allocation101_spill] sm:$0xff] }
 0x224   :  { %v6013_v40 = vpop.eup %6012  ;;  %v1617_v38 = vsel %vm1614_vm3, %v1616_v52, %v1612_v9  ;;  %v1688_v8 = vpop.f32.mrf.mxu2  ;;  %v11112_v52 = vld [vmem:[#allocation98_spill] sm:$0xff]  ;;  %v11114_v9 = vld [vmem:[#allocation99_spill] sm:$0xff] }
 0x225   :  { %v1644_v59 = vmul.f32 %v6013_v40, %v1642_v41  ;;  %v1659_v47 = vmul.f32 %v6011_v33, %v1617_v38  ;;  %vm1649_vm4 = vweird.f32 %v6013_v40  ;;  %v8381_v38 = vld [vmem:[%s10903_s26 + $0x178] sm:$0xff] }
 0x226   :  { %vm1650_vm6 = vmor %vm1648_vm5, %vm1649_vm4 }
 0x227   :  { %v1645_v32 = vsub.f32 1.0, %v1644_v59  ;;  %v8316_v39 = vadd.f32 %v1659_v47, %v1658_v44  ;;  %v1716_v2 = vpop.f32.mrf.mxu0  ;;  %v8387_v44 = vld [vmem:[%s10903_s26 + $0xc0] sm:$0xff]  ;;  %v8396_v47 = vld [vmem:[%s10903_s26 + $0x170] sm:$0xff] }
 0x228   :  { %v8405_v2 = vld [vmem:[%s10903_s26 + $0x168] sm:$0xff] }
 0x229   :  { %6014 = vtanh.f32 %v8316_v39  ;;  %v1646_v23 = vmul.f32 %v6013_v40, %v1645_v32  ;;  %v1689_v32 = vadd.f32 %v8322_v29, %v1688_v8 }
 0x22b   :  { %v1647_v58 = vadd.f32 %v6013_v40, %v1646_v23  ;;  %v1702_v41 = vadd.f32 %v8259_v14, %v1689_v32  ;;  %v8340_v14 = vld [vmem:[%s10903_s26 + $0xd8] sm:$0xff]  ;;  %v8414_v23 = vld [vmem:[%s10903_s26 + $0x160] sm:$0xff] }
 0x22c   :  { %v1690_v45 = vpop.f32.mrf.mxu2  ;;  %v11125_v32 = vld [vmem:[#allocation23_spill] sm:$0xff] }
 0x22d   :  { %v1651_v7 = vsel %vm1650_vm6, %v6013_v40, %v1647_v58  ;;  %v1715_v33 = vadd.f32 %v1714_v34, %v1702_v41  ;;  %v8374_v34 = vld [vmem:[%s10903_s26 + $0x40] sm:$0xff]  ;;  %v11118_v45 = vld [vmem:[#allocation102_spill] sm:$0xff]  ;;  %v8442_v41 = vld [vmem:[%s10903_s26 + $0x148] sm:$0xff] }
 0x22e   :  { %v1656_v51 = vsel %vm1653_vm7, %v1655_v28, %v1651_v7  ;;  %v11117_v58 = vld [vmem:[#allocation107_spill] sm:$0xff]  ;;  %11126 = vst [vmem:[#allocation99_spill] sm:$0xff] %v8442_v41 }
 0x22f   :  { %v6015_v16 = vpop.eup %6014  ;;  %v1728_v40 = vadd.f32 %v8271_v31, %v1715_v33  ;;  %v8423_v28 = vld [vmem:[%s10903_s26 + $0x158] sm:$0xff]  ;;  %v8451_v33 = vld [vmem:[%s10903_s26 + $0x140] sm:$0xff] }
 0x230   :  { %v1662_v63 = vmul.f32 %v6015_v16, %v1656_v51  ;;  %11119 = vst [vmem:[#allocation98_spill] sm:$0xff] %v8423_v28  ;;  %v11120_v7 = vld [vmem:[#allocation19_spill] sm:$0xff]  ;;  %v11121_v51 = vld [vmem:[#allocation109_spill] sm:$0xff] }
 0x231   :  { %v11122_v16 = vld [vmem:[#allocation103_spill] sm:$0xff]  ;;  %11129 = vst [vmem:[#allocation101_spill] sm:$0xff] %v8451_v33 }
 0x232   :  { %v1926_v59 = vpack.c.bf16 %v1662_v63, %v1662_v63  ;;  %v8432_v63 = vld [vmem:[%s10903_s26 + $0x150] sm:$0xff] }
 0x233   :  { %11123 = vst [vmem:[#allocation100_spill] sm:$0xff] %v8432_v63 }
 0x234   :  { %1948 = vmatmul.bf16.vlgmr.msrb.gmra.mxu1 %v1926_v59  ;;  %1974 = vmatmul.bf16.vlgmr.msrb.gmra.mxu3 %v1926_v59 }
 0x235   :  { %2123 = vmatpush.bf16.msrb.mxu1 %v7618_v12  ;;  %2149 = vmatpush.bf16.msrb.mxu3 %v7635_v25 }
 0x239   :  { %2124 = vmatpush.bf16.msrb.mxu1 %v11112_v52  ;;  %2150 = vmatpush.bf16.msrb.mxu3 %v11113_v36  ;;  %v11127_v52 = vld [vmem:[#allocation105_spill] sm:$0xff]  ;;  %v11128_v36 = vld [vmem:[#allocation27_spill] sm:$0xff] }
 0x23d   :  { %2125 = vmatpush.bf16.msrb.mxu1 %v11114_v9  ;;  %2151 = vmatpush.bf16.msrb.mxu3 %v7668_v1  ;;  %v8346_v1 = vld [vmem:[%s10903_s26 + $0x50] sm:$0xff]  ;;  %v11130_v9 = vld [vmem:[#allocation108_spill] sm:$0xff] }
 0x241   :  { %2126 = vmatpush.bf16.msrb.mxu1 %v7662_v4  ;;  %2152 = vmatpush.bf16.msrb.mxu3 %v7681_v49  ;;  %v8367_v49 = vld [vmem:[%s10903_s26 + $0xc8] sm:$0xff] }
 0x244   :  { %v1740_v8 = vpop.f32.mrf.mxu2  ;;  %2000 = vmatmul.bf16.vlgmr.msra.gmra.mxu1 %v1926_v59  ;;  %2026 = vmatmul.bf16.vlgmr.msra.gmra.mxu3 %v1926_v59  ;;  %v11124_v59 = vld [vmem:[#allocation104_spill] sm:$0xff] }
 0x245   :  { %v1741_v12 = vadd.f32 %v1740_v8, %v1728_v40  ;;  %2127 = vmatpush.bf16.msrb.mxu1 %v7675_v57  ;;  %2153 = vmatpush.bf16.msrb.mxu3 %v8340_v14  ;;  %v8360_v57 = vld [vmem:[%s10903_s26 + $0x48] sm:$0xff] }
 0x246   :  { %v11131_v40 = vld [vmem:[#allocation32_spill] sm:$0xff] }
 0x247   :  { %v1754_v25 = vadd.f32 %v8277_v15, %v1741_v12  ;;  %v8353_v15 = vld [vmem:[%s10903_s26 + $0xd0] sm:$0xff]  ;;  %v11132_v8 = vld [vmem:[#allocation120_spill] sm:$0xff] }
 0x248   :  { %v5655_v12 = vld [vmem:[%s10904_s27 + $0xc] sm:$0x3f] }
 0x249   :  { %v1757_v31 = vpack.c.bf16 %v1754_v25, %v1754_v25  ;;  %2128 = vmatpush.bf16.msrb.mxu1 %v8346_v1  ;;  %2154 = vmatpush.bf16.msrb.mxu3 %v8353_v15  ;;  %2097 = vst [vmem:[#allocation1] ss:$9 sm:$0xff] %v5655_v12  ;;  %v11137_v12 = vld [vmem:[#allocation110_spill] sm:$0xff] }
 0x24b   :  { %1766 = vmatmul.bf16.vlgmr.msrb.gmra.mxu0 %v1757_v31  ;;  %1792 = vmatmul.bf16.vlgmr.msrb.gmra.mxu2 %v1757_v31 }
 0x24c   :  { %v1742_v4 = vpop.f32.mrf.mxu2  ;;  %1927 = vmatpush.bf16.msrb.mxu0 %v7657_v10  ;;  %1953 = vmatpush.bf16.msrb.mxu2 %v7741_v30 }
 0x24d   :  { %2129 = vmatpush.bf16.msrb.mxu1 %v8360_v57  ;;  %2155 = vmatpush.bf16.msrb.mxu3 %v8367_v49  ;;  %v11133_v4 = vld [vmem:[#allocation10_spill] sm:$0xff] }
 0x250   :  { %1928 = vmatpush.bf16.msrb.mxu0 %v7707_v26  ;;  %1954 = vmatpush.bf16.msrb.mxu2 %v7764_v19 }
 0x251   :  { %2130 = vmatpush.bf16.msrb.mxu1 %v8374_v34  ;;  %2156 = vmatpush.bf16.msrb.mxu3 %v8387_v44 }
 0x254   :  { %1929 = vmatpush.bf16.msrb.mxu0 %v7720_v35  ;;  %1955 = vmatpush.bf16.msrb.mxu2 %v7784_v11 }
 0x255   :  { %2175 = vmatpush.bf16.msra.mxu1 %v8381_v38  ;;  %2202 = vmatpush.bf16.msra.mxu3 %v6688_v46 }
 0x258   :  { %1930 = vmatpush.bf16.msrb.mxu0 %v7731_v5  ;;  %1956 = vmatpush.bf16.msrb.mxu2 %v7805_v42 }
 0x259   :  { %2176 = vmatpush.bf16.msra.mxu1 %v8396_v47  ;;  %2203 = vmatpush.bf16.msra.mxu3 %v6715_v54 }
 0x25b   :  { %1818 = vmatmul.bf16.vlgmr.msra.gmra.mxu0 %v1757_v31  ;;  %1844 = vmatmul.bf16.vlgmr.msra.gmra.mxu2 %v1757_v31  ;;  %v2099_v31 = vld [vmem:[#allocation1 + $0x9] sm:$0xff] }
 0x25c   :  { %1931 = vmatpush.bf16.msrb.mxu0 %v7751_v53  ;;  %1957 = vmatpush.bf16.msrb.mxu2 %v7832_v27 }
 0x25d   :  { %2177 = vmatpush.bf16.msra.mxu1 %v8405_v2  ;;  %2204 = vmatpush.bf16.msra.mxu3 %v6742_v62 }
 0x25e   :  { %2131 = vmatmul.bf16.vlgmr.msrb.gmra.mxu1 %v2099_v31 }
 0x260   :  { %1932 = vmatpush.bf16.msrb.mxu0 %v11115_v50  ;;  %1958 = vmatpush.bf16.msrb.mxu2 %v11117_v58 }
 0x261   :  { %2178 = vmatpush.bf16.msra.mxu1 %v8414_v23  ;;  %2205 = vmatpush.bf16.msra.mxu3 %v11116_v48 }
 0x264   :  { %1933 = vmatpush.bf16.msrb.mxu0 %v11118_v45  ;;  %1959 = vmatpush.bf16.msrb.mxu2 %v11121_v51 }
 0x265   :  { %2179 = vmatpush.bf16.msra.mxu1 %v8423_v28  ;;  %2206 = vmatpush.bf16.msra.mxu3 %v11120_v7  ;;  %v11153_v7 = vld [vmem:[#allocation51_spill] sm:$0xff]  ;;  %v11154_v28 = vld [vmem:[#allocation48_spill] sm:$0xff] }
 0x268   :  { %1934 = vmatpush.bf16.msrb.mxu0 %v11122_v16  ;;  %1960 = vmatpush.bf16.msrb.mxu2 %v7902_v24 }
 0x269   :  { %2180 = vmatpush.bf16.msra.mxu1 %v8432_v63  ;;  %2207 = vmatpush.bf16.msra.mxu3 %v11125_v32  ;;  %v2103_v32 = vld [vmem:[#allocation1 + $0x2d] sm:$0xff] }
 0x26c   :  { %1979 = vmatpush.bf16.msra.mxu0 %v11124_v59  ;;  %2005 = vmatpush.bf16.msra.mxu2 %v7911_v17 }
 0x26d   :  { %2181 = vmatpush.bf16.msra.mxu1 %v8442_v41  ;;  %2208 = vmatpush.bf16.msra.mxu3 %v11128_v36  ;;  %v11139_v41 = vld [vmem:[#allocation20_spill] sm:$0xff] }
 0x270   :  { %1980 = vmatpush.bf16.msra.mxu0 %v11127_v52  ;;  %2006 = vmatpush.bf16.msra.mxu2 %v7935_v6 }
 0x271   :  { %2182 = vmatpush.bf16.msra.mxu1 %v8451_v33  ;;  %2209 = vmatpush.bf16.msra.mxu3 %v11131_v40  ;;  %v11136_v40 = vld [vmem:[#allocation16_spill] sm:$0xff] }
 0x274   :  { %1981 = vmatpush.bf16.msra.mxu0 %v11130_v9  ;;  %2007 = vmatpush.bf16.msra.mxu2 %v7960_v13 }
 0x275   :  { %2228 = vmatpush.bf16.msrb.mxu1 %v11133_v4 }
 0x276   :  { %2183 = vmatmul.bf16.vlgmr.msra.gmra.mxu1 %v2103_v32 }
 0x278   :  { %1982 = vmatpush.bf16.msra.mxu0 %v7894_v55  ;;  %2008 = vmatpush.bf16.msra.mxu2 %v7981_v56  ;;  %v11141_v55 = vld [vmem:[#allocation24_spill] sm:$0xff] }
 0x27c   :  { %1983 = vmatpush.bf16.msra.mxu0 %v7922_v61  ;;  %2009 = vmatpush.bf16.msra.mxu2 %v8011_v37  ;;  %v11138_v61 = vld [vmem:[#allocation18_spill] sm:$0xff] }
 0x280   :  { %1984 = vmatpush.bf16.msra.mxu0 %v7944_v21  ;;  %2010 = vmatpush.bf16.msra.mxu2 %v8023_v18  ;;  %v11134_v21 = vld [vmem:[#allocation12_spill] sm:$0xff] }
 0x281   :  { %2229 = vmatpush.bf16.msrb.mxu1 %v11134_v21 }
 0x284   :  { %1985 = vmatpush.bf16.msra.mxu0 %v7972_v20  ;;  %2011 = vmatpush.bf16.msra.mxu2 %v8038_v22  ;;  %v11135_v22 = vld [vmem:[#allocation14_spill] sm:$0xff] }
 0x285   :  { %2230 = vmatpush.bf16.msrb.mxu1 %v11135_v22 }
 0x288   :  { %1986 = vmatpush.bf16.msra.mxu0 %v11132_v8  ;;  %2012 = vmatpush.bf16.msra.mxu2 %v8059_v0 }
 0x289   :  { %2231 = vmatpush.bf16.msrb.mxu1 %v11136_v40 }
 0x28d   :  { %2232 = vmatpush.bf16.msrb.mxu1 %v11138_v61  ;;  %v2101_v61 = vld [vmem:[#allocation1 + $0x1b] sm:$0xff] }
 0x28e   :  { %2157 = vmatmul.bf16.vlgmr.msrb.gmra.mxu3 %v2101_v61  ;;  %v11147_v61 = vld [vmem:[#allocation43_spill] sm:$0xff] }
 0x291   :  { %2233 = vmatpush.bf16.msrb.mxu1 %v11139_v41  ;;  %v11150_v41 = vld [vmem:[#allocation47_spill] sm:$0xff] }
 0x295   :  { %2234 = vmatpush.bf16.msrb.mxu1 %v11141_v55 }
 0x2b1   :  { %v8470_v25 = vpop.f32.mrf.mxu1 }
 0x2b7   :  { %v8473_v18 = vpop.f32.mrf.mxu3 }
 0x2b9   :  { %v1951_v20 = vpop.f32.mrf.mxu1 }
 0x2bf   :  { %v1977_v8 = vpop.f32.mrf.mxu3 }
 0x2c0   :  { %v11140_v8 = vld [vmem:[#allocation106_spill] sm:$0xff] }
 0x2c1   :  { %v8477_v0 = vpop.f32.mrf.mxu1 }
 0x2c7   :  { %v8482_v31 = vpop.f32.mrf.mxu3 }
 0x2c8   :  { %v1767_v33 = vpop.f32.mrf.mxu0 }
 0x2c9   :  { %v1768_v37 = vadd.f32 %v1767_v33, %v11137_v12  ;;  %v2003_v36 = vpop.f32.mrf.mxu1 }
 0x2ca   :  { %v11143_v36 = vld [vmem:[#allocation34_spill] sm:$0xff] }
 0x2cb   :  { %v1781_v4 = vadd.f32 %v8295_v3, %v1768_v37  ;;  %v11142_v3 = vld [vmem:[#allocation28_spill] sm:$0xff]  ;;  %2254 = vmatpush.bf16.msrb.mxu3 %v11143_v36 }
 0x2cc   :  { %2235 = vmatpush.bf16.msrb.mxu1 %v11142_v3  ;;  %v11148_v3 = vld [vmem:[#allocation40_spill] sm:$0xff] }
 0x2cd   :  { %v5649_v20 = vmul.f32 -1.442695, %v1781_v4 }
 0x2ce   :  { %v1793_v21 = vpop.f32.mrf.mxu2 }
 0x2cf   :  { %6016 = vpow2.f32 %v5649_v20  ;;  %v1794_v22 = vadd.f32 %v1793_v21, %v11140_v8  ;;  %v2029_v33 = vpop.f32.mrf.mxu3  ;;  %v11144_v21 = vld [vmem:[#allocation31_spill] sm:$0xff] }
 0x2d0   :  { %v1769_v56 = vpop.f32.mrf.mxu0  ;;  %2280 = vmatpush.bf16.msra.mxu1 %v11144_v21 }
 0x2d1   :  { %v1807_v40 = vadd.f32 %v8301_v43, %v1794_v22  ;;  %v11145_v22 = vld [vmem:[#allocation39_spill] sm:$0xff]  ;;  %v11146_v43 = vld [vmem:[#allocation36_spill] sm:$0xff] }
 0x2d2   :  { %2255 = vmatpush.bf16.msrb.mxu3 %v11145_v22  ;;  %v11151_v22 = vld [vmem:[#allocation44_spill] sm:$0xff] }
 0x2d3   :  { %v5650_v12 = vmul.f32 -1.442695, %v1807_v40 }
 0x2d4   :  { %2281 = vmatpush.bf16.msra.mxu1 %v11146_v43  ;;  %v11152_v43 = vld [vmem:[#allocation119_spill] sm:$0xff] }
 0x2d5   :  { %v6017_v37 = vpop.eup %6016  ;;  %6018 = vpow2.f32 %v5650_v12 }
 0x2d6   :  { %v1865_v4 = vadd.f32 1.0, %v6017_v37  ;;  %v1795_v20 = vpop.f32.mrf.mxu2  ;;  %2256 = vmatpush.bf16.msrb.mxu3 %v11147_v61  ;;  %v11149_v37 = vld [vmem:[#allocation115_spill] sm:$0xff] }
 0x2d8   :  { %6020 = vrcp.f32 %v1865_v4  ;;  %v1819_v56 = vpop.f32.mrf.mxu0  ;;  %2282 = vmatpush.bf16.msra.mxu1 %v11148_v3  ;;  %vm1871_vm10 = vweird.f32 %v1865_v4 }
 0x2da   :  { %2257 = vmatpush.bf16.msrb.mxu3 %v11150_v41 }
 0x2db   :  { %v6019_v40 = vpop.eup %6018 }
 0x2dc   :  { %v1884_v33 = vadd.f32 1.0, %v6019_v40  ;;  %2283 = vmatpush.bf16.msra.mxu1 %v11151_v22  ;;  %v1820_v40 = vadd.f32 %v1819_v56, %v11152_v43  ;;  %v1877_v22 = vand.u32 2147483648, %v1865_v4  ;;  %v11162_v43 = vld [vmem:[#allocation125_spill] sm:$0xff] }
 0x2de   :  { %v6021_v32 = vpop.eup %6020  ;;  %6022 = vrcp.f32 %v1884_v33  ;;  %v1845_v12 = vpop.f32.mrf.mxu2  ;;  %2258 = vmatpush.bf16.msrb.mxu3 %v11153_v7  ;;  %v1894_v56 = vand.u32 2147483647, %v1884_v33  ;;  %vm1890_vm11 = vweird.f32 %v1884_v33 }
 0x2df   :  { %v1867_v36 = vmul.f32 %v6021_v32, %v1865_v4  ;;  %v1846_v20 = vadd.f32 %v1845_v12, %v11149_v37  ;;  %vm1872_vm8 = vweird.f32 %v6021_v32  ;;  %v11163_v37 = vld [vmem:[#allocation63_spill] sm:$0xff] }
 0x2e0   :  { %v1821_v55 = vpop.f32.mrf.mxu0  ;;  %2284 = vmatpush.bf16.msra.mxu1 %v11154_v28  ;;  %vm8506_vm12 = vmor %vm1871_vm10, %vm1872_vm8  ;;  %vm1895_vm14 = vcmp.eq.f32.partialorder %v1894_v56, 8.507059e+37 }
 0x2e1   :  { %v1868_v21 = vsub.f32 1.0, %v1867_v36  ;;  %v1859_v8 = vadd.f32 %v8313_v60, %v1846_v20  ;;  %v11155_v36 = vld [vmem:[#allocation153_spill] sm:$0xff]  ;;  %v1896_v60 = vand.u32 2147483648, %v1884_v33 }
 0x2e2   :  { %v1833_v12 = vadd.f32 %v11155_v36, %v1820_v40  ;;  %v1878_v36 = vor.u32 1.1754944e-38, %v1877_v22 }
 0x2e3   :  { %v5651_v63 = vmul.f32 -1.442695, %v1859_v8  ;;  %v1869_v13 = vmul.f32 %v6021_v32, %v1868_v21  ;;  %v11156_v8 = vld [vmem:[#allocation55_spill] sm:$0xff]  ;;  %v1875_v21 = vand.u32 2147483647, %v1865_v4 }
 0x2e4   :  { %v6023_v61 = vpop.eup %6022  ;;  %2259 = vmatpush.bf16.msrb.mxu3 %v11156_v8  ;;  %v11160_v4 = vld [vmem:[#allocation59_spill] sm:$0xff] }
 0x2e5   :  { %v1886_v9 = vmul.f32 %v6023_v61, %v1884_v33  ;;  %6024 = vpow2.f32 %v5651_v63  ;;  %v1870_v20 = vadd.f32 %v6021_v32, %v1869_v13  ;;  %vm1891_vm9 = vweird.f32 %v6023_v61  ;;  %v11157_v63 = vld [vmem:[#allocation52_spill] sm:$0xff] }
 0x2e6   :  { %v1847_v3 = vpop.f32.mrf.mxu2  ;;  %2285 = vmatpush.bf16.msra.mxu1 %v11157_v63  ;;  %6026 = vtanh.f32 %v1833_v12  ;;  %vm1892_vm13 = vmor %vm1890_vm11, %vm1891_vm9  ;;  %v1897_v13 = vor.u32 1.1754944e-38, %v1896_v60  ;;  %vm1876_vm15 = vcmp.eq.f32.partialorder %v1875_v21, 8.507059e+37  ;;  %v11161_v33 = vld [vmem:[#allocation56_spill] sm:$0xff] }
 0x2e7   :  { %v1887_v55 = vsub.f32 1.0, %v1886_v9  ;;  %v1874_v40 = vsel %vm8506_vm12, %v6021_v32, %v1870_v20  ;;  %v11164_v3 = vld [vmem:[#allocation60_spill] sm:$0xff] }
 0x2e8   :  { %2260 = vmatpush.bf16.msrb.mxu3 %v11160_v4  ;;  %v1879_v28 = vsel %vm1876_vm15, %v1878_v36, %v1874_v40  ;;  %v11166_v36 = vld [vmem:[#allocation126_spill] sm:$0xff] }
 0x2e9   :  { %v1888_v41 = vmul.f32 %v6023_v61, %v1887_v55 }
 0x2ea   :  { %2286 = vmatpush.bf16.msra.mxu1 %v11161_v33 }
 0x2eb   :  { %v6025_v7 = vpop.eup %6024  ;;  %v1889_v9 = vadd.f32 %v6023_v61, %v1888_v41 }
 0x2ec   :  { %v1904_v55 = vadd.f32 1.0, %v6025_v7  ;;  %v6027_v12 = vpop.eup %6026  ;;  %2261 = vmatpush.bf16.msrb.mxu3 %v11163_v37 }
 0x2ed   :  { %v1893_v8 = vsel %vm1892_vm13, %v6023_v61, %v1889_v9  ;;  %v1921_v60 = vmul.f32 %v6027_v12, %v1879_v28  ;;  %v11168_v12 = vld [vmem:[#allocation66_spill] sm:$0xff] }
 0x2ee   :  { %v1898_v63 = vsel %vm1895_vm14, %v1897_v13, %v1893_v8  ;;  %6028 = vrcp.f32 %v1904_v55  ;;  %2287 = vmatpush.bf16.msra.mxu1 %v11164_v3  ;;  %v1916_v20 = vand.u32 2147483648, %v1904_v55  ;;  %v1914_v8 = vand.u32 2147483647, %v1904_v55 }
 0x2ef   :  { %v1920_v41 = vmul.f32 %v1898_v63, %v11162_v43  ;;  %vm1910_vm1 = vweird.f32 %v1904_v55 }
 0x2f0   :  { %v1917_v43 = vor.u32 1.1754944e-38, %v1916_v20  ;;  %vm1915_vm3 = vcmp.eq.f32.partialorder %v1914_v8, 8.507059e+37  ;;  %v11174_v20 = vld [vmem:[#allocation130_spill] sm:$0xff]  ;;  %v11176_v8 = vld [vmem:[#allocation69_spill] sm:$0xff] }
 0x2f1   :  { %v8517_v22 = vadd.f32 %v1921_v60, %v1920_v41  ;;  %v11167_v41 = vld [vmem:[#allocation127_spill] sm:$0xff]  ;;  %v11169_v60 = vld [vmem:[#allocation68_spill] sm:$0xff] }
 0x2f3   :  { %11165 = vst [vmem:[#allocation8_spill] sm:$0xff] %v8517_v22  ;;  %6030 = vtanh.f32 %v8517_v22 }
 0x2f4   :  { %v6029_v7 = vpop.eup %6028 }
 0x2f5   :  { %v1906_v61 = vmul.f32 %v6029_v7, %v1904_v55  ;;  %vm1911_vm0 = vweird.f32 %v6029_v7  ;;  %v11170_v55 = vld [vmem:[#allocation128_spill] sm:$0xff] }
 0x2f6   :  { %vm1912_vm2 = vmor %vm1910_vm1, %vm1911_vm0 }
 0x2f7   :  { %v1907_v32 = vsub.f32 1.0, %v1906_v61  ;;  %v11172_v61 = vld [vmem:[#allocation67_spill] sm:$0xff] }
 0x2f9   :  { %v1908_v56 = vmul.f32 %v6029_v7, %v1907_v32  ;;  %v6031_v28 = vpop.eup %6030  ;;  %v11173_v32 = vld [vmem:[#allocation70_spill] sm:$0xff] }
 0x2fb   :  { %v1909_v21 = vadd.f32 %v6029_v7, %v1908_v56  ;;  %v11175_v56 = vld [vmem:[#allocation131_spill] sm:$0xff] }
 0x2fd   :  { %v1913_v63 = vsel %vm1912_vm2, %v6029_v7, %v1909_v21  ;;  %v11171_v7 = vld [vmem:[#allocation129_spill] sm:$0xff]  ;;  %v11177_v21 = vld [vmem:[#allocation72_spill] sm:$0xff] }
 0x2fe   :  { %v1918_v9 = vsel %vm1915_vm3, %v1917_v43, %v1913_v63  ;;  %v11178_v43 = vld [vmem:[#allocation132_spill] sm:$0xff]  ;;  %v11179_v63 = vld [vmem:[#allocation133_spill] sm:$0xff] }
 0x2ff   :  { %v1924_v13 = vmul.f32 %v6031_v28, %v1918_v9  ;;  %v11180_v28 = vld [vmem:[#allocation71_spill] sm:$0xff]  ;;  %v11181_v9 = vld [vmem:[#allocation74_spill] sm:$0xff] }
 0x301   :  { %v1925_v40 = vpack.c.bf16 %v1924_v13, %v1924_v13  ;;  %v11182_v13 = vld [vmem:[#allocation134_spill] sm:$0xff] }
 0x303   :  { %1935 = vmatmul.bf16.vlgmr.msrb.gmra.mxu0 %v1925_v40  ;;  %1961 = vmatmul.bf16.vlgmr.msrb.gmra.mxu2 %v1925_v40 }
 0x304   :  { %2110 = vmatpush.bf16.msrb.mxu0 %v11166_v36  ;;  %2210 = vmatmul.bf16.vlgmr.msra.gmra.mxu3 %v1925_v40  ;;  %v11183_v36 = vld [vmem:[#allocation135_spill] sm:$0xff] }
 0x305   :  { %2236 = vmatmul.bf16.vlgmr.msrb.gmra.mxu1 %v1925_v40  ;;  %2136 = vmatpush.bf16.msrb.mxu2 %v11167_v41  ;;  %v11184_v41 = vld [vmem:[#allocation73_spill] sm:$0xff] }
 0x306   :  { %2371 = vmatpush.bf16.msra.mxu3 %v11168_v12  ;;  %2397 = vmatpush.bf16.msrb.mxu1 %v11169_v60 }
 0x308   :  { %2111 = vmatpush.bf16.msrb.mxu0 %v11170_v55  ;;  %v11185_v55 = vld [vmem:[#allocation76_spill] sm:$0xff] }
 0x309   :  { %2137 = vmatpush.bf16.msrb.mxu2 %v11171_v7  ;;  %v11186_v7 = vld [vmem:[#allocation136_spill] sm:$0xff] }
 0x30a   :  { %2372 = vmatpush.bf16.msra.mxu3 %v11172_v61  ;;  %2398 = vmatpush.bf16.msrb.mxu1 %v11173_v32  ;;  %v11252_v32 = vld [vmem:[#allocation62_spill] sm:$0xff] }
 0x30c   :  { %2112 = vmatpush.bf16.msrb.mxu0 %v11174_v20  ;;  %v11187_v20 = vld [vmem:[#allocation137_spill] sm:$0xff] }
 0x30d   :  { %2138 = vmatpush.bf16.msrb.mxu2 %v11175_v56  ;;  %v11188_v56 = vld [vmem:[#allocation75_spill] sm:$0xff] }
 0x30e   :  { %2373 = vmatpush.bf16.msra.mxu3 %v11176_v8  ;;  %2399 = vmatpush.bf16.msrb.mxu1 %v11177_v21  ;;  %v11227_v21 = vld [vmem:[#allocation11_spill] sm:$0xff]  ;;  %v11248_v8 = vld [vmem:[#allocation46_spill] sm:$0xff] }
 0x310   :  { %2113 = vmatpush.bf16.msrb.mxu0 %v11178_v43  ;;  %v11189_v43 = vld [vmem:[#allocation78_spill] sm:$0xff] }
 0x311   :  { %2139 = vmatpush.bf16.msrb.mxu2 %v11179_v63  ;;  %v11190_v63 = vld [vmem:[#allocation138_spill] sm:$0xff] }
 0x312   :  { %2374 = vmatpush.bf16.msra.mxu3 %v11180_v28  ;;  %2400 = vmatpush.bf16.msrb.mxu1 %v11181_v9  ;;  %v11191_v9 = vld [vmem:[#allocation139_spill] sm:$0xff]  ;;  %v11197_v28 = vld [vmem:[#allocation5_spill] sm:$0xff] }
 0x313   :  { %1987 = vmatmul.bf16.vlgmr.msra.gmra.mxu0 %v1925_v40  ;;  %2013 = vmatmul.bf16.vlgmr.msra.gmra.mxu2 %v1925_v40 }
 0x314   :  { %2114 = vmatpush.bf16.msrb.mxu0 %v11182_v13  ;;  %2262 = vmatmul.bf16.vlgmr.msrb.gmra.mxu3 %v1925_v40  ;;  %v11192_v13 = vld [vmem:[#allocation77_spill] sm:$0xff] }
 0x315   :  { %2288 = vmatmul.bf16.vlgmr.msra.gmra.mxu1 %v1925_v40  ;;  %2140 = vmatpush.bf16.msrb.mxu2 %v11183_v36  ;;  %v11193_v40 = vld [vmem:[#allocation81_spill] sm:$0xff]  ;;  %v11194_v36 = vld [vmem:[#allocation140_spill] sm:$0xff] }
 0x316   :  { %2375 = vmatpush.bf16.msra.mxu3 %v11184_v41  ;;  %2401 = vmatpush.bf16.msrb.mxu1 %v11185_v55  ;;  %v2098_v41 = vld [vmem:[#allocation1] sm:$0xff]  ;;  %v11195_v55 = vld [vmem:[#allocation141_spill] sm:$0xff] }
 0x318   :  { %2115 = vmatpush.bf16.msrb.mxu0 %v11186_v7  ;;  %v11196_v7 = vld [vmem:[#allocation142_spill] sm:$0xff] }
 0x319   :  { %2141 = vmatpush.bf16.msrb.mxu2 %v11187_v20  ;;  %v2100_v20 = vld [vmem:[#allocation1 + $0x12] sm:$0xff] }
 0x31a   :  { %2376 = vmatpush.bf16.msra.mxu3 %v11188_v56  ;;  %2402 = vmatpush.bf16.msrb.mxu1 %v11189_v43  ;;  %v11198_v56 = vld [vmem:[#allocation79_spill] sm:$0xff]  ;;  %v11206_v43 = vld [vmem:[#allocation86_spill] sm:$0xff] }
 0x31c   :  { %2116 = vmatpush.bf16.msrb.mxu0 %v11190_v63  ;;  %v11199_v63 = vld [vmem:[#allocation83_spill] sm:$0xff] }
 0x31d   :  { %2142 = vmatpush.bf16.msrb.mxu2 %v11191_v9  ;;  %v11200_v9 = vld [vmem:[#allocation80_spill] sm:$0xff] }
 0x31e   :  { %2377 = vmatpush.bf16.msra.mxu3 %v11192_v13  ;;  %2403 = vmatpush.bf16.msrb.mxu1 %v11193_v40  ;;  %v11201_v13 = vld [vmem:[#allocation143_spill] sm:$0xff]  ;;  %v11202_v40 = vld [vmem:[#allocation84_spill] sm:$0xff] }
 0x320   :  { %2117 = vmatpush.bf16.msrb.mxu0 %v11194_v36  ;;  %v11203_v36 = vld [vmem:[#allocation6_spill] sm:$0xff] }
 0x321   :  { %2143 = vmatpush.bf16.msrb.mxu2 %v11196_v7  ;;  %v11205_v7 = vld [vmem:[#allocation144_spill] sm:$0xff] }
 0x322   :  { %2378 = vmatpush.bf16.msra.mxu3 %v11198_v56  ;;  %2404 = vmatpush.bf16.msrb.mxu1 %v11199_v63  ;;  %v11209_v63 = vld [vmem:[#allocation145_spill] sm:$0xff]  ;;  %v11226_v56 = vld [vmem:[#allocation96_spill] sm:$0xff] }
 0x323   :  { %2118 = vmatmul.bf16.vlgmr.msrb.gmra.mxu0 %v2098_v41  ;;  %v11208_v41 = vld [vmem:[#allocation85_spill] sm:$0xff] }
 0x324   :  { %2162 = vmatpush.bf16.msra.mxu0 %v11195_v55  ;;  %2144 = vmatmul.bf16.vlgmr.msrb.gmra.mxu2 %v2100_v20  ;;  %v11204_v55 = vld [vmem:[#allocation82_spill] sm:$0xff]  ;;  %v11210_v20 = vld [vmem:[#allocation88_spill] sm:$0xff] }
 0x325   :  { %2189 = vmatpush.bf16.msra.mxu2 %v11197_v28  ;;  %v11207_v28 = vld [vmem:[#allocation7_spill] sm:$0xff] }
 0x326   :  { %2423 = vmatpush.bf16.msrb.mxu3 %v11200_v9  ;;  %2449 = vmatpush.bf16.msra.mxu1 %v11202_v40  ;;  %v11211_v9 = vld [vmem:[#allocation9_spill] sm:$0xff]  ;;  %v11213_v40 = vld [vmem:[#allocation146_spill] sm:$0xff] }
 0x328   :  { %2163 = vmatpush.bf16.msra.mxu0 %v11201_v13  ;;  %v11212_v13 = vld [vmem:[#allocation87_spill] sm:$0xff] }
 0x329   :  { %2190 = vmatpush.bf16.msra.mxu2 %v11203_v36  ;;  %v11214_v36 = vld [vmem:[#allocation90_spill] sm:$0xff] }
 0x32a   :  { %2424 = vmatpush.bf16.msrb.mxu3 %v11204_v55  ;;  %2450 = vmatpush.bf16.msra.mxu1 %v11206_v43  ;;  %v11215_v55 = vld [vmem:[#allocation21_spill] sm:$0xff]  ;;  %v11217_v43 = vld [vmem:[#allocation147_spill] sm:$0xff] }
 0x32c   :  { %2164 = vmatpush.bf16.msra.mxu0 %v11205_v7  ;;  %v11216_v7 = vld [vmem:[#allocation89_spill] sm:$0xff] }
 0x32d   :  { %2191 = vmatpush.bf16.msra.mxu2 %v11207_v28  ;;  %v8572_v28 = vpop.f32.mrf.mxu1 }
 0x32e   :  { %2425 = vmatpush.bf16.msrb.mxu3 %v11208_v41  ;;  %2451 = vmatpush.bf16.msra.mxu1 %v11210_v20  ;;  %v11218_v41 = vld [vmem:[#allocation92_spill] sm:$0xff]  ;;  %v11220_v20 = vld [vmem:[#allocation91_spill] sm:$0xff] }
 0x330   :  { %2165 = vmatpush.bf16.msra.mxu0 %v11209_v63  ;;  %v11219_v63 = vld [vmem:[#allocation25_spill] sm:$0xff] }
 0x331   :  { %2192 = vmatpush.bf16.msra.mxu2 %v11211_v9  ;;  %v11221_v9 = vld [vmem:[#allocation148_spill] sm:$0xff] }
 0x332   :  { %2426 = vmatpush.bf16.msrb.mxu3 %v11212_v13  ;;  %2452 = vmatpush.bf16.msra.mxu1 %v11214_v36  ;;  %v11222_v13 = vld [vmem:[#allocation94_spill] sm:$0xff]  ;;  %v11224_v36 = vld [vmem:[#allocation93_spill] sm:$0xff] }
 0x334   :  { %2166 = vmatpush.bf16.msra.mxu0 %v11213_v40  ;;  %v11223_v40 = vld [vmem:[#allocation29_spill] sm:$0xff] }
 0x335   :  { %2193 = vmatpush.bf16.msra.mxu2 %v11215_v55  ;;  %v11225_v55 = vld [vmem:[#allocation149_spill] sm:$0xff] }
 0x336   :  { %2427 = vmatpush.bf16.msrb.mxu3 %v11216_v7  ;;  %2453 = vmatpush.bf16.msra.mxu1 %v11218_v41  ;;  %v2102_v7 = vld [vmem:[#allocation1 + $0x24] sm:$0xff] }
 0x337   :  { %v11228_v41 = vld [vmem:[#allocation33_spill] sm:$0xff] }
 0x338   :  { %2167 = vmatpush.bf16.msra.mxu0 %v11217_v43  ;;  %v2134_v43 = vpop.f32.mrf.mxu1 }
 0x339   :  { %2194 = vmatpush.bf16.msra.mxu2 %v11219_v63  ;;  %v11229_v63 = vld [vmem:[#allocation37_spill] sm:$0xff] }
 0x33a   :  { %2428 = vmatpush.bf16.msrb.mxu3 %v11220_v20  ;;  %2454 = vmatpush.bf16.msra.mxu1 %v11222_v13  ;;  %v11231_v13 = vld [vmem:[#allocation97_spill] sm:$0xff]  ;;  %v11247_v20 = vld [vmem:[#allocation42_spill] sm:$0xff] }
 0x33b   :  { %v11235_v43 = vld [vmem:[#allocation45_spill] sm:$0xff] }
 0x33c   :  { %2168 = vmatpush.bf16.msra.mxu0 %v11221_v9  ;;  %v11230_v9 = vld [vmem:[#allocation95_spill] sm:$0xff] }
 0x33d   :  { %2195 = vmatpush.bf16.msra.mxu2 %v11223_v40  ;;  %v11232_v40 = vld [vmem:[#allocation13_spill] sm:$0xff] }
 0x33e   :  { %2429 = vmatpush.bf16.msrb.mxu3 %v11224_v36  ;;  %2455 = vmatpush.bf16.msra.mxu1 %v11226_v56  ;;  %v11233_v36 = vld [vmem:[#allocation41_spill] sm:$0xff] }
 0x33f   :  { %v11236_v56 = vld [vmem:[#allocation17_spill] sm:$0xff] }
 0x340   :  { %2169 = vmatpush.bf16.msra.mxu0 %v11225_v55  ;;  %v11234_v55 = vld [vmem:[#allocation15_spill] sm:$0xff] }
 0x341   :  { %2196 = vmatpush.bf16.msra.mxu2 %v11228_v41  ;;  %v11238_v41 = vld [vmem:[#allocation22_spill] sm:$0xff] }
 0x342   :  { %2430 = vmatpush.bf16.msrb.mxu3 %v11230_v9  ;;  %2456 = vmatpush.bf16.msra.mxu1 %v11231_v13  ;;  %v11240_v9 = vld [vmem:[#allocation26_spill] sm:$0xff]  ;;  %v11241_v13 = vld [vmem:[#allocation57_spill] sm:$0xff] }
 0x343   :  { %2170 = vmatmul.bf16.vlgmr.msra.gmra.mxu0 %v2102_v7  ;;  %v8596_v7 = vpop.f32.mrf.mxu1 }
 0x344   :  { %2215 = vmatpush.bf16.msrb.mxu0 %v11227_v21  ;;  %v11237_v21 = vld [vmem:[#allocation49_spill] sm:$0xff] }
 0x345   :  { %2241 = vmatpush.bf16.msrb.mxu2 %v11229_v63  ;;  %v11239_v63 = vld [vmem:[#allocation53_spill] sm:$0xff] }
 0x348   :  { %2216 = vmatpush.bf16.msrb.mxu0 %v11232_v40  ;;  %v11242_v40 = vld [vmem:[#allocation30_spill] sm:$0xff] }
 0x349   :  { %2242 = vmatpush.bf16.msrb.mxu2 %v11233_v36  ;;  %v8601_v36 = vpop.f32.mrf.mxu3 }
 0x34c   :  { %2217 = vmatpush.bf16.msrb.mxu0 %v11234_v55  ;;  %v11243_v55 = vld [vmem:[#allocation61_spill] sm:$0xff] }
 0x34d   :  { %2243 = vmatpush.bf16.msrb.mxu2 %v11235_v43  ;;  %v2186_v43 = vpop.f32.mrf.mxu1 }
 0x34e   :  { %v11253_v43 = vld [vmem:[#allocation65_spill] sm:$0xff] }
 0x350   :  { %2218 = vmatpush.bf16.msrb.mxu0 %v11236_v56  ;;  %v11244_v56 = vld [vmem:[#allocation35_spill] sm:$0xff] }
 0x351   :  { %2244 = vmatpush.bf16.msrb.mxu2 %v11237_v21  ;;  %v11245_v21 = vld [vmem:[#allocation38_spill] sm:$0xff] }
 0x354   :  { %2219 = vmatpush.bf16.msrb.mxu0 %v11238_v41  ;;  %v11246_v41 = vld [vmem:[#allocation64_spill] sm:$0xff] }
 0x355   :  { %2245 = vmatpush.bf16.msrb.mxu2 %v11239_v63  ;;  %v2160_v63 = vpop.f32.mrf.mxu3 }
 0x358   :  { %2220 = vmatpush.bf16.msrb.mxu0 %v11240_v9  ;;  %v11249_v9 = vld [vmem:[#allocation50_spill] sm:$0xff] }
 0x359   :  { %2246 = vmatpush.bf16.msrb.mxu2 %v11241_v13  ;;  %v11250_v13 = vld [vmem:[#allocation54_spill] sm:$0xff] }
 0x35c   :  { %2221 = vmatpush.bf16.msrb.mxu0 %v11242_v40  ;;  %v11251_v40 = vld [vmem:[#allocation58_spill] sm:$0xff] }
 0x35d   :  { %2247 = vmatpush.bf16.msrb.mxu2 %v11243_v55  ;;  %v11254_v55 = vld [vmem:[#allocation151_spill] sm:$0xff] }
 0x360   :  { %2222 = vmatpush.bf16.msrb.mxu0 %v11244_v56 }
 0x361   :  { %2248 = vmatpush.bf16.msrb.mxu2 %v11246_v41 }
 0x364   :  { %2267 = vmatpush.bf16.msra.mxu0 %v11245_v21 }
 0x368   :  { %2268 = vmatpush.bf16.msra.mxu0 %v11247_v20 }
 0x36c   :  { %2269 = vmatpush.bf16.msra.mxu0 %v11248_v8  ;;  %v11256_v8 = vld [vmem:[#allocation150_spill] sm:$0xff] }
 0x370   :  { %2270 = vmatpush.bf16.msra.mxu0 %v11249_v9 }
 0x374   :  { %2271 = vmatpush.bf16.msra.mxu0 %v11250_v13 }
 0x378   :  { %2272 = vmatpush.bf16.msra.mxu0 %v11251_v40 }
 0x37c   :  { %2273 = vmatpush.bf16.msra.mxu0 %v11252_v32 }
 0x380   :  { %2274 = vmatpush.bf16.msra.mxu0 %v11253_v43  ;;  %v1936_v56 = vpop.f32.mrf.mxu0 }
 0x381   :  { %v1937_v21 = vadd.f32 %v1936_v56, %v11254_v55 }
 0x382   :  { %v8615_v61 = vpop.f32.mrf.mxu1 }
 0x383   :  { %11255 = vst [vmem:[#allocation107_spill] sm:$0xff] %v8615_v61  ;;  %v1950_v63 = vadd.f32 %v8470_v25, %v1937_v21 }
 0x385   :  { %v5652_v20 = vmul.f32 -1.442695, %v1950_v63 }
 0x386   :  { %v1962_v41 = vpop.f32.mrf.mxu2 }
 0x387   :  { %6032 = vpow2.f32 %v5652_v20  ;;  %v1963_v9 = vadd.f32 %v1962_v41, %v11256_v8  ;;  %v8619_v60 = vpop.f32.mrf.mxu3 }
 0x388   :  { %11257 = vst [vmem:[#allocation102_spill] sm:$0xff] %v8619_v60  ;;  %v1938_v13 = vpop.f32.mrf.mxu0 }
 0x389   :  { %v1976_v40 = vadd.f32 %v8473_v18, %v1963_v9  ;;  %v11259_v13 = vld [vmem:[#allocation152_spill] sm:$0xff] }
 0x38a   :  { %v2239_v32 = vpop.f32.mrf.mxu1 }
 0x38b   :  { %v5653_v12 = vmul.f32 -1.442695, %v1976_v40 }
 0x38d   :  { %v6033_v43 = vpop.eup %6032  ;;  %6034 = vpow2.f32 %v5653_v12 }
 0x38e   :  { %v2034_v22 = vadd.f32 1.0, %v6033_v43  ;;  %v1964_v56 = vpop.f32.mrf.mxu2 }
 0x38f   :  { %v2213_v55 = vpop.f32.mrf.mxu3 }
 0x390   :  { %6036 = vrcp.f32 %v2034_v22  ;;  %v1988_v3 = vpop.f32.mrf.mxu0  ;;  %v11261_v55 = vld [vmem:[#allocation154_spill] sm:$0xff]  ;;  %vm2040_vm6 = vweird.f32 %v2034_v22 }
 0x391   :  { %v1989_v43 = vadd.f32 %v1988_v3, %v11261_v55  ;;  %v2044_v3 = vand.u32 2147483647, %v2034_v22 }
 0x392   :  { %v8622_v25 = vpop.f32.mrf.mxu1 }
 0x393   :  { %11258 = vst [vmem:[#allocation109_spill] sm:$0xff] %v8622_v25  ;;  %v6035_v21 = vpop.eup %6034  ;;  %v2002_v61 = vadd.f32 %v8477_v0, %v1989_v43  ;;  %vm2045_vm11 = vcmp.eq.f32.partialorder %v2044_v3, 8.507059e+37 }
 0x394   :  { %v2053_v20 = vadd.f32 1.0, %v6035_v21 }
 0x396   :  { %v6037_v63 = vpop.eup %6036  ;;  %6038 = vrcp.f32 %v2053_v20  ;;  %v2014_v41 = vpop.f32.mrf.mxu2  ;;  %vm2059_vm7 = vweird.f32 %v2053_v20 }
 0x397   :  { %v2036_v8 = vmul.f32 %v6037_v63, %v2034_v22  ;;  %v2015_v37 = vadd.f32 %v2014_v41, %v11259_v13  ;;  %v8625_v18 = vpop.f32.mrf.mxu3  ;;  %v2065_v41 = vand.u32 2147483648, %v2053_v20  ;;  %vm2041_vm4 = vweird.f32 %v6037_v63 }
 0x398   :  { %11260 = vst [vmem:[#allocation103_spill] sm:$0xff] %v8625_v18  ;;  %v1990_v32 = vpop.f32.mrf.mxu0  ;;  %vm2042_vm8 = vmor %vm2040_vm6, %vm2041_vm4 }
 0x399   :  { %v2037_v40 = vsub.f32 1.0, %v2036_v8  ;;  %v2028_v12 = vadd.f32 %v8482_v31, %v2015_v37  ;;  %v2046_v31 = vand.u32 2147483648, %v2034_v22  ;;  %v2063_v37 = vand.u32 2147483647, %v2053_v20 }
 0x39a   :  { %v2291_v9 = vpop.f32.mrf.mxu1 }
 0x39b   :  { %v5654_v56 = vmul.f32 -1.442695, %v2028_v12  ;;  %v2038_v4 = vmul.f32 %v6037_v63, %v2037_v40  ;;  %vm2064_vm10 = vcmp.eq.f32.partialorder %v2063_v37, 8.507059e+37 }
 0x39c   :  { %v6039_v33 = vpop.eup %6038 }
 0x39d   :  { %v2055_v25 = vmul.f32 %v6039_v33, %v2053_v20  ;;  %6040 = vpow2.f32 %v5654_v56  ;;  %v2039_v13 = vadd.f32 %v6037_v63, %v2038_v4  ;;  %vm2060_vm5 = vweird.f32 %v6039_v33 }
 0x39e   :  { %v2016_v21 = vpop.f32.mrf.mxu2  ;;  %6042 = vtanh.f32 %v2002_v61  ;;  %vm2061_vm9 = vmor %vm2059_vm7, %vm2060_vm5 }
 0x39f   :  { %v2056_v60 = vsub.f32 1.0, %v2055_v25  ;;  %v2265_v6 = vpop.f32.mrf.mxu3  ;;  %v2066_v25 = vor.u32 1.1754944e-38, %v2065_v41  ;;  %v2043_v9 = vsel %vm2042_vm8, %v6037_v63, %v2039_v13 }
 0x3a0   :  { %v2119_v32 = vpop.f32.mrf.mxu0  ;;  %v2047_v6 = vor.u32 1.1754944e-38, %v2046_v31 }
 0x3a1   :  { %v2057_v8 = vmul.f32 %v6039_v33, %v2056_v60  ;;  %v2120_v13 = vadd.f32 %v8322_v29, %v2119_v32  ;;  %v8640_v32 = vld [vmem:[%s10903_s26 + $0x78] sm:$0xff] }
 0x3a2   :  { %v2048_v60 = vsel %vm2045_vm11, %v2047_v6, %v2043_v9 }
 0x3a3   :  { %v6041_v12 = vpop.eup %6040  ;;  %v2058_v40 = vadd.f32 %v6039_v33, %v2057_v8 }
 0x3a4   :  { %v2073_v0 = vadd.f32 1.0, %v6041_v12  ;;  %v6043_v55 = vpop.eup %6042 }
 0x3a5   :  { %v2062_v43 = vsel %vm2061_vm9, %v6039_v33, %v2058_v40  ;;  %v2090_v20 = vmul.f32 %v6043_v55, %v2048_v60  ;;  %v8659_v60 = vld [vmem:[%s10903_s26 + $0xf0] sm:$0xff] }
 0x3a6   :  { %v2067_v4 = vsel %vm2064_vm10, %v2066_v25, %v2062_v43  ;;  %6044 = vrcp.f32 %v2073_v0  ;;  %v2085_v33 = vand.u32 2147483648, %v2073_v0  ;;  %v2083_v37 = vand.u32 2147483647, %v2073_v0 }
 0x3a7   :  { %v2145_v56 = vpop.f32.mrf.mxu2  ;;  %v2089_v21 = vmul.f32 %v2067_v4, %v8316_v39  ;;  %vm2079_vm13 = vweird.f32 %v2073_v0  ;;  %v2133_v39 = vadd.f32 %v8572_v28, %v2120_v13  ;;  %v8646_v28 = vld [vmem:[%s10903_s26 + $0xf8] sm:$0xff]  ;;  %v11275_v13 = vld [vmem:[#allocation101_spill] sm:$0xff] }
 0x3a8   :  { %v2121_v22 = vpop.f32.mrf.mxu0  ;;  %v2086_v55 = vor.u32 1.1754944e-38, %v2085_v33  ;;  %vm2084_vm15 = vcmp.eq.f32.partialorder %v2083_v37, 8.507059e+37  ;;  %v11274_v33 = vld [vmem:[#allocation121_spill] sm:$0xff]  ;;  %v11277_v37 = vld [vmem:[#allocation114_spill] sm:$0xff] }
 0x3a9   :  { %v8631_v8 = vadd.f32 %v2090_v20, %v2089_v21  ;;  %v2146_v6 = vadd.f32 %v2145_v56, %v2133_v39  ;;  %v8671_v22 = vld [vmem:[%s10903_s26 + $0xe8] sm:$0xff]  ;;  %v8679_v20 = vld [vmem:[%s10903_s26 + $0x60] sm:$0xff] }
 0x3aa   :  { %v11279_v39 = vld [vmem:[#allocation117_spill] sm:$0xff] }
 0x3ab   :  { %6046 = vtanh.f32 %v8631_v8  ;;  %v2159_v29 = vadd.f32 %v8601_v36, %v2146_v6  ;;  %v8653_v36 = vld [vmem:[%s10903_s26 + $0x70] sm:$0xff] }
 0x3ac   :  { %v6045_v18 = vpop.eup %6044  ;;  %v11283_v6 = vld [vmem:[#allocation10_spill] sm:$0xff] }
 0x3ad   :  { %v2075_v61 = vmul.f32 %v6045_v18, %v2073_v0  ;;  %vm2080_vm12 = vweird.f32 %v6045_v18 }
 0x3ae   :  { %vm2081_vm14 = vmor %vm2079_vm13, %vm2080_vm12 }
 0x3af   :  { %v2076_v41 = vsub.f32 1.0, %v2075_v61  ;;  %v2147_v63 = vpop.f32.mrf.mxu2  ;;  %v8685_v61 = vld [vmem:[%s10903_s26 + $0xe0] sm:$0xff] }
 0x3b0   :  { %v11273_v63 = vld [vmem:[#allocation112_spill] sm:$0xff] }
 0x3b1   :  { %v2077_v31 = vmul.f32 %v6045_v18, %v2076_v41  ;;  %v6047_v40 = vpop.eup %6046  ;;  %v8693_v41 = vld [vmem:[%s10903_s26 + $0x58] sm:$0xff] }
 0x3b3   :  { %v2078_v3 = vadd.f32 %v6045_v18, %v2077_v31  ;;  %v11276_v31 = vld [vmem:[#allocation32_spill] sm:$0xff] }
 0x3b5   :  { %v2082_v12 = vsel %vm2081_vm14, %v6045_v18, %v2078_v3  ;;  %v11278_v3 = vld [vmem:[#allocation122_spill] sm:$0xff] }
 0x3b6   :  { %v2087_v25 = vsel %vm2084_vm15, %v2086_v55, %v2082_v12  ;;  %v11280_v55 = vld [vmem:[#allocation123_spill] sm:$0xff]  ;;  %v11281_v12 = vld [vmem:[#allocation120_spill] sm:$0xff] }
 0x3b7   :  { %v2093_v9 = vmul.f32 %v6047_v40, %v2087_v25  ;;  %v11282_v40 = vld [vmem:[#allocation124_spill] sm:$0xff]  ;;  %v5662_v25 = vld [vmem:[%s10904_s27 + $0x12] sm:$0x3f] }
 0x3b8   :  { %2528 = vst [vmem:[#allocation1] ss:$9 sm:$0xff] %v5662_v25  ;;  %v11290_v25 = vld [vmem:[#allocation107_spill] sm:$0xff] }
 0x3b9   :  { %v2357_v43 = vpack.c.bf16 %v2093_v9, %v2093_v9 }
 0x3bb   :  { %2379 = vmatmul.bf16.vlgmr.msra.gmra.mxu3 %v2357_v43  ;;  %2405 = vmatmul.bf16.vlgmr.msrb.gmra.mxu1 %v2357_v43 }
 0x3bc   :  { %2554 = vmatpush.bf16.msra.mxu3 %v8640_v32  ;;  %2580 = vmatpush.bf16.msrb.mxu1 %v8646_v28 }
 0x3bf   :  { %v2530_v9 = vld [vmem:[#allocation1 + $0x9] sm:$0xff] }
 0x3c0   :  { %v2171_v18 = vpop.f32.mrf.mxu0  ;;  %2555 = vmatpush.bf16.msra.mxu3 %v8653_v36  ;;  %2581 = vmatpush.bf16.msrb.mxu1 %v8659_v60 }
 0x3c1   :  { %v2172_v0 = vadd.f32 %v2171_v18, %v2159_v29  ;;  %v11285_v29 = vld [vmem:[#allocation14_spill] sm:$0xff] }
 0x3c3   :  { %v2185_v4 = vadd.f32 %v8596_v7, %v2172_v0  ;;  %v8665_v7 = vld [vmem:[%s10903_s26 + $0x68] sm:$0xff] }
 0x3c4   :  { %2556 = vmatpush.bf16.msra.mxu3 %v8665_v7  ;;  %2582 = vmatpush.bf16.msrb.mxu1 %v8671_v22  ;;  %v11286_v0 = vld [vmem:[#allocation16_spill] sm:$0xff] }
 0x3c5   :  { %v2188_v56 = vpack.c.bf16 %v2185_v4, %v2185_v4  ;;  %v11287_v4 = vld [vmem:[#allocation18_spill] sm:$0xff] }
 0x3c7   :  { %2197 = vmatmul.bf16.vlgmr.msra.gmra.mxu2 %v2188_v56  ;;  %2223 = vmatmul.bf16.vlgmr.msrb.gmra.mxu0 %v2188_v56 }
 0x3c8   :  { %v2173_v21 = vpop.f32.mrf.mxu0  ;;  %2358 = vmatpush.bf16.msra.mxu2 %v7657_v10  ;;  %2384 = vmatpush.bf16.msrb.mxu0 %v7741_v30 }
 0x3c9   :  { %2557 = vmatpush.bf16.msra.mxu3 %v8679_v20  ;;  %2583 = vmatpush.bf16.msrb.mxu1 %v8685_v61 }
 0x3cb   :  { %2431 = vmatmul.bf16.vlgmr.msrb.gmra.mxu3 %v2357_v43  ;;  %2457 = vmatmul.bf16.vlgmr.msra.gmra.mxu1 %v2357_v43  ;;  %v11284_v43 = vld [vmem:[#allocation12_spill] sm:$0xff] }
 0x3cc   :  { %2359 = vmatpush.bf16.msra.mxu2 %v7707_v26  ;;  %2385 = vmatpush.bf16.msrb.mxu0 %v7764_v19 }
 0x3cd   :  { %2558 = vmatpush.bf16.msra.mxu3 %v8693_v41  ;;  %2584 = vmatpush.bf16.msrb.mxu1 %v8340_v14  ;;  %v11262_v14 = vld [vmem:[#allocation113_spill] sm:$0xff] }
 0x3d0   :  { %2360 = vmatpush.bf16.msra.mxu2 %v7720_v35  ;;  %2386 = vmatpush.bf16.msrb.mxu0 %v7784_v11 }
 0x3d1   :  { %2559 = vmatpush.bf16.msra.mxu3 %v8346_v1  ;;  %2585 = vmatpush.bf16.msrb.mxu1 %v8353_v15  ;;  %v11263_v1 = vld [vmem:[#allocation98_spill] sm:$0xff]  ;;  %v11264_v15 = vld [vmem:[#allocation19_spill] sm:$0xff] }
 0x3d4   :  { %2361 = vmatpush.bf16.msra.mxu2 %v7731_v5  ;;  %2387 = vmatpush.bf16.msrb.mxu0 %v7805_v42 }
 0x3d5   :  { %2560 = vmatpush.bf16.msra.mxu3 %v8360_v57  ;;  %2586 = vmatpush.bf16.msrb.mxu1 %v8367_v49  ;;  %v11265_v57 = vld [vmem:[#allocation108_spill] sm:$0xff] }
 0x3d6   :  { %v11266_v49 = vld [vmem:[#allocation116_spill] sm:$0xff] }
 0x3d7   :  { %2249 = vmatmul.bf16.vlgmr.msrb.gmra.mxu2 %v2188_v56  ;;  %2275 = vmatmul.bf16.vlgmr.msra.gmra.mxu0 %v2188_v56 }
 0x3d8   :  { %2362 = vmatpush.bf16.msra.mxu2 %v7751_v53  ;;  %2388 = vmatpush.bf16.msrb.mxu0 %v7832_v27 }
 0x3d9   :  { %2561 = vmatpush.bf16.msra.mxu3 %v8374_v34  ;;  %2587 = vmatpush.bf16.msrb.mxu1 %v8387_v44  ;;  %v11267_v34 = vld [vmem:[#allocation100_spill] sm:$0xff]  ;;  %v11269_v44 = vld [vmem:[#allocation111_spill] sm:$0xff] }
 0x3dc   :  { %2363 = vmatpush.bf16.msra.mxu2 %v11115_v50  ;;  %2389 = vmatpush.bf16.msrb.mxu0 %v11117_v58 }
 0x3dd   :  { %2606 = vmatpush.bf16.msrb.mxu3 %v8381_v38  ;;  %2633 = vmatpush.bf16.msra.mxu1 %v6688_v46  ;;  %v11268_v38 = vld [vmem:[#allocation23_spill] sm:$0xff] }
 0x3de   :  { %2562 = vmatmul.bf16.vlgmr.msra.gmra.mxu3 %v2530_v9 }
 0x3e0   :  { %2364 = vmatpush.bf16.msra.mxu2 %v11118_v45  ;;  %2390 = vmatpush.bf16.msrb.mxu0 %v11121_v51 }
 0x3e1   :  { %2607 = vmatpush.bf16.msrb.mxu3 %v8396_v47  ;;  %2634 = vmatpush.bf16.msra.mxu1 %v6715_v54  ;;  %v11270_v47 = vld [vmem:[#allocation118_spill] sm:$0xff] }
 0x3e4   :  { %2365 = vmatpush.bf16.msra.mxu2 %v11122_v16  ;;  %2391 = vmatpush.bf16.msrb.mxu0 %v7902_v24 }
 0x3e5   :  { %2608 = vmatpush.bf16.msrb.mxu3 %v8405_v2  ;;  %2635 = vmatpush.bf16.msra.mxu1 %v6742_v62  ;;  %v11271_v2 = vld [vmem:[#allocation99_spill] sm:$0xff] }
 0x3e8   :  { %2410 = vmatpush.bf16.msrb.mxu2 %v11124_v59  ;;  %2436 = vmatpush.bf16.msra.mxu0 %v7911_v17 }
 0x3e9   :  { %2609 = vmatpush.bf16.msrb.mxu3 %v8414_v23  ;;  %2636 = vmatpush.bf16.msra.mxu1 %v11116_v48  ;;  %v11272_v23 = vld [vmem:[#allocation27_spill] sm:$0xff] }
 0x3ec   :  { %2411 = vmatpush.bf16.msrb.mxu2 %v11127_v52  ;;  %2437 = vmatpush.bf16.msra.mxu0 %v11262_v14 }
 0x3ed   :  { %2610 = vmatpush.bf16.msrb.mxu3 %v11263_v1  ;;  %2637 = vmatpush.bf16.msra.mxu1 %v11264_v15 }
 0x3f0   :  { %2412 = vmatpush.bf16.msrb.mxu2 %v11265_v57  ;;  %2438 = vmatpush.bf16.msra.mxu0 %v11266_v49  ;;  %v11310_v49 = vld [vmem:[#allocation52_spill] sm:$0xff] }
 0x3f1   :  { %2611 = vmatpush.bf16.msrb.mxu3 %v11267_v34  ;;  %2638 = vmatpush.bf16.msra.mxu1 %v11268_v38  ;;  %v11288_v34 = vld [vmem:[#allocation20_spill] sm:$0xff] }
 0x3f4   :  { %2413 = vmatpush.bf16.msrb.mxu2 %v11269_v44  ;;  %2439 = vmatpush.bf16.msra.mxu0 %v11270_v47  ;;  %v11307_v47 = vld [vmem:[#allocation48_spill] sm:$0xff] }
 0x3f5   :  { %2612 = vmatpush.bf16.msrb.mxu3 %v11271_v2  ;;  %2639 = vmatpush.bf16.msra.mxu1 %v11272_v23  ;;  %v11289_v2 = vld [vmem:[#allocation106_spill] sm:$0xff] }
 0x3f8   :  { %2414 = vmatpush.bf16.msrb.mxu2 %v11273_v63  ;;  %2440 = vmatpush.bf16.msra.mxu0 %v11274_v33 }
 0x3f9   :  { %2613 = vmatpush.bf16.msrb.mxu3 %v11275_v13  ;;  %2640 = vmatpush.bf16.msra.mxu1 %v11276_v31 }
 0x3fc   :  { %2415 = vmatpush.bf16.msrb.mxu2 %v11277_v37  ;;  %2441 = vmatpush.bf16.msra.mxu0 %v11278_v3 }
 0x3fd   :  { %2659 = vmatpush.bf16.msra.mxu3 %v11283_v6  ;;  %v11291_v6 = vld [vmem:[#allocation24_spill] sm:$0xff] }
 0x400   :  { %2416 = vmatpush.bf16.msrb.mxu2 %v11279_v39  ;;  %2442 = vmatpush.bf16.msra.mxu0 %v11280_v55  ;;  %v2534_v55 = vld [vmem:[#allocation1 + $0x2d] sm:$0xff] }
 0x401   :  { %2660 = vmatpush.bf16.msra.mxu3 %v11284_v43 }
 0x402   :  { %2614 = vmatmul.bf16.vlgmr.msrb.gmra.mxu3 %v2534_v55 }
 0x404   :  { %2417 = vmatpush.bf16.msrb.mxu2 %v11281_v12  ;;  %2443 = vmatpush.bf16.msra.mxu0 %v11282_v40  ;;  %v2532_v12 = vld [vmem:[#allocation1 + $0x1b] sm:$0xff] }
 0x405   :  { %2661 = vmatpush.bf16.msra.mxu3 %v11285_v29  ;;  %2588 = vmatmul.bf16.vlgmr.msrb.gmra.mxu1 %v2532_v12 }
 0x409   :  { %2662 = vmatpush.bf16.msra.mxu3 %v11286_v0  ;;  %v11292_v0 = vld [vmem:[#allocation110_spill] sm:$0xff] }
 0x40d   :  { %2663 = vmatpush.bf16.msra.mxu3 %v11287_v4 }
 0x411   :  { %2664 = vmatpush.bf16.msra.mxu3 %v11288_v34  ;;  %v11293_v34 = vld [vmem:[#allocation28_spill] sm:$0xff] }
 0x415   :  { %2665 = vmatpush.bf16.msra.mxu3 %v11291_v6  ;;  %v11296_v6 = vld [vmem:[#allocation31_spill] sm:$0xff] }
 0x419   :  { %2666 = vmatpush.bf16.msra.mxu3 %v11293_v34 }
 0x41d   :  { %2711 = vmatpush.bf16.msrb.mxu3 %v11296_v6  ;;  %v11302_v6 = vld [vmem:[#allocation109_spill] sm:$0xff] }
 0x438   :  { %v8753_v18 = vpop.f32.mrf.mxu1 }
 0x43e   :  { %v8757_v56 = vpop.f32.mrf.mxu3 }
 0x440   :  { %v2408_v21 = vpop.f32.mrf.mxu1 }
 0x444   :  { %v2224_v1 = vpop.f32.mrf.mxu0 }
 0x445   :  { %v2225_v13 = vadd.f32 %v2224_v1, %v11289_v2  ;;  %v11294_v1 = vld [vmem:[#allocation34_spill] sm:$0xff] }
 0x446   :  { %v2382_v29 = vpop.f32.mrf.mxu3  ;;  %2685 = vmatpush.bf16.msrb.mxu1 %v11294_v1  ;;  %v11300_v1 = vld [vmem:[#allocation115_spill] sm:$0xff] }
 0x447   :  { %v2238_v9 = vadd.f32 %v11290_v25, %v2225_v13  ;;  %v11295_v13 = vld [vmem:[#allocation102_spill] sm:$0xff] }
 0x448   :  { %v8764_v39 = vpop.f32.mrf.mxu1 }
 0x449   :  { %v5657_v43 = vmul.f32 -1.442695, %v2238_v9  ;;  %v11297_v9 = vld [vmem:[#allocation39_spill] sm:$0xff] }
 0x44a   :  { %v2198_v40 = vpop.f32.mrf.mxu2  ;;  %2686 = vmatpush.bf16.msrb.mxu1 %v11297_v9 }
 0x44b   :  { %6048 = vpow2.f32 %v5657_v43  ;;  %v2199_v4 = vadd.f32 %v2198_v40, %v11292_v0  ;;  %v11298_v40 = vld [vmem:[#allocation36_spill] sm:$0xff]  ;;  %v11299_v0 = vld [vmem:[#allocation43_spill] sm:$0xff] }
 0x44c   :  { %v2226_v21 = vpop.f32.mrf.mxu0  ;;  %2712 = vmatpush.bf16.msrb.mxu3 %v11298_v40  ;;  %v11304_v40 = vld [vmem:[#allocation44_spill] sm:$0xff] }
 0x44d   :  { %v2212_v25 = vadd.f32 %v11295_v13, %v2199_v4  ;;  %v11301_v13 = vld [vmem:[#allocation40_spill] sm:$0xff] }
 0x44e   :  { %v8771_v43 = vpop.f32.mrf.mxu3  ;;  %2687 = vmatpush.bf16.msrb.mxu1 %v11299_v0  ;;  %v11305_v0 = vld [vmem:[#allocation119_spill] sm:$0xff] }
 0x44f   :  { %v5656_v29 = vmul.f32 -1.442695, %v2212_v25 }
 0x450   :  { %v2460_v21 = vpop.f32.mrf.mxu1  ;;  %2713 = vmatpush.bf16.msrb.mxu3 %v11301_v13 }
 0x451   :  { %v6049_v2 = vpop.eup %6048  ;;  %6050 = vpow2.f32 %v5656_v29  ;;  %v11303_v29 = vld [vmem:[#allocation47_spill] sm:$0xff] }
 0x452   :  { %v2315_v12 = vadd.f32 1.0, %v6049_v2  ;;  %v2200_v55 = vpop.f32.mrf.mxu2  ;;  %2688 = vmatpush.bf16.msrb.mxu1 %v11303_v29 }
 0x454   :  { %6052 = vrcp.f32 %v2315_v12  ;;  %v2276_v34 = vpop.f32.mrf.mxu0  ;;  %2714 = vmatpush.bf16.msrb.mxu3 %v11304_v40  ;;  %vm2321_vm1 = vweird.f32 %v2315_v12 }
 0x455   :  { %v2277_v4 = vadd.f32 %v2276_v34, %v11300_v1  ;;  %v11306_v1 = vld [vmem:[#allocation51_spill] sm:$0xff] }
 0x456   :  { %v2434_v33 = vpop.f32.mrf.mxu3  ;;  %2689 = vmatpush.bf16.msrb.mxu1 %v11306_v1 }
 0x457   :  { %v6051_v25 = vpop.eup %6050  ;;  %v2290_v9 = vadd.f32 %v11302_v6, %v2277_v4  ;;  %v11308_v4 = vld [vmem:[#allocation103_spill] sm:$0xff] }
 0x458   :  { %v2296_v3 = vadd.f32 1.0, %v6051_v25  ;;  %2715 = vmatpush.bf16.msrb.mxu3 %v11307_v47  ;;  %v11309_v33 = vld [vmem:[#allocation55_spill] sm:$0xff] }
 0x459   :  { %v5658_v37 = vmul.f32 -1.442695, %v2290_v9  ;;  %v11315_v47 = vld [vmem:[#allocation63_spill] sm:$0xff] }
 0x45a   :  { %v6053_v2 = vpop.eup %6052  ;;  %6054 = vrcp.f32 %v2296_v3  ;;  %v2250_v55 = vpop.f32.mrf.mxu2  ;;  %2690 = vmatpush.bf16.msrb.mxu1 %v11309_v33  ;;  %vm2302_vm4 = vweird.f32 %v2296_v3 }
 0x45b   :  { %v2317_v21 = vmul.f32 %v6053_v2, %v2315_v12  ;;  %6056 = vpow2.f32 %v5658_v37  ;;  %v2251_v63 = vadd.f32 %v2250_v55, %v11305_v0  ;;  %vm2322_vm0 = vweird.f32 %v6053_v2 }
 0x45c   :  { %v2278_v34 = vpop.f32.mrf.mxu0  ;;  %2716 = vmatpush.bf16.msrb.mxu3 %v11310_v49  ;;  %v2327_v37 = vand.u32 2147483648, %v2315_v12  ;;  %vm8786_vm2 = vmor %vm2321_vm1, %vm2322_vm0 }
 0x45d   :  { %v2318_v13 = vsub.f32 1.0, %v2317_v21  ;;  %v2264_v25 = vadd.f32 %v11308_v4, %v2251_v63  ;;  %v2325_v21 = vand.u32 2147483647, %v2315_v12  ;;  %v2308_v63 = vand.u32 2147483648, %v2296_v3  ;;  %v11313_v4 = vld [vmem:[#allocation59_spill] sm:$0xff] }
 0x45e   :  { %2691 = vmatpush.bf16.msrb.mxu1 %v11313_v4 }
 0x45f   :  { %v2319_v6 = vmul.f32 %v6053_v2, %v2318_v13  ;;  %6058 = vtanh.f32 %v2264_v25  ;;  %vm2326_vm5 = vcmp.eq.f32.partialorder %v2325_v21, 8.507059e+37  ;;  %v2309_v12 = vor.u32 1.1754944e-38, %v2308_v63 }
 0x460   :  { %v6055_v9 = vpop.eup %6054 }
 0x461   :  { %v6057_v40 = vpop.eup %6056  ;;  %v2298_v29 = vmul.f32 %v6055_v9, %v2296_v3  ;;  %v2320_v44 = vadd.f32 %v6053_v2, %v2319_v6  ;;  %vm2303_vm3 = vweird.f32 %v6055_v9  ;;  %v2306_v6 = vand.u32 2147483647, %v2296_v3 }
 0x462   :  { %v2335_v55 = vadd.f32 1.0, %v6057_v40  ;;  %v2252_v34 = vpop.f32.mrf.mxu2  ;;  %v11314_v40 = vld [vmem:[#allocation56_spill] sm:$0xff]  ;;  %vm2304_vm6 = vmor %vm2302_vm4, %vm2303_vm3  ;;  %2692 = vmatpush.bf16.msrb.mxu1 %v11315_v47 }
 0x463   :  { %v2299_v1 = vsub.f32 1.0, %v2298_v29  ;;  %v2324_v49 = vsel %vm8786_vm2, %v6053_v2, %v2320_v44  ;;  %2717 = vmatpush.bf16.msrb.mxu3 %v11314_v40  ;;  %v2328_v34 = vor.u32 1.1754944e-38, %v2327_v37  ;;  %vm2307_vm7 = vcmp.eq.f32.partialorder %v2306_v6, 8.507059e+37  ;;  %v11317_v44 = vld [vmem:[#allocation8_spill] sm:$0xff] }
 0x464   :  { %6060 = vrcp.f32 %v2335_v55  ;;  %v2347_v3 = vand.u32 2147483648, %v2335_v55  ;;  %vm2341_vm9 = vweird.f32 %v2335_v55 }
 0x465   :  { %v2300_v33 = vmul.f32 %v6055_v9, %v2299_v1  ;;  %v2329_v25 = vsel %vm2326_vm5, %v2328_v34, %v2324_v49  ;;  %v6059_v0 = vpop.eup %6058  ;;  %v11316_v1 = vld [vmem:[#allocation60_spill] sm:$0xff]  ;;  %v2345_v49 = vand.u32 2147483647, %v2335_v55 }
 0x466   :  { %v2351_v2 = vmul.f32 %v2329_v25, %v11317_v44  ;;  %v8823_v25 = vld [vmem:[%s10903_s26 + $0xb0] sm:$0xff] }
 0x467   :  { %v2301_v29 = vadd.f32 %v6055_v9, %v2300_v33  ;;  %2718 = vmatpush.bf16.msrb.mxu3 %v11316_v1  ;;  %vm2346_vm11 = vcmp.eq.f32.partialorder %v2345_v49, 8.507059e+37  ;;  %11324 = vst [vmem:[#allocation126_spill] sm:$0xff] %v8823_v25  ;;  %v11326_v44 = vld [vmem:[#allocation70_spill] sm:$0xff]  ;;  %v8845_v49 = vld [vmem:[%s10903_s26 + $0x20] sm:$0xff] }
 0x468   :  { %11331 = vst [vmem:[#allocation129_spill] sm:$0xff] %v8845_v49 }
 0x469   :  { %v2305_v31 = vsel %vm2304_vm6, %v6055_v9, %v2301_v29  ;;  %v2348_v9 = vor.u32 1.1754944e-38, %v2347_v3  ;;  %v11329_v3 = vld [vmem:[#allocation69_spill] sm:$0xff] }
 0x46a   :  { %v6061_v4 = vpop.eup %6060  ;;  %v2310_v57 = vsel %vm2307_vm7, %v2309_v12, %v2305_v31 }
 0x46b   :  { %v2337_v13 = vmul.f32 %v6061_v4, %v2335_v55  ;;  %v2352_v40 = vmul.f32 %v6059_v0, %v2310_v57  ;;  %vm2342_vm8 = vweird.f32 %v6061_v4  ;;  %v8803_v57 = vld [vmem:[%s10903_s26 + $0x38] sm:$0xff] }
 0x46c   :  { %vm2343_vm10 = vmor %vm2341_vm9, %vm2342_vm8  ;;  %11319 = vst [vmem:[#allocation105_spill] sm:$0xff] %v8803_v57  ;;  %v8809_v0 = vld [vmem:[%s10903_s26 + $0xb8] sm:$0xff] }
 0x46d   :  { %v2338_v37 = vsub.f32 1.0, %v2337_v13  ;;  %v8797_v33 = vadd.f32 %v2352_v40, %v2351_v2  ;;  %11320 = vst [vmem:[#allocation153_spill] sm:$0xff] %v8809_v0  ;;  %v11321_v55 = vld [vmem:[#allocation66_spill] sm:$0xff]  ;;  %v11325_v13 = vld [vmem:[#allocation67_spill] sm:$0xff]  ;;  %v8831_v2 = vld [vmem:[%s10903_s26 + $0x28] sm:$0xff] }
 0x46e   :  { %v8817_v40 = vld [vmem:[%s10903_s26 + $0x30] sm:$0xff]  ;;  %11327 = vst [vmem:[#allocation127_spill] sm:$0xff] %v8831_v2 }
 0x46f   :  { %11318 = vst [vmem:[#allocation104_spill] sm:$0xff] %v8797_v33  ;;  %v2339_v21 = vmul.f32 %v6061_v4, %v2338_v37  ;;  %6062 = vtanh.f32 %v8797_v33  ;;  %v8837_v37 = vld [vmem:[%s10903_s26 + $0xa8] sm:$0xff] }
 0x470   :  { %11323 = vst [vmem:[#allocation125_spill] sm:$0xff] %v8817_v40 }
 0x471   :  { %v2340_v63 = vadd.f32 %v6061_v4, %v2339_v21  ;;  %11328 = vst [vmem:[#allocation128_spill] sm:$0xff] %v8837_v37  ;;  %v11330_v21 = vld [vmem:[#allocation72_spill] sm:$0xff] }
 0x473   :  { %v2344_v6 = vsel %vm2343_vm10, %v6061_v4, %v2340_v63  ;;  %v11322_v4 = vld [vmem:[#allocation68_spill] sm:$0xff] }
 0x474   :  { %v2349_v31 = vsel %vm2346_vm11, %v2348_v9, %v2344_v6  ;;  %v8851_v63 = vld [vmem:[%s10903_s26 + $0xa0] sm:$0xff]  ;;  %v11334_v6 = vld [vmem:[#allocation74_spill] sm:$0xff] }
 0x475   :  { %v6063_v34 = vpop.eup %6062  ;;  %11332 = vst [vmem:[#allocation130_spill] sm:$0xff] %v8851_v63  ;;  %v11333_v9 = vld [vmem:[#allocation71_spill] sm:$0xff] }
 0x476   :  { %v2355_v29 = vmul.f32 %v6063_v34, %v2349_v31  ;;  %v8859_v31 = vld [vmem:[%s10903_s26 + $0x18] sm:$0xff] }
 0x477   :  { %11335 = vst [vmem:[#allocation131_spill] sm:$0xff] %v8859_v31  ;;  %v8865_v34 = vld [vmem:[%s10903_s26 + $0x98] sm:$0xff] }
 0x478   :  { %v2356_v12 = vpack.c.bf16 %v2355_v29, %v2355_v29  ;;  %11336 = vst [vmem:[#allocation132_spill] sm:$0xff] %v8865_v34  ;;  %v11337_v29 = vld [vmem:[#allocation73_spill] sm:$0xff] }
 0x47a   :  { %2366 = vmatmul.bf16.vlgmr.msra.gmra.mxu2 %v2356_v12  ;;  %2392 = vmatmul.bf16.vlgmr.msrb.gmra.mxu0 %v2356_v12 }
 0x47b   :  { %2541 = vmatpush.bf16.msra.mxu2 %v8803_v57  ;;  %2641 = vmatmul.bf16.vlgmr.msra.gmra.mxu1 %v2356_v12 }
 0x47c   :  { %2667 = vmatmul.bf16.vlgmr.msra.gmra.mxu3 %v2356_v12  ;;  %2567 = vmatpush.bf16.msrb.mxu0 %v8809_v0 }
 0x47d   :  { %2802 = vmatpush.bf16.msra.mxu1 %v11321_v55  ;;  %2828 = vmatpush.bf16.msra.mxu3 %v11322_v4 }
 0x47f   :  { %2542 = vmatpush.bf16.msra.mxu2 %v8817_v40 }
 0x480   :  { %2568 = vmatpush.bf16.msrb.mxu0 %v8823_v25  ;;  %v11405_v25 = vld [vmem:[#allocation62_spill] sm:$0xff] }
 0x481   :  { %2803 = vmatpush.bf16.msra.mxu1 %v11325_v13  ;;  %2829 = vmatpush.bf16.msra.mxu3 %v11326_v44  ;;  %v11388_v44 = vld [vmem:[#allocation45_spill] sm:$0xff]  ;;  %v11401_v13 = vld [vmem:[#allocation46_spill] sm:$0xff] }
 0x483   :  { %2543 = vmatpush.bf16.msra.mxu2 %v8831_v2  ;;  %v11386_v2 = vld [vmem:[#allocation41_spill] sm:$0xff] }
 0x484   :  { %2569 = vmatpush.bf16.msrb.mxu0 %v8837_v37 }
 0x485   :  { %2804 = vmatpush.bf16.msra.mxu1 %v11329_v3  ;;  %2830 = vmatpush.bf16.msra.mxu3 %v11330_v21  ;;  %v11355_v21 = vld [vmem:[#allocation84_spill] sm:$0xff]  ;;  %v11385_v3 = vld [vmem:[#allocation13_spill] sm:$0xff] }
 0x487   :  { %2544 = vmatpush.bf16.msra.mxu2 %v8845_v49  ;;  %v11353_v49 = vld [vmem:[#allocation80_spill] sm:$0xff] }
 0x488   :  { %2570 = vmatpush.bf16.msrb.mxu0 %v8851_v63  ;;  %v11351_v63 = vld [vmem:[#allocation79_spill] sm:$0xff] }
 0x489   :  { %2805 = vmatpush.bf16.msra.mxu1 %v11333_v9  ;;  %2831 = vmatpush.bf16.msra.mxu3 %v11334_v6  ;;  %v11338_v6 = vld [vmem:[#allocation76_spill] sm:$0xff]  ;;  %v8873_v9 = vld [vmem:[%s10903_s26 + $0x10] sm:$0xff] }
 0x48a   :  { %2418 = vmatmul.bf16.vlgmr.msrb.gmra.mxu2 %v2356_v12  ;;  %2444 = vmatmul.bf16.vlgmr.msra.gmra.mxu0 %v2356_v12  ;;  %11339 = vst [vmem:[#allocation133_spill] sm:$0xff] %v8873_v9 }
 0x48b   :  { %2545 = vmatpush.bf16.msra.mxu2 %v8859_v31  ;;  %2693 = vmatmul.bf16.vlgmr.msrb.gmra.mxu1 %v2356_v12  ;;  %v11341_v31 = vld [vmem:[#allocation75_spill] sm:$0xff] }
 0x48c   :  { %2719 = vmatmul.bf16.vlgmr.msrb.gmra.mxu3 %v2356_v12  ;;  %2571 = vmatpush.bf16.msrb.mxu0 %v8865_v34  ;;  %v8879_v12 = vld [vmem:[%s10903_s26 + $0x90] sm:$0xff] }
 0x48d   :  { %2806 = vmatpush.bf16.msra.mxu1 %v11337_v29  ;;  %2832 = vmatpush.bf16.msra.mxu3 %v11338_v6  ;;  %11340 = vst [vmem:[#allocation134_spill] sm:$0xff] %v8879_v12  ;;  %v11342_v34 = vld [vmem:[#allocation78_spill] sm:$0xff]  ;;  %v8887_v6 = vld [vmem:[%s10903_s26 + $0x8] sm:$0xff] }
 0x48e   :  { %11343 = vst [vmem:[#allocation135_spill] sm:$0xff] %v8887_v6  ;;  %v11345_v29 = vld [vmem:[#allocation77_spill] sm:$0xff] }
 0x48f   :  { %2546 = vmatpush.bf16.msra.mxu2 %v8873_v9  ;;  %v8893_v9 = vld [vmem:[%s10903_s26 + $0x88] sm:$0xff] }
 0x490   :  { %2572 = vmatpush.bf16.msrb.mxu0 %v8879_v12  ;;  %11344 = vst [vmem:[#allocation136_spill] sm:$0xff] %v8893_v9  ;;  %v11346_v12 = vld [vmem:[#allocation81_spill] sm:$0xff] }
 0x491   :  { %2807 = vmatpush.bf16.msra.mxu1 %v11341_v31  ;;  %2833 = vmatpush.bf16.msra.mxu3 %v11342_v34  ;;  %v8901_v34 = vld [vmem:[%s10903_s26] sm:$0xff] }
 0x492   :  { %11347 = vst [vmem:[#allocation137_spill] sm:$0xff] %v8901_v34  ;;  %v2529_v31 = vld [vmem:[#allocation1] sm:$0xff] }
 0x493   :  { %2547 = vmatpush.bf16.msra.mxu2 %v8887_v6  ;;  %v8907_v6 = vld [vmem:[%s10903_s26 + $0x138] sm:$0xff] }
 0x494   :  { %2573 = vmatpush.bf16.msrb.mxu0 %v8893_v9  ;;  %11348 = vst [vmem:[#allocation138_spill] sm:$0xff] %v8907_v6  ;;  %v11350_v9 = vld [vmem:[#allocation5_spill] sm:$0xff] }
 0x495   :  { %2808 = vmatpush.bf16.msra.mxu1 %v11345_v29  ;;  %2834 = vmatpush.bf16.msra.mxu3 %v11346_v12  ;;  %v8913_v29 = vld [vmem:[%s10903_s26 + $0x80] sm:$0xff]  ;;  %v2531_v12 = vld [vmem:[#allocation1 + $0x12] sm:$0xff] }
 0x496   :  { %11349 = vst [vmem:[#allocation139_spill] sm:$0xff] %v8913_v29 }
 0x497   :  { %2548 = vmatpush.bf16.msra.mxu2 %v8901_v34  ;;  %v11352_v34 = vld [vmem:[#allocation83_spill] sm:$0xff] }
 0x498   :  { %2574 = vmatpush.bf16.msrb.mxu0 %v8913_v29  ;;  %v11356_v29 = vld [vmem:[#allocation6_spill] sm:$0xff] }
 0x499   :  { %2809 = vmatpush.bf16.msra.mxu1 %v11351_v63  ;;  %2835 = vmatpush.bf16.msra.mxu3 %v11352_v34  ;;  %v11361_v34 = vld [vmem:[#allocation85_spill] sm:$0xff]  ;;  %v11380_v63 = vld [vmem:[#allocation11_spill] sm:$0xff] }
 0x49a   :  { %2549 = vmatmul.bf16.vlgmr.msra.gmra.mxu2 %v2529_v31  ;;  %v8932_v31 = vld [vmem:[%s10903_s26 + $0x128] sm:$0xff] }
 0x49b   :  { %2593 = vmatpush.bf16.msrb.mxu2 %v8907_v6  ;;  %2575 = vmatmul.bf16.vlgmr.msrb.gmra.mxu0 %v2531_v12  ;;  %v8923_v6 = vld [vmem:[%s10903_s26 + $0x130] sm:$0xff]  ;;  %11358 = vst [vmem:[#allocation141_spill] sm:$0xff] %v8932_v31 }
 0x49c   :  { %2620 = vmatpush.bf16.msra.mxu0 %v11350_v9  ;;  %11354 = vst [vmem:[#allocation140_spill] sm:$0xff] %v8923_v6  ;;  %v11357_v9 = vld [vmem:[#allocation82_spill] sm:$0xff] }
 0x49d   :  { %2854 = vmatpush.bf16.msrb.mxu1 %v11353_v49  ;;  %2880 = vmatpush.bf16.msrb.mxu3 %v11355_v21  ;;  %v11359_v12 = vld [vmem:[#allocation86_spill] sm:$0xff]  ;;  %v11360_v49 = vld [vmem:[#allocation7_spill] sm:$0xff] }
 0x49e   :  { %v8941_v21 = vld [vmem:[%s10903_s26 + $0x120] sm:$0xff] }
 0x49f   :  { %2594 = vmatpush.bf16.msrb.mxu2 %v8923_v6  ;;  %11362 = vst [vmem:[#allocation142_spill] sm:$0xff] %v8941_v21  ;;  %v11365_v6 = vld [vmem:[#allocation87_spill] sm:$0xff] }
 0x4a0   :  { %2621 = vmatpush.bf16.msra.mxu0 %v11356_v29  ;;  %v11364_v29 = vld [vmem:[#allocation9_spill] sm:$0xff] }
 0x4a1   :  { %2855 = vmatpush.bf16.msrb.mxu1 %v11357_v9  ;;  %2881 = vmatpush.bf16.msrb.mxu3 %v11359_v12  ;;  %v11363_v9 = vld [vmem:[#allocation88_spill] sm:$0xff]  ;;  %v8950_v12 = vld [vmem:[%s10903_s26 + $0x118] sm:$0xff] }
 0x4a2   :  { %11366 = vst [vmem:[#allocation143_spill] sm:$0xff] %v8950_v12 }
 0x4a3   :  { %2595 = vmatpush.bf16.msrb.mxu2 %v8932_v31  ;;  %v11369_v31 = vld [vmem:[#allocation89_spill] sm:$0xff] }
 0x4a4   :  { %2622 = vmatpush.bf16.msra.mxu0 %v11360_v49  ;;  %v11368_v49 = vld [vmem:[#allocation21_spill] sm:$0xff] }
 0x4a5   :  { %2856 = vmatpush.bf16.msrb.mxu1 %v11361_v34  ;;  %2882 = vmatpush.bf16.msrb.mxu3 %v11363_v9  ;;  %v11367_v34 = vld [vmem:[#allocation90_spill] sm:$0xff] }
 0x4a6   :  { %v8959_v9 = vld [vmem:[%s10903_s26 + $0x110] sm:$0xff] }
 0x4a7   :  { %2596 = vmatpush.bf16.msrb.mxu2 %v8941_v21  ;;  %11370 = vst [vmem:[#allocation144_spill] sm:$0xff] %v8959_v9  ;;  %v11373_v21 = vld [vmem:[#allocation91_spill] sm:$0xff] }
 0x4a8   :  { %2623 = vmatpush.bf16.msra.mxu0 %v11364_v29  ;;  %v11372_v29 = vld [vmem:[#allocation25_spill] sm:$0xff] }
 0x4a9   :  { %2857 = vmatpush.bf16.msrb.mxu1 %v11365_v6  ;;  %2883 = vmatpush.bf16.msrb.mxu3 %v11367_v34  ;;  %v11371_v6 = vld [vmem:[#allocation92_spill] sm:$0xff] }
 0x4aa   :  { %v8968_v34 = vld [vmem:[%s10903_s26 + $0x108] sm:$0xff] }
 0x4ab   :  { %2597 = vmatpush.bf16.msrb.mxu2 %v8950_v12  ;;  %11374 = vst [vmem:[#allocation145_spill] sm:$0xff] %v8968_v34  ;;  %v8973_v12 = vpop.f32.mrf.mxu3 }
 0x4ac   :  { %2624 = vmatpush.bf16.msra.mxu0 %v11368_v49  ;;  %v11376_v49 = vld [vmem:[#allocation29_spill] sm:$0xff] }
 0x4ad   :  { %2858 = vmatpush.bf16.msrb.mxu1 %v11369_v31  ;;  %2884 = vmatpush.bf16.msrb.mxu3 %v11371_v6  ;;  %v11375_v31 = vld [vmem:[#allocation94_spill] sm:$0xff]  ;;  %v11379_v6 = vld [vmem:[#allocation96_spill] sm:$0xff] }
 0x4af   :  { %2598 = vmatpush.bf16.msrb.mxu2 %v8959_v9  ;;  %v11377_v9 = vld [vmem:[#allocation93_spill] sm:$0xff] }
 0x4b0   :  { %2625 = vmatpush.bf16.msra.mxu0 %v11372_v29  ;;  %v8979_v29 = vld [vmem:[%s10903_s26 + $0x100] sm:$0xff] }
 0x4b1   :  { %2859 = vmatpush.bf16.msrb.mxu1 %v11373_v21  ;;  %2885 = vmatpush.bf16.msrb.mxu3 %v11375_v31  ;;  %11378 = vst [vmem:[#allocation146_spill] sm:$0xff] %v8979_v29  ;;  %v2533_v21 = vld [vmem:[#allocation1 + $0x24] sm:$0xff] }
 0x4b2   :  { %v11382_v31 = vld [vmem:[#allocation37_spill] sm:$0xff] }
 0x4b3   :  { %2599 = vmatpush.bf16.msrb.mxu2 %v8968_v34  ;;  %v11381_v34 = vld [vmem:[#allocation33_spill] sm:$0xff]  ;;  %v2565_v37 = vpop.f32.mrf.mxu3 }
 0x4b4   :  { %2626 = vmatpush.bf16.msra.mxu0 %v11376_v49  ;;  %v11383_v49 = vld [vmem:[#allocation95_spill] sm:$0xff]  ;;  %v11395_v37 = vld [vmem:[#allocation30_spill] sm:$0xff] }
 0x4b5   :  { %2860 = vmatpush.bf16.msrb.mxu1 %v11377_v9  ;;  %2886 = vmatpush.bf16.msrb.mxu3 %v11379_v6  ;;  %v11384_v9 = vld [vmem:[#allocation97_spill] sm:$0xff] }
 0x4b6   :  { %v11389_v6 = vld [vmem:[#allocation17_spill] sm:$0xff] }
 0x4b7   :  { %2600 = vmatpush.bf16.msrb.mxu2 %v8979_v29  ;;  %v11387_v29 = vld [vmem:[#allocation15_spill] sm:$0xff] }
 0x4b8   :  { %2627 = vmatpush.bf16.msra.mxu0 %v11381_v34  ;;  %v11391_v34 = vld [vmem:[#allocation22_spill] sm:$0xff] }
 0x4b9   :  { %2861 = vmatpush.bf16.msrb.mxu1 %v11383_v49  ;;  %2887 = vmatpush.bf16.msrb.mxu3 %v11384_v9  ;;  %v8996_v49 = vpop.f32.mrf.mxu1  ;;  %v11393_v9 = vld [vmem:[#allocation26_spill] sm:$0xff] }
 0x4ba   :  { %2601 = vmatmul.bf16.vlgmr.msrb.gmra.mxu2 %v2533_v21  ;;  %v11392_v21 = vld [vmem:[#allocation53_spill] sm:$0xff] }
 0x4bb   :  { %2646 = vmatpush.bf16.msra.mxu2 %v11380_v63  ;;  %v11390_v63 = vld [vmem:[#allocation49_spill] sm:$0xff] }
 0x4bc   :  { %2672 = vmatpush.bf16.msrb.mxu0 %v11382_v31  ;;  %v11400_v31 = vld [vmem:[#allocation42_spill] sm:$0xff] }
 0x4bf   :  { %2647 = vmatpush.bf16.msra.mxu2 %v11385_v3  ;;  %v11394_v3 = vld [vmem:[#allocation57_spill] sm:$0xff] }
 0x4c0   :  { %2673 = vmatpush.bf16.msrb.mxu0 %v11386_v2  ;;  %v9001_v2 = vpop.f32.mrf.mxu3 }
 0x4c3   :  { %2648 = vmatpush.bf16.msra.mxu2 %v11387_v29  ;;  %v11396_v29 = vld [vmem:[#allocation61_spill] sm:$0xff] }
 0x4c4   :  { %2674 = vmatpush.bf16.msrb.mxu0 %v11388_v44  ;;  %v2591_v44 = vpop.f32.mrf.mxu1 }
 0x4c5   :  { %v11406_v44 = vld [vmem:[#allocation65_spill] sm:$0xff] }
 0x4c7   :  { %2649 = vmatpush.bf16.msra.mxu2 %v11389_v6  ;;  %v11397_v6 = vld [vmem:[#allocation35_spill] sm:$0xff] }
 0x4c8   :  { %2675 = vmatpush.bf16.msrb.mxu0 %v11390_v63  ;;  %v11398_v63 = vld [vmem:[#allocation38_spill] sm:$0xff] }
 0x4cb   :  { %2650 = vmatpush.bf16.msra.mxu2 %v11391_v34  ;;  %v11399_v34 = vld [vmem:[#allocation64_spill] sm:$0xff] }
 0x4cc   :  { %2676 = vmatpush.bf16.msrb.mxu0 %v11392_v21  ;;  %v2617_v21 = vpop.f32.mrf.mxu3 }
 0x4cf   :  { %2651 = vmatpush.bf16.msra.mxu2 %v11393_v9  ;;  %v11402_v9 = vld [vmem:[#allocation50_spill] sm:$0xff] }
 0x4d0   :  { %2677 = vmatpush.bf16.msrb.mxu0 %v11394_v3  ;;  %v11403_v3 = vld [vmem:[#allocation54_spill] sm:$0xff] }
 0x4d3   :  { %2652 = vmatpush.bf16.msra.mxu2 %v11395_v37  ;;  %v11404_v37 = vld [vmem:[#allocation58_spill] sm:$0xff] }
 0x4d4   :  { %2678 = vmatpush.bf16.msrb.mxu0 %v11396_v29  ;;  %v11407_v29 = vld [vmem:[#allocation150_spill] sm:$0xff] }
 0x4d7   :  { %2653 = vmatpush.bf16.msra.mxu2 %v11397_v6 }
 0x4d8   :  { %2679 = vmatpush.bf16.msrb.mxu0 %v11399_v34 }
 0x4db   :  { %2698 = vmatpush.bf16.msrb.mxu2 %v11398_v63 }
 0x4df   :  { %2699 = vmatpush.bf16.msrb.mxu2 %v11400_v31 }
 0x4e3   :  { %2700 = vmatpush.bf16.msrb.mxu2 %v11401_v13  ;;  %v11409_v13 = vld [vmem:[#allocation151_spill] sm:$0xff] }
 0x4e7   :  { %2701 = vmatpush.bf16.msrb.mxu2 %v11402_v9 }
 0x4eb   :  { %2702 = vmatpush.bf16.msrb.mxu2 %v11403_v3 }
 0x4ef   :  { %2703 = vmatpush.bf16.msrb.mxu2 %v11404_v37 }
 0x4f3   :  { %2704 = vmatpush.bf16.msrb.mxu2 %v11405_v25 }
 0x4f7   :  { %2705 = vmatpush.bf16.msrb.mxu2 %v11406_v44  ;;  %v2393_v6 = vpop.f32.mrf.mxu0 }
 0x4f8   :  { %v2394_v63 = vadd.f32 %v2393_v6, %v11407_v29  ;;  %v9015_v40 = vpop.f32.mrf.mxu1 }
 0x4f9   :  { %11408 = vst [vmem:[#allocation147_spill] sm:$0xff] %v9015_v40 }
 0x4fa   :  { %v2407_v21 = vadd.f32 %v8753_v18, %v2394_v63  ;;  %v11411_v18 = vld [vmem:[#allocation152_spill] sm:$0xff] }
 0x4fc   :  { %v5660_v31 = vmul.f32 -1.442695, %v2407_v21 }
 0x4fd   :  { %v2367_v34 = vpop.f32.mrf.mxu2 }
 0x4fe   :  { %6064 = vpow2.f32 %v5660_v31  ;;  %v2368_v9 = vadd.f32 %v2367_v34, %v11409_v13 }
 0x4ff   :  { %v9019_v4 = vpop.f32.mrf.mxu3  ;;  %v2395_v3 = vpop.f32.mrf.mxu0 }
 0x500   :  { %11410 = vst [vmem:[#allocation148_spill] sm:$0xff] %v9019_v4  ;;  %v2381_v37 = vadd.f32 %v8757_v56, %v2368_v9  ;;  %v2644_v25 = vpop.f32.mrf.mxu1 }
 0x502   :  { %v5659_v55 = vmul.f32 -1.442695, %v2381_v37 }
 0x504   :  { %v6065_v44 = vpop.eup %6064  ;;  %6066 = vpow2.f32 %v5659_v55  ;;  %v11413_v55 = vld [vmem:[#allocation154_spill] sm:$0xff] }
 0x505   :  { %v2484_v0 = vadd.f32 1.0, %v6065_v44  ;;  %v2369_v6 = vpop.f32.mrf.mxu2 }
 0x507   :  { %6068 = vrcp.f32 %v2484_v0  ;;  %v2670_v29 = vpop.f32.mrf.mxu3  ;;  %v2445_v57 = vpop.f32.mrf.mxu0  ;;  %vm2490_vm13 = vweird.f32 %v2484_v0  ;;  %v2494_v4 = vand.u32 2147483647, %v2484_v0 }
 0x508   :  { %v2446_v63 = vadd.f32 %v2445_v57, %v11411_v18  ;;  %v9023_v21 = vpop.f32.mrf.mxu1 }
 0x509   :  { %11412 = vst [vmem:[#allocation149_spill] sm:$0xff] %v9023_v21  ;;  %vm2495_vm1 = vcmp.eq.f32.partialorder %v2494_v4, 8.507059e+37 }
 0x50a   :  { %v6067_v31 = vpop.eup %6066  ;;  %v2459_v34 = vadd.f32 %v8764_v39, %v2446_v63 }
 0x50b   :  { %v2465_v13 = vadd.f32 1.0, %v6067_v31  ;;  %v2496_v31 = vand.u32 2147483648, %v2484_v0 }
 0x50c   :  { %v5661_v3 = vmul.f32 -1.442695, %v2459_v34 }
 0x50d   :  { %v6069_v1 = vpop.eup %6068  ;;  %6070 = vrcp.f32 %v2465_v13  ;;  %v2419_v56 = vpop.f32.mrf.mxu2  ;;  %vm2471_vm0 = vweird.f32 %v2465_v13 }
 0x50e   :  { %v2486_v25 = vmul.f32 %v6069_v1, %v2484_v0  ;;  %6072 = vpow2.f32 %v5661_v3  ;;  %v2420_v9 = vadd.f32 %v2419_v56, %v11413_v55  ;;  %vm2491_vm12 = vweird.f32 %v6069_v1 }
 0x50f   :  { %v9027_v37 = vpop.f32.mrf.mxu3  ;;  %v2447_v29 = vpop.f32.mrf.mxu0  ;;  %vm9030_vm14 = vmor %vm2490_vm13, %vm2491_vm12 }
 0x510   :  { %11414 = vst [vmem:[#allocation98_spill] sm:$0xff] %v9027_v37  ;;  %v2487_v44 = vsub.f32 1.0, %v2486_v25  ;;  %v2696_v6 = vpop.f32.mrf.mxu1  ;;  %v2433_v18 = vadd.f32 %v8771_v43, %v2420_v9  ;;  %v2477_v25 = vand.u32 2147483648, %v2465_v13  ;;  %v2475_v9 = vand.u32 2147483647, %v2465_v13 }
 0x512   :  { %v2488_v57 = vmul.f32 %v6069_v1, %v2487_v44  ;;  %6074 = vtanh.f32 %v2433_v18  ;;  %v2478_v0 = vor.u32 1.1754944e-38, %v2477_v25  ;;  %vm2476_vm3 = vcmp.eq.f32.partialorder %v2475_v9, 8.507059e+37 }
 0x513   :  { %v6071_v47 = vpop.eup %6070 }
 0x514   :  { %v6073_v33 = vpop.eup %6072  ;;  %v2467_v39 = vmul.f32 %v6071_v47, %v2465_v13  ;;  %v2489_v63 = vadd.f32 %v6069_v1, %v2488_v57  ;;  %vm2472_vm15 = vweird.f32 %v6071_v47 }
 0x515   :  { %v2504_v34 = vadd.f32 1.0, %v6073_v33  ;;  %v2421_v21 = vpop.f32.mrf.mxu2  ;;  %v2497_v33 = vor.u32 1.1754944e-38, %v2496_v31  ;;  %vm2473_vm2 = vmor %vm2471_vm0, %vm2472_vm15 }
 0x516   :  { %v2468_v3 = vsub.f32 1.0, %v2467_v39  ;;  %v2493_v44 = vsel %vm9030_vm14, %v6069_v1, %v2489_v63 }
 0x517   :  { %6076 = vrcp.f32 %v2504_v34  ;;  %v2722_v29 = vpop.f32.mrf.mxu3  ;;  %v2498_v18 = vsel %vm2495_vm1, %v2497_v33, %v2493_v44  ;;  %v2516_v31 = vand.u32 2147483648, %v2504_v34  ;;  %v2514_v4 = vand.u32 2147483647, %v2504_v34 }
 0x518   :  { %v2469_v43 = vmul.f32 %v6071_v47, %v2468_v3  ;;  %v2576_v6 = vpop.f32.mrf.mxu0  ;;  %v6075_v57 = vpop.eup %6074  ;;  %v2520_v40 = vmul.f32 %v2498_v18, %v8631_v8  ;;  %vm2510_vm5 = vweird.f32 %v2504_v34  ;;  %v9126_v18 = vld [vmem:[%s10903_s26 + $0x168] sm:$0xff] }
 0x519   :  { %vm2515_vm7 = vcmp.eq.f32.partialorder %v2514_v4, 8.507059e+37  ;;  %v11424_v4 = vld [vmem:[#allocation116_spill] sm:$0xff] }
 0x51a   :  { %v2470_v21 = vadd.f32 %v6071_v47, %v2469_v43  ;;  %v2517_v43 = vor.u32 1.1754944e-38, %v2516_v31  ;;  %v11422_v31 = vld [vmem:[#allocation108_spill] sm:$0xff] }
 0x51c   :  { %v2474_v39 = vsel %vm2473_vm2, %v6071_v47, %v2470_v21 }
 0x51d   :  { %v6077_v55 = vpop.eup %6076  ;;  %v2479_v37 = vsel %vm2476_vm3, %v2478_v0, %v2474_v39  ;;  %v2550_v29 = vpop.f32.mrf.mxu2  ;;  %v9144_v39 = vld [vmem:[%s10903_s26 + $0x158] sm:$0xff] }
 0x51e   :  { %v2506_v3 = vmul.f32 %v6077_v55, %v2504_v34  ;;  %v2521_v14 = vmul.f32 %v6075_v57, %v2479_v37  ;;  %vm2511_vm4 = vweird.f32 %v6077_v55  ;;  %v9135_v57 = vld [vmem:[%s10903_s26 + $0x160] sm:$0xff]  ;;  %11417 = vst [vmem:[#allocation100_spill] sm:$0xff] %v9144_v39 }
 0x51f   :  { %vm2512_vm6 = vmor %vm2510_vm5, %vm2511_vm4 }
 0x520   :  { %v2507_v56 = vsub.f32 1.0, %v2506_v3  ;;  %v9037_v1 = vadd.f32 %v2521_v14, %v2520_v40  ;;  %v2578_v63 = vpop.f32.mrf.mxu0  ;;  %v9043_v14 = vld [vmem:[%s10539_s2] ss:$0 sm:$0xff]  ;;  %v9163_v3 = vld [vmem:[%s10903_s26 + $0x148] sm:$0xff] }
 0x521   :  { %v2551_v40 = vadd.f32 %v9043_v14, %v2550_v29  ;;  %v9153_v29 = vld [vmem:[%s10903_s26 + $0x150] sm:$0xff]  ;;  %11419 = vst [vmem:[#allocation101_spill] sm:$0xff] %v9163_v3  ;;  %v9172_v63 = vld [vmem:[%s10903_s26 + $0x140] sm:$0xff] }
 0x522   :  { %v2508_v13 = vmul.f32 %v6077_v55, %v2507_v56  ;;  %6078 = vtanh.f32 %v9037_v1  ;;  %11418 = vst [vmem:[#allocation99_spill] sm:$0xff] %v9153_v29  ;;  %v11420_v56 = vld [vmem:[#allocation113_spill] sm:$0xff] }
 0x523   :  { %11421 = vst [vmem:[#allocation107_spill] sm:$0xff] %v9172_v63 }
 0x524   :  { %v2509_v47 = vadd.f32 %v6077_v55, %v2508_v13  ;;  %v11423_v13 = vld [vmem:[#allocation32_spill] sm:$0xff] }
 0x525   :  { %v2552_v25 = vpop.f32.mrf.mxu2 }
 0x526   :  { %v2513_v9 = vsel %vm2512_vm6, %v6077_v55, %v2509_v47  ;;  %v2564_v55 = vadd.f32 %v8973_v12, %v2551_v40  ;;  %v9108_v12 = vld [vmem:[%s10903_s26 + $0xc0] sm:$0xff]  ;;  %v11426_v25 = vld [vmem:[#allocation118_spill] sm:$0xff] }
 0x527   :  { %v2518_v44 = vsel %vm2515_vm7, %v2517_v43, %v2513_v9  ;;  %v11425_v47 = vld [vmem:[#allocation111_spill] sm:$0xff]  ;;  %v11427_v43 = vld [vmem:[#allocation112_spill] sm:$0xff]  ;;  %v11428_v9 = vld [vmem:[#allocation121_spill] sm:$0xff] }
 0x528   :  { %v6079_v8 = vpop.eup %6078  ;;  %v2577_v34 = vadd.f32 %v2576_v6, %v2564_v55  ;;  %v9117_v6 = vld [vmem:[%s10903_s26 + $0x170] sm:$0xff]  ;;  %v11433_v40 = vld [vmem:[#allocation120_spill] sm:$0xff] }
 0x529   :  { %v2524_v37 = vmul.f32 %v6079_v8, %v2518_v44  ;;  %v11429_v44 = vld [vmem:[#allocation114_spill] sm:$0xff]  ;;  %v11434_v55 = vld [vmem:[#allocation124_spill] sm:$0xff] }
 0x52a   :  { %v2590_v21 = vadd.f32 %v8996_v49, %v2577_v34  ;;  %v9102_v49 = vld [vmem:[%s10903_s26 + $0x178] sm:$0xff] }
 0x52b   :  { %v2788_v33 = vpack.c.bf16 %v2524_v37, %v2524_v37  ;;  %v11430_v8 = vld [vmem:[#allocation122_spill] sm:$0xff]  ;;  %v11431_v37 = vld [vmem:[#allocation117_spill] sm:$0xff] }
 0x52c   :  { %v5669_v34 = vld [vmem:[%s10904_s27 + $0x18] sm:$0x3f] }
 0x52d   :  { %2810 = vmatmul.bf16.vlgmr.msra.gmra.mxu1 %v2788_v33  ;;  %2836 = vmatmul.bf16.vlgmr.msra.gmra.mxu3 %v2788_v33  ;;  %2959 = vst [vmem:[#allocation1] ss:$9 sm:$0xff] %v5669_v34  ;;  %v11439_v34 = vld [vmem:[#allocation110_spill] sm:$0xff] }
 0x52e   :  { %2985 = vmatpush.bf16.msra.mxu1 %v8640_v32  ;;  %3011 = vmatpush.bf16.msra.mxu3 %v8646_v28 }
 0x532   :  { %2986 = vmatpush.bf16.msra.mxu1 %v8653_v36  ;;  %3012 = vmatpush.bf16.msra.mxu3 %v8659_v60  ;;  %v9061_v36 = vld [vmem:[%s10903_s26 + $0xd8] sm:$0xff] }
 0x536   :  { %2987 = vmatpush.bf16.msra.mxu1 %v8665_v7  ;;  %3013 = vmatpush.bf16.msra.mxu3 %v8671_v22  ;;  %v9067_v22 = vld [vmem:[%s10903_s26 + $0x50] sm:$0xff] }
 0x53a   :  { %2988 = vmatpush.bf16.msra.mxu1 %v8679_v20  ;;  %3014 = vmatpush.bf16.msra.mxu3 %v8685_v61  ;;  %v9074_v20 = vld [vmem:[%s10903_s26 + $0xd0] sm:$0xff]  ;;  %v9081_v61 = vld [vmem:[%s10903_s26 + $0x48] sm:$0xff] }
 0x53d   :  { %v2602_v0 = vpop.f32.mrf.mxu2  ;;  %2862 = vmatmul.bf16.vlgmr.msrb.gmra.mxu1 %v2788_v33  ;;  %2888 = vmatmul.bf16.vlgmr.msrb.gmra.mxu3 %v2788_v33  ;;  %v11432_v33 = vld [vmem:[#allocation123_spill] sm:$0xff] }
 0x53e   :  { %v2603_v32 = vadd.f32 %v2602_v0, %v2590_v21  ;;  %2989 = vmatpush.bf16.msra.mxu1 %v8693_v41  ;;  %3015 = vmatpush.bf16.msra.mxu3 %v9061_v36  ;;  %v9088_v41 = vld [vmem:[%s10903_s26 + $0xc8] sm:$0xff] }
 0x53f   :  { %v2961_v0 = vld [vmem:[#allocation1 + $0x9] sm:$0xff] }
 0x540   :  { %v2616_v28 = vadd.f32 %v9001_v2, %v2603_v32  ;;  %v9095_v2 = vld [vmem:[%s10903_s26 + $0x40] sm:$0xff]  ;;  %v11435_v32 = vld [vmem:[#allocation10_spill] sm:$0xff] }
 0x542   :  { %v2619_v60 = vpack.c.bf16 %v2616_v28, %v2616_v28  ;;  %2990 = vmatpush.bf16.msra.mxu1 %v9067_v22  ;;  %3016 = vmatpush.bf16.msra.mxu3 %v9074_v20 }
 0x544   :  { %2628 = vmatmul.bf16.vlgmr.msra.gmra.mxu0 %v2619_v60  ;;  %2654 = vmatmul.bf16.vlgmr.msra.gmra.mxu2 %v2619_v60 }
 0x545   :  { %v2604_v7 = vpop.f32.mrf.mxu2  ;;  %2789 = vmatpush.bf16.msra.mxu0 %v7657_v10  ;;  %2815 = vmatpush.bf16.msra.mxu2 %v7741_v30 }
 0x546   :  { %2991 = vmatpush.bf16.msra.mxu1 %v9081_v61  ;;  %3017 = vmatpush.bf16.msra.mxu3 %v9088_v41  ;;  %v11436_v7 = vld [vmem:[#allocation12_spill] sm:$0xff] }
 0x549   :  { %2790 = vmatpush.bf16.msra.mxu0 %v7707_v26  ;;  %2816 = vmatpush.bf16.msra.mxu2 %v7764_v19 }
 0x54a   :  { %2992 = vmatpush.bf16.msra.mxu1 %v9095_v2  ;;  %3018 = vmatpush.bf16.msra.mxu3 %v9108_v12 }
 0x54d   :  { %2791 = vmatpush.bf16.msra.mxu0 %v7720_v35  ;;  %2817 = vmatpush.bf16.msra.mxu2 %v7784_v11 }
 0x54e   :  { %3037 = vmatpush.bf16.msrb.mxu1 %v9102_v49  ;;  %3064 = vmatpush.bf16.msrb.mxu3 %v6688_v46 }
 0x54f   :  { %2993 = vmatmul.bf16.vlgmr.msra.gmra.mxu1 %v2961_v0 }
 0x551   :  { %2792 = vmatpush.bf16.msra.mxu0 %v7731_v5  ;;  %2818 = vmatpush.bf16.msra.mxu2 %v7805_v42 }
 0x552   :  { %3038 = vmatpush.bf16.msrb.mxu1 %v9117_v6  ;;  %3065 = vmatpush.bf16.msrb.mxu3 %v6715_v54 }
 0x554   :  { %2680 = vmatmul.bf16.vlgmr.msrb.gmra.mxu0 %v2619_v60  ;;  %2706 = vmatmul.bf16.vlgmr.msrb.gmra.mxu2 %v2619_v60 }
 0x555   :  { %2793 = vmatpush.bf16.msra.mxu0 %v7751_v53  ;;  %2819 = vmatpush.bf16.msra.mxu2 %v7832_v27 }
 0x556   :  { %3039 = vmatpush.bf16.msrb.mxu1 %v9126_v18  ;;  %3066 = vmatpush.bf16.msrb.mxu3 %v6742_v62 }
 0x559   :  { %2794 = vmatpush.bf16.msra.mxu0 %v11115_v50  ;;  %2820 = vmatpush.bf16.msra.mxu2 %v11117_v58 }
 0x55a   :  { %3040 = vmatpush.bf16.msrb.mxu1 %v9135_v57  ;;  %3067 = vmatpush.bf16.msrb.mxu3 %v11116_v48 }
 0x55d   :  { %2795 = vmatpush.bf16.msra.mxu0 %v11118_v45  ;;  %2821 = vmatpush.bf16.msra.mxu2 %v11121_v51 }
 0x55e   :  { %3041 = vmatpush.bf16.msrb.mxu1 %v9144_v39  ;;  %3068 = vmatpush.bf16.msrb.mxu3 %v11264_v15  ;;  %v11458_v15 = vld [vmem:[#allocation51_spill] sm:$0xff]  ;;  %v11459_v39 = vld [vmem:[#allocation48_spill] sm:$0xff] }
 0x561   :  { %2796 = vmatpush.bf16.msra.mxu0 %v11122_v16  ;;  %2822 = vmatpush.bf16.msra.mxu2 %v7902_v24 }
 0x562   :  { %3042 = vmatpush.bf16.msrb.mxu1 %v9153_v29  ;;  %3069 = vmatpush.bf16.msrb.mxu3 %v11268_v38  ;;  %v11455_v38 = vld [vmem:[#allocation47_spill] sm:$0xff] }
 0x565   :  { %2841 = vmatpush.bf16.msrb.mxu0 %v11124_v59  ;;  %2867 = vmatpush.bf16.msrb.mxu2 %v7911_v17 }
 0x566   :  { %3043 = vmatpush.bf16.msrb.mxu1 %v9163_v3  ;;  %3070 = vmatpush.bf16.msrb.mxu3 %v11272_v23  ;;  %v11444_v3 = vld [vmem:[#allocation148_spill] sm:$0xff] }
 0x569   :  { %2842 = vmatpush.bf16.msrb.mxu0 %v11127_v52  ;;  %2868 = vmatpush.bf16.msrb.mxu2 %v11420_v56 }
 0x56a   :  { %3044 = vmatpush.bf16.msrb.mxu1 %v9172_v63  ;;  %3071 = vmatpush.bf16.msrb.mxu3 %v11423_v13  ;;  %v11440_v13 = vld [vmem:[#allocation18_spill] sm:$0xff] }
 0x56d   :  { %2843 = vmatpush.bf16.msrb.mxu0 %v11422_v31  ;;  %2869 = vmatpush.bf16.msrb.mxu2 %v11424_v4 }
 0x56e   :  { %3090 = vmatpush.bf16.msra.mxu1 %v11435_v32  ;;  %v11441_v32 = vld [vmem:[#allocation147_spill] sm:$0xff] }
 0x571   :  { %2844 = vmatpush.bf16.msrb.mxu0 %v11425_v47  ;;  %2870 = vmatpush.bf16.msrb.mxu2 %v11426_v25  ;;  %v11445_v25 = vld [vmem:[#allocation24_spill] sm:$0xff]  ;;  %v2965_v47 = vld [vmem:[#allocation1 + $0x2d] sm:$0xff] }
 0x572   :  { %3091 = vmatpush.bf16.msra.mxu1 %v11436_v7 }
 0x573   :  { %3045 = vmatmul.bf16.vlgmr.msrb.gmra.mxu1 %v2965_v47 }
 0x575   :  { %2845 = vmatpush.bf16.msrb.mxu0 %v11427_v43  ;;  %2871 = vmatpush.bf16.msrb.mxu2 %v11428_v9  ;;  %v11442_v43 = vld [vmem:[#allocation20_spill] sm:$0xff] }
 0x579   :  { %2846 = vmatpush.bf16.msrb.mxu0 %v11429_v44  ;;  %2872 = vmatpush.bf16.msrb.mxu2 %v11430_v8 }
 0x57d   :  { %2847 = vmatpush.bf16.msrb.mxu0 %v11431_v37  ;;  %2873 = vmatpush.bf16.msrb.mxu2 %v11432_v33  ;;  %v11437_v33 = vld [vmem:[#allocation14_spill] sm:$0xff]  ;;  %v11438_v37 = vld [vmem:[#allocation16_spill] sm:$0xff] }
 0x57e   :  { %3092 = vmatpush.bf16.msra.mxu1 %v11437_v33 }
 0x581   :  { %2848 = vmatpush.bf16.msrb.mxu0 %v11433_v40  ;;  %2874 = vmatpush.bf16.msrb.mxu2 %v11434_v55 }
 0x582   :  { %3093 = vmatpush.bf16.msra.mxu1 %v11438_v37 }
 0x586   :  { %3094 = vmatpush.bf16.msra.mxu1 %v11440_v13  ;;  %v2963_v13 = vld [vmem:[#allocation1 + $0x1b] sm:$0xff] }
 0x587   :  { %3019 = vmatmul.bf16.vlgmr.msra.gmra.mxu3 %v2963_v13  ;;  %v11451_v13 = vld [vmem:[#allocation43_spill] sm:$0xff] }
 0x58a   :  { %3095 = vmatpush.bf16.msra.mxu1 %v11442_v43 }
 0x58e   :  { %3096 = vmatpush.bf16.msra.mxu1 %v11445_v25 }
 0x5aa   :  { %v9191_v21 = vpop.f32.mrf.mxu1 }
 0x5b0   :  { %v9194_v28 = vpop.f32.mrf.mxu3 }
 0x5b2   :  { %v2813_v60 = vpop.f32.mrf.mxu1 }
 0x5b8   :  { %v2839_v40 = vpop.f32.mrf.mxu3 }
 0x5b9   :  { %v11443_v40 = vld [vmem:[#allocation106_spill] sm:$0xff] }
 0x5ba   :  { %v9198_v55 = vpop.f32.mrf.mxu1 }
 0x5c0   :  { %v9203_v0 = vpop.f32.mrf.mxu3 }
 0x5c1   :  { %v2629_v8 = vpop.f32.mrf.mxu0 }
 0x5c2   :  { %v2630_v44 = vadd.f32 %v2629_v8, %v11439_v34  ;;  %v2865_v9 = vpop.f32.mrf.mxu1 }
 0x5c3   :  { %v11447_v9 = vld [vmem:[#allocation34_spill] sm:$0xff] }
 0x5c4   :  { %v2643_v63 = vadd.f32 %v11441_v32, %v2630_v44  ;;  %3116 = vmatpush.bf16.msra.mxu3 %v11447_v9 }
 0x5c6   :  { %v5663_v60 = vmul.f32 -1.442695, %v2643_v63  ;;  %v11446_v63 = vld [vmem:[#allocation28_spill] sm:$0xff] }
 0x5c7   :  { %v2655_v7 = vpop.f32.mrf.mxu2  ;;  %3097 = vmatpush.bf16.msra.mxu1 %v11446_v63  ;;  %v11452_v63 = vld [vmem:[#allocation40_spill] sm:$0xff] }
 0x5c8   :  { %6080 = vpow2.f32 %v5663_v60  ;;  %v2656_v33 = vadd.f32 %v2655_v7, %v11443_v40  ;;  %v2891_v8 = vpop.f32.mrf.mxu3  ;;  %v11448_v7 = vld [vmem:[#allocation31_spill] sm:$0xff]  ;;  %v11454_v40 = vld [vmem:[#allocation98_spill] sm:$0xff] }
 0x5c9   :  { %v2631_v23 = vpop.f32.mrf.mxu0 }
 0x5ca   :  { %v2669_v37 = vadd.f32 %v11444_v3, %v2656_v33  ;;  %v11449_v3 = vld [vmem:[#allocation39_spill] sm:$0xff]  ;;  %v11450_v33 = vld [vmem:[#allocation36_spill] sm:$0xff] }
 0x5cb   :  { %3142 = vmatpush.bf16.msrb.mxu1 %v11448_v7  ;;  %3117 = vmatpush.bf16.msra.mxu3 %v11449_v3  ;;  %v11456_v3 = vld [vmem:[#allocation44_spill] sm:$0xff] }
 0x5cc   :  { %v5664_v34 = vmul.f32 -1.442695, %v2669_v37 }
 0x5ce   :  { %v6081_v44 = vpop.eup %6080  ;;  %6082 = vpow2.f32 %v5664_v34 }
 0x5cf   :  { %v2727_v32 = vadd.f32 1.0, %v6081_v44  ;;  %v2657_v60 = vpop.f32.mrf.mxu2  ;;  %3143 = vmatpush.bf16.msrb.mxu1 %v11450_v33  ;;  %3118 = vmatpush.bf16.msra.mxu3 %v11451_v13  ;;  %v11453_v44 = vld [vmem:[#allocation115_spill] sm:$0xff] }
 0x5d0   :  { %v11457_v33 = vld [vmem:[#allocation119_spill] sm:$0xff] }
 0x5d1   :  { %6084 = vrcp.f32 %v2727_v32  ;;  %v2681_v23 = vpop.f32.mrf.mxu0  ;;  %vm2733_vm10 = vweird.f32 %v2727_v32 }
 0x5d3   :  { %3144 = vmatpush.bf16.msrb.mxu1 %v11452_v63  ;;  %3119 = vmatpush.bf16.msra.mxu3 %v11455_v38 }
 0x5d4   :  { %v6083_v37 = vpop.eup %6082 }
 0x5d5   :  { %v2746_v8 = vadd.f32 1.0, %v6083_v37  ;;  %v2682_v37 = vadd.f32 %v2681_v23, %v11457_v33  ;;  %v11467_v33 = vld [vmem:[#allocation104_spill] sm:$0xff] }
 0x5d7   :  { %v6085_v47 = vpop.eup %6084  ;;  %6086 = vrcp.f32 %v2746_v8  ;;  %v2707_v34 = vpop.f32.mrf.mxu2  ;;  %3145 = vmatpush.bf16.msrb.mxu1 %v11456_v3  ;;  %3120 = vmatpush.bf16.msra.mxu3 %v11458_v15  ;;  %v2739_v3 = vand.u32 2147483648, %v2727_v32  ;;  %v2756_v23 = vand.u32 2147483647, %v2746_v8  ;;  %vm2752_vm11 = vweird.f32 %v2746_v8 }
 0x5d8   :  { %v2729_v9 = vmul.f32 %v6085_v47, %v2727_v32  ;;  %v2708_v60 = vadd.f32 %v2707_v34, %v11453_v44  ;;  %vm2734_vm8 = vweird.f32 %v6085_v47  ;;  %v11468_v44 = vld [vmem:[#allocation63_spill] sm:$0xff] }
 0x5d9   :  { %v2683_v25 = vpop.f32.mrf.mxu0  ;;  %vm9227_vm12 = vmor %vm2733_vm10, %vm2734_vm8  ;;  %vm2757_vm14 = vcmp.eq.f32.partialorder %v2756_v23, 8.507059e+37 }
 0x5da   :  { %v2730_v7 = vsub.f32 1.0, %v2729_v9  ;;  %v2721_v43 = vadd.f32 %v11454_v40, %v2708_v60  ;;  %v11460_v9 = vld [vmem:[#allocation149_spill] sm:$0xff]  ;;  %v2758_v40 = vand.u32 2147483648, %v2746_v8 }
 0x5db   :  { %3146 = vmatpush.bf16.msrb.mxu1 %v11459_v39  ;;  %v2695_v34 = vadd.f32 %v11460_v9, %v2682_v37  ;;  %v2740_v9 = vor.u32 1.1754944e-38, %v2739_v3 }
 0x5dc   :  { %v5665_v29 = vmul.f32 -1.442695, %v2721_v43  ;;  %v2731_v4 = vmul.f32 %v6085_v47, %v2730_v7  ;;  %v11461_v43 = vld [vmem:[#allocation55_spill] sm:$0xff]  ;;  %v2737_v7 = vand.u32 2147483647, %v2727_v32 }
 0x5dd   :  { %v6087_v13 = vpop.eup %6086  ;;  %3121 = vmatpush.bf16.msra.mxu3 %v11461_v43  ;;  %v11465_v32 = vld [vmem:[#allocation59_spill] sm:$0xff] }
 0x5de   :  { %v2748_v31 = vmul.f32 %v6087_v13, %v2746_v8  ;;  %6088 = vpow2.f32 %v5665_v29  ;;  %v2732_v60 = vadd.f32 %v6085_v47, %v2731_v4  ;;  %vm2753_vm9 = vweird.f32 %v6087_v13  ;;  %v11462_v29 = vld [vmem:[#allocation52_spill] sm:$0xff] }
 0x5df   :  { %v2709_v63 = vpop.f32.mrf.mxu2  ;;  %3147 = vmatpush.bf16.msrb.mxu1 %v11462_v29  ;;  %6090 = vtanh.f32 %v2695_v34  ;;  %vm2754_vm13 = vmor %vm2752_vm11, %vm2753_vm9  ;;  %v2759_v4 = vor.u32 1.1754944e-38, %v2758_v40  ;;  %vm2738_vm15 = vcmp.eq.f32.partialorder %v2737_v7, 8.507059e+37  ;;  %v11466_v8 = vld [vmem:[#allocation56_spill] sm:$0xff] }
 0x5e0   :  { %v2749_v25 = vsub.f32 1.0, %v2748_v31  ;;  %v2736_v37 = vsel %vm9227_vm12, %v6085_v47, %v2732_v60  ;;  %v11469_v63 = vld [vmem:[#allocation60_spill] sm:$0xff] }
 0x5e1   :  { %3122 = vmatpush.bf16.msra.mxu3 %v11465_v32  ;;  %v2741_v39 = vsel %vm2738_vm15, %v2740_v9, %v2736_v37  ;;  %v11471_v9 = vld [vmem:[#allocation105_spill] sm:$0xff] }
 0x5e2   :  { %v2750_v38 = vmul.f32 %v6087_v13, %v2749_v25 }
 0x5e3   :  { %3148 = vmatpush.bf16.msrb.mxu1 %v11466_v8 }
 0x5e4   :  { %v6089_v15 = vpop.eup %6088  ;;  %v2751_v31 = vadd.f32 %v6087_v13, %v2750_v38 }
 0x5e5   :  { %v2766_v25 = vadd.f32 1.0, %v6089_v15  ;;  %v6091_v34 = vpop.eup %6090  ;;  %3123 = vmatpush.bf16.msra.mxu3 %v11468_v44 }
 0x5e6   :  { %v2755_v43 = vsel %vm2754_vm13, %v6087_v13, %v2751_v31  ;;  %v2783_v40 = vmul.f32 %v6091_v34, %v2741_v39  ;;  %v11473_v34 = vld [vmem:[#allocation66_spill] sm:$0xff] }
 0x5e7   :  { %v2760_v29 = vsel %vm2757_vm14, %v2759_v4, %v2755_v43  ;;  %6092 = vrcp.f32 %v2766_v25  ;;  %3149 = vmatpush.bf16.msrb.mxu1 %v11469_v63  ;;  %v2778_v60 = vand.u32 2147483648, %v2766_v25  ;;  %v2776_v43 = vand.u32 2147483647, %v2766_v25 }
 0x5e8   :  { %v2782_v38 = vmul.f32 %v2760_v29, %v11467_v33  ;;  %vm2772_vm1 = vweird.f32 %v2766_v25 }
 0x5e9   :  { %v2779_v33 = vor.u32 1.1754944e-38, %v2778_v60  ;;  %vm2777_vm3 = vcmp.eq.f32.partialorder %v2776_v43, 8.507059e+37  ;;  %v11479_v60 = vld [vmem:[#allocation127_spill] sm:$0xff]  ;;  %v11481_v43 = vld [vmem:[#allocation69_spill] sm:$0xff] }
 0x5ea   :  { %v9238_v3 = vadd.f32 %v2783_v40, %v2782_v38  ;;  %v11472_v38 = vld [vmem:[#allocation153_spill] sm:$0xff]  ;;  %v11474_v40 = vld [vmem:[#allocation68_spill] sm:$0xff] }
 0x5ec   :  { %11470 = vst [vmem:[#allocation102_spill] sm:$0xff] %v9238_v3  ;;  %6094 = vtanh.f32 %v9238_v3 }
 0x5ed   :  { %v6093_v15 = vpop.eup %6092 }
 0x5ee   :  { %v2768_v13 = vmul.f32 %v6093_v15, %v2766_v25  ;;  %vm2773_vm0 = vweird.f32 %v6093_v15  ;;  %v11475_v25 = vld [vmem:[#allocation125_spill] sm:$0xff] }
 0x5ef   :  { %vm2774_vm2 = vmor %vm2772_vm1, %vm2773_vm0 }
 0x5f0   :  { %v2769_v47 = vsub.f32 1.0, %v2768_v13  ;;  %v11477_v13 = vld [vmem:[#allocation67_spill] sm:$0xff] }
 0x5f2   :  { %v2770_v23 = vmul.f32 %v6093_v15, %v2769_v47  ;;  %v6095_v39 = vpop.eup %6094  ;;  %v11478_v47 = vld [vmem:[#allocation70_spill] sm:$0xff] }
 0x5f4   :  { %v2771_v7 = vadd.f32 %v6093_v15, %v2770_v23  ;;  %v11480_v23 = vld [vmem:[#allocation128_spill] sm:$0xff] }
 0x5f6   :  { %v2775_v29 = vsel %vm2774_vm2, %v6093_v15, %v2771_v7  ;;  %v11476_v15 = vld [vmem:[#allocation126_spill] sm:$0xff]  ;;  %v11482_v7 = vld [vmem:[#allocation72_spill] sm:$0xff] }
 0x5f7   :  { %v2780_v31 = vsel %vm2777_vm3, %v2779_v33, %v2775_v29  ;;  %v11483_v33 = vld [vmem:[#allocation129_spill] sm:$0xff]  ;;  %v11484_v29 = vld [vmem:[#allocation130_spill] sm:$0xff] }
 0x5f8   :  { %v2786_v4 = vmul.f32 %v6095_v39, %v2780_v31  ;;  %v11485_v39 = vld [vmem:[#allocation71_spill] sm:$0xff]  ;;  %v11486_v31 = vld [vmem:[#allocation74_spill] sm:$0xff] }
 0x5fa   :  { %v2787_v37 = vpack.c.bf16 %v2786_v4, %v2786_v4  ;;  %v11487_v4 = vld [vmem:[#allocation131_spill] sm:$0xff] }
 0x5fc   :  { %2797 = vmatmul.bf16.vlgmr.msra.gmra.mxu0 %v2787_v37  ;;  %2823 = vmatmul.bf16.vlgmr.msra.gmra.mxu2 %v2787_v37 }
 0x5fd   :  { %2972 = vmatpush.bf16.msra.mxu0 %v11471_v9  ;;  %3072 = vmatmul.bf16.vlgmr.msrb.gmra.mxu3 %v2787_v37  ;;  %v11488_v9 = vld [vmem:[#allocation132_spill] sm:$0xff] }
 0x5fe   :  { %3098 = vmatmul.bf16.vlgmr.msra.gmra.mxu1 %v2787_v37  ;;  %2998 = vmatpush.bf16.msra.mxu2 %v11472_v38  ;;  %v11489_v38 = vld [vmem:[#allocation73_spill] sm:$0xff] }
 0x5ff   :  { %3233 = vmatpush.bf16.msrb.mxu3 %v11473_v34  ;;  %3259 = vmatpush.bf16.msra.mxu1 %v11474_v40 }
 0x601   :  { %2973 = vmatpush.bf16.msra.mxu0 %v11475_v25  ;;  %v11490_v25 = vld [vmem:[#allocation76_spill] sm:$0xff] }
 0x602   :  { %2999 = vmatpush.bf16.msra.mxu2 %v11476_v15  ;;  %v11491_v15 = vld [vmem:[#allocation133_spill] sm:$0xff] }
 0x603   :  { %3234 = vmatpush.bf16.msrb.mxu3 %v11477_v13  ;;  %3260 = vmatpush.bf16.msra.mxu1 %v11478_v47  ;;  %v11557_v47 = vld [vmem:[#allocation62_spill] sm:$0xff] }
 0x605   :  { %2974 = vmatpush.bf16.msra.mxu0 %v11479_v60  ;;  %v11492_v60 = vld [vmem:[#allocation134_spill] sm:$0xff] }
 0x606   :  { %3000 = vmatpush.bf16.msra.mxu2 %v11480_v23  ;;  %v11493_v23 = vld [vmem:[#allocation75_spill] sm:$0xff] }
 0x607   :  { %3235 = vmatpush.bf16.msrb.mxu3 %v11481_v43  ;;  %3261 = vmatpush.bf16.msra.mxu1 %v11482_v7  ;;  %v11532_v7 = vld [vmem:[#allocation11_spill] sm:$0xff]  ;;  %v11553_v43 = vld [vmem:[#allocation46_spill] sm:$0xff] }
 0x609   :  { %2975 = vmatpush.bf16.msra.mxu0 %v11483_v33  ;;  %v11494_v33 = vld [vmem:[#allocation78_spill] sm:$0xff] }
 0x60a   :  { %3001 = vmatpush.bf16.msra.mxu2 %v11484_v29  ;;  %v11495_v29 = vld [vmem:[#allocation135_spill] sm:$0xff] }
 0x60b   :  { %3236 = vmatpush.bf16.msrb.mxu3 %v11485_v39  ;;  %3262 = vmatpush.bf16.msra.mxu1 %v11486_v31  ;;  %v11496_v31 = vld [vmem:[#allocation136_spill] sm:$0xff]  ;;  %v11502_v39 = vld [vmem:[#allocation5_spill] sm:$0xff] }
 0x60c   :  { %2849 = vmatmul.bf16.vlgmr.msrb.gmra.mxu0 %v2787_v37  ;;  %2875 = vmatmul.bf16.vlgmr.msrb.gmra.mxu2 %v2787_v37 }
 0x60d   :  { %2976 = vmatpush.bf16.msra.mxu0 %v11487_v4  ;;  %3124 = vmatmul.bf16.vlgmr.msra.gmra.mxu3 %v2787_v37  ;;  %v11497_v4 = vld [vmem:[#allocation77_spill] sm:$0xff] }
 0x60e   :  { %3150 = vmatmul.bf16.vlgmr.msrb.gmra.mxu1 %v2787_v37  ;;  %3002 = vmatpush.bf16.msra.mxu2 %v11488_v9  ;;  %v11498_v37 = vld [vmem:[#allocation81_spill] sm:$0xff] }
 0x60f   :  { %3237 = vmatpush.bf16.msrb.mxu3 %v11489_v38  ;;  %3263 = vmatpush.bf16.msra.mxu1 %v11490_v25  ;;  %v11499_v9 = vld [vmem:[#allocation137_spill] sm:$0xff]  ;;  %v2960_v38 = vld [vmem:[#allocation1] sm:$0xff]  ;;  %v11500_v25 = vld [vmem:[#allocation138_spill] sm:$0xff] }
 0x611   :  { %2977 = vmatpush.bf16.msra.mxu0 %v11491_v15  ;;  %v11501_v15 = vld [vmem:[#allocation139_spill] sm:$0xff] }
 0x612   :  { %3003 = vmatpush.bf16.msra.mxu2 %v11492_v60  ;;  %v2962_v60 = vld [vmem:[#allocation1 + $0x12] sm:$0xff] }
 0x613   :  { %3238 = vmatpush.bf16.msrb.mxu3 %v11493_v23  ;;  %3264 = vmatpush.bf16.msra.mxu1 %v11494_v33  ;;  %v11503_v23 = vld [vmem:[#allocation79_spill] sm:$0xff]  ;;  %v11511_v33 = vld [vmem:[#allocation86_spill] sm:$0xff] }
 0x615   :  { %2978 = vmatpush.bf16.msra.mxu0 %v11495_v29  ;;  %v11504_v29 = vld [vmem:[#allocation83_spill] sm:$0xff] }
 0x616   :  { %3004 = vmatpush.bf16.msra.mxu2 %v11496_v31  ;;  %v11505_v31 = vld [vmem:[#allocation80_spill] sm:$0xff] }
 0x617   :  { %3239 = vmatpush.bf16.msrb.mxu3 %v11497_v4  ;;  %3265 = vmatpush.bf16.msra.mxu1 %v11498_v37  ;;  %v11506_v4 = vld [vmem:[#allocation140_spill] sm:$0xff] }
 0x618   :  { %v11507_v37 = vld [vmem:[#allocation84_spill] sm:$0xff] }
 0x619   :  { %2979 = vmatpush.bf16.msra.mxu0 %v11499_v9  ;;  %v11508_v9 = vld [vmem:[#allocation6_spill] sm:$0xff] }
 0x61a   :  { %3005 = vmatpush.bf16.msra.mxu2 %v11501_v15  ;;  %v11510_v15 = vld [vmem:[#allocation141_spill] sm:$0xff] }
 0x61b   :  { %3240 = vmatpush.bf16.msrb.mxu3 %v11503_v23  ;;  %3266 = vmatpush.bf16.msra.mxu1 %v11504_v29  ;;  %v11514_v29 = vld [vmem:[#allocation142_spill] sm:$0xff]  ;;  %v11531_v23 = vld [vmem:[#allocation96_spill] sm:$0xff] }
 0x61c   :  { %2980 = vmatmul.bf16.vlgmr.msra.gmra.mxu0 %v2960_v38  ;;  %v11513_v38 = vld [vmem:[#allocation85_spill] sm:$0xff] }
 0x61d   :  { %3024 = vmatpush.bf16.msrb.mxu0 %v11500_v25  ;;  %3006 = vmatmul.bf16.vlgmr.msra.gmra.mxu2 %v2962_v60  ;;  %v11509_v25 = vld [vmem:[#allocation82_spill] sm:$0xff]  ;;  %v11515_v60 = vld [vmem:[#allocation88_spill] sm:$0xff] }
 0x61e   :  { %3051 = vmatpush.bf16.msrb.mxu2 %v11502_v39  ;;  %v11512_v39 = vld [vmem:[#allocation7_spill] sm:$0xff] }
 0x61f   :  { %3285 = vmatpush.bf16.msra.mxu3 %v11505_v31  ;;  %3311 = vmatpush.bf16.msrb.mxu1 %v11507_v37  ;;  %v11516_v31 = vld [vmem:[#allocation9_spill] sm:$0xff]  ;;  %v11518_v37 = vld [vmem:[#allocation143_spill] sm:$0xff] }
 0x621   :  { %3025 = vmatpush.bf16.msrb.mxu0 %v11506_v4  ;;  %v11517_v4 = vld [vmem:[#allocation87_spill] sm:$0xff] }
 0x622   :  { %3052 = vmatpush.bf16.msrb.mxu2 %v11508_v9  ;;  %v11519_v9 = vld [vmem:[#allocation90_spill] sm:$0xff] }
 0x623   :  { %3286 = vmatpush.bf16.msra.mxu3 %v11509_v25  ;;  %3312 = vmatpush.bf16.msrb.mxu1 %v11511_v33  ;;  %v11520_v25 = vld [vmem:[#allocation21_spill] sm:$0xff]  ;;  %v11522_v33 = vld [vmem:[#allocation144_spill] sm:$0xff] }
 0x625   :  { %3026 = vmatpush.bf16.msrb.mxu0 %v11510_v15  ;;  %v11521_v15 = vld [vmem:[#allocation89_spill] sm:$0xff] }
 0x626   :  { %3053 = vmatpush.bf16.msrb.mxu2 %v11512_v39  ;;  %v9293_v39 = vpop.f32.mrf.mxu1 }
 0x627   :  { %3287 = vmatpush.bf16.msra.mxu3 %v11513_v38  ;;  %3313 = vmatpush.bf16.msrb.mxu1 %v11515_v60  ;;  %v11523_v38 = vld [vmem:[#allocation92_spill] sm:$0xff]  ;;  %v11525_v60 = vld [vmem:[#allocation91_spill] sm:$0xff] }
 0x629   :  { %3027 = vmatpush.bf16.msrb.mxu0 %v11514_v29  ;;  %v11524_v29 = vld [vmem:[#allocation25_spill] sm:$0xff] }
 0x62a   :  { %3054 = vmatpush.bf16.msrb.mxu2 %v11516_v31  ;;  %v11526_v31 = vld [vmem:[#allocation145_spill] sm:$0xff] }
 0x62b   :  { %3288 = vmatpush.bf16.msra.mxu3 %v11517_v4  ;;  %3314 = vmatpush.bf16.msrb.mxu1 %v11519_v9  ;;  %v11527_v4 = vld [vmem:[#allocation94_spill] sm:$0xff]  ;;  %v11529_v9 = vld [vmem:[#allocation93_spill] sm:$0xff] }
 0x62d   :  { %3028 = vmatpush.bf16.msrb.mxu0 %v11518_v37  ;;  %v11528_v37 = vld [vmem:[#allocation29_spill] sm:$0xff] }
 0x62e   :  { %3055 = vmatpush.bf16.msrb.mxu2 %v11520_v25  ;;  %v11530_v25 = vld [vmem:[#allocation146_spill] sm:$0xff] }
 0x62f   :  { %3289 = vmatpush.bf16.msra.mxu3 %v11521_v15  ;;  %3315 = vmatpush.bf16.msrb.mxu1 %v11523_v38  ;;  %v2964_v15 = vld [vmem:[#allocation1 + $0x24] sm:$0xff] }
 0x630   :  { %v11533_v38 = vld [vmem:[#allocation33_spill] sm:$0xff] }
 0x631   :  { %3029 = vmatpush.bf16.msrb.mxu0 %v11522_v33  ;;  %v2996_v33 = vpop.f32.mrf.mxu1 }
 0x632   :  { %3056 = vmatpush.bf16.msrb.mxu2 %v11524_v29  ;;  %v11534_v29 = vld [vmem:[#allocation37_spill] sm:$0xff] }
 0x633   :  { %3290 = vmatpush.bf16.msra.mxu3 %v11525_v60  ;;  %3316 = vmatpush.bf16.msrb.mxu1 %v11527_v4  ;;  %v11536_v4 = vld [vmem:[#allocation97_spill] sm:$0xff]  ;;  %v11552_v60 = vld [vmem:[#allocation42_spill] sm:$0xff] }
 0x634   :  { %v11540_v33 = vld [vmem:[#allocation45_spill] sm:$0xff] }
 0x635   :  { %3030 = vmatpush.bf16.msrb.mxu0 %v11526_v31  ;;  %v11535_v31 = vld [vmem:[#allocation95_spill] sm:$0xff] }
 0x636   :  { %3057 = vmatpush.bf16.msrb.mxu2 %v11528_v37  ;;  %v11537_v37 = vld [vmem:[#allocation13_spill] sm:$0xff] }
 0x637   :  { %3291 = vmatpush.bf16.msra.mxu3 %v11529_v9  ;;  %3317 = vmatpush.bf16.msrb.mxu1 %v11531_v23  ;;  %v11538_v9 = vld [vmem:[#allocation41_spill] sm:$0xff] }
 0x638   :  { %v11541_v23 = vld [vmem:[#allocation17_spill] sm:$0xff] }
 0x639   :  { %3031 = vmatpush.bf16.msrb.mxu0 %v11530_v25  ;;  %v11539_v25 = vld [vmem:[#allocation15_spill] sm:$0xff] }
 0x63a   :  { %3058 = vmatpush.bf16.msrb.mxu2 %v11533_v38  ;;  %v11543_v38 = vld [vmem:[#allocation22_spill] sm:$0xff] }
 0x63b   :  { %3292 = vmatpush.bf16.msra.mxu3 %v11535_v31  ;;  %3318 = vmatpush.bf16.msrb.mxu1 %v11536_v4  ;;  %v11545_v31 = vld [vmem:[#allocation26_spill] sm:$0xff]  ;;  %v11546_v4 = vld [vmem:[#allocation57_spill] sm:$0xff] }
 0x63c   :  { %3032 = vmatmul.bf16.vlgmr.msrb.gmra.mxu0 %v2964_v15  ;;  %v9317_v15 = vpop.f32.mrf.mxu1 }
 0x63d   :  { %3077 = vmatpush.bf16.msra.mxu0 %v11532_v7  ;;  %v11542_v7 = vld [vmem:[#allocation49_spill] sm:$0xff] }
 0x63e   :  { %3103 = vmatpush.bf16.msra.mxu2 %v11534_v29  ;;  %v11544_v29 = vld [vmem:[#allocation53_spill] sm:$0xff] }
 0x641   :  { %3078 = vmatpush.bf16.msra.mxu0 %v11537_v37  ;;  %v11547_v37 = vld [vmem:[#allocation30_spill] sm:$0xff] }
 0x642   :  { %3104 = vmatpush.bf16.msra.mxu2 %v11538_v9  ;;  %v9322_v9 = vpop.f32.mrf.mxu3 }
 0x645   :  { %3079 = vmatpush.bf16.msra.mxu0 %v11539_v25  ;;  %v11548_v25 = vld [vmem:[#allocation61_spill] sm:$0xff] }
 0x646   :  { %3105 = vmatpush.bf16.msra.mxu2 %v11540_v33  ;;  %v3048_v33 = vpop.f32.mrf.mxu1 }
 0x647   :  { %v11558_v33 = vld [vmem:[#allocation65_spill] sm:$0xff] }
 0x649   :  { %3080 = vmatpush.bf16.msra.mxu0 %v11541_v23  ;;  %v11549_v23 = vld [vmem:[#allocation35_spill] sm:$0xff] }
 0x64a   :  { %3106 = vmatpush.bf16.msra.mxu2 %v11542_v7  ;;  %v11550_v7 = vld [vmem:[#allocation38_spill] sm:$0xff] }
 0x64d   :  { %3081 = vmatpush.bf16.msra.mxu0 %v11543_v38  ;;  %v11551_v38 = vld [vmem:[#allocation64_spill] sm:$0xff] }
 0x64e   :  { %3107 = vmatpush.bf16.msra.mxu2 %v11544_v29  ;;  %v3022_v29 = vpop.f32.mrf.mxu3 }
 0x651   :  { %3082 = vmatpush.bf16.msra.mxu0 %v11545_v31  ;;  %v11554_v31 = vld [vmem:[#allocation50_spill] sm:$0xff] }
 0x652   :  { %3108 = vmatpush.bf16.msra.mxu2 %v11546_v4  ;;  %v11555_v4 = vld [vmem:[#allocation54_spill] sm:$0xff] }
 0x655   :  { %3083 = vmatpush.bf16.msra.mxu0 %v11547_v37  ;;  %v11556_v37 = vld [vmem:[#allocation58_spill] sm:$0xff] }
 0x656   :  { %3109 = vmatpush.bf16.msra.mxu2 %v11548_v25  ;;  %v11559_v25 = vld [vmem:[#allocation151_spill] sm:$0xff] }
 0x659   :  { %3084 = vmatpush.bf16.msra.mxu0 %v11549_v23 }
 0x65a   :  { %3110 = vmatpush.bf16.msra.mxu2 %v11551_v38 }
 0x65d   :  { %3129 = vmatpush.bf16.msrb.mxu0 %v11550_v7 }
 0x661   :  { %3130 = vmatpush.bf16.msrb.mxu0 %v11552_v60 }
 0x665   :  { %3131 = vmatpush.bf16.msrb.mxu0 %v11553_v43  ;;  %v11561_v43 = vld [vmem:[#allocation150_spill] sm:$0xff] }
 0x669   :  { %3132 = vmatpush.bf16.msrb.mxu0 %v11554_v31 }
 0x66d   :  { %3133 = vmatpush.bf16.msrb.mxu0 %v11555_v4 }
 0x671   :  { %3134 = vmatpush.bf16.msrb.mxu0 %v11556_v37 }
 0x675   :  { %3135 = vmatpush.bf16.msrb.mxu0 %v11557_v47 }
 0x679   :  { %3136 = vmatpush.bf16.msrb.mxu0 %v11558_v33  ;;  %v2798_v23 = vpop.f32.mrf.mxu0 }
 0x67a   :  { %v2799_v7 = vadd.f32 %v2798_v23, %v11559_v25 }
 0x67b   :  { %v9336_v13 = vpop.f32.mrf.mxu1 }
 0x67c   :  { %11560 = vst [vmem:[#allocation109_spill] sm:$0xff] %v9336_v13  ;;  %v2812_v29 = vadd.f32 %v9191_v21, %v2799_v7 }
 0x67e   :  { %v5666_v60 = vmul.f32 -1.442695, %v2812_v29 }
 0x67f   :  { %v2824_v38 = vpop.f32.mrf.mxu2 }
 0x680   :  { %6096 = vpow2.f32 %v5666_v60  ;;  %v2825_v31 = vadd.f32 %v2824_v38, %v11561_v43  ;;  %v9340_v40 = vpop.f32.mrf.mxu3 }
 0x681   :  { %11562 = vst [vmem:[#allocation103_spill] sm:$0xff] %v9340_v40  ;;  %v2800_v4 = vpop.f32.mrf.mxu0 }
 0x682   :  { %v2838_v37 = vadd.f32 %v9194_v28, %v2825_v31  ;;  %v11564_v4 = vld [vmem:[#allocation152_spill] sm:$0xff] }
 0x683   :  { %v3101_v47 = vpop.f32.mrf.mxu1 }
 0x684   :  { %v5667_v34 = vmul.f32 -1.442695, %v2838_v37 }
 0x686   :  { %v6097_v33 = vpop.eup %6096  ;;  %6098 = vpow2.f32 %v5667_v34 }
 0x687   :  { %v2896_v3 = vadd.f32 1.0, %v6097_v33  ;;  %v2826_v23 = vpop.f32.mrf.mxu2 }
 0x688   :  { %v3075_v25 = vpop.f32.mrf.mxu3 }
 0x689   :  { %6100 = vrcp.f32 %v2896_v3  ;;  %v2850_v63 = vpop.f32.mrf.mxu0  ;;  %v11566_v25 = vld [vmem:[#allocation154_spill] sm:$0xff]  ;;  %vm2902_vm6 = vweird.f32 %v2896_v3 }
 0x68a   :  { %v2851_v33 = vadd.f32 %v2850_v63, %v11566_v25  ;;  %v2906_v63 = vand.u32 2147483647, %v2896_v3 }
 0x68b   :  { %v9343_v21 = vpop.f32.mrf.mxu1 }
 0x68c   :  { %11563 = vst [vmem:[#allocation8_spill] sm:$0xff] %v9343_v21  ;;  %v6099_v7 = vpop.eup %6098  ;;  %v2864_v13 = vadd.f32 %v9198_v55, %v2851_v33  ;;  %vm2907_vm11 = vcmp.eq.f32.partialorder %v2906_v63, 8.507059e+37 }
 0x68d   :  { %v2915_v60 = vadd.f32 1.0, %v6099_v7 }
 0x68f   :  { %v6101_v29 = vpop.eup %6100  ;;  %6102 = vrcp.f32 %v2915_v60  ;;  %v2876_v38 = vpop.f32.mrf.mxu2  ;;  %vm2921_vm7 = vweird.f32 %v2915_v60 }
 0x690   :  { %v2898_v43 = vmul.f32 %v6101_v29, %v2896_v3  ;;  %v2877_v44 = vadd.f32 %v2876_v38, %v11564_v4  ;;  %v9346_v28 = vpop.f32.mrf.mxu3  ;;  %v2927_v38 = vand.u32 2147483648, %v2915_v60  ;;  %vm2903_vm4 = vweird.f32 %v6101_v29 }
 0x691   :  { %11565 = vst [vmem:[#allocation147_spill] sm:$0xff] %v9346_v28  ;;  %v2852_v47 = vpop.f32.mrf.mxu0  ;;  %vm2904_vm8 = vmor %vm2902_vm6, %vm2903_vm4 }
 0x692   :  { %v2899_v37 = vsub.f32 1.0, %v2898_v43  ;;  %v2890_v34 = vadd.f32 %v9203_v0, %v2877_v44  ;;  %v2908_v0 = vand.u32 2147483648, %v2896_v3  ;;  %v2925_v44 = vand.u32 2147483647, %v2915_v60 }
 0x693   :  { %v3153_v31 = vpop.f32.mrf.mxu1 }
 0x694   :  { %v5668_v23 = vmul.f32 -1.442695, %v2890_v34  ;;  %v2900_v32 = vmul.f32 %v6101_v29, %v2899_v37  ;;  %vm2926_vm10 = vcmp.eq.f32.partialorder %v2925_v44, 8.507059e+37 }
 0x695   :  { %v6103_v8 = vpop.eup %6102 }
 0x696   :  { %v2917_v21 = vmul.f32 %v6103_v8, %v2915_v60  ;;  %6104 = vpow2.f32 %v5668_v23  ;;  %v2901_v4 = vadd.f32 %v6101_v29, %v2900_v32  ;;  %vm2922_vm5 = vweird.f32 %v6103_v8 }
 0x697   :  { %v2878_v7 = vpop.f32.mrf.mxu2  ;;  %6106 = vtanh.f32 %v2864_v13  ;;  %vm2923_vm9 = vmor %vm2921_vm7, %vm2922_vm5 }
 0x698   :  { %v2918_v40 = vsub.f32 1.0, %v2917_v21  ;;  %v3127_v56 = vpop.f32.mrf.mxu3  ;;  %v2928_v21 = vor.u32 1.1754944e-38, %v2927_v38  ;;  %v2905_v31 = vsel %vm2904_vm8, %v6101_v29, %v2901_v4 }
 0x699   :  { %v2981_v47 = vpop.f32.mrf.mxu0  ;;  %v2909_v56 = vor.u32 1.1754944e-38, %v2908_v0 }
 0x69a   :  { %v2919_v43 = vmul.f32 %v6103_v8, %v2918_v40  ;;  %v2982_v4 = vadd.f32 %v9043_v14, %v2981_v47  ;;  %v9361_v47 = vld [vmem:[%s10903_s26 + $0x78] sm:$0xff] }
 0x69b   :  { %v2910_v40 = vsel %vm2907_vm11, %v2909_v56, %v2905_v31 }
 0x69c   :  { %v6105_v34 = vpop.eup %6104  ;;  %v2920_v37 = vadd.f32 %v6103_v8, %v2919_v43 }
 0x69d   :  { %v2935_v55 = vadd.f32 1.0, %v6105_v34  ;;  %v6107_v25 = vpop.eup %6106 }
 0x69e   :  { %v2924_v33 = vsel %vm2923_vm9, %v6103_v8, %v2920_v37  ;;  %v2952_v60 = vmul.f32 %v6107_v25, %v2910_v40  ;;  %v9380_v40 = vld [vmem:[%s10903_s26 + $0xf0] sm:$0xff] }
 0x69f   :  { %v2929_v32 = vsel %vm2926_vm10, %v2928_v21, %v2924_v33  ;;  %6108 = vrcp.f32 %v2935_v55  ;;  %v2947_v8 = vand.u32 2147483648, %v2935_v55  ;;  %v2945_v44 = vand.u32 2147483647, %v2935_v55 }
 0x6a0   :  { %v3007_v23 = vpop.f32.mrf.mxu2  ;;  %v2951_v7 = vmul.f32 %v2929_v32, %v9037_v1  ;;  %vm2941_vm13 = vweird.f32 %v2935_v55  ;;  %v2995_v1 = vadd.f32 %v9293_v39, %v2982_v4  ;;  %v9367_v39 = vld [vmem:[%s10903_s26 + $0xf8] sm:$0xff] }
 0x6a1   :  { %v2983_v3 = vpop.f32.mrf.mxu0  ;;  %v2948_v25 = vor.u32 1.1754944e-38, %v2947_v8  ;;  %vm2946_vm15 = vcmp.eq.f32.partialorder %v2945_v44, 8.507059e+37  ;;  %v11579_v8 = vld [vmem:[#allocation121_spill] sm:$0xff]  ;;  %v11580_v4 = vld [vmem:[#allocation107_spill] sm:$0xff]  ;;  %v11582_v44 = vld [vmem:[#allocation114_spill] sm:$0xff] }
 0x6a2   :  { %v9352_v43 = vadd.f32 %v2952_v60, %v2951_v7  ;;  %v3008_v56 = vadd.f32 %v3007_v23, %v2995_v1  ;;  %v9392_v3 = vld [vmem:[%s10903_s26 + $0xe8] sm:$0xff]  ;;  %v9400_v60 = vld [vmem:[%s10903_s26 + $0x60] sm:$0xff] }
 0x6a3   :  { %v11584_v1 = vld [vmem:[#allocation117_spill] sm:$0xff] }
 0x6a4   :  { %6110 = vtanh.f32 %v9352_v43  ;;  %v3021_v14 = vadd.f32 %v9322_v9, %v3008_v56  ;;  %v9374_v9 = vld [vmem:[%s10903_s26 + $0x70] sm:$0xff] }
 0x6a5   :  { %v6109_v28 = vpop.eup %6108  ;;  %v11588_v56 = vld [vmem:[#allocation10_spill] sm:$0xff] }
 0x6a6   :  { %v2937_v13 = vmul.f32 %v6109_v28, %v2935_v55  ;;  %vm2942_vm12 = vweird.f32 %v6109_v28 }
 0x6a7   :  { %vm2943_vm14 = vmor %vm2941_vm13, %vm2942_vm12 }
 0x6a8   :  { %v2938_v38 = vsub.f32 1.0, %v2937_v13  ;;  %v3009_v29 = vpop.f32.mrf.mxu2  ;;  %v9406_v13 = vld [vmem:[%s10903_s26 + $0xe0] sm:$0xff] }
 0x6a9   :  { %v11578_v29 = vld [vmem:[#allocation112_spill] sm:$0xff] }
 0x6aa   :  { %v2939_v0 = vmul.f32 %v6109_v28, %v2938_v38  ;;  %v6111_v37 = vpop.eup %6110  ;;  %v9414_v38 = vld [vmem:[%s10903_s26 + $0x58] sm:$0xff] }
 0x6ac   :  { %v2940_v63 = vadd.f32 %v6109_v28, %v2939_v0  ;;  %v11581_v0 = vld [vmem:[#allocation32_spill] sm:$0xff] }
 0x6ae   :  { %v2944_v34 = vsel %vm2943_vm14, %v6109_v28, %v2940_v63  ;;  %v11583_v63 = vld [vmem:[#allocation122_spill] sm:$0xff] }
 0x6af   :  { %v2949_v21 = vsel %vm2946_vm15, %v2948_v25, %v2944_v34  ;;  %v11585_v25 = vld [vmem:[#allocation123_spill] sm:$0xff]  ;;  %v11586_v34 = vld [vmem:[#allocation120_spill] sm:$0xff] }
 0x6b0   :  { %v2955_v31 = vmul.f32 %v6111_v37, %v2949_v21  ;;  %v11587_v37 = vld [vmem:[#allocation124_spill] sm:$0xff] }
 0x6b1   :  { %v5676_v21 = vld [vmem:[%s10904_s27 + $0x1e] sm:$0x3f] }
 0x6b2   :  { %v3219_v33 = vpack.c.bf16 %v2955_v31, %v2955_v31  ;;  %3390 = vst [vmem:[#allocation1] ss:$9 sm:$0xff] %v5676_v21  ;;  %v11595_v21 = vld [vmem:[#allocation109_spill] sm:$0xff] }
 0x6b4   :  { %3241 = vmatmul.bf16.vlgmr.msrb.gmra.mxu3 %v3219_v33  ;;  %3267 = vmatmul.bf16.vlgmr.msra.gmra.mxu1 %v3219_v33 }
 0x6b5   :  { %3416 = vmatpush.bf16.msrb.mxu3 %v9361_v47  ;;  %3442 = vmatpush.bf16.msra.mxu1 %v9367_v39 }
 0x6b9   :  { %v3033_v28 = vpop.f32.mrf.mxu0  ;;  %3417 = vmatpush.bf16.msrb.mxu3 %v9374_v9  ;;  %3443 = vmatpush.bf16.msra.mxu1 %v9380_v40  ;;  %v3392_v31 = vld [vmem:[#allocation1 + $0x9] sm:$0xff] }
 0x6ba   :  { %v3034_v55 = vadd.f32 %v3033_v28, %v3021_v14  ;;  %v11590_v14 = vld [vmem:[#allocation14_spill] sm:$0xff] }
 0x6bc   :  { %v3047_v32 = vadd.f32 %v9317_v15, %v3034_v55  ;;  %v9386_v15 = vld [vmem:[%s10903_s26 + $0x68] sm:$0xff] }
 0x6bd   :  { %3418 = vmatpush.bf16.msrb.mxu3 %v9386_v15  ;;  %3444 = vmatpush.bf16.msra.mxu1 %v9392_v3  ;;  %v11591_v55 = vld [vmem:[#allocation16_spill] sm:$0xff] }
 0x6be   :  { %v3050_v23 = vpack.c.bf16 %v3047_v32, %v3047_v32  ;;  %v11592_v32 = vld [vmem:[#allocation18_spill] sm:$0xff] }
 0x6c0   :  { %3059 = vmatmul.bf16.vlgmr.msrb.gmra.mxu2 %v3050_v23  ;;  %3085 = vmatmul.bf16.vlgmr.msra.gmra.mxu0 %v3050_v23 }
 0x6c1   :  { %v3035_v7 = vpop.f32.mrf.mxu0  ;;  %3220 = vmatpush.bf16.msrb.mxu2 %v7657_v10  ;;  %3246 = vmatpush.bf16.msra.mxu0 %v7741_v30 }
 0x6c2   :  { %3419 = vmatpush.bf16.msrb.mxu3 %v9400_v60  ;;  %3445 = vmatpush.bf16.msra.mxu1 %v9406_v13 }
 0x6c4   :  { %3293 = vmatmul.bf16.vlgmr.msra.gmra.mxu3 %v3219_v33  ;;  %3319 = vmatmul.bf16.vlgmr.msrb.gmra.mxu1 %v3219_v33  ;;  %v11589_v33 = vld [vmem:[#allocation12_spill] sm:$0xff] }
 0x6c5   :  { %3221 = vmatpush.bf16.msrb.mxu2 %v7707_v26  ;;  %3247 = vmatpush.bf16.msra.mxu0 %v7764_v19 }
 0x6c6   :  { %3420 = vmatpush.bf16.msrb.mxu3 %v9414_v38  ;;  %3446 = vmatpush.bf16.msra.mxu1 %v9061_v36  ;;  %v11567_v36 = vld [vmem:[#allocation113_spill] sm:$0xff] }
 0x6c9   :  { %3222 = vmatpush.bf16.msrb.mxu2 %v7720_v35  ;;  %3248 = vmatpush.bf16.msra.mxu0 %v7784_v11 }
 0x6ca   :  { %3421 = vmatpush.bf16.msrb.mxu3 %v9067_v22  ;;  %3447 = vmatpush.bf16.msra.mxu1 %v9074_v20  ;;  %v11568_v22 = vld [vmem:[#allocation100_spill] sm:$0xff]  ;;  %v11569_v20 = vld [vmem:[#allocation19_spill] sm:$0xff] }
 0x6cd   :  { %3223 = vmatpush.bf16.msrb.mxu2 %v7731_v5  ;;  %3249 = vmatpush.bf16.msra.mxu0 %v7805_v42 }
 0x6ce   :  { %3422 = vmatpush.bf16.msrb.mxu3 %v9081_v61  ;;  %3448 = vmatpush.bf16.msra.mxu1 %v9088_v41  ;;  %v11570_v61 = vld [vmem:[#allocation108_spill] sm:$0xff] }
 0x6cf   :  { %v11571_v41 = vld [vmem:[#allocation116_spill] sm:$0xff] }
 0x6d0   :  { %3111 = vmatmul.bf16.vlgmr.msra.gmra.mxu2 %v3050_v23  ;;  %3137 = vmatmul.bf16.vlgmr.msrb.gmra.mxu0 %v3050_v23 }
 0x6d1   :  { %3224 = vmatpush.bf16.msrb.mxu2 %v7751_v53  ;;  %3250 = vmatpush.bf16.msra.mxu0 %v7832_v27 }
 0x6d2   :  { %3423 = vmatpush.bf16.msrb.mxu3 %v9095_v2  ;;  %3449 = vmatpush.bf16.msra.mxu1 %v9108_v12  ;;  %v11572_v2 = vld [vmem:[#allocation99_spill] sm:$0xff] }
 0x6d3   :  { %v11574_v12 = vld [vmem:[#allocation111_spill] sm:$0xff] }
 0x6d5   :  { %3225 = vmatpush.bf16.msrb.mxu2 %v11115_v50  ;;  %3251 = vmatpush.bf16.msra.mxu0 %v11117_v58 }
 0x6d6   :  { %3468 = vmatpush.bf16.msra.mxu3 %v9102_v49  ;;  %3495 = vmatpush.bf16.msrb.mxu1 %v6688_v46  ;;  %v11573_v49 = vld [vmem:[#allocation23_spill] sm:$0xff] }
 0x6d7   :  { %3424 = vmatmul.bf16.vlgmr.msrb.gmra.mxu3 %v3392_v31 }
 0x6d9   :  { %3226 = vmatpush.bf16.msrb.mxu2 %v11118_v45  ;;  %3252 = vmatpush.bf16.msra.mxu0 %v11121_v51 }
 0x6da   :  { %3469 = vmatpush.bf16.msra.mxu3 %v9117_v6  ;;  %3496 = vmatpush.bf16.msrb.mxu1 %v6715_v54  ;;  %v11575_v6 = vld [vmem:[#allocation118_spill] sm:$0xff] }
 0x6dd   :  { %3227 = vmatpush.bf16.msrb.mxu2 %v11122_v16  ;;  %3253 = vmatpush.bf16.msra.mxu0 %v7902_v24 }
 0x6de   :  { %3470 = vmatpush.bf16.msra.mxu3 %v9126_v18  ;;  %3497 = vmatpush.bf16.msrb.mxu1 %v6742_v62  ;;  %v11576_v18 = vld [vmem:[#allocation101_spill] sm:$0xff] }
 0x6e1   :  { %3272 = vmatpush.bf16.msra.mxu2 %v11124_v59  ;;  %3298 = vmatpush.bf16.msrb.mxu0 %v7911_v17 }
 0x6e2   :  { %3471 = vmatpush.bf16.msra.mxu3 %v9135_v57  ;;  %3498 = vmatpush.bf16.msrb.mxu1 %v11116_v48  ;;  %v11577_v57 = vld [vmem:[#allocation27_spill] sm:$0xff] }
 0x6e5   :  { %3273 = vmatpush.bf16.msra.mxu2 %v11127_v52  ;;  %3299 = vmatpush.bf16.msrb.mxu0 %v11567_v36 }
 0x6e6   :  { %3472 = vmatpush.bf16.msra.mxu3 %v11568_v22  ;;  %3499 = vmatpush.bf16.msrb.mxu1 %v11569_v20 }
 0x6e9   :  { %3274 = vmatpush.bf16.msra.mxu2 %v11570_v61  ;;  %3300 = vmatpush.bf16.msrb.mxu0 %v11571_v41  ;;  %v11615_v41 = vld [vmem:[#allocation52_spill] sm:$0xff] }
 0x6ea   :  { %3473 = vmatpush.bf16.msra.mxu3 %v11572_v2  ;;  %3500 = vmatpush.bf16.msrb.mxu1 %v11573_v49  ;;  %v11593_v2 = vld [vmem:[#allocation20_spill] sm:$0xff] }
 0x6ed   :  { %3275 = vmatpush.bf16.msra.mxu2 %v11574_v12  ;;  %3301 = vmatpush.bf16.msrb.mxu0 %v11575_v6  ;;  %v11612_v6 = vld [vmem:[#allocation48_spill] sm:$0xff] }
 0x6ee   :  { %3474 = vmatpush.bf16.msra.mxu3 %v11576_v18  ;;  %3501 = vmatpush.bf16.msrb.mxu1 %v11577_v57  ;;  %v11594_v18 = vld [vmem:[#allocation106_spill] sm:$0xff] }
 0x6f1   :  { %3276 = vmatpush.bf16.msra.mxu2 %v11578_v29  ;;  %3302 = vmatpush.bf16.msrb.mxu0 %v11579_v8 }
 0x6f2   :  { %3475 = vmatpush.bf16.msra.mxu3 %v11580_v4  ;;  %3502 = vmatpush.bf16.msrb.mxu1 %v11581_v0 }
 0x6f5   :  { %3277 = vmatpush.bf16.msra.mxu2 %v11582_v44  ;;  %3303 = vmatpush.bf16.msrb.mxu0 %v11583_v63 }
 0x6f6   :  { %3521 = vmatpush.bf16.msrb.mxu3 %v11588_v56  ;;  %v11596_v56 = vld [vmem:[#allocation24_spill] sm:$0xff] }
 0x6f9   :  { %3278 = vmatpush.bf16.msra.mxu2 %v11584_v1  ;;  %3304 = vmatpush.bf16.msrb.mxu0 %v11585_v25  ;;  %v3396_v25 = vld [vmem:[#allocation1 + $0x2d] sm:$0xff] }
 0x6fa   :  { %3522 = vmatpush.bf16.msrb.mxu3 %v11589_v33 }
 0x6fb   :  { %3476 = vmatmul.bf16.vlgmr.msra.gmra.mxu3 %v3396_v25 }
 0x6fd   :  { %3279 = vmatpush.bf16.msra.mxu2 %v11586_v34  ;;  %3305 = vmatpush.bf16.msrb.mxu0 %v11587_v37  ;;  %v3394_v34 = vld [vmem:[#allocation1 + $0x1b] sm:$0xff] }
 0x6fe   :  { %3523 = vmatpush.bf16.msrb.mxu3 %v11590_v14  ;;  %3450 = vmatmul.bf16.vlgmr.msra.gmra.mxu1 %v3394_v34 }
 0x702   :  { %3524 = vmatpush.bf16.msrb.mxu3 %v11591_v55  ;;  %v11597_v55 = vld [vmem:[#allocation110_spill] sm:$0xff] }
 0x706   :  { %3525 = vmatpush.bf16.msrb.mxu3 %v11592_v32 }
 0x70a   :  { %3526 = vmatpush.bf16.msrb.mxu3 %v11593_v2  ;;  %v11598_v2 = vld [vmem:[#allocation28_spill] sm:$0xff] }
 0x70e   :  { %3527 = vmatpush.bf16.msrb.mxu3 %v11596_v56  ;;  %v11601_v56 = vld [vmem:[#allocation31_spill] sm:$0xff] }
 0x712   :  { %3528 = vmatpush.bf16.msrb.mxu3 %v11598_v2 }
 0x716   :  { %3573 = vmatpush.bf16.msra.mxu3 %v11601_v56  ;;  %v11607_v56 = vld [vmem:[#allocation8_spill] sm:$0xff] }
 0x731   :  { %v9474_v28 = vpop.f32.mrf.mxu1 }
 0x737   :  { %v9478_v23 = vpop.f32.mrf.mxu3 }
 0x739   :  { %v3270_v7 = vpop.f32.mrf.mxu1 }
 0x73d   :  { %v3086_v22 = vpop.f32.mrf.mxu0 }
 0x73e   :  { %v3087_v4 = vadd.f32 %v3086_v22, %v11594_v18  ;;  %v11599_v22 = vld [vmem:[#allocation34_spill] sm:$0xff] }
 0x73f   :  { %v3244_v14 = vpop.f32.mrf.mxu3  ;;  %3547 = vmatpush.bf16.msra.mxu1 %v11599_v22  ;;  %v11605_v22 = vld [vmem:[#allocation115_spill] sm:$0xff] }
 0x740   :  { %v3100_v31 = vadd.f32 %v11595_v21, %v3087_v4  ;;  %v11600_v4 = vld [vmem:[#allocation103_spill] sm:$0xff] }
 0x741   :  { %v9485_v1 = vpop.f32.mrf.mxu1 }
 0x742   :  { %v5671_v33 = vmul.f32 -1.442695, %v3100_v31  ;;  %v11602_v31 = vld [vmem:[#allocation39_spill] sm:$0xff] }
 0x743   :  { %v3060_v37 = vpop.f32.mrf.mxu2  ;;  %3548 = vmatpush.bf16.msra.mxu1 %v11602_v31 }
 0x744   :  { %6112 = vpow2.f32 %v5671_v33  ;;  %v3061_v32 = vadd.f32 %v3060_v37, %v11597_v55  ;;  %v11603_v37 = vld [vmem:[#allocation36_spill] sm:$0xff]  ;;  %v11604_v55 = vld [vmem:[#allocation43_spill] sm:$0xff] }
 0x745   :  { %v3088_v7 = vpop.f32.mrf.mxu0  ;;  %3574 = vmatpush.bf16.msra.mxu3 %v11603_v37  ;;  %v11609_v37 = vld [vmem:[#allocation44_spill] sm:$0xff] }
 0x746   :  { %v3074_v21 = vadd.f32 %v11600_v4, %v3061_v32  ;;  %v11606_v4 = vld [vmem:[#allocation40_spill] sm:$0xff] }
 0x747   :  { %v9492_v33 = vpop.f32.mrf.mxu3  ;;  %3549 = vmatpush.bf16.msra.mxu1 %v11604_v55  ;;  %v11610_v55 = vld [vmem:[#allocation119_spill] sm:$0xff] }
 0x748   :  { %v5670_v14 = vmul.f32 -1.442695, %v3074_v21 }
 0x749   :  { %v3322_v7 = vpop.f32.mrf.mxu1  ;;  %3575 = vmatpush.bf16.msra.mxu3 %v11606_v4 }
 0x74a   :  { %v6113_v18 = vpop.eup %6112  ;;  %6114 = vpow2.f32 %v5670_v14  ;;  %v11608_v14 = vld [vmem:[#allocation47_spill] sm:$0xff] }
 0x74b   :  { %v3177_v34 = vadd.f32 1.0, %v6113_v18  ;;  %v3062_v25 = vpop.f32.mrf.mxu2  ;;  %3550 = vmatpush.bf16.msra.mxu1 %v11608_v14 }
 0x74d   :  { %6116 = vrcp.f32 %v3177_v34  ;;  %v3138_v2 = vpop.f32.mrf.mxu0  ;;  %3576 = vmatpush.bf16.msra.mxu3 %v11609_v37  ;;  %vm3183_vm1 = vweird.f32 %v3177_v34 }
 0x74e   :  { %v3139_v32 = vadd.f32 %v3138_v2, %v11605_v22  ;;  %v11611_v22 = vld [vmem:[#allocation51_spill] sm:$0xff] }
 0x74f   :  { %v3296_v8 = vpop.f32.mrf.mxu3  ;;  %3551 = vmatpush.bf16.msra.mxu1 %v11611_v22 }
 0x750   :  { %v6115_v21 = vpop.eup %6114  ;;  %v3152_v31 = vadd.f32 %v11607_v56, %v3139_v32  ;;  %v11613_v32 = vld [vmem:[#allocation147_spill] sm:$0xff] }
 0x751   :  { %v3158_v63 = vadd.f32 1.0, %v6115_v21  ;;  %3577 = vmatpush.bf16.msra.mxu3 %v11612_v6  ;;  %v11614_v8 = vld [vmem:[#allocation55_spill] sm:$0xff] }
 0x752   :  { %v5672_v44 = vmul.f32 -1.442695, %v3152_v31  ;;  %v11620_v6 = vld [vmem:[#allocation63_spill] sm:$0xff] }
 0x753   :  { %v6117_v18 = vpop.eup %6116  ;;  %6118 = vrcp.f32 %v3158_v63  ;;  %v3112_v25 = vpop.f32.mrf.mxu2  ;;  %3552 = vmatpush.bf16.msra.mxu1 %v11614_v8  ;;  %vm3164_vm4 = vweird.f32 %v3158_v63 }
 0x754   :  { %v3179_v7 = vmul.f32 %v6117_v18, %v3177_v34  ;;  %6120 = vpow2.f32 %v5672_v44  ;;  %v3113_v29 = vadd.f32 %v3112_v25, %v11610_v55  ;;  %vm3184_vm0 = vweird.f32 %v6117_v18 }
 0x755   :  { %v3140_v2 = vpop.f32.mrf.mxu0  ;;  %3578 = vmatpush.bf16.msra.mxu3 %v11615_v41  ;;  %v3189_v44 = vand.u32 2147483648, %v3177_v34  ;;  %vm9507_vm2 = vmor %vm3183_vm1, %vm3184_vm0 }
 0x756   :  { %v3180_v4 = vsub.f32 1.0, %v3179_v7  ;;  %v3126_v21 = vadd.f32 %v11613_v32, %v3113_v29  ;;  %v3187_v7 = vand.u32 2147483647, %v3177_v34  ;;  %v3170_v29 = vand.u32 2147483648, %v3158_v63  ;;  %v11618_v32 = vld [vmem:[#allocation59_spill] sm:$0xff] }
 0x757   :  { %3553 = vmatpush.bf16.msra.mxu1 %v11618_v32 }
 0x758   :  { %v3181_v56 = vmul.f32 %v6117_v18, %v3180_v4  ;;  %6122 = vtanh.f32 %v3126_v21  ;;  %vm3188_vm5 = vcmp.eq.f32.partialorder %v3187_v7, 8.507059e+37  ;;  %v3171_v34 = vor.u32 1.1754944e-38, %v3170_v29 }
 0x759   :  { %v6119_v31 = vpop.eup %6118 }
 0x75a   :  { %v6121_v37 = vpop.eup %6120  ;;  %v3160_v14 = vmul.f32 %v6119_v31, %v3158_v63  ;;  %v3182_v12 = vadd.f32 %v6117_v18, %v3181_v56  ;;  %vm3165_vm3 = vweird.f32 %v6119_v31  ;;  %v3168_v56 = vand.u32 2147483647, %v3158_v63 }
 0x75b   :  { %v3197_v25 = vadd.f32 1.0, %v6121_v37  ;;  %v3114_v2 = vpop.f32.mrf.mxu2  ;;  %v11619_v37 = vld [vmem:[#allocation56_spill] sm:$0xff]  ;;  %vm3166_vm6 = vmor %vm3164_vm4, %vm3165_vm3  ;;  %3554 = vmatpush.bf16.msra.mxu1 %v11620_v6 }
 0x75c   :  { %v3161_v22 = vsub.f32 1.0, %v3160_v14  ;;  %v3186_v41 = vsel %vm9507_vm2, %v6117_v18, %v3182_v12  ;;  %3579 = vmatpush.bf16.msra.mxu3 %v11619_v37  ;;  %v3190_v2 = vor.u32 1.1754944e-38, %v3189_v44  ;;  %vm3169_vm7 = vcmp.eq.f32.partialorder %v3168_v56, 8.507059e+37  ;;  %v11622_v12 = vld [vmem:[#allocation102_spill] sm:$0xff] }
 0x75d   :  { %6124 = vrcp.f32 %v3197_v25  ;;  %v3209_v63 = vand.u32 2147483648, %v3197_v25  ;;  %vm3203_vm9 = vweird.f32 %v3197_v25 }
 0x75e   :  { %v3162_v8 = vmul.f32 %v6119_v31, %v3161_v22  ;;  %v3191_v21 = vsel %vm3188_vm5, %v3190_v2, %v3186_v41  ;;  %v6123_v55 = vpop.eup %6122  ;;  %v11621_v22 = vld [vmem:[#allocation60_spill] sm:$0xff]  ;;  %v3207_v41 = vand.u32 2147483647, %v3197_v25 }
 0x75f   :  { %v3213_v18 = vmul.f32 %v3191_v21, %v11622_v12  ;;  %v9544_v21 = vld [vmem:[%s10903_s26 + $0xb0] sm:$0xff] }
 0x760   :  { %v3163_v14 = vadd.f32 %v6119_v31, %v3162_v8  ;;  %3580 = vmatpush.bf16.msra.mxu3 %v11621_v22  ;;  %vm3208_vm11 = vcmp.eq.f32.partialorder %v3207_v41, 8.507059e+37  ;;  %11629 = vst [vmem:[#allocation105_spill] sm:$0xff] %v9544_v21  ;;  %v11631_v12 = vld [vmem:[#allocation70_spill] sm:$0xff]  ;;  %v9566_v41 = vld [vmem:[%s10903_s26 + $0x20] sm:$0xff] }
 0x761   :  { %11636 = vst [vmem:[#allocation126_spill] sm:$0xff] %v9566_v41 }
 0x762   :  { %v3167_v0 = vsel %vm3166_vm6, %v6119_v31, %v3163_v14  ;;  %v3210_v31 = vor.u32 1.1754944e-38, %v3209_v63  ;;  %v11634_v63 = vld [vmem:[#allocation69_spill] sm:$0xff] }
 0x763   :  { %v6125_v32 = vpop.eup %6124  ;;  %v3172_v61 = vsel %vm3169_vm7, %v3171_v34, %v3167_v0 }
 0x764   :  { %v3199_v4 = vmul.f32 %v6125_v32, %v3197_v25  ;;  %v3214_v37 = vmul.f32 %v6123_v55, %v3172_v61  ;;  %vm3204_vm8 = vweird.f32 %v6125_v32  ;;  %v9524_v61 = vld [vmem:[%s10903_s26 + $0x38] sm:$0xff] }
 0x765   :  { %vm3205_vm10 = vmor %vm3203_vm9, %vm3204_vm8  ;;  %11624 = vst [vmem:[#allocation98_spill] sm:$0xff] %v9524_v61  ;;  %v9530_v55 = vld [vmem:[%s10903_s26 + $0xb8] sm:$0xff] }
 0x766   :  { %v3200_v44 = vsub.f32 1.0, %v3199_v4  ;;  %v9518_v8 = vadd.f32 %v3214_v37, %v3213_v18  ;;  %11625 = vst [vmem:[#allocation149_spill] sm:$0xff] %v9530_v55  ;;  %v11626_v25 = vld [vmem:[#allocation66_spill] sm:$0xff]  ;;  %v11630_v4 = vld [vmem:[#allocation67_spill] sm:$0xff]  ;;  %v9552_v18 = vld [vmem:[%s10903_s26 + $0x28] sm:$0xff] }
 0x767   :  { %v9538_v37 = vld [vmem:[%s10903_s26 + $0x30] sm:$0xff]  ;;  %11632 = vst [vmem:[#allocation153_spill] sm:$0xff] %v9552_v18 }
 0x768   :  { %11623 = vst [vmem:[#allocation148_spill] sm:$0xff] %v9518_v8  ;;  %v3201_v7 = vmul.f32 %v6125_v32, %v3200_v44  ;;  %6126 = vtanh.f32 %v9518_v8  ;;  %v9558_v44 = vld [vmem:[%s10903_s26 + $0xa8] sm:$0xff] }
 0x769   :  { %11628 = vst [vmem:[#allocation104_spill] sm:$0xff] %v9538_v37 }
 0x76a   :  { %v3202_v29 = vadd.f32 %v6125_v32, %v3201_v7  ;;  %11633 = vst [vmem:[#allocation125_spill] sm:$0xff] %v9558_v44  ;;  %v11635_v7 = vld [vmem:[#allocation72_spill] sm:$0xff] }
 0x76c   :  { %v3206_v56 = vsel %vm3205_vm10, %v6125_v32, %v3202_v29  ;;  %v11627_v32 = vld [vmem:[#allocation68_spill] sm:$0xff] }
 0x76d   :  { %v3211_v0 = vsel %vm3208_vm11, %v3210_v31, %v3206_v56  ;;  %v9572_v29 = vld [vmem:[%s10903_s26 + $0xa0] sm:$0xff]  ;;  %v11639_v56 = vld [vmem:[#allocation74_spill] sm:$0xff] }
 0x76e   :  { %v6127_v2 = vpop.eup %6126  ;;  %11637 = vst [vmem:[#allocation127_spill] sm:$0xff] %v9572_v29  ;;  %v11638_v31 = vld [vmem:[#allocation71_spill] sm:$0xff] }
 0x76f   :  { %v3217_v14 = vmul.f32 %v6127_v2, %v3211_v0  ;;  %v9580_v0 = vld [vmem:[%s10903_s26 + $0x18] sm:$0xff] }
 0x770   :  { %11640 = vst [vmem:[#allocation128_spill] sm:$0xff] %v9580_v0  ;;  %v9586_v2 = vld [vmem:[%s10903_s26 + $0x98] sm:$0xff] }
 0x771   :  { %v3218_v34 = vpack.c.bf16 %v3217_v14, %v3217_v14  ;;  %11641 = vst [vmem:[#allocation129_spill] sm:$0xff] %v9586_v2  ;;  %v11642_v14 = vld [vmem:[#allocation73_spill] sm:$0xff] }
 0x773   :  { %3228 = vmatmul.bf16.vlgmr.msrb.gmra.mxu2 %v3218_v34  ;;  %3254 = vmatmul.bf16.vlgmr.msra.gmra.mxu0 %v3218_v34 }
 0x774   :  { %3403 = vmatpush.bf16.msrb.mxu2 %v9524_v61  ;;  %3503 = vmatmul.bf16.vlgmr.msrb.gmra.mxu1 %v3218_v34 }
 0x775   :  { %3529 = vmatmul.bf16.vlgmr.msrb.gmra.mxu3 %v3218_v34  ;;  %3429 = vmatpush.bf16.msra.mxu0 %v9530_v55 }
 0x776   :  { %3664 = vmatpush.bf16.msrb.mxu1 %v11626_v25  ;;  %3690 = vmatpush.bf16.msrb.mxu3 %v11627_v32 }
 0x778   :  { %3404 = vmatpush.bf16.msrb.mxu2 %v9538_v37 }
 0x779   :  { %3430 = vmatpush.bf16.msra.mxu0 %v9544_v21  ;;  %v11710_v21 = vld [vmem:[#allocation62_spill] sm:$0xff] }
 0x77a   :  { %3665 = vmatpush.bf16.msrb.mxu1 %v11630_v4  ;;  %3691 = vmatpush.bf16.msrb.mxu3 %v11631_v12  ;;  %v11693_v12 = vld [vmem:[#allocation45_spill] sm:$0xff]  ;;  %v11706_v4 = vld [vmem:[#allocation46_spill] sm:$0xff] }
 0x77c   :  { %3405 = vmatpush.bf16.msrb.mxu2 %v9552_v18  ;;  %v11691_v18 = vld [vmem:[#allocation41_spill] sm:$0xff] }
 0x77d   :  { %3431 = vmatpush.bf16.msra.mxu0 %v9558_v44 }
 0x77e   :  { %3666 = vmatpush.bf16.msrb.mxu1 %v11634_v63  ;;  %3692 = vmatpush.bf16.msrb.mxu3 %v11635_v7  ;;  %v11660_v7 = vld [vmem:[#allocation84_spill] sm:$0xff]  ;;  %v11690_v63 = vld [vmem:[#allocation13_spill] sm:$0xff] }
 0x780   :  { %3406 = vmatpush.bf16.msrb.mxu2 %v9566_v41  ;;  %v11658_v41 = vld [vmem:[#allocation80_spill] sm:$0xff] }
 0x781   :  { %3432 = vmatpush.bf16.msra.mxu0 %v9572_v29  ;;  %v11656_v29 = vld [vmem:[#allocation79_spill] sm:$0xff] }
 0x782   :  { %3667 = vmatpush.bf16.msrb.mxu1 %v11638_v31  ;;  %3693 = vmatpush.bf16.msrb.mxu3 %v11639_v56  ;;  %v11643_v56 = vld [vmem:[#allocation76_spill] sm:$0xff]  ;;  %v9594_v31 = vld [vmem:[%s10903_s26 + $0x10] sm:$0xff] }
 0x783   :  { %3280 = vmatmul.bf16.vlgmr.msra.gmra.mxu2 %v3218_v34  ;;  %3306 = vmatmul.bf16.vlgmr.msrb.gmra.mxu0 %v3218_v34  ;;  %11644 = vst [vmem:[#allocation130_spill] sm:$0xff] %v9594_v31 }
 0x784   :  { %3407 = vmatpush.bf16.msrb.mxu2 %v9580_v0  ;;  %3555 = vmatmul.bf16.vlgmr.msra.gmra.mxu1 %v3218_v34  ;;  %v11646_v0 = vld [vmem:[#allocation75_spill] sm:$0xff] }
 0x785   :  { %3581 = vmatmul.bf16.vlgmr.msra.gmra.mxu3 %v3218_v34  ;;  %3433 = vmatpush.bf16.msra.mxu0 %v9586_v2  ;;  %v9600_v34 = vld [vmem:[%s10903_s26 + $0x90] sm:$0xff] }
 0x786   :  { %3668 = vmatpush.bf16.msrb.mxu1 %v11642_v14  ;;  %3694 = vmatpush.bf16.msrb.mxu3 %v11643_v56  ;;  %11645 = vst [vmem:[#allocation131_spill] sm:$0xff] %v9600_v34  ;;  %v11647_v2 = vld [vmem:[#allocation78_spill] sm:$0xff]  ;;  %v9608_v56 = vld [vmem:[%s10903_s26 + $0x8] sm:$0xff] }
 0x787   :  { %11648 = vst [vmem:[#allocation132_spill] sm:$0xff] %v9608_v56  ;;  %v11650_v14 = vld [vmem:[#allocation77_spill] sm:$0xff] }
 0x788   :  { %3408 = vmatpush.bf16.msrb.mxu2 %v9594_v31  ;;  %v9614_v31 = vld [vmem:[%s10903_s26 + $0x88] sm:$0xff] }
 0x789   :  { %3434 = vmatpush.bf16.msra.mxu0 %v9600_v34  ;;  %11649 = vst [vmem:[#allocation133_spill] sm:$0xff] %v9614_v31  ;;  %v11651_v34 = vld [vmem:[#allocation81_spill] sm:$0xff] }
 0x78a   :  { %3669 = vmatpush.bf16.msrb.mxu1 %v11646_v0  ;;  %3695 = vmatpush.bf16.msrb.mxu3 %v11647_v2  ;;  %v9622_v2 = vld [vmem:[%s10903_s26] sm:$0xff] }
 0x78b   :  { %11652 = vst [vmem:[#allocation134_spill] sm:$0xff] %v9622_v2  ;;  %v3391_v0 = vld [vmem:[#allocation1] sm:$0xff] }
 0x78c   :  { %3409 = vmatpush.bf16.msrb.mxu2 %v9608_v56  ;;  %v9628_v56 = vld [vmem:[%s10903_s26 + $0x138] sm:$0xff] }
 0x78d   :  { %3435 = vmatpush.bf16.msra.mxu0 %v9614_v31  ;;  %11653 = vst [vmem:[#allocation135_spill] sm:$0xff] %v9628_v56  ;;  %v11655_v31 = vld [vmem:[#allocation5_spill] sm:$0xff] }
 0x78e   :  { %3670 = vmatpush.bf16.msrb.mxu1 %v11650_v14  ;;  %3696 = vmatpush.bf16.msrb.mxu3 %v11651_v34  ;;  %v9634_v14 = vld [vmem:[%s10903_s26 + $0x80] sm:$0xff]  ;;  %v3393_v34 = vld [vmem:[#allocation1 + $0x12] sm:$0xff] }
 0x78f   :  { %11654 = vst [vmem:[#allocation136_spill] sm:$0xff] %v9634_v14 }
 0x790   :  { %3410 = vmatpush.bf16.msrb.mxu2 %v9622_v2  ;;  %v11657_v2 = vld [vmem:[#allocation83_spill] sm:$0xff] }
 0x791   :  { %3436 = vmatpush.bf16.msra.mxu0 %v9634_v14  ;;  %v11661_v14 = vld [vmem:[#allocation6_spill] sm:$0xff] }
 0x792   :  { %3671 = vmatpush.bf16.msrb.mxu1 %v11656_v29  ;;  %3697 = vmatpush.bf16.msrb.mxu3 %v11657_v2  ;;  %v11666_v2 = vld [vmem:[#allocation85_spill] sm:$0xff]  ;;  %v11685_v29 = vld [vmem:[#allocation11_spill] sm:$0xff] }
 0x793   :  { %3411 = vmatmul.bf16.vlgmr.msrb.gmra.mxu2 %v3391_v0  ;;  %v9653_v0 = vld [vmem:[%s10903_s26 + $0x128] sm:$0xff] }
 0x794   :  { %3455 = vmatpush.bf16.msra.mxu2 %v9628_v56  ;;  %3437 = vmatmul.bf16.vlgmr.msra.gmra.mxu0 %v3393_v34  ;;  %v9644_v56 = vld [vmem:[%s10903_s26 + $0x130] sm:$0xff]  ;;  %11663 = vst [vmem:[#allocation138_spill] sm:$0xff] %v9653_v0 }
 0x795   :  { %3482 = vmatpush.bf16.msrb.mxu0 %v11655_v31  ;;  %11659 = vst [vmem:[#allocation137_spill] sm:$0xff] %v9644_v56  ;;  %v11662_v31 = vld [vmem:[#allocation82_spill] sm:$0xff] }
 0x796   :  { %3716 = vmatpush.bf16.msra.mxu1 %v11658_v41  ;;  %3742 = vmatpush.bf16.msra.mxu3 %v11660_v7  ;;  %v11664_v34 = vld [vmem:[#allocation86_spill] sm:$0xff]  ;;  %v11665_v41 = vld [vmem:[#allocation7_spill] sm:$0xff] }
 0x797   :  { %v9662_v7 = vld [vmem:[%s10903_s26 + $0x120] sm:$0xff] }
 0x798   :  { %3456 = vmatpush.bf16.msra.mxu2 %v9644_v56  ;;  %11667 = vst [vmem:[#allocation139_spill] sm:$0xff] %v9662_v7  ;;  %v11670_v56 = vld [vmem:[#allocation87_spill] sm:$0xff] }
 0x799   :  { %3483 = vmatpush.bf16.msrb.mxu0 %v11661_v14  ;;  %v11669_v14 = vld [vmem:[#allocation9_spill] sm:$0xff] }
 0x79a   :  { %3717 = vmatpush.bf16.msra.mxu1 %v11662_v31  ;;  %3743 = vmatpush.bf16.msra.mxu3 %v11664_v34  ;;  %v11668_v31 = vld [vmem:[#allocation88_spill] sm:$0xff]  ;;  %v9671_v34 = vld [vmem:[%s10903_s26 + $0x118] sm:$0xff] }
 0x79b   :  { %11671 = vst [vmem:[#allocation140_spill] sm:$0xff] %v9671_v34 }
 0x79c   :  { %3457 = vmatpush.bf16.msra.mxu2 %v9653_v0  ;;  %v11674_v0 = vld [vmem:[#allocation89_spill] sm:$0xff] }
 0x79d   :  { %3484 = vmatpush.bf16.msrb.mxu0 %v11665_v41  ;;  %v11673_v41 = vld [vmem:[#allocation21_spill] sm:$0xff] }
 0x79e   :  { %3718 = vmatpush.bf16.msra.mxu1 %v11666_v2  ;;  %3744 = vmatpush.bf16.msra.mxu3 %v11668_v31  ;;  %v11672_v2 = vld [vmem:[#allocation90_spill] sm:$0xff] }
 0x79f   :  { %v9680_v31 = vld [vmem:[%s10903_s26 + $0x110] sm:$0xff] }
 0x7a0   :  { %3458 = vmatpush.bf16.msra.mxu2 %v9662_v7  ;;  %11675 = vst [vmem:[#allocation141_spill] sm:$0xff] %v9680_v31  ;;  %v11678_v7 = vld [vmem:[#allocation91_spill] sm:$0xff] }
 0x7a1   :  { %3485 = vmatpush.bf16.msrb.mxu0 %v11669_v14  ;;  %v11677_v14 = vld [vmem:[#allocation25_spill] sm:$0xff] }
 0x7a2   :  { %3719 = vmatpush.bf16.msra.mxu1 %v11670_v56  ;;  %3745 = vmatpush.bf16.msra.mxu3 %v11672_v2  ;;  %v11676_v56 = vld [vmem:[#allocation92_spill] sm:$0xff] }
 0x7a3   :  { %v9689_v2 = vld [vmem:[%s10903_s26 + $0x108] sm:$0xff] }
 0x7a4   :  { %3459 = vmatpush.bf16.msra.mxu2 %v9671_v34  ;;  %11679 = vst [vmem:[#allocation142_spill] sm:$0xff] %v9689_v2  ;;  %v9694_v34 = vpop.f32.mrf.mxu3 }
 0x7a5   :  { %3486 = vmatpush.bf16.msrb.mxu0 %v11673_v41  ;;  %v11681_v41 = vld [vmem:[#allocation29_spill] sm:$0xff] }
 0x7a6   :  { %3720 = vmatpush.bf16.msra.mxu1 %v11674_v0  ;;  %3746 = vmatpush.bf16.msra.mxu3 %v11676_v56  ;;  %v11680_v0 = vld [vmem:[#allocation94_spill] sm:$0xff]  ;;  %v11684_v56 = vld [vmem:[#allocation96_spill] sm:$0xff] }
 0x7a8   :  { %3460 = vmatpush.bf16.msra.mxu2 %v9680_v31  ;;  %v11682_v31 = vld [vmem:[#allocation93_spill] sm:$0xff] }
 0x7a9   :  { %3487 = vmatpush.bf16.msrb.mxu0 %v11677_v14  ;;  %v9700_v14 = vld [vmem:[%s10903_s26 + $0x100] sm:$0xff] }
 0x7aa   :  { %3721 = vmatpush.bf16.msra.mxu1 %v11678_v7  ;;  %3747 = vmatpush.bf16.msra.mxu3 %v11680_v0  ;;  %11683 = vst [vmem:[#allocation143_spill] sm:$0xff] %v9700_v14  ;;  %v3395_v7 = vld [vmem:[#allocation1 + $0x24] sm:$0xff] }
 0x7ab   :  { %v11687_v0 = vld [vmem:[#allocation37_spill] sm:$0xff] }
 0x7ac   :  { %3461 = vmatpush.bf16.msra.mxu2 %v9689_v2  ;;  %v11686_v2 = vld [vmem:[#allocation33_spill] sm:$0xff]  ;;  %v3427_v44 = vpop.f32.mrf.mxu3 }
 0x7ad   :  { %3488 = vmatpush.bf16.msrb.mxu0 %v11681_v41  ;;  %v11688_v41 = vld [vmem:[#allocation95_spill] sm:$0xff]  ;;  %v11700_v44 = vld [vmem:[#allocation30_spill] sm:$0xff] }
 0x7ae   :  { %3722 = vmatpush.bf16.msra.mxu1 %v11682_v31  ;;  %3748 = vmatpush.bf16.msra.mxu3 %v11684_v56  ;;  %v11689_v31 = vld [vmem:[#allocation97_spill] sm:$0xff] }
 0x7af   :  { %v11694_v56 = vld [vmem:[#allocation17_spill] sm:$0xff] }
 0x7b0   :  { %3462 = vmatpush.bf16.msra.mxu2 %v9700_v14  ;;  %v11692_v14 = vld [vmem:[#allocation15_spill] sm:$0xff] }
 0x7b1   :  { %3489 = vmatpush.bf16.msrb.mxu0 %v11686_v2  ;;  %v11696_v2 = vld [vmem:[#allocation22_spill] sm:$0xff] }
 0x7b2   :  { %3723 = vmatpush.bf16.msra.mxu1 %v11688_v41  ;;  %3749 = vmatpush.bf16.msra.mxu3 %v11689_v31  ;;  %v9717_v41 = vpop.f32.mrf.mxu1  ;;  %v11698_v31 = vld [vmem:[#allocation26_spill] sm:$0xff] }
 0x7b3   :  { %3463 = vmatmul.bf16.vlgmr.msra.gmra.mxu2 %v3395_v7  ;;  %v11697_v7 = vld [vmem:[#allocation53_spill] sm:$0xff] }
 0x7b4   :  { %3508 = vmatpush.bf16.msrb.mxu2 %v11685_v29  ;;  %v11695_v29 = vld [vmem:[#allocation49_spill] sm:$0xff] }
 0x7b5   :  { %3534 = vmatpush.bf16.msra.mxu0 %v11687_v0  ;;  %v11705_v0 = vld [vmem:[#allocation42_spill] sm:$0xff] }
 0x7b8   :  { %3509 = vmatpush.bf16.msrb.mxu2 %v11690_v63  ;;  %v11699_v63 = vld [vmem:[#allocation57_spill] sm:$0xff] }
 0x7b9   :  { %3535 = vmatpush.bf16.msra.mxu0 %v11691_v18  ;;  %v9722_v18 = vpop.f32.mrf.mxu3 }
 0x7bc   :  { %3510 = vmatpush.bf16.msrb.mxu2 %v11692_v14  ;;  %v11701_v14 = vld [vmem:[#allocation61_spill] sm:$0xff] }
 0x7bd   :  { %3536 = vmatpush.bf16.msra.mxu0 %v11693_v12  ;;  %v3453_v12 = vpop.f32.mrf.mxu1 }
 0x7be   :  { %v11711_v12 = vld [vmem:[#allocation65_spill] sm:$0xff] }
 0x7c0   :  { %3511 = vmatpush.bf16.msrb.mxu2 %v11694_v56  ;;  %v11702_v56 = vld [vmem:[#allocation35_spill] sm:$0xff] }
 0x7c1   :  { %3537 = vmatpush.bf16.msra.mxu0 %v11695_v29  ;;  %v11703_v29 = vld [vmem:[#allocation38_spill] sm:$0xff] }
 0x7c4   :  { %3512 = vmatpush.bf16.msrb.mxu2 %v11696_v2  ;;  %v11704_v2 = vld [vmem:[#allocation64_spill] sm:$0xff] }
 0x7c5   :  { %3538 = vmatpush.bf16.msra.mxu0 %v11697_v7  ;;  %v3479_v7 = vpop.f32.mrf.mxu3 }
 0x7c8   :  { %3513 = vmatpush.bf16.msrb.mxu2 %v11698_v31  ;;  %v11707_v31 = vld [vmem:[#allocation50_spill] sm:$0xff] }
 0x7c9   :  { %3539 = vmatpush.bf16.msra.mxu0 %v11699_v63  ;;  %v11708_v63 = vld [vmem:[#allocation54_spill] sm:$0xff] }
 0x7cc   :  { %3514 = vmatpush.bf16.msrb.mxu2 %v11700_v44  ;;  %v11709_v44 = vld [vmem:[#allocation58_spill] sm:$0xff] }
 0x7cd   :  { %3540 = vmatpush.bf16.msra.mxu0 %v11701_v14  ;;  %v11712_v14 = vld [vmem:[#allocation150_spill] sm:$0xff] }
 0x7d0   :  { %3515 = vmatpush.bf16.msrb.mxu2 %v11702_v56 }
 0x7d1   :  { %3541 = vmatpush.bf16.msra.mxu0 %v11704_v2 }
 0x7d4   :  { %3560 = vmatpush.bf16.msra.mxu2 %v11703_v29 }
 0x7d8   :  { %3561 = vmatpush.bf16.msra.mxu2 %v11705_v0 }
 0x7dc   :  { %3562 = vmatpush.bf16.msra.mxu2 %v11706_v4  ;;  %v11714_v4 = vld [vmem:[#allocation151_spill] sm:$0xff] }
 0x7e0   :  { %3563 = vmatpush.bf16.msra.mxu2 %v11707_v31 }
 0x7e4   :  { %3564 = vmatpush.bf16.msra.mxu2 %v11708_v63 }
 0x7e8   :  { %3565 = vmatpush.bf16.msra.mxu2 %v11709_v44 }
 0x7ec   :  { %3566 = vmatpush.bf16.msra.mxu2 %v11710_v21 }
 0x7f0   :  { %3567 = vmatpush.bf16.msra.mxu2 %v11711_v12  ;;  %v3255_v56 = vpop.f32.mrf.mxu0 }
 0x7f1   :  { %v3256_v29 = vadd.f32 %v3255_v56, %v11712_v14  ;;  %v9736_v37 = vpop.f32.mrf.mxu1 }
 0x7f2   :  { %11713 = vst [vmem:[#allocation144_spill] sm:$0xff] %v9736_v37 }
 0x7f3   :  { %v3269_v7 = vadd.f32 %v9474_v28, %v3256_v29  ;;  %v11716_v28 = vld [vmem:[#allocation152_spill] sm:$0xff] }
 0x7f5   :  { %v5674_v0 = vmul.f32 -1.442695, %v3269_v7 }
 0x7f6   :  { %v3229_v2 = vpop.f32.mrf.mxu2 }
 0x7f7   :  { %6128 = vpow2.f32 %v5674_v0  ;;  %v3230_v31 = vadd.f32 %v3229_v2, %v11714_v4 }
 0x7f8   :  { %v9740_v32 = vpop.f32.mrf.mxu3  ;;  %v3257_v63 = vpop.f32.mrf.mxu0 }
 0x7f9   :  { %11715 = vst [vmem:[#allocation145_spill] sm:$0xff] %v9740_v32  ;;  %v3243_v44 = vadd.f32 %v9478_v23, %v3230_v31  ;;  %v3506_v21 = vpop.f32.mrf.mxu1 }
 0x7fb   :  { %v5673_v25 = vmul.f32 -1.442695, %v3243_v44 }
 0x7fd   :  { %v6129_v12 = vpop.eup %6128  ;;  %6130 = vpow2.f32 %v5673_v25  ;;  %v11718_v25 = vld [vmem:[#allocation154_spill] sm:$0xff] }
 0x7fe   :  { %v3346_v55 = vadd.f32 1.0, %v6129_v12  ;;  %v3231_v56 = vpop.f32.mrf.mxu2 }
 0x800   :  { %6132 = vrcp.f32 %v3346_v55  ;;  %v3532_v14 = vpop.f32.mrf.mxu3  ;;  %v3307_v61 = vpop.f32.mrf.mxu0  ;;  %vm3352_vm13 = vweird.f32 %v3346_v55  ;;  %v3356_v32 = vand.u32 2147483647, %v3346_v55 }
 0x801   :  { %v3308_v29 = vadd.f32 %v3307_v61, %v11716_v28  ;;  %v9744_v7 = vpop.f32.mrf.mxu1 }
 0x802   :  { %11717 = vst [vmem:[#allocation146_spill] sm:$0xff] %v9744_v7  ;;  %vm3357_vm1 = vcmp.eq.f32.partialorder %v3356_v32, 8.507059e+37 }
 0x803   :  { %v6131_v0 = vpop.eup %6130  ;;  %v3321_v2 = vadd.f32 %v9485_v1, %v3308_v29 }
 0x804   :  { %v3327_v4 = vadd.f32 1.0, %v6131_v0  ;;  %v3358_v0 = vand.u32 2147483648, %v3346_v55 }
 0x805   :  { %v5675_v63 = vmul.f32 -1.442695, %v3321_v2 }
 0x806   :  { %v6133_v22 = vpop.eup %6132  ;;  %6134 = vrcp.f32 %v3327_v4  ;;  %v3281_v23 = vpop.f32.mrf.mxu2  ;;  %vm3333_vm0 = vweird.f32 %v3327_v4 }
 0x807   :  { %v3348_v21 = vmul.f32 %v6133_v22, %v3346_v55  ;;  %6136 = vpow2.f32 %v5675_v63  ;;  %v3282_v31 = vadd.f32 %v3281_v23, %v11718_v25  ;;  %vm3353_vm12 = vweird.f32 %v6133_v22 }
 0x808   :  { %v9748_v44 = vpop.f32.mrf.mxu3  ;;  %v3309_v14 = vpop.f32.mrf.mxu0  ;;  %vm9751_vm14 = vmor %vm3352_vm13, %vm3353_vm12 }
 0x809   :  { %11719 = vst [vmem:[#allocation100_spill] sm:$0xff] %v9748_v44  ;;  %v3349_v12 = vsub.f32 1.0, %v3348_v21  ;;  %v3558_v56 = vpop.f32.mrf.mxu1  ;;  %v3295_v28 = vadd.f32 %v9492_v33, %v3282_v31  ;;  %v3339_v21 = vand.u32 2147483648, %v3327_v4  ;;  %v3337_v31 = vand.u32 2147483647, %v3327_v4 }
 0x80b   :  { %v3350_v61 = vmul.f32 %v6133_v22, %v3349_v12  ;;  %6138 = vtanh.f32 %v3295_v28  ;;  %v3340_v55 = vor.u32 1.1754944e-38, %v3339_v21  ;;  %vm3338_vm3 = vcmp.eq.f32.partialorder %v3337_v31, 8.507059e+37 }
 0x80c   :  { %v6135_v6 = vpop.eup %6134 }
 0x80d   :  { %v6137_v8 = vpop.eup %6136  ;;  %v3329_v1 = vmul.f32 %v6135_v6, %v3327_v4  ;;  %v3351_v29 = vadd.f32 %v6133_v22, %v3350_v61  ;;  %vm3334_vm15 = vweird.f32 %v6135_v6 }
 0x80e   :  { %v3366_v2 = vadd.f32 1.0, %v6137_v8  ;;  %v3283_v7 = vpop.f32.mrf.mxu2  ;;  %v3359_v8 = vor.u32 1.1754944e-38, %v3358_v0  ;;  %vm3335_vm2 = vmor %vm3333_vm0, %vm3334_vm15 }
 0x80f   :  { %v3330_v63 = vsub.f32 1.0, %v3329_v1  ;;  %v3355_v12 = vsel %vm9751_vm14, %v6133_v22, %v3351_v29 }
 0x810   :  { %6140 = vrcp.f32 %v3366_v2  ;;  %v3584_v14 = vpop.f32.mrf.mxu3  ;;  %v3360_v28 = vsel %vm3357_vm1, %v3359_v8, %v3355_v12  ;;  %v3378_v0 = vand.u32 2147483648, %v3366_v2  ;;  %v3376_v32 = vand.u32 2147483647, %v3366_v2 }
 0x811   :  { %v3331_v33 = vmul.f32 %v6135_v6, %v3330_v63  ;;  %v3438_v56 = vpop.f32.mrf.mxu0  ;;  %v6139_v61 = vpop.eup %6138  ;;  %v3382_v37 = vmul.f32 %v3360_v28, %v9352_v43  ;;  %vm3372_vm5 = vweird.f32 %v3366_v2  ;;  %v9847_v28 = vld [vmem:[%s10903_s26 + $0x168] sm:$0xff] }
 0x812   :  { %vm3377_vm7 = vcmp.eq.f32.partialorder %v3376_v32, 8.507059e+37  ;;  %v11729_v32 = vld [vmem:[#allocation116_spill] sm:$0xff] }
 0x813   :  { %v3332_v7 = vadd.f32 %v6135_v6, %v3331_v33  ;;  %v3379_v33 = vor.u32 1.1754944e-38, %v3378_v0  ;;  %v11727_v0 = vld [vmem:[#allocation108_spill] sm:$0xff] }
 0x815   :  { %v3336_v1 = vsel %vm3335_vm2, %v6135_v6, %v3332_v7 }
 0x816   :  { %v6141_v25 = vpop.eup %6140  ;;  %v3341_v44 = vsel %vm3338_vm3, %v3340_v55, %v3336_v1  ;;  %v3412_v14 = vpop.f32.mrf.mxu2  ;;  %v9865_v1 = vld [vmem:[%s10903_s26 + $0x158] sm:$0xff] }
 0x817   :  { %v3368_v63 = vmul.f32 %v6141_v25, %v3366_v2  ;;  %v3383_v36 = vmul.f32 %v6139_v61, %v3341_v44  ;;  %vm3373_vm4 = vweird.f32 %v6141_v25  ;;  %v9856_v61 = vld [vmem:[%s10903_s26 + $0x160] sm:$0xff]  ;;  %11722 = vst [vmem:[#allocation99_spill] sm:$0xff] %v9865_v1 }
 0x818   :  { %vm3374_vm6 = vmor %vm3372_vm5, %vm3373_vm4 }
 0x819   :  { %v3369_v23 = vsub.f32 1.0, %v3368_v63  ;;  %v9758_v22 = vadd.f32 %v3383_v36, %v3382_v37  ;;  %v3440_v29 = vpop.f32.mrf.mxu0  ;;  %v9764_v36 = vld [vmem:[%s10539_s2] ss:$0 sm:$0xff]  ;;  %v9884_v63 = vld [vmem:[%s10903_s26 + $0x148] sm:$0xff] }
 0x81a   :  { %v3413_v37 = vadd.f32 %v9764_v36, %v3412_v14  ;;  %v9874_v14 = vld [vmem:[%s10903_s26 + $0x150] sm:$0xff]  ;;  %11724 = vst [vmem:[#allocation107_spill] sm:$0xff] %v9884_v63  ;;  %v9893_v29 = vld [vmem:[%s10903_s26 + $0x140] sm:$0xff] }
 0x81b   :  { %v3370_v4 = vmul.f32 %v6141_v25, %v3369_v23  ;;  %6142 = vtanh.f32 %v9758_v22  ;;  %11723 = vst [vmem:[#allocation101_spill] sm:$0xff] %v9874_v14  ;;  %v11725_v23 = vld [vmem:[#allocation113_spill] sm:$0xff] }
 0x81c   :  { %11726 = vst [vmem:[#allocation109_spill] sm:$0xff] %v9893_v29 }
 0x81d   :  { %v3371_v6 = vadd.f32 %v6141_v25, %v3370_v4  ;;  %v11728_v4 = vld [vmem:[#allocation32_spill] sm:$0xff] }
 0x81e   :  { %v3414_v21 = vpop.f32.mrf.mxu2 }
 0x81f   :  { %v3375_v31 = vsel %vm3374_vm6, %v6141_v25, %v3371_v6  ;;  %v3426_v25 = vadd.f32 %v9694_v34, %v3413_v37  ;;  %v9829_v34 = vld [vmem:[%s10903_s26 + $0xc0] sm:$0xff]  ;;  %v11731_v21 = vld [vmem:[#allocation118_spill] sm:$0xff] }
 0x820   :  { %v3380_v12 = vsel %vm3377_vm7, %v3379_v33, %v3375_v31  ;;  %v11730_v6 = vld [vmem:[#allocation111_spill] sm:$0xff]  ;;  %v11732_v33 = vld [vmem:[#allocation112_spill] sm:$0xff]  ;;  %v11733_v31 = vld [vmem:[#allocation121_spill] sm:$0xff] }
 0x821   :  { %v6143_v43 = vpop.eup %6142  ;;  %v3439_v2 = vadd.f32 %v3438_v56, %v3426_v25  ;;  %v9838_v56 = vld [vmem:[%s10903_s26 + $0x170] sm:$0xff]  ;;  %v11738_v37 = vld [vmem:[#allocation120_spill] sm:$0xff] }
 0x822   :  { %v3386_v44 = vmul.f32 %v6143_v43, %v3380_v12  ;;  %v11734_v12 = vld [vmem:[#allocation114_spill] sm:$0xff]  ;;  %v11739_v25 = vld [vmem:[#allocation124_spill] sm:$0xff] }
 0x823   :  { %v3452_v7 = vadd.f32 %v9717_v41, %v3439_v2  ;;  %v9823_v41 = vld [vmem:[%s10903_s26 + $0x178] sm:$0xff]  ;;  %v5683_v2 = vld [vmem:[%s10904_s27 + $0x24] sm:$0x3f] }
 0x824   :  { %v3650_v8 = vpack.c.bf16 %v3386_v44, %v3386_v44  ;;  %v11735_v43 = vld [vmem:[#allocation122_spill] sm:$0xff]  ;;  %v11736_v44 = vld [vmem:[#allocation117_spill] sm:$0xff]  ;;  %3821 = vst [vmem:[#allocation1] ss:$9 sm:$0xff] %v5683_v2 }
 0x825   :  { %v11744_v2 = vld [vmem:[#allocation110_spill] sm:$0xff] }
 0x826   :  { %3672 = vmatmul.bf16.vlgmr.msrb.gmra.mxu1 %v3650_v8  ;;  %3698 = vmatmul.bf16.vlgmr.msrb.gmra.mxu3 %v3650_v8 }
 0x827   :  { %3847 = vmatpush.bf16.msrb.mxu1 %v9361_v47  ;;  %3873 = vmatpush.bf16.msrb.mxu3 %v9367_v39 }
 0x82b   :  { %3848 = vmatpush.bf16.msrb.mxu1 %v9374_v9  ;;  %3874 = vmatpush.bf16.msrb.mxu3 %v9380_v40  ;;  %v9782_v9 = vld [vmem:[%s10903_s26 + $0xd8] sm:$0xff] }
 0x82f   :  { %3849 = vmatpush.bf16.msrb.mxu1 %v9386_v15  ;;  %3875 = vmatpush.bf16.msrb.mxu3 %v9392_v3  ;;  %v9788_v3 = vld [vmem:[%s10903_s26 + $0x50] sm:$0xff] }
 0x833   :  { %3850 = vmatpush.bf16.msrb.mxu1 %v9400_v60  ;;  %3876 = vmatpush.bf16.msrb.mxu3 %v9406_v13  ;;  %v9795_v60 = vld [vmem:[%s10903_s26 + $0xd0] sm:$0xff]  ;;  %v9802_v13 = vld [vmem:[%s10903_s26 + $0x48] sm:$0xff] }
 0x836   :  { %v3464_v55 = vpop.f32.mrf.mxu2  ;;  %3724 = vmatmul.bf16.vlgmr.msra.gmra.mxu1 %v3650_v8  ;;  %3750 = vmatmul.bf16.vlgmr.msra.gmra.mxu3 %v3650_v8  ;;  %v11737_v8 = vld [vmem:[#allocation123_spill] sm:$0xff] }
 0x837   :  { %v3465_v47 = vadd.f32 %v3464_v55, %v3452_v7  ;;  %3851 = vmatpush.bf16.msrb.mxu1 %v9414_v38  ;;  %3877 = vmatpush.bf16.msrb.mxu3 %v9782_v9  ;;  %v9809_v38 = vld [vmem:[%s10903_s26 + $0xc8] sm:$0xff] }
 0x838   :  { %v3823_v55 = vld [vmem:[#allocation1 + $0x9] sm:$0xff] }
 0x839   :  { %v3478_v39 = vadd.f32 %v9722_v18, %v3465_v47  ;;  %v9816_v18 = vld [vmem:[%s10903_s26 + $0x40] sm:$0xff]  ;;  %v11740_v47 = vld [vmem:[#allocation10_spill] sm:$0xff] }
 0x83b   :  { %v3481_v40 = vpack.c.bf16 %v3478_v39, %v3478_v39  ;;  %3852 = vmatpush.bf16.msrb.mxu1 %v9788_v3  ;;  %3878 = vmatpush.bf16.msrb.mxu3 %v9795_v60 }
 0x83d   :  { %3490 = vmatmul.bf16.vlgmr.msrb.gmra.mxu0 %v3481_v40  ;;  %3516 = vmatmul.bf16.vlgmr.msrb.gmra.mxu2 %v3481_v40 }
 0x83e   :  { %v3466_v15 = vpop.f32.mrf.mxu2  ;;  %3651 = vmatpush.bf16.msrb.mxu0 %v7657_v10  ;;  %3677 = vmatpush.bf16.msrb.mxu2 %v7741_v30 }
 0x83f   :  { %3853 = vmatpush.bf16.msrb.mxu1 %v9802_v13  ;;  %3879 = vmatpush.bf16.msrb.mxu3 %v9809_v38  ;;  %v11741_v15 = vld [vmem:[#allocation12_spill] sm:$0xff] }
 0x842   :  { %3652 = vmatpush.bf16.msrb.mxu0 %v7707_v26  ;;  %3678 = vmatpush.bf16.msrb.mxu2 %v7764_v19 }
 0x843   :  { %3854 = vmatpush.bf16.msrb.mxu1 %v9816_v18  ;;  %3880 = vmatpush.bf16.msrb.mxu3 %v9829_v34 }
 0x846   :  { %3653 = vmatpush.bf16.msrb.mxu0 %v7720_v35  ;;  %3679 = vmatpush.bf16.msrb.mxu2 %v7784_v11 }
 0x847   :  { %3899 = vmatpush.bf16.msra.mxu1 %v9823_v41  ;;  %3926 = vmatpush.bf16.msra.mxu3 %v6688_v46 }
 0x848   :  { %3855 = vmatmul.bf16.vlgmr.msrb.gmra.mxu1 %v3823_v55 }
 0x84a   :  { %3654 = vmatpush.bf16.msrb.mxu0 %v7731_v5  ;;  %3680 = vmatpush.bf16.msrb.mxu2 %v7805_v42 }
 0x84b   :  { %3900 = vmatpush.bf16.msra.mxu1 %v9838_v56  ;;  %3927 = vmatpush.bf16.msra.mxu3 %v6715_v54 }
 0x84d   :  { %3542 = vmatmul.bf16.vlgmr.msra.gmra.mxu0 %v3481_v40  ;;  %3568 = vmatmul.bf16.vlgmr.msra.gmra.mxu2 %v3481_v40 }
 0x84e   :  { %3655 = vmatpush.bf16.msrb.mxu0 %v7751_v53  ;;  %3681 = vmatpush.bf16.msrb.mxu2 %v7832_v27 }
 0x84f   :  { %3901 = vmatpush.bf16.msra.mxu1 %v9847_v28  ;;  %3928 = vmatpush.bf16.msra.mxu3 %v6742_v62 }
 0x852   :  { %3656 = vmatpush.bf16.msrb.mxu0 %v11115_v50  ;;  %3682 = vmatpush.bf16.msrb.mxu2 %v11117_v58 }
 0x853   :  { %3902 = vmatpush.bf16.msra.mxu1 %v9856_v61  ;;  %3929 = vmatpush.bf16.msra.mxu3 %v11116_v48 }
 0x856   :  { %3657 = vmatpush.bf16.msrb.mxu0 %v11118_v45  ;;  %3683 = vmatpush.bf16.msrb.mxu2 %v11121_v51 }
 0x857   :  { %3903 = vmatpush.bf16.msra.mxu1 %v9865_v1  ;;  %3930 = vmatpush.bf16.msra.mxu3 %v11569_v20  ;;  %v11763_v20 = vld [vmem:[#allocation51_spill] sm:$0xff]  ;;  %v11764_v1 = vld [vmem:[#allocation48_spill] sm:$0xff] }
 0x85a   :  { %3658 = vmatpush.bf16.msrb.mxu0 %v11122_v16  ;;  %3684 = vmatpush.bf16.msrb.mxu2 %v7902_v24 }
 0x85b   :  { %3904 = vmatpush.bf16.msra.mxu1 %v9874_v14  ;;  %3931 = vmatpush.bf16.msra.mxu3 %v11573_v49  ;;  %v11760_v49 = vld [vmem:[#allocation47_spill] sm:$0xff] }
 0x85e   :  { %3703 = vmatpush.bf16.msra.mxu0 %v11124_v59  ;;  %3729 = vmatpush.bf16.msra.mxu2 %v7911_v17 }
 0x85f   :  { %3905 = vmatpush.bf16.msra.mxu1 %v9884_v63  ;;  %3932 = vmatpush.bf16.msra.mxu3 %v11577_v57  ;;  %v11749_v63 = vld [vmem:[#allocation145_spill] sm:$0xff] }
 0x862   :  { %3704 = vmatpush.bf16.msra.mxu0 %v11127_v52  ;;  %3730 = vmatpush.bf16.msra.mxu2 %v11725_v23 }
 0x863   :  { %3906 = vmatpush.bf16.msra.mxu1 %v9893_v29  ;;  %3933 = vmatpush.bf16.msra.mxu3 %v11728_v4  ;;  %v11745_v4 = vld [vmem:[#allocation18_spill] sm:$0xff] }
 0x866   :  { %3705 = vmatpush.bf16.msra.mxu0 %v11727_v0  ;;  %3731 = vmatpush.bf16.msra.mxu2 %v11729_v32 }
 0x867   :  { %3952 = vmatpush.bf16.msrb.mxu1 %v11740_v47  ;;  %v11746_v47 = vld [vmem:[#allocation144_spill] sm:$0xff] }
 0x86a   :  { %3706 = vmatpush.bf16.msra.mxu0 %v11730_v6  ;;  %3732 = vmatpush.bf16.msra.mxu2 %v11731_v21  ;;  %v11750_v21 = vld [vmem:[#allocation24_spill] sm:$0xff]  ;;  %v3827_v6 = vld [vmem:[#allocation1 + $0x2d] sm:$0xff] }
 0x86b   :  { %3953 = vmatpush.bf16.msrb.mxu1 %v11741_v15 }
 0x86c   :  { %3907 = vmatmul.bf16.vlgmr.msra.gmra.mxu1 %v3827_v6 }
 0x86e   :  { %3707 = vmatpush.bf16.msra.mxu0 %v11732_v33  ;;  %3733 = vmatpush.bf16.msra.mxu2 %v11733_v31  ;;  %v11747_v33 = vld [vmem:[#allocation20_spill] sm:$0xff] }
 0x872   :  { %3708 = vmatpush.bf16.msra.mxu0 %v11734_v12  ;;  %3734 = vmatpush.bf16.msra.mxu2 %v11735_v43 }
 0x876   :  { %3709 = vmatpush.bf16.msra.mxu0 %v11736_v44  ;;  %3735 = vmatpush.bf16.msra.mxu2 %v11737_v8  ;;  %v11742_v8 = vld [vmem:[#allocation14_spill] sm:$0xff]  ;;  %v11743_v44 = vld [vmem:[#allocation16_spill] sm:$0xff] }
 0x877   :  { %3954 = vmatpush.bf16.msrb.mxu1 %v11742_v8 }
 0x87a   :  { %3710 = vmatpush.bf16.msra.mxu0 %v11738_v37  ;;  %3736 = vmatpush.bf16.msra.mxu2 %v11739_v25 }
 0x87b   :  { %3955 = vmatpush.bf16.msrb.mxu1 %v11743_v44 }
 0x87f   :  { %3956 = vmatpush.bf16.msrb.mxu1 %v11745_v4  ;;  %v3825_v4 = vld [vmem:[#allocation1 + $0x1b] sm:$0xff] }
 0x880   :  { %3881 = vmatmul.bf16.vlgmr.msrb.gmra.mxu3 %v3825_v4  ;;  %v11756_v4 = vld [vmem:[#allocation43_spill] sm:$0xff] }
 0x883   :  { %3957 = vmatpush.bf16.msrb.mxu1 %v11747_v33 }
 0x887   :  { %3958 = vmatpush.bf16.msrb.mxu1 %v11750_v21 }
 0x8a3   :  { %v9912_v7 = vpop.f32.mrf.mxu1 }
 0x8a9   :  { %v9915_v39 = vpop.f32.mrf.mxu3 }
 0x8ab   :  { %v3675_v40 = vpop.f32.mrf.mxu1 }
 0x8b1   :  { %v3701_v37 = vpop.f32.mrf.mxu3 }
 0x8b2   :  { %v11748_v37 = vld [vmem:[#allocation106_spill] sm:$0xff] }
 0x8b3   :  { %v9919_v25 = vpop.f32.mrf.mxu1 }
 0x8b9   :  { %v9924_v55 = vpop.f32.mrf.mxu3 }
 0x8ba   :  { %v3491_v43 = vpop.f32.mrf.mxu0 }
 0x8bb   :  { %v3492_v12 = vadd.f32 %v3491_v43, %v11744_v2  ;;  %v3727_v31 = vpop.f32.mrf.mxu1 }
 0x8bc   :  { %v11752_v31 = vld [vmem:[#allocation34_spill] sm:$0xff] }
 0x8bd   :  { %v3505_v29 = vadd.f32 %v11746_v47, %v3492_v12  ;;  %3978 = vmatpush.bf16.msrb.mxu3 %v11752_v31 }
 0x8bf   :  { %v5677_v40 = vmul.f32 -1.442695, %v3505_v29  ;;  %v11751_v29 = vld [vmem:[#allocation28_spill] sm:$0xff] }
 0x8c0   :  { %v3517_v15 = vpop.f32.mrf.mxu2  ;;  %3959 = vmatpush.bf16.msrb.mxu1 %v11751_v29  ;;  %v11757_v29 = vld [vmem:[#allocation40_spill] sm:$0xff] }
 0x8c1   :  { %6144 = vpow2.f32 %v5677_v40  ;;  %v3518_v8 = vadd.f32 %v3517_v15, %v11748_v37  ;;  %v3753_v43 = vpop.f32.mrf.mxu3  ;;  %v11753_v15 = vld [vmem:[#allocation31_spill] sm:$0xff]  ;;  %v11759_v37 = vld [vmem:[#allocation100_spill] sm:$0xff] }
 0x8c2   :  { %v3493_v57 = vpop.f32.mrf.mxu0 }
 0x8c3   :  { %v3531_v44 = vadd.f32 %v11749_v63, %v3518_v8  ;;  %v11754_v63 = vld [vmem:[#allocation39_spill] sm:$0xff]  ;;  %v11755_v8 = vld [vmem:[#allocation36_spill] sm:$0xff] }
 0x8c4   :  { %4004 = vmatpush.bf16.msra.mxu1 %v11753_v15  ;;  %3979 = vmatpush.bf16.msrb.mxu3 %v11754_v63  ;;  %v11761_v63 = vld [vmem:[#allocation44_spill] sm:$0xff] }
 0x8c5   :  { %v5678_v2 = vmul.f32 -1.442695, %v3531_v44 }
 0x8c7   :  { %v6145_v12 = vpop.eup %6144  ;;  %6146 = vpow2.f32 %v5678_v2 }
 0x8c8   :  { %v3589_v47 = vadd.f32 1.0, %v6145_v12  ;;  %v3519_v40 = vpop.f32.mrf.mxu2  ;;  %4005 = vmatpush.bf16.msra.mxu1 %v11755_v8  ;;  %3980 = vmatpush.bf16.msrb.mxu3 %v11756_v4  ;;  %v11758_v12 = vld [vmem:[#allocation115_spill] sm:$0xff] }
 0x8c9   :  { %v11762_v8 = vld [vmem:[#allocation119_spill] sm:$0xff] }
 0x8ca   :  { %6148 = vrcp.f32 %v3589_v47  ;;  %v3543_v57 = vpop.f32.mrf.mxu0  ;;  %vm3595_vm10 = vweird.f32 %v3589_v47 }
 0x8cc   :  { %4006 = vmatpush.bf16.msra.mxu1 %v11757_v29  ;;  %3981 = vmatpush.bf16.msrb.mxu3 %v11760_v49 }
 0x8cd   :  { %v6147_v44 = vpop.eup %6146 }
 0x8ce   :  { %v3608_v43 = vadd.f32 1.0, %v6147_v44  ;;  %v3544_v44 = vadd.f32 %v3543_v57, %v11762_v8  ;;  %v11772_v8 = vld [vmem:[#allocation148_spill] sm:$0xff] }
 0x8d0   :  { %v6149_v6 = vpop.eup %6148  ;;  %6150 = vrcp.f32 %v3608_v43  ;;  %v3569_v2 = vpop.f32.mrf.mxu2  ;;  %4007 = vmatpush.bf16.msra.mxu1 %v11761_v63  ;;  %3982 = vmatpush.bf16.msrb.mxu3 %v11763_v20  ;;  %v3601_v63 = vand.u32 2147483648, %v3589_v47  ;;  %v3618_v57 = vand.u32 2147483647, %v3608_v43  ;;  %vm3614_vm11 = vweird.f32 %v3608_v43 }
 0x8d1   :  { %v3591_v31 = vmul.f32 %v6149_v6, %v3589_v47  ;;  %v3570_v40 = vadd.f32 %v3569_v2, %v11758_v12  ;;  %vm3596_vm8 = vweird.f32 %v6149_v6  ;;  %v11773_v12 = vld [vmem:[#allocation63_spill] sm:$0xff] }
 0x8d2   :  { %v3545_v21 = vpop.f32.mrf.mxu0  ;;  %vm9948_vm12 = vmor %vm3595_vm10, %vm3596_vm8  ;;  %vm3619_vm14 = vcmp.eq.f32.partialorder %v3618_v57, 8.507059e+37 }
 0x8d3   :  { %v3592_v15 = vsub.f32 1.0, %v3591_v31  ;;  %v3583_v33 = vadd.f32 %v11759_v37, %v3570_v40  ;;  %v11765_v31 = vld [vmem:[#allocation146_spill] sm:$0xff]  ;;  %v3620_v37 = vand.u32 2147483648, %v3608_v43 }
 0x8d4   :  { %4008 = vmatpush.bf16.msra.mxu1 %v11764_v1  ;;  %v3557_v2 = vadd.f32 %v11765_v31, %v3544_v44  ;;  %v3602_v31 = vor.u32 1.1754944e-38, %v3601_v63 }
 0x8d5   :  { %v5679_v14 = vmul.f32 -1.442695, %v3583_v33  ;;  %v3593_v32 = vmul.f32 %v6149_v6, %v3592_v15  ;;  %v11766_v33 = vld [vmem:[#allocation55_spill] sm:$0xff]  ;;  %v3599_v15 = vand.u32 2147483647, %v3589_v47 }
 0x8d6   :  { %v6151_v4 = vpop.eup %6150  ;;  %3983 = vmatpush.bf16.msrb.mxu3 %v11766_v33  ;;  %v11770_v47 = vld [vmem:[#allocation59_spill] sm:$0xff] }
 0x8d7   :  { %v3610_v0 = vmul.f32 %v6151_v4, %v3608_v43  ;;  %6152 = vpow2.f32 %v5679_v14  ;;  %v3594_v40 = vadd.f32 %v6149_v6, %v3593_v32  ;;  %vm3615_vm9 = vweird.f32 %v6151_v4  ;;  %v11767_v14 = vld [vmem:[#allocation52_spill] sm:$0xff] }
 0x8d8   :  { %v3571_v29 = vpop.f32.mrf.mxu2  ;;  %4009 = vmatpush.bf16.msra.mxu1 %v11767_v14  ;;  %6154 = vtanh.f32 %v3557_v2  ;;  %vm3616_vm13 = vmor %vm3614_vm11, %vm3615_vm9  ;;  %v3621_v32 = vor.u32 1.1754944e-38, %v3620_v37  ;;  %vm3600_vm15 = vcmp.eq.f32.partialorder %v3599_v15, 8.507059e+37  ;;  %v11771_v43 = vld [vmem:[#allocation56_spill] sm:$0xff] }
 0x8d9   :  { %v3611_v21 = vsub.f32 1.0, %v3610_v0  ;;  %v3598_v44 = vsel %vm9948_vm12, %v6149_v6, %v3594_v40  ;;  %v11774_v29 = vld [vmem:[#allocation60_spill] sm:$0xff] }
 0x8da   :  { %3984 = vmatpush.bf16.msrb.mxu3 %v11770_v47  ;;  %v3603_v1 = vsel %vm3600_vm15, %v3602_v31, %v3598_v44  ;;  %v11776_v31 = vld [vmem:[#allocation98_spill] sm:$0xff] }
 0x8db   :  { %v3612_v49 = vmul.f32 %v6151_v4, %v3611_v21 }
 0x8dc   :  { %4010 = vmatpush.bf16.msra.mxu1 %v11771_v43 }
 0x8dd   :  { %v6153_v20 = vpop.eup %6152  ;;  %v3613_v0 = vadd.f32 %v6151_v4, %v3612_v49 }
 0x8de   :  { %v3628_v21 = vadd.f32 1.0, %v6153_v20  ;;  %v6155_v2 = vpop.eup %6154  ;;  %3985 = vmatpush.bf16.msrb.mxu3 %v11773_v12 }
 0x8df   :  { %v3617_v33 = vsel %vm3616_vm13, %v6151_v4, %v3613_v0  ;;  %v3645_v37 = vmul.f32 %v6155_v2, %v3603_v1  ;;  %v11778_v2 = vld [vmem:[#allocation66_spill] sm:$0xff] }
 0x8e0   :  { %v3622_v14 = vsel %vm3619_vm14, %v3621_v32, %v3617_v33  ;;  %6156 = vrcp.f32 %v3628_v21  ;;  %4011 = vmatpush.bf16.msra.mxu1 %v11774_v29  ;;  %v3640_v40 = vand.u32 2147483648, %v3628_v21  ;;  %v3638_v33 = vand.u32 2147483647, %v3628_v21 }
 0x8e1   :  { %v3644_v49 = vmul.f32 %v3622_v14, %v11772_v8  ;;  %vm3634_vm1 = vweird.f32 %v3628_v21 }
 0x8e2   :  { %v3641_v8 = vor.u32 1.1754944e-38, %v3640_v40  ;;  %vm3639_vm3 = vcmp.eq.f32.partialorder %v3638_v33, 8.507059e+37  ;;  %v11784_v40 = vld [vmem:[#allocation153_spill] sm:$0xff] }
 0x8e3   :  { %v9959_v63 = vadd.f32 %v3645_v37, %v3644_v49  ;;  %v11777_v49 = vld [vmem:[#allocation149_spill] sm:$0xff]  ;;  %v11779_v37 = vld [vmem:[#allocation68_spill] sm:$0xff] }
 0x8e4   :  { %v11786_v33 = vld [vmem:[#allocation69_spill] sm:$0xff] }
 0x8e5   :  { %11775 = vst [vmem:[#allocation103_spill] sm:$0xff] %v9959_v63  ;;  %6158 = vtanh.f32 %v9959_v63 }
 0x8e6   :  { %v6157_v20 = vpop.eup %6156 }
 0x8e7   :  { %v3630_v4 = vmul.f32 %v6157_v20, %v3628_v21  ;;  %vm3635_vm0 = vweird.f32 %v6157_v20  ;;  %v11780_v21 = vld [vmem:[#allocation104_spill] sm:$0xff] }
 0x8e8   :  { %vm3636_vm2 = vmor %vm3634_vm1, %vm3635_vm0 }
 0x8e9   :  { %v3631_v6 = vsub.f32 1.0, %v3630_v4  ;;  %v11782_v4 = vld [vmem:[#allocation67_spill] sm:$0xff] }
 0x8eb   :  { %v3632_v57 = vmul.f32 %v6157_v20, %v3631_v6  ;;  %v6159_v1 = vpop.eup %6158  ;;  %v11783_v6 = vld [vmem:[#allocation70_spill] sm:$0xff] }
 0x8ed   :  { %v3633_v15 = vadd.f32 %v6157_v20, %v3632_v57  ;;  %v11785_v57 = vld [vmem:[#allocation125_spill] sm:$0xff] }
 0x8ef   :  { %v3637_v14 = vsel %vm3636_vm2, %v6157_v20, %v3633_v15  ;;  %v11781_v20 = vld [vmem:[#allocation105_spill] sm:$0xff]  ;;  %v11787_v15 = vld [vmem:[#allocation72_spill] sm:$0xff] }
 0x8f0   :  { %v3642_v0 = vsel %vm3639_vm3, %v3641_v8, %v3637_v14  ;;  %v11788_v8 = vld [vmem:[#allocation126_spill] sm:$0xff]  ;;  %v11789_v14 = vld [vmem:[#allocation127_spill] sm:$0xff] }
 0x8f1   :  { %v3648_v32 = vmul.f32 %v6159_v1, %v3642_v0  ;;  %v11790_v1 = vld [vmem:[#allocation71_spill] sm:$0xff]  ;;  %v11791_v0 = vld [vmem:[#allocation74_spill] sm:$0xff] }
 0x8f3   :  { %v3649_v44 = vpack.c.bf16 %v3648_v32, %v3648_v32  ;;  %v11792_v32 = vld [vmem:[#allocation128_spill] sm:$0xff] }
 0x8f5   :  { %3659 = vmatmul.bf16.vlgmr.msrb.gmra.mxu0 %v3649_v44  ;;  %3685 = vmatmul.bf16.vlgmr.msrb.gmra.mxu2 %v3649_v44 }
 0x8f6   :  { %3834 = vmatpush.bf16.msrb.mxu0 %v11776_v31  ;;  %3934 = vmatmul.bf16.vlgmr.msra.gmra.mxu3 %v3649_v44  ;;  %v11793_v31 = vld [vmem:[#allocation129_spill] sm:$0xff] }
 0x8f7   :  { %3960 = vmatmul.bf16.vlgmr.msrb.gmra.mxu1 %v3649_v44  ;;  %3860 = vmatpush.bf16.msrb.mxu2 %v11777_v49  ;;  %v11794_v49 = vld [vmem:[#allocation73_spill] sm:$0xff] }
 0x8f8   :  { %4095 = vmatpush.bf16.msra.mxu3 %v11778_v2  ;;  %4121 = vmatpush.bf16.msrb.mxu1 %v11779_v37 }
 0x8fa   :  { %3835 = vmatpush.bf16.msrb.mxu0 %v11780_v21  ;;  %v11795_v21 = vld [vmem:[#allocation76_spill] sm:$0xff] }
 0x8fb   :  { %3861 = vmatpush.bf16.msrb.mxu2 %v11781_v20  ;;  %v11796_v20 = vld [vmem:[#allocation130_spill] sm:$0xff] }
 0x8fc   :  { %4096 = vmatpush.bf16.msra.mxu3 %v11782_v4  ;;  %4122 = vmatpush.bf16.msrb.mxu1 %v11783_v6  ;;  %v11862_v6 = vld [vmem:[#allocation62_spill] sm:$0xff] }
 0x8fe   :  { %3836 = vmatpush.bf16.msrb.mxu0 %v11784_v40  ;;  %v11797_v40 = vld [vmem:[#allocation131_spill] sm:$0xff] }
 0x8ff   :  { %3862 = vmatpush.bf16.msrb.mxu2 %v11785_v57  ;;  %v11798_v57 = vld [vmem:[#allocation75_spill] sm:$0xff] }
 0x900   :  { %4097 = vmatpush.bf16.msra.mxu3 %v11786_v33  ;;  %4123 = vmatpush.bf16.msrb.mxu1 %v11787_v15  ;;  %v11837_v15 = vld [vmem:[#allocation11_spill] sm:$0xff]  ;;  %v11858_v33 = vld [vmem:[#allocation46_spill] sm:$0xff] }
 0x902   :  { %3837 = vmatpush.bf16.msrb.mxu0 %v11788_v8  ;;  %v11799_v8 = vld [vmem:[#allocation78_spill] sm:$0xff] }
 0x903   :  { %3863 = vmatpush.bf16.msrb.mxu2 %v11789_v14  ;;  %v11800_v14 = vld [vmem:[#allocation132_spill] sm:$0xff] }
 0x904   :  { %4098 = vmatpush.bf16.msra.mxu3 %v11790_v1  ;;  %4124 = vmatpush.bf16.msrb.mxu1 %v11791_v0  ;;  %v11801_v0 = vld [vmem:[#allocation133_spill] sm:$0xff] }
 0x905   :  { %3711 = vmatmul.bf16.vlgmr.msra.gmra.mxu0 %v3649_v44  ;;  %3737 = vmatmul.bf16.vlgmr.msra.gmra.mxu2 %v3649_v44  ;;  %v11807_v1 = vld [vmem:[#allocation5_spill] sm:$0xff] }
 0x906   :  { %3838 = vmatpush.bf16.msrb.mxu0 %v11792_v32  ;;  %3986 = vmatmul.bf16.vlgmr.msrb.gmra.mxu3 %v3649_v44  ;;  %v11802_v32 = vld [vmem:[#allocation77_spill] sm:$0xff] }
 0x907   :  { %4012 = vmatmul.bf16.vlgmr.msra.gmra.mxu1 %v3649_v44  ;;  %3864 = vmatpush.bf16.msrb.mxu2 %v11793_v31  ;;  %v11803_v44 = vld [vmem:[#allocation81_spill] sm:$0xff]  ;;  %v11804_v31 = vld [vmem:[#allocation134_spill] sm:$0xff] }
 0x908   :  { %4099 = vmatpush.bf16.msra.mxu3 %v11794_v49  ;;  %4125 = vmatpush.bf16.msrb.mxu1 %v11795_v21  ;;  %v3822_v49 = vld [vmem:[#allocation1] sm:$0xff] }
 0x909   :  { %v11805_v21 = vld [vmem:[#allocation135_spill] sm:$0xff] }
 0x90a   :  { %3839 = vmatpush.bf16.msrb.mxu0 %v11796_v20  ;;  %v11806_v20 = vld [vmem:[#allocation136_spill] sm:$0xff] }
 0x90b   :  { %3865 = vmatpush.bf16.msrb.mxu2 %v11797_v40  ;;  %v3824_v40 = vld [vmem:[#allocation1 + $0x12] sm:$0xff] }
 0x90c   :  { %4100 = vmatpush.bf16.msra.mxu3 %v11798_v57  ;;  %4126 = vmatpush.bf16.msrb.mxu1 %v11799_v8  ;;  %v11808_v57 = vld [vmem:[#allocation79_spill] sm:$0xff]  ;;  %v11816_v8 = vld [vmem:[#allocation86_spill] sm:$0xff] }
 0x90e   :  { %3840 = vmatpush.bf16.msrb.mxu0 %v11800_v14  ;;  %v11809_v14 = vld [vmem:[#allocation83_spill] sm:$0xff] }
 0x90f   :  { %3866 = vmatpush.bf16.msrb.mxu2 %v11801_v0  ;;  %v11810_v0 = vld [vmem:[#allocation80_spill] sm:$0xff] }
 0x910   :  { %4101 = vmatpush.bf16.msra.mxu3 %v11802_v32  ;;  %4127 = vmatpush.bf16.msrb.mxu1 %v11803_v44  ;;  %v11811_v32 = vld [vmem:[#allocation137_spill] sm:$0xff]  ;;  %v11812_v44 = vld [vmem:[#allocation84_spill] sm:$0xff] }
 0x912   :  { %3841 = vmatpush.bf16.msrb.mxu0 %v11804_v31  ;;  %v11813_v31 = vld [vmem:[#allocation6_spill] sm:$0xff] }
 0x913   :  { %3867 = vmatpush.bf16.msrb.mxu2 %v11806_v20  ;;  %v11815_v20 = vld [vmem:[#allocation138_spill] sm:$0xff] }
 0x914   :  { %4102 = vmatpush.bf16.msra.mxu3 %v11808_v57  ;;  %4128 = vmatpush.bf16.msrb.mxu1 %v11809_v14  ;;  %v11819_v14 = vld [vmem:[#allocation139_spill] sm:$0xff]  ;;  %v11836_v57 = vld [vmem:[#allocation96_spill] sm:$0xff] }
 0x915   :  { %3842 = vmatmul.bf16.vlgmr.msrb.gmra.mxu0 %v3822_v49  ;;  %v11818_v49 = vld [vmem:[#allocation85_spill] sm:$0xff] }
 0x916   :  { %3886 = vmatpush.bf16.msra.mxu0 %v11805_v21  ;;  %3868 = vmatmul.bf16.vlgmr.msrb.gmra.mxu2 %v3824_v40  ;;  %v11814_v21 = vld [vmem:[#allocation82_spill] sm:$0xff]  ;;  %v11820_v40 = vld [vmem:[#allocation88_spill] sm:$0xff] }
 0x917   :  { %3913 = vmatpush.bf16.msra.mxu2 %v11807_v1  ;;  %v11817_v1 = vld [vmem:[#allocation7_spill] sm:$0xff] }
 0x918   :  { %4147 = vmatpush.bf16.msrb.mxu3 %v11810_v0  ;;  %4173 = vmatpush.bf16.msra.mxu1 %v11812_v44  ;;  %v11821_v0 = vld [vmem:[#allocation9_spill] sm:$0xff]  ;;  %v11823_v44 = vld [vmem:[#allocation140_spill] sm:$0xff] }
 0x91a   :  { %3887 = vmatpush.bf16.msra.mxu0 %v11811_v32  ;;  %v11822_v32 = vld [vmem:[#allocation87_spill] sm:$0xff] }
 0x91b   :  { %3914 = vmatpush.bf16.msra.mxu2 %v11813_v31  ;;  %v11824_v31 = vld [vmem:[#allocation90_spill] sm:$0xff] }
 0x91c   :  { %4148 = vmatpush.bf16.msrb.mxu3 %v11814_v21  ;;  %4174 = vmatpush.bf16.msra.mxu1 %v11816_v8  ;;  %v11825_v21 = vld [vmem:[#allocation21_spill] sm:$0xff] }
 0x91d   :  { %v11827_v8 = vld [vmem:[#allocation141_spill] sm:$0xff] }
 0x91e   :  { %3888 = vmatpush.bf16.msra.mxu0 %v11815_v20  ;;  %v11826_v20 = vld [vmem:[#allocation89_spill] sm:$0xff] }
 0x91f   :  { %3915 = vmatpush.bf16.msra.mxu2 %v11817_v1  ;;  %v10014_v1 = vpop.f32.mrf.mxu1 }
 0x920   :  { %4149 = vmatpush.bf16.msrb.mxu3 %v11818_v49  ;;  %4175 = vmatpush.bf16.msra.mxu1 %v11820_v40  ;;  %v11828_v49 = vld [vmem:[#allocation92_spill] sm:$0xff]  ;;  %v11830_v40 = vld [vmem:[#allocation91_spill] sm:$0xff] }
 0x922   :  { %3889 = vmatpush.bf16.msra.mxu0 %v11819_v14  ;;  %v11829_v14 = vld [vmem:[#allocation25_spill] sm:$0xff] }
 0x923   :  { %3916 = vmatpush.bf16.msra.mxu2 %v11821_v0  ;;  %v11831_v0 = vld [vmem:[#allocation142_spill] sm:$0xff] }
 0x924   :  { %4150 = vmatpush.bf16.msrb.mxu3 %v11822_v32  ;;  %4176 = vmatpush.bf16.msra.mxu1 %v11824_v31  ;;  %v11832_v32 = vld [vmem:[#allocation94_spill] sm:$0xff]  ;;  %v11834_v31 = vld [vmem:[#allocation93_spill] sm:$0xff] }
 0x926   :  { %3890 = vmatpush.bf16.msra.mxu0 %v11823_v44  ;;  %v11833_v44 = vld [vmem:[#allocation29_spill] sm:$0xff] }
 0x927   :  { %3917 = vmatpush.bf16.msra.mxu2 %v11825_v21  ;;  %v11835_v21 = vld [vmem:[#allocation143_spill] sm:$0xff] }
 0x928   :  { %4151 = vmatpush.bf16.msrb.mxu3 %v11826_v20  ;;  %4177 = vmatpush.bf16.msra.mxu1 %v11828_v49  ;;  %v3826_v20 = vld [vmem:[#allocation1 + $0x24] sm:$0xff] }
 0x929   :  { %v11838_v49 = vld [vmem:[#allocation33_spill] sm:$0xff] }
 0x92a   :  { %3891 = vmatpush.bf16.msra.mxu0 %v11827_v8  ;;  %v3858_v8 = vpop.f32.mrf.mxu1 }
 0x92b   :  { %3918 = vmatpush.bf16.msra.mxu2 %v11829_v14  ;;  %v11839_v14 = vld [vmem:[#allocation37_spill] sm:$0xff] }
 0x92c   :  { %4152 = vmatpush.bf16.msrb.mxu3 %v11830_v40  ;;  %4178 = vmatpush.bf16.msra.mxu1 %v11832_v32  ;;  %v11841_v32 = vld [vmem:[#allocation97_spill] sm:$0xff]  ;;  %v11857_v40 = vld [vmem:[#allocation42_spill] sm:$0xff] }
 0x92d   :  { %v11845_v8 = vld [vmem:[#allocation45_spill] sm:$0xff] }
 0x92e   :  { %3892 = vmatpush.bf16.msra.mxu0 %v11831_v0  ;;  %v11840_v0 = vld [vmem:[#allocation95_spill] sm:$0xff] }
 0x92f   :  { %3919 = vmatpush.bf16.msra.mxu2 %v11833_v44  ;;  %v11842_v44 = vld [vmem:[#allocation13_spill] sm:$0xff] }
 0x930   :  { %4153 = vmatpush.bf16.msrb.mxu3 %v11834_v31  ;;  %4179 = vmatpush.bf16.msra.mxu1 %v11836_v57  ;;  %v11843_v31 = vld [vmem:[#allocation41_spill] sm:$0xff] }
 0x931   :  { %v11846_v57 = vld [vmem:[#allocation17_spill] sm:$0xff] }
 0x932   :  { %3893 = vmatpush.bf16.msra.mxu0 %v11835_v21  ;;  %v11844_v21 = vld [vmem:[#allocation15_spill] sm:$0xff] }
 0x933   :  { %3920 = vmatpush.bf16.msra.mxu2 %v11838_v49  ;;  %v11848_v49 = vld [vmem:[#allocation22_spill] sm:$0xff] }
 0x934   :  { %4154 = vmatpush.bf16.msrb.mxu3 %v11840_v0  ;;  %4180 = vmatpush.bf16.msra.mxu1 %v11841_v32  ;;  %v11850_v0 = vld [vmem:[#allocation26_spill] sm:$0xff]  ;;  %v11851_v32 = vld [vmem:[#allocation57_spill] sm:$0xff] }
 0x935   :  { %3894 = vmatmul.bf16.vlgmr.msra.gmra.mxu0 %v3826_v20  ;;  %v10038_v20 = vpop.f32.mrf.mxu1 }
 0x936   :  { %3939 = vmatpush.bf16.msrb.mxu0 %v11837_v15  ;;  %v11847_v15 = vld [vmem:[#allocation49_spill] sm:$0xff] }
 0x937   :  { %3965 = vmatpush.bf16.msrb.mxu2 %v11839_v14  ;;  %v11849_v14 = vld [vmem:[#allocation53_spill] sm:$0xff] }
 0x93a   :  { %3940 = vmatpush.bf16.msrb.mxu0 %v11842_v44  ;;  %v11852_v44 = vld [vmem:[#allocation30_spill] sm:$0xff] }
 0x93b   :  { %3966 = vmatpush.bf16.msrb.mxu2 %v11843_v31  ;;  %v10043_v31 = vpop.f32.mrf.mxu3 }
 0x93e   :  { %3941 = vmatpush.bf16.msrb.mxu0 %v11844_v21  ;;  %v11853_v21 = vld [vmem:[#allocation61_spill] sm:$0xff] }
 0x93f   :  { %3967 = vmatpush.bf16.msrb.mxu2 %v11845_v8  ;;  %v3910_v8 = vpop.f32.mrf.mxu1 }
 0x940   :  { %v11863_v8 = vld [vmem:[#allocation65_spill] sm:$0xff] }
 0x942   :  { %3942 = vmatpush.bf16.msrb.mxu0 %v11846_v57  ;;  %v11854_v57 = vld [vmem:[#allocation35_spill] sm:$0xff] }
 0x943   :  { %3968 = vmatpush.bf16.msrb.mxu2 %v11847_v15  ;;  %v11855_v15 = vld [vmem:[#allocation38_spill] sm:$0xff] }
 0x946   :  { %3943 = vmatpush.bf16.msrb.mxu0 %v11848_v49  ;;  %v11856_v49 = vld [vmem:[#allocation64_spill] sm:$0xff] }
 0x947   :  { %3969 = vmatpush.bf16.msrb.mxu2 %v11849_v14  ;;  %v3884_v14 = vpop.f32.mrf.mxu3 }
 0x94a   :  { %3944 = vmatpush.bf16.msrb.mxu0 %v11850_v0  ;;  %v11859_v0 = vld [vmem:[#allocation50_spill] sm:$0xff] }
 0x94b   :  { %3970 = vmatpush.bf16.msrb.mxu2 %v11851_v32  ;;  %v11860_v32 = vld [vmem:[#allocation54_spill] sm:$0xff] }
 0x94e   :  { %3945 = vmatpush.bf16.msrb.mxu0 %v11852_v44  ;;  %v11861_v44 = vld [vmem:[#allocation58_spill] sm:$0xff] }
 0x94f   :  { %3971 = vmatpush.bf16.msrb.mxu2 %v11853_v21  ;;  %v11864_v21 = vld [vmem:[#allocation151_spill] sm:$0xff] }
 0x952   :  { %3946 = vmatpush.bf16.msrb.mxu0 %v11854_v57 }
 0x953   :  { %3972 = vmatpush.bf16.msrb.mxu2 %v11856_v49 }
 0x956   :  { %3991 = vmatpush.bf16.msra.mxu0 %v11855_v15 }
 0x95a   :  { %3992 = vmatpush.bf16.msra.mxu0 %v11857_v40 }
 0x95e   :  { %3993 = vmatpush.bf16.msra.mxu0 %v11858_v33  ;;  %v11866_v33 = vld [vmem:[#allocation150_spill] sm:$0xff] }
 0x962   :  { %3994 = vmatpush.bf16.msra.mxu0 %v11859_v0 }
 0x966   :  { %3995 = vmatpush.bf16.msra.mxu0 %v11860_v32 }
 0x96a   :  { %3996 = vmatpush.bf16.msra.mxu0 %v11861_v44 }
 0x96e   :  { %3997 = vmatpush.bf16.msra.mxu0 %v11862_v6 }
 0x972   :  { %3998 = vmatpush.bf16.msra.mxu0 %v11863_v8  ;;  %v3660_v57 = vpop.f32.mrf.mxu0 }
 0x973   :  { %v3661_v15 = vadd.f32 %v3660_v57, %v11864_v21 }
 0x974   :  { %v10057_v4 = vpop.f32.mrf.mxu1 }
 0x975   :  { %11865 = vst [vmem:[#allocation8_spill] sm:$0xff] %v10057_v4  ;;  %v3674_v14 = vadd.f32 %v9912_v7, %v3661_v15 }
 0x977   :  { %v5680_v40 = vmul.f32 -1.442695, %v3674_v14 }
 0x978   :  { %v3686_v49 = vpop.f32.mrf.mxu2 }
 0x979   :  { %6160 = vpow2.f32 %v5680_v40  ;;  %v3687_v0 = vadd.f32 %v3686_v49, %v11866_v33  ;;  %v10061_v37 = vpop.f32.mrf.mxu3 }
 0x97a   :  { %11867 = vst [vmem:[#allocation147_spill] sm:$0xff] %v10061_v37  ;;  %v3662_v32 = vpop.f32.mrf.mxu0 }
 0x97b   :  { %v3700_v44 = vadd.f32 %v9915_v39, %v3687_v0  ;;  %v11869_v32 = vld [vmem:[#allocation152_spill] sm:$0xff] }
 0x97c   :  { %v3963_v6 = vpop.f32.mrf.mxu1 }
 0x97d   :  { %v5681_v2 = vmul.f32 -1.442695, %v3700_v44 }
 0x97f   :  { %v6161_v8 = vpop.eup %6160  ;;  %6162 = vpow2.f32 %v5681_v2 }
 0x980   :  { %v3758_v63 = vadd.f32 1.0, %v6161_v8  ;;  %v3688_v57 = vpop.f32.mrf.mxu2 }
 0x981   :  { %v3937_v21 = vpop.f32.mrf.mxu3 }
 0x982   :  { %6164 = vrcp.f32 %v3758_v63  ;;  %v3712_v29 = vpop.f32.mrf.mxu0  ;;  %v11871_v21 = vld [vmem:[#allocation154_spill] sm:$0xff]  ;;  %vm3764_vm6 = vweird.f32 %v3758_v63 }
 0x983   :  { %v3713_v8 = vadd.f32 %v3712_v29, %v11871_v21  ;;  %v3768_v29 = vand.u32 2147483647, %v3758_v63 }
 0x984   :  { %v10064_v7 = vpop.f32.mrf.mxu1 }
 0x985   :  { %11868 = vst [vmem:[#allocation102_spill] sm:$0xff] %v10064_v7  ;;  %v6163_v15 = vpop.eup %6162  ;;  %v3726_v4 = vadd.f32 %v9919_v25, %v3713_v8  ;;  %vm3769_vm11 = vcmp.eq.f32.partialorder %v3768_v29, 8.507059e+37 }
 0x986   :  { %v3777_v40 = vadd.f32 1.0, %v6163_v15 }
 0x988   :  { %v6165_v14 = vpop.eup %6164  ;;  %6166 = vrcp.f32 %v3777_v40  ;;  %v3738_v49 = vpop.f32.mrf.mxu2  ;;  %vm3783_vm7 = vweird.f32 %v3777_v40 }
 0x989   :  { %v3760_v33 = vmul.f32 %v6165_v14, %v3758_v63  ;;  %v3739_v12 = vadd.f32 %v3738_v49, %v11869_v32  ;;  %v10067_v39 = vpop.f32.mrf.mxu3  ;;  %v3789_v49 = vand.u32 2147483648, %v3777_v40  ;;  %vm3765_vm4 = vweird.f32 %v6165_v14 }
 0x98a   :  { %11870 = vst [vmem:[#allocation144_spill] sm:$0xff] %v10067_v39  ;;  %v3714_v6 = vpop.f32.mrf.mxu0  ;;  %vm3766_vm8 = vmor %vm3764_vm6, %vm3765_vm4 }
 0x98b   :  { %v3761_v44 = vsub.f32 1.0, %v3760_v33  ;;  %v3752_v2 = vadd.f32 %v9924_v55, %v3739_v12  ;;  %v3770_v55 = vand.u32 2147483648, %v3758_v63  ;;  %v3787_v12 = vand.u32 2147483647, %v3777_v40 }
 0x98c   :  { %v4015_v0 = vpop.f32.mrf.mxu1 }
 0x98d   :  { %v5682_v57 = vmul.f32 -1.442695, %v3752_v2  ;;  %v3762_v47 = vmul.f32 %v6165_v14, %v3761_v44  ;;  %vm3788_vm10 = vcmp.eq.f32.partialorder %v3787_v12, 8.507059e+37 }
 0x98e   :  { %v6167_v43 = vpop.eup %6166 }
 0x98f   :  { %v3779_v7 = vmul.f32 %v6167_v43, %v3777_v40  ;;  %6168 = vpow2.f32 %v5682_v57  ;;  %v3763_v32 = vadd.f32 %v6165_v14, %v3762_v47  ;;  %vm3784_vm5 = vweird.f32 %v6167_v43 }
 0x990   :  { %v3740_v15 = vpop.f32.mrf.mxu2  ;;  %6170 = vtanh.f32 %v3726_v4  ;;  %vm3785_vm9 = vmor %vm3783_vm7, %vm3784_vm5 }
 0x991   :  { %v3780_v37 = vsub.f32 1.0, %v3779_v7  ;;  %v3989_v23 = vpop.f32.mrf.mxu3  ;;  %v3790_v7 = vor.u32 1.1754944e-38, %v3789_v49  ;;  %v3767_v0 = vsel %vm3766_vm8, %v6165_v14, %v3763_v32 }
 0x992   :  { %v3843_v6 = vpop.f32.mrf.mxu0  ;;  %v3771_v23 = vor.u32 1.1754944e-38, %v3770_v55 }
 0x993   :  { %v3781_v33 = vmul.f32 %v6167_v43, %v3780_v37  ;;  %v3844_v32 = vadd.f32 %v9764_v36, %v3843_v6  ;;  %v6387_v6 = vld [vmem:[%s10903_s26 + $0x78] sm:$0xff] }
 0x994   :  { %v3772_v37 = vsel %vm3769_vm11, %v3771_v23, %v3767_v0 }
 0x995   :  { %v6169_v2 = vpop.eup %6168  ;;  %v3782_v44 = vadd.f32 %v6167_v43, %v3781_v33 }
 0x996   :  { %v3797_v25 = vadd.f32 1.0, %v6169_v2  ;;  %v6171_v21 = vpop.eup %6170 }
 0x997   :  { %v3786_v8 = vsel %vm3785_vm9, %v6167_v43, %v3782_v44  ;;  %v3814_v40 = vmul.f32 %v6171_v21, %v3772_v37  ;;  %v6389_v37 = vld [vmem:[%s10903_s26 + $0x70] sm:$0xff] }
 0x998   :  { %v3791_v47 = vsel %vm3788_vm10, %v3790_v7, %v3786_v8  ;;  %6172 = vrcp.f32 %v3797_v25  ;;  %v3809_v43 = vand.u32 2147483648, %v3797_v25  ;;  %v3807_v12 = vand.u32 2147483647, %v3797_v25 }
 0x999   :  { %v3869_v57 = vpop.f32.mrf.mxu2  ;;  %v3813_v15 = vmul.f32 %v3791_v47, %v9758_v22  ;;  %vm3803_vm13 = vweird.f32 %v3797_v25  ;;  %v3857_v22 = vadd.f32 %v10014_v1, %v3844_v32  ;;  %v6388_v1 = vld [vmem:[%s10903_s26 + $0xf8] sm:$0xff]  ;;  %v11889_v32 = vld [vmem:[#allocation117_spill] sm:$0xff] }
 0x99a   :  { %v3845_v63 = vpop.f32.mrf.mxu0  ;;  %v3810_v21 = vor.u32 1.1754944e-38, %v3809_v43  ;;  %vm3808_vm15 = vcmp.eq.f32.partialorder %v3807_v12, 8.507059e+37  ;;  %v11888_v43 = vld [vmem:[#allocation122_spill] sm:$0xff]  ;;  %v11891_v12 = vld [vmem:[#allocation120_spill] sm:$0xff] }
 0x99b   :  { %v10073_v33 = vadd.f32 %v3814_v40, %v3813_v15  ;;  %v3870_v23 = vadd.f32 %v3869_v57, %v3857_v22  ;;  %v6391_v63 = vld [vmem:[%s10903_s26 + $0x68] sm:$0xff]  ;;  %v6393_v40 = vld [vmem:[%s10903_s26 + $0x60] sm:$0xff] }
 0x99c   :  { %v5690_v22 = vld [vmem:[%s10904_s27 + $0x2a] sm:$0x3f]  ;;  %s6448_s27 = smov [#allocation2]  }
 0x99d   :  { %6174 = vtanh.f32 %v10073_v33  ;;  %v3883_v36 = vadd.f32 %v10043_v31, %v3870_v23  ;;  %v6390_v31 = vld [vmem:[%s10903_s26 + $0xf0] sm:$0xff]  ;;  %4252 = vst [vmem:[#allocation1] ss:$9 sm:$0xff] %v5690_v22  ;;  %v11896_v23 = vld [vmem:[#allocation16_spill] sm:$0xff]  ;;  %s4927_s23 = sshll.u32 %s6448_s27, 4  ;;  %s4928_s23 = int_to_ptr.vmem [resolvable:$true] %s4927_s23 }
 0x99e   :  { %v6173_v39 = vpop.eup %6172 }
 0x99f   :  { %v3799_v4 = vmul.f32 %v6173_v39, %v3797_v25  ;;  %vm3804_vm12 = vweird.f32 %v6173_v39 }
 0x9a0   :  { %vm3805_vm14 = vmor %vm3803_vm13, %vm3804_vm12 }
 0x9a1   :  { %v3800_v49 = vsub.f32 1.0, %v3799_v4  ;;  %v3871_v14 = vpop.f32.mrf.mxu2  ;;  %v6394_v4 = vld [vmem:[%s10903_s26 + $0xe0] sm:$0xff] }
 0x9a2   :  { %v11887_v14 = vld [vmem:[#allocation114_spill] sm:$0xff] }
 0x9a3   :  { %v3801_v55 = vmul.f32 %v6173_v39, %v3800_v49  ;;  %v6175_v44 = vpop.eup %6174  ;;  %v6395_v49 = vld [vmem:[%s10903_s26 + $0x58] sm:$0xff] }
 0x9a5   :  { %v3802_v29 = vadd.f32 %v6173_v39, %v3801_v55  ;;  %v11890_v55 = vld [vmem:[#allocation123_spill] sm:$0xff] }
 0x9a7   :  { %v3806_v2 = vsel %vm3805_vm14, %v6173_v39, %v3802_v29  ;;  %v11892_v29 = vld [vmem:[#allocation124_spill] sm:$0xff] }
 0x9a8   :  { %v3811_v7 = vsel %vm3808_vm15, %v3810_v21, %v3806_v2  ;;  %v4254_v21 = vld [vmem:[#allocation1 + $0x9] sm:$0xff]  ;;  %v11893_v2 = vld [vmem:[#allocation10_spill] sm:$0xff] }
 0x9a9   :  { %v3817_v0 = vmul.f32 %v6175_v44, %v3811_v7  ;;  %v11894_v44 = vld [vmem:[#allocation12_spill] sm:$0xff]  ;;  %v11895_v7 = vld [vmem:[#allocation14_spill] sm:$0xff] }
 0x9ab   :  { %v4081_v8 = vpack.c.bf16 %v3817_v0, %v3817_v0 }
 0x9ad   :  { %4103 = vmatmul.bf16.vlgmr.msra.gmra.mxu3 %v4081_v8  ;;  %4129 = vmatmul.bf16.vlgmr.msrb.gmra.mxu1 %v4081_v8 }
 0x9ae   :  { %4278 = vmatpush.bf16.msra.mxu3 %v6387_v6  ;;  %4304 = vmatpush.bf16.msrb.mxu1 %v6388_v1 }
 0x9b2   :  { %v3895_v39 = vpop.f32.mrf.mxu0  ;;  %4279 = vmatpush.bf16.msra.mxu3 %v6389_v37  ;;  %4305 = vmatpush.bf16.msrb.mxu1 %v6390_v31  ;;  %v11900_v37 = vld [vmem:[#allocation8_spill] sm:$0xff] }
 0x9b3   :  { %v3896_v25 = vadd.f32 %v3895_v39, %v3883_v36  ;;  %v11898_v39 = vld [vmem:[#allocation20_spill] sm:$0xff] }
 0x9b5   :  { %v3909_v47 = vadd.f32 %v10038_v20, %v3896_v25  ;;  %v6392_v20 = vld [vmem:[%s10903_s26 + $0xe8] sm:$0xff]  ;;  %v11899_v25 = vld [vmem:[#allocation106_spill] sm:$0xff] }
 0x9b6   :  { %4280 = vmatpush.bf16.msra.mxu3 %v6391_v63  ;;  %4306 = vmatpush.bf16.msrb.mxu1 %v6392_v20 }
 0x9b7   :  { %v3912_v57 = vpack.c.bf16 %v3909_v47, %v3909_v47 }
 0x9b9   :  { %3921 = vmatmul.bf16.vlgmr.msra.gmra.mxu2 %v3912_v57  ;;  %3947 = vmatmul.bf16.vlgmr.msrb.gmra.mxu0 %v3912_v57 }
 0x9ba   :  { %v3897_v15 = vpop.f32.mrf.mxu0  ;;  %4082 = vmatpush.bf16.msra.mxu2 %v7657_v10  ;;  %4108 = vmatpush.bf16.msrb.mxu0 %v7741_v30 }
 0x9bb   :  { %4281 = vmatpush.bf16.msra.mxu3 %v6393_v40  ;;  %4307 = vmatpush.bf16.msrb.mxu1 %v6394_v4  ;;  %v4256_v40 = vld [vmem:[#allocation1 + $0x1b] sm:$0xff]  ;;  %v4258_v4 = vld [vmem:[#allocation1 + $0x2d] sm:$0xff] }
 0x9bd   :  { %4155 = vmatmul.bf16.vlgmr.msrb.gmra.mxu3 %v4081_v8  ;;  %4181 = vmatmul.bf16.vlgmr.msra.gmra.mxu1 %v4081_v8  ;;  %v11897_v8 = vld [vmem:[#allocation18_spill] sm:$0xff] }
 0x9be   :  { %4083 = vmatpush.bf16.msra.mxu2 %v7707_v26  ;;  %4109 = vmatpush.bf16.msrb.mxu0 %v7764_v19 }
 0x9bf   :  { %4282 = vmatpush.bf16.msra.mxu3 %v6395_v49  ;;  %4308 = vmatpush.bf16.msrb.mxu1 %v9782_v9  ;;  %v11874_v9 = vld [vmem:[#allocation19_spill] sm:$0xff]  ;;  %v11902_v49 = vld [vmem:[#allocation110_spill] sm:$0xff] }
 0x9c2   :  { %4084 = vmatpush.bf16.msra.mxu2 %v7720_v35  ;;  %4110 = vmatpush.bf16.msrb.mxu0 %v7784_v11 }
 0x9c3   :  { %4283 = vmatpush.bf16.msra.mxu3 %v9788_v3  ;;  %4309 = vmatpush.bf16.msrb.mxu1 %v9795_v60  ;;  %v11876_v3 = vld [vmem:[#allocation116_spill] sm:$0xff]  ;;  %v11877_v60 = vld [vmem:[#allocation101_spill] sm:$0xff] }
 0x9c6   :  { %4085 = vmatpush.bf16.msra.mxu2 %v7731_v5  ;;  %4111 = vmatpush.bf16.msrb.mxu0 %v7805_v42 }
 0x9c7   :  { %4284 = vmatpush.bf16.msra.mxu3 %v9802_v13  ;;  %4310 = vmatpush.bf16.msrb.mxu1 %v9809_v38  ;;  %v11878_v13 = vld [vmem:[#allocation23_spill] sm:$0xff] }
 0x9c8   :  { %v11879_v38 = vld [vmem:[#allocation111_spill] sm:$0xff] }
 0x9c9   :  { %3973 = vmatmul.bf16.vlgmr.msrb.gmra.mxu2 %v3912_v57  ;;  %3999 = vmatmul.bf16.vlgmr.msra.gmra.mxu0 %v3912_v57  ;;  %v11901_v57 = vld [vmem:[#allocation24_spill] sm:$0xff] }
 0x9ca   :  { %4086 = vmatpush.bf16.msra.mxu2 %v7751_v53  ;;  %4112 = vmatpush.bf16.msrb.mxu0 %v7832_v27 }
 0x9cb   :  { %4285 = vmatpush.bf16.msra.mxu3 %v9816_v18  ;;  %4311 = vmatpush.bf16.msrb.mxu1 %v9829_v34  ;;  %v11880_v18 = vld [vmem:[#allocation118_spill] sm:$0xff]  ;;  %v11883_v34 = vld [vmem:[#allocation112_spill] sm:$0xff] }
 0x9ce   :  { %4087 = vmatpush.bf16.msra.mxu2 %v11115_v50  ;;  %4113 = vmatpush.bf16.msrb.mxu0 %v11117_v58 }
 0x9cf   :  { %4330 = vmatpush.bf16.msrb.mxu3 %v9823_v41  ;;  %4357 = vmatpush.bf16.msra.mxu1 %v6688_v46  ;;  %v11872_v46 = vld [vmem:[#allocation113_spill] sm:$0xff]  ;;  %v11882_v41 = vld [vmem:[#allocation27_spill] sm:$0xff] }
 0x9d0   :  { %4286 = vmatmul.bf16.vlgmr.msra.gmra.mxu3 %v4254_v21  ;;  %4312 = vmatmul.bf16.vlgmr.msrb.gmra.mxu1 %v4256_v40  ;;  %v11907_v21 = vld [vmem:[#allocation39_spill] sm:$0xff] }
 0x9d1   :  { %v11913_v40 = vld [vmem:[#allocation47_spill] sm:$0xff] }
 0x9d2   :  { %4088 = vmatpush.bf16.msra.mxu2 %v11118_v45  ;;  %4114 = vmatpush.bf16.msrb.mxu0 %v11121_v51 }
 0x9d3   :  { %4331 = vmatpush.bf16.msrb.mxu3 %v9838_v56  ;;  %4358 = vmatpush.bf16.msra.mxu1 %v6715_v54  ;;  %v11873_v54 = vld [vmem:[#allocation99_spill] sm:$0xff]  ;;  %v11884_v56 = vld [vmem:[#allocation121_spill] sm:$0xff] }
 0x9d6   :  { %4089 = vmatpush.bf16.msra.mxu2 %v11122_v16  ;;  %4115 = vmatpush.bf16.msrb.mxu0 %v7902_v24 }
 0x9d7   :  { %4332 = vmatpush.bf16.msrb.mxu3 %v9847_v28  ;;  %4359 = vmatpush.bf16.msra.mxu1 %v6742_v62  ;;  %v11875_v62 = vld [vmem:[#allocation108_spill] sm:$0xff]  ;;  %v11885_v28 = vld [vmem:[#allocation109_spill] sm:$0xff] }
 0x9da   :  { %4134 = vmatpush.bf16.msrb.mxu2 %v11124_v59  ;;  %4160 = vmatpush.bf16.msra.mxu0 %v7911_v17 }
 0x9db   :  { %4333 = vmatpush.bf16.msrb.mxu3 %v9856_v61  ;;  %4360 = vmatpush.bf16.msra.mxu1 %v11116_v48  ;;  %v11881_v48 = vld [vmem:[#allocation107_spill] sm:$0xff]  ;;  %v11886_v61 = vld [vmem:[#allocation32_spill] sm:$0xff] }
 0x9de   :  { %4135 = vmatpush.bf16.msrb.mxu2 %v11127_v52  ;;  %4161 = vmatpush.bf16.msra.mxu0 %v11872_v46 }
 0x9df   :  { %4334 = vmatpush.bf16.msrb.mxu3 %v11873_v54  ;;  %4361 = vmatpush.bf16.msra.mxu1 %v11874_v9 }
 0x9e2   :  { %4136 = vmatpush.bf16.msrb.mxu2 %v11875_v62  ;;  %4162 = vmatpush.bf16.msra.mxu0 %v11876_v3 }
 0x9e3   :  { %4335 = vmatpush.bf16.msrb.mxu3 %v11877_v60  ;;  %4362 = vmatpush.bf16.msra.mxu1 %v11878_v13  ;;  %v11903_v13 = vld [vmem:[#allocation28_spill] sm:$0xff] }
 0x9e6   :  { %4137 = vmatpush.bf16.msrb.mxu2 %v11879_v38  ;;  %4163 = vmatpush.bf16.msra.mxu0 %v11880_v18 }
 0x9e7   :  { %4336 = vmatpush.bf16.msrb.mxu3 %v11881_v48  ;;  %4363 = vmatpush.bf16.msra.mxu1 %v11882_v41  ;;  %v11904_v48 = vld [vmem:[#allocation34_spill] sm:$0xff]  ;;  %v11905_v41 = vld [vmem:[#allocation147_spill] sm:$0xff] }
 0x9ea   :  { %4138 = vmatpush.bf16.msrb.mxu2 %v11883_v34  ;;  %4164 = vmatpush.bf16.msra.mxu0 %v11884_v56 }
 0x9eb   :  { %4337 = vmatpush.bf16.msrb.mxu3 %v11885_v28  ;;  %4364 = vmatpush.bf16.msra.mxu1 %v11886_v61  ;;  %v11906_v61 = vld [vmem:[#allocation31_spill] sm:$0xff] }
 0x9ee   :  { %4139 = vmatpush.bf16.msrb.mxu2 %v11887_v14  ;;  %4165 = vmatpush.bf16.msra.mxu0 %v11888_v43 }
 0x9ef   :  { %4383 = vmatpush.bf16.msra.mxu3 %v11893_v2  ;;  %4409 = vmatpush.bf16.msrb.mxu1 %v11904_v48 }
 0x9f0   :  { %4338 = vmatmul.bf16.vlgmr.msrb.gmra.mxu3 %v4258_v4 }
 0x9f2   :  { %4140 = vmatpush.bf16.msrb.mxu2 %v11889_v32  ;;  %4166 = vmatpush.bf16.msra.mxu0 %v11890_v55 }
 0x9f3   :  { %4384 = vmatpush.bf16.msra.mxu3 %v11894_v44  ;;  %4410 = vmatpush.bf16.msrb.mxu1 %v11907_v21  ;;  %v11916_v21 = vld [vmem:[#allocation51_spill] sm:$0xff] }
 0x9f6   :  { %4141 = vmatpush.bf16.msrb.mxu2 %v11891_v12  ;;  %4167 = vmatpush.bf16.msra.mxu0 %v11892_v29 }
 0x9f7   :  { %4385 = vmatpush.bf16.msra.mxu3 %v11895_v7  ;;  %v11908_v7 = vld [vmem:[#allocation36_spill] sm:$0xff] }
 0x9fb   :  { %4386 = vmatpush.bf16.msra.mxu3 %v11896_v23 }
 0x9ff   :  { %4387 = vmatpush.bf16.msra.mxu3 %v11897_v8 }
 0xa03   :  { %4388 = vmatpush.bf16.msra.mxu3 %v11898_v39  ;;  %v11909_v39 = vld [vmem:[#allocation43_spill] sm:$0xff] }
 0xa04   :  { %4411 = vmatpush.bf16.msrb.mxu1 %v11909_v39 }
 0xa07   :  { %4389 = vmatpush.bf16.msra.mxu3 %v11901_v57 }
 0xa08   :  { %4412 = vmatpush.bf16.msrb.mxu1 %v11913_v40 }
 0xa0b   :  { %4390 = vmatpush.bf16.msra.mxu3 %v11903_v13 }
 0xa0c   :  { %4413 = vmatpush.bf16.msrb.mxu1 %v11916_v21 }
 0xa0f   :  { %4435 = vmatpush.bf16.msrb.mxu3 %v11906_v61 }
 0xa13   :  { %4436 = vmatpush.bf16.msrb.mxu3 %v11908_v7  ;;  %v11917_v7 = vld [vmem:[#allocation48_spill] sm:$0xff] }
 0xa2a   :  { %v10168_v0 = vpop.f32.mrf.mxu1 }
 0xa30   :  { %v10172_v36 = vpop.f32.mrf.mxu3 }
 0xa32   :  { %v4132_v6 = vpop.f32.mrf.mxu1 }
 0xa36   :  { %v3948_v1 = vpop.f32.mrf.mxu0 }
 0xa37   :  { %v3949_v47 = vadd.f32 %v3948_v1, %v11899_v25 }
 0xa38   :  { %v4106_v63 = vpop.f32.mrf.mxu3 }
 0xa39   :  { %v3962_v31 = vadd.f32 %v11900_v37, %v3949_v47  ;;  %v11910_v47 = vld [vmem:[#allocation115_spill] sm:$0xff] }
 0xa3a   :  { %v10179_v9 = vpop.f32.mrf.mxu1 }
 0xa3b   :  { %v5685_v15 = vmul.f32 -1.442695, %v3962_v31  ;;  %v11911_v31 = vld [vmem:[#allocation40_spill] sm:$0xff] }
 0xa3c   :  { %v3922_v20 = vpop.f32.mrf.mxu2  ;;  %4437 = vmatpush.bf16.msrb.mxu3 %v11911_v31 }
 0xa3d   :  { %6176 = vpow2.f32 %v5685_v15  ;;  %v3923_v54 = vadd.f32 %v3922_v20, %v11902_v49  ;;  %v11912_v15 = vld [vmem:[#allocation102_spill] sm:$0xff] }
 0xa3e   :  { %v3950_v60 = vpop.f32.mrf.mxu0 }
 0xa3f   :  { %v3936_v28 = vadd.f32 %v11905_v41, %v3923_v54  ;;  %v11914_v60 = vld [vmem:[#allocation44_spill] sm:$0xff] }
 0xa40   :  { %v10186_v44 = vpop.f32.mrf.mxu3  ;;  %4438 = vmatpush.bf16.msrb.mxu3 %v11914_v60 }
 0xa41   :  { %v5684_v22 = vmul.f32 -1.442695, %v3936_v28  ;;  %v11915_v28 = vld [vmem:[#allocation119_spill] sm:$0xff] }
 0xa42   :  { %v4184_v6 = vpop.f32.mrf.mxu1 }
 0xa43   :  { %v6177_v2 = vpop.eup %6176  ;;  %6178 = vpow2.f32 %v5684_v22  ;;  %v11918_v6 = vld [vmem:[#allocation144_spill] sm:$0xff] }
 0xa44   :  { %v4039_v23 = vadd.f32 1.0, %v6177_v2  ;;  %v3924_v8 = vpop.f32.mrf.mxu2  ;;  %4439 = vmatpush.bf16.msrb.mxu3 %v11917_v7 }
 0xa46   :  { %6180 = vrcp.f32 %v4039_v23  ;;  %v4000_v1 = vpop.f32.mrf.mxu0  ;;  %v4051_v40 = vand.u32 2147483648, %v4039_v23  ;;  %vm4045_vm1 = vweird.f32 %v4039_v23 }
 0xa47   :  { %v4001_v37 = vadd.f32 %v4000_v1, %v11910_v47 }
 0xa48   :  { %v4158_v54 = vpop.f32.mrf.mxu3 }
 0xa49   :  { %v6179_v57 = vpop.eup %6178  ;;  %v4014_v63 = vadd.f32 %v11912_v15, %v4001_v37  ;;  %v11919_v37 = vld [vmem:[#allocation55_spill] sm:$0xff] }
 0xa4a   :  { %v4020_v20 = vadd.f32 1.0, %v6179_v57  ;;  %4414 = vmatpush.bf16.msrb.mxu1 %v11919_v37 }
 0xa4b   :  { %v5686_v4 = vmul.f32 -1.442695, %v4014_v63  ;;  %v11920_v63 = vld [vmem:[#allocation52_spill] sm:$0xff] }
 0xa4c   :  { %v6181_v13 = vpop.eup %6180  ;;  %6182 = vrcp.f32 %v4020_v20  ;;  %v3974_v48 = vpop.f32.mrf.mxu2  ;;  %4440 = vmatpush.bf16.msrb.mxu3 %v11920_v63  ;;  %vm4026_vm4 = vweird.f32 %v4020_v20 }
 0xa4d   :  { %v4041_v41 = vmul.f32 %v6181_v13, %v4039_v23  ;;  %6184 = vpow2.f32 %v5686_v4  ;;  %v3975_v61 = vadd.f32 %v3974_v48, %v11915_v28  ;;  %vm4046_vm0 = vweird.f32 %v6181_v13 }
 0xa4e   :  { %v4002_v22 = vpop.f32.mrf.mxu0  ;;  %v4049_v48 = vand.u32 2147483647, %v4039_v23  ;;  %vm10201_vm2 = vmor %vm4045_vm1, %vm4046_vm0 }
 0xa4f   :  { %v4042_v2 = vsub.f32 1.0, %v4041_v41  ;;  %v3988_v1 = vadd.f32 %v11918_v6, %v3975_v61  ;;  %v4032_v61 = vand.u32 2147483648, %v4020_v20  ;;  %v11923_v22 = vld [vmem:[#allocation59_spill] sm:$0xff]  ;;  %v4052_v6 = vor.u32 1.1754944e-38, %v4051_v40 }
 0xa50   :  { %4415 = vmatpush.bf16.msrb.mxu1 %v11923_v22  ;;  %vm4050_vm5 = vcmp.eq.f32.partialorder %v4049_v48, 8.507059e+37 }
 0xa51   :  { %v4043_v8 = vmul.f32 %v6181_v13, %v4042_v2  ;;  %6186 = vtanh.f32 %v3988_v1  ;;  %v4030_v2 = vand.u32 2147483647, %v4020_v20  ;;  %v4033_v23 = vor.u32 1.1754944e-38, %v4032_v61 }
 0xa52   :  { %v6183_v39 = vpop.eup %6182 }
 0xa53   :  { %v6185_v31 = vpop.eup %6184  ;;  %v4022_v57 = vmul.f32 %v6183_v39, %v4020_v20  ;;  %v4044_v15 = vadd.f32 %v6181_v13, %v4043_v8  ;;  %vm4027_vm3 = vweird.f32 %v6183_v39  ;;  %v11924_v8 = vld [vmem:[#allocation56_spill] sm:$0xff]  ;;  %vm4031_vm7 = vcmp.eq.f32.partialorder %v4030_v2, 8.507059e+37 }
 0xa54   :  { %v4059_v4 = vadd.f32 1.0, %v6185_v31  ;;  %v3976_v54 = vpop.f32.mrf.mxu2  ;;  %4441 = vmatpush.bf16.msrb.mxu3 %v11924_v8  ;;  %vm4028_vm6 = vmor %vm4026_vm4, %vm4027_vm3  ;;  %v11925_v31 = vld [vmem:[#allocation63_spill] sm:$0xff] }
 0xa55   :  { %v4023_v60 = vsub.f32 1.0, %v4022_v57  ;;  %v4048_v7 = vsel %vm10201_vm2, %v6181_v13, %v4044_v15  ;;  %4416 = vmatpush.bf16.msrb.mxu1 %v11925_v31  ;;  %v11926_v54 = vld [vmem:[#allocation60_spill] sm:$0xff]  ;;  %v11927_v13 = vld [vmem:[#allocation103_spill] sm:$0xff] }
 0xa56   :  { %6188 = vrcp.f32 %v4059_v4  ;;  %v4053_v1 = vsel %vm4050_vm5, %v4052_v6, %v4048_v7  ;;  %v4071_v20 = vand.u32 2147483648, %v4059_v4  ;;  %v4069_v61 = vand.u32 2147483647, %v4059_v4  ;;  %v6396_v31 = vld [vmem:[%s10903_s26 + $0x38] sm:$0xff] }
 0xa57   :  { %v4024_v21 = vmul.f32 %v6183_v39, %v4023_v60  ;;  %v6187_v57 = vpop.eup %6186  ;;  %v4075_v15 = vmul.f32 %v4053_v1, %v11927_v13  ;;  %vm4065_vm9 = vweird.f32 %v4059_v4  ;;  %v6400_v13 = vld [vmem:[%s10903_s26 + $0x28] sm:$0xff] }
 0xa58   :  { %4442 = vmatpush.bf16.msrb.mxu3 %v11926_v54  ;;  %vm4070_vm11 = vcmp.eq.f32.partialorder %v4069_v61, 8.507059e+37  ;;  %v6398_v54 = vld [vmem:[%s10903_s26 + $0x30] sm:$0xff]  ;;  %v11935_v61 = vld [vmem:[#allocation71_spill] sm:$0xff] }
 0xa59   :  { %v4025_v37 = vadd.f32 %v6183_v39, %v4024_v21 }
 0xa5b   :  { %v4029_v63 = vsel %vm4028_vm6, %v6183_v39, %v4025_v37  ;;  %v4072_v39 = vor.u32 1.1754944e-38, %v4071_v20  ;;  %v6402_v20 = vld [vmem:[%s10903_s26 + $0x20] sm:$0xff] }
 0xa5c   :  { %v6189_v60 = vpop.eup %6188  ;;  %v4034_v22 = vsel %vm4031_vm7, %v4033_v23, %v4029_v63  ;;  %v11930_v63 = vld [vmem:[#allocation68_spill] sm:$0xff] }
 0xa5d   :  { %v4061_v41 = vmul.f32 %v6189_v60, %v4059_v4  ;;  %v4076_v8 = vmul.f32 %v6187_v57, %v4034_v22  ;;  %vm4066_vm8 = vweird.f32 %v6189_v60  ;;  %v6397_v4 = vld [vmem:[%s10903_s26 + $0xb8] sm:$0xff] }
 0xa5e   :  { %vm4067_vm10 = vmor %vm4065_vm9, %vm4066_vm8  ;;  %v11929_v57 = vld [vmem:[#allocation66_spill] sm:$0xff]  ;;  %v11931_v22 = vld [vmem:[#allocation67_spill] sm:$0xff] }
 0xa5f   :  { %v4062_v40 = vsub.f32 1.0, %v4061_v41  ;;  %v10212_v21 = vadd.f32 %v4076_v8, %v4075_v15  ;;  %v11932_v41 = vld [vmem:[#allocation70_spill] sm:$0xff]  ;;  %v6401_v15 = vld [vmem:[%s10903_s26 + $0xa8] sm:$0xff] }
 0xa60   :  { %v11933_v8 = vld [vmem:[#allocation69_spill] sm:$0xff] }
 0xa61   :  { %11928 = vst [vmem:[#allocation145_spill] sm:$0xff] %v10212_v21  ;;  %v4063_v48 = vmul.f32 %v6189_v60, %v4062_v40  ;;  %6190 = vtanh.f32 %v10212_v21  ;;  %v11934_v40 = vld [vmem:[#allocation72_spill] sm:$0xff] }
 0xa63   :  { %v4064_v7 = vadd.f32 %v6189_v60, %v4063_v48  ;;  %v6403_v48 = vld [vmem:[%s10903_s26 + $0xa0] sm:$0xff] }
 0xa65   :  { %v4068_v2 = vsel %vm4067_vm10, %v6189_v60, %v4064_v7  ;;  %v6399_v60 = vld [vmem:[%s10903_s26 + $0xb0] sm:$0xff] }
 0xa66   :  { %v4073_v6 = vsel %vm4070_vm11, %v4072_v39, %v4068_v2  ;;  %v11936_v7 = vld [vmem:[#allocation74_spill] sm:$0xff] }
 0xa67   :  { %v6191_v37 = vpop.eup %6190  ;;  %v6404_v39 = vld [vmem:[%s10903_s26 + $0x18] sm:$0xff] }
 0xa68   :  { %v4079_v23 = vmul.f32 %v6191_v37, %v4073_v6  ;;  %v6405_v2 = vld [vmem:[%s10903_s26 + $0x98] sm:$0xff]  ;;  %v11937_v6 = vld [vmem:[#allocation73_spill] sm:$0xff]  ;;  %v11938_v37 = vld [vmem:[#allocation76_spill] sm:$0xff] }
 0xa6a   :  { %v4080_v1 = vpack.c.bf16 %v4079_v23, %v4079_v23  ;;  %v6406_v23 = vld [vmem:[%s10903_s26 + $0x10] sm:$0xff] }
 0xa6c   :  { %4090 = vmatmul.bf16.vlgmr.msra.gmra.mxu2 %v4080_v1  ;;  %4116 = vmatmul.bf16.vlgmr.msrb.gmra.mxu0 %v4080_v1 }
 0xa6d   :  { %4265 = vmatpush.bf16.msra.mxu2 %v6396_v31  ;;  %4365 = vmatmul.bf16.vlgmr.msra.gmra.mxu1 %v4080_v1  ;;  %v6407_v31 = vld [vmem:[%s10903_s26 + $0x90] sm:$0xff] }
 0xa6e   :  { %4391 = vmatmul.bf16.vlgmr.msra.gmra.mxu3 %v4080_v1  ;;  %4291 = vmatpush.bf16.msrb.mxu0 %v6397_v4  ;;  %v11940_v4 = vld [vmem:[#allocation78_spill] sm:$0xff] }
 0xa6f   :  { %4526 = vmatpush.bf16.msra.mxu1 %v11929_v57  ;;  %4552 = vmatpush.bf16.msra.mxu3 %v11930_v63  ;;  %v6408_v57 = vld [vmem:[%s10903_s26 + $0x8] sm:$0xff] }
 0xa70   :  { %v6409_v63 = vld [vmem:[%s10903_s26 + $0x88] sm:$0xff] }
 0xa71   :  { %4266 = vmatpush.bf16.msra.mxu2 %v6398_v54  ;;  %v11941_v54 = vld [vmem:[#allocation77_spill] sm:$0xff] }
 0xa72   :  { %4292 = vmatpush.bf16.msrb.mxu0 %v6399_v60  ;;  %v11942_v60 = vld [vmem:[#allocation81_spill] sm:$0xff] }
 0xa73   :  { %4527 = vmatpush.bf16.msra.mxu1 %v11931_v22  ;;  %4553 = vmatpush.bf16.msra.mxu3 %v11932_v41  ;;  %v6410_v22 = vld [vmem:[%s10903_s26] sm:$0xff] }
 0xa74   :  { %v4253_v41 = vld [vmem:[#allocation1] sm:$0xff] }
 0xa75   :  { %4267 = vmatpush.bf16.msra.mxu2 %v6400_v13  ;;  %v6411_v13 = vld [vmem:[%s10903_s26 + $0x138] sm:$0xff] }
 0xa76   :  { %4293 = vmatpush.bf16.msrb.mxu0 %v6401_v15  ;;  %v6412_v15 = vld [vmem:[%s10903_s26 + $0x80] sm:$0xff] }
 0xa77   :  { %4528 = vmatpush.bf16.msra.mxu1 %v11933_v8  ;;  %4554 = vmatpush.bf16.msra.mxu3 %v11934_v40  ;;  %v4255_v8 = vld [vmem:[#allocation1 + $0x12] sm:$0xff]  ;;  %v11943_v40 = vld [vmem:[#allocation5_spill] sm:$0xff] }
 0xa79   :  { %4268 = vmatpush.bf16.msra.mxu2 %v6402_v20  ;;  %v11944_v20 = vld [vmem:[#allocation79_spill] sm:$0xff] }
 0xa7a   :  { %4294 = vmatpush.bf16.msrb.mxu0 %v6403_v48  ;;  %v11945_v48 = vld [vmem:[#allocation83_spill] sm:$0xff] }
 0xa7b   :  { %4529 = vmatpush.bf16.msra.mxu1 %v11935_v61  ;;  %4555 = vmatpush.bf16.msra.mxu3 %v11936_v7  ;;  %v11946_v61 = vld [vmem:[#allocation80_spill] sm:$0xff]  ;;  %v6413_v7 = vld [vmem:[%s10903_s26 + $0x130] sm:$0xff] }
 0xa7c   :  { %4142 = vmatmul.bf16.vlgmr.msrb.gmra.mxu2 %v4080_v1  ;;  %4168 = vmatmul.bf16.vlgmr.msra.gmra.mxu0 %v4080_v1 }
 0xa7d   :  { %4269 = vmatpush.bf16.msra.mxu2 %v6404_v39  ;;  %4417 = vmatmul.bf16.vlgmr.msrb.gmra.mxu1 %v4080_v1  ;;  %v11947_v39 = vld [vmem:[#allocation84_spill] sm:$0xff] }
 0xa7e   :  { %4443 = vmatmul.bf16.vlgmr.msrb.gmra.mxu3 %v4080_v1  ;;  %4295 = vmatpush.bf16.msrb.mxu0 %v6405_v2  ;;  %v11939_v1 = vld [vmem:[#allocation75_spill] sm:$0xff]  ;;  %v11948_v2 = vld [vmem:[#allocation6_spill] sm:$0xff] }
 0xa7f   :  { %4530 = vmatpush.bf16.msra.mxu1 %v11937_v6  ;;  %4556 = vmatpush.bf16.msra.mxu3 %v11938_v37  ;;  %v11949_v6 = vld [vmem:[#allocation82_spill] sm:$0xff]  ;;  %v6414_v37 = vld [vmem:[%s10903_s26 + $0x128] sm:$0xff] }
 0xa81   :  { %4270 = vmatpush.bf16.msra.mxu2 %v6406_v23  ;;  %v11950_v23 = vld [vmem:[#allocation86_spill] sm:$0xff] }
 0xa82   :  { %4296 = vmatpush.bf16.msrb.mxu0 %v6407_v31  ;;  %v11951_v31 = vld [vmem:[#allocation7_spill] sm:$0xff] }
 0xa83   :  { %4531 = vmatpush.bf16.msra.mxu1 %v11939_v1  ;;  %4557 = vmatpush.bf16.msra.mxu3 %v11940_v4  ;;  %v11952_v1 = vld [vmem:[#allocation85_spill] sm:$0xff]  ;;  %v6415_v4 = vld [vmem:[%s10903_s26 + $0x120] sm:$0xff] }
 0xa85   :  { %4271 = vmatpush.bf16.msra.mxu2 %v6408_v57  ;;  %v11953_v57 = vld [vmem:[#allocation88_spill] sm:$0xff] }
 0xa86   :  { %4297 = vmatpush.bf16.msrb.mxu0 %v6409_v63  ;;  %v11954_v63 = vld [vmem:[#allocation9_spill] sm:$0xff] }
 0xa87   :  { %4532 = vmatpush.bf16.msra.mxu1 %v11941_v54  ;;  %4558 = vmatpush.bf16.msra.mxu3 %v11942_v60  ;;  %v11955_v54 = vld [vmem:[#allocation87_spill] sm:$0xff] }
 0xa88   :  { %v6416_v60 = vld [vmem:[%s10903_s26 + $0x118] sm:$0xff] }
 0xa89   :  { %4272 = vmatpush.bf16.msra.mxu2 %v6410_v22  ;;  %v11956_v22 = vld [vmem:[#allocation90_spill] sm:$0xff] }
 0xa8a   :  { %4298 = vmatpush.bf16.msrb.mxu0 %v6412_v15  ;;  %v6417_v15 = vld [vmem:[%s10903_s26 + $0x110] sm:$0xff] }
 0xa8b   :  { %4533 = vmatpush.bf16.msra.mxu1 %v11944_v20  ;;  %4559 = vmatpush.bf16.msra.mxu3 %v11945_v48  ;;  %v11961_v20 = vld [vmem:[#allocation91_spill] sm:$0xff]  ;;  %v6418_v48 = vld [vmem:[%s10903_s26 + $0x108] sm:$0xff] }
 0xa8c   :  { %4273 = vmatmul.bf16.vlgmr.msra.gmra.mxu2 %v4253_v41  ;;  %v11957_v41 = vld [vmem:[#allocation21_spill] sm:$0xff] }
 0xa8d   :  { %4317 = vmatpush.bf16.msrb.mxu2 %v6411_v13  ;;  %4299 = vmatmul.bf16.vlgmr.msrb.gmra.mxu0 %v4255_v8  ;;  %v11958_v13 = vld [vmem:[#allocation89_spill] sm:$0xff]  ;;  %v11959_v8 = vld [vmem:[#allocation92_spill] sm:$0xff] }
 0xa8e   :  { %4344 = vmatpush.bf16.msra.mxu0 %v11943_v40  ;;  %v11960_v40 = vld [vmem:[#allocation25_spill] sm:$0xff] }
 0xa8f   :  { %4578 = vmatpush.bf16.msrb.mxu1 %v11946_v61  ;;  %4604 = vmatpush.bf16.msrb.mxu3 %v11947_v39  ;;  %v11962_v61 = vld [vmem:[#allocation94_spill] sm:$0xff]  ;;  %v10319_v39 = vpop.f32.mrf.mxu3 }
 0xa91   :  { %4318 = vmatpush.bf16.msrb.mxu2 %v6413_v7  ;;  %v11963_v7 = vld [vmem:[#allocation29_spill] sm:$0xff] }
 0xa92   :  { %4345 = vmatpush.bf16.msra.mxu0 %v11948_v2  ;;  %v11964_v2 = vld [vmem:[#allocation93_spill] sm:$0xff] }
 0xa93   :  { %4579 = vmatpush.bf16.msrb.mxu1 %v11949_v6  ;;  %4605 = vmatpush.bf16.msrb.mxu3 %v11950_v23  ;;  %v6419_v6 = vld [vmem:[%s10903_s26 + $0x100] sm:$0xff] }
 0xa94   :  { %v11965_v23 = vld [vmem:[#allocation96_spill] sm:$0xff] }
 0xa95   :  { %4319 = vmatpush.bf16.msrb.mxu2 %v6414_v37  ;;  %v4257_v37 = vld [vmem:[#allocation1 + $0x24] sm:$0xff] }
 0xa96   :  { %4346 = vmatpush.bf16.msra.mxu0 %v11951_v31  ;;  %v11966_v31 = vld [vmem:[#allocation11_spill] sm:$0xff] }
 0xa97   :  { %4580 = vmatpush.bf16.msrb.mxu1 %v11952_v1  ;;  %4606 = vmatpush.bf16.msrb.mxu3 %v11953_v57  ;;  %v11967_v1 = vld [vmem:[#allocation33_spill] sm:$0xff]  ;;  %v11969_v57 = vld [vmem:[#allocation95_spill] sm:$0xff] }
 0xa99   :  { %4320 = vmatpush.bf16.msrb.mxu2 %v6415_v4  ;;  %v11968_v4 = vld [vmem:[#allocation37_spill] sm:$0xff] }
 0xa9a   :  { %4347 = vmatpush.bf16.msra.mxu0 %v11954_v63  ;;  %v11970_v63 = vld [vmem:[#allocation97_spill] sm:$0xff] }
 0xa9b   :  { %4581 = vmatpush.bf16.msrb.mxu1 %v11955_v54  ;;  %4607 = vmatpush.bf16.msrb.mxu3 %v11956_v22  ;;  %v11971_v54 = vld [vmem:[#allocation13_spill] sm:$0xff] }
 0xa9c   :  { %v11972_v22 = vld [vmem:[#allocation41_spill] sm:$0xff] }
 0xa9d   :  { %4321 = vmatpush.bf16.msrb.mxu2 %v6416_v60  ;;  %v4289_v60 = vpop.f32.mrf.mxu3 }
 0xa9e   :  { %4348 = vmatpush.bf16.msra.mxu0 %v11957_v41  ;;  %v11973_v41 = vld [vmem:[#allocation15_spill] sm:$0xff]  ;;  %v11988_v60 = vld [vmem:[#allocation50_spill] sm:$0xff] }
 0xa9f   :  { %4582 = vmatpush.bf16.msrb.mxu1 %v11958_v13  ;;  %4608 = vmatpush.bf16.msrb.mxu3 %v11959_v8  ;;  %v11974_v13 = vld [vmem:[#allocation45_spill] sm:$0xff] }
 0xaa0   :  { %v11976_v8 = vld [vmem:[#allocation49_spill] sm:$0xff] }
 0xaa1   :  { %4322 = vmatpush.bf16.msrb.mxu2 %v6417_v15  ;;  %v11975_v15 = vld [vmem:[#allocation17_spill] sm:$0xff] }
 0xaa2   :  { %4349 = vmatpush.bf16.msra.mxu0 %v11960_v40  ;;  %v11977_v40 = vld [vmem:[#allocation22_spill] sm:$0xff] }
 0xaa3   :  { %4583 = vmatpush.bf16.msrb.mxu1 %v11961_v20  ;;  %4609 = vmatpush.bf16.msrb.mxu3 %v11962_v61  ;;  %v11978_v20 = vld [vmem:[#allocation53_spill] sm:$0xff]  ;;  %v11979_v61 = vld [vmem:[#allocation26_spill] sm:$0xff] }
 0xaa5   :  { %4323 = vmatpush.bf16.msrb.mxu2 %v6418_v48  ;;  %v10339_v48 = vpop.f32.mrf.mxu1 }
 0xaa6   :  { %4350 = vmatpush.bf16.msra.mxu0 %v11963_v7  ;;  %v11980_v7 = vld [vmem:[#allocation57_spill] sm:$0xff] }
 0xaa7   :  { %4584 = vmatpush.bf16.msrb.mxu1 %v11964_v2  ;;  %4610 = vmatpush.bf16.msrb.mxu3 %v11965_v23  ;;  %v11981_v2 = vld [vmem:[#allocation30_spill] sm:$0xff] }
 0xaa9   :  { %4324 = vmatpush.bf16.msrb.mxu2 %v6419_v6  ;;  %v10344_v6 = vpop.f32.mrf.mxu3 }
 0xaaa   :  { %4351 = vmatpush.bf16.msra.mxu0 %v11967_v1  ;;  %v11984_v1 = vld [vmem:[#allocation38_spill] sm:$0xff] }
 0xaab   :  { %4585 = vmatpush.bf16.msrb.mxu1 %v11969_v57  ;;  %4611 = vmatpush.bf16.msrb.mxu3 %v11970_v63  ;;  %v11986_v63 = vld [vmem:[#allocation42_spill] sm:$0xff] }
 0xaac   :  { %4325 = vmatmul.bf16.vlgmr.msrb.gmra.mxu2 %v4257_v37  ;;  %v11982_v37 = vld [vmem:[#allocation61_spill] sm:$0xff] }
 0xaad   :  { %4370 = vmatpush.bf16.msra.mxu2 %v11966_v31  ;;  %v4315_v23 = vpop.f32.mrf.mxu1  ;;  %v11983_v31 = vld [vmem:[#allocation35_spill] sm:$0xff] }
 0xaae   :  { %4396 = vmatpush.bf16.msrb.mxu0 %v11968_v4  ;;  %v11985_v4 = vld [vmem:[#allocation64_spill] sm:$0xff]  ;;  %v11994_v23 = vld [vmem:[#allocation151_spill] sm:$0xff] }
 0xab1   :  { %4371 = vmatpush.bf16.msra.mxu2 %v11971_v54  ;;  %v4341_v57 = vpop.f32.mrf.mxu3  ;;  %v11987_v54 = vld [vmem:[#allocation46_spill] sm:$0xff] }
 0xab2   :  { %4397 = vmatpush.bf16.msrb.mxu0 %v11972_v22  ;;  %v11989_v22 = vld [vmem:[#allocation54_spill] sm:$0xff] }
 0xab5   :  { %4372 = vmatpush.bf16.msra.mxu2 %v11973_v41  ;;  %v11990_v41 = vld [vmem:[#allocation58_spill] sm:$0xff] }
 0xab6   :  { %4398 = vmatpush.bf16.msrb.mxu0 %v11974_v13  ;;  %v11991_v13 = vld [vmem:[#allocation62_spill] sm:$0xff] }
 0xab9   :  { %4373 = vmatpush.bf16.msra.mxu2 %v11975_v15  ;;  %v11992_v15 = vld [vmem:[#allocation65_spill] sm:$0xff] }
 0xaba   :  { %4399 = vmatpush.bf16.msrb.mxu0 %v11976_v8 }
 0xabd   :  { %4374 = vmatpush.bf16.msra.mxu2 %v11977_v40  ;;  %v11993_v40 = vld [vmem:[#allocation150_spill] sm:$0xff] }
 0xabe   :  { %4400 = vmatpush.bf16.msrb.mxu0 %v11978_v20 }
 0xac1   :  { %4375 = vmatpush.bf16.msra.mxu2 %v11979_v61 }
 0xac2   :  { %4401 = vmatpush.bf16.msrb.mxu0 %v11980_v7 }
 0xac5   :  { %4376 = vmatpush.bf16.msra.mxu2 %v11981_v2 }
 0xac6   :  { %4402 = vmatpush.bf16.msrb.mxu0 %v11982_v37 }
 0xac9   :  { %4377 = vmatpush.bf16.msra.mxu2 %v11983_v31 }
 0xaca   :  { %4403 = vmatpush.bf16.msrb.mxu0 %v11985_v4 }
 0xacd   :  { %4422 = vmatpush.bf16.msrb.mxu2 %v11984_v1 }
 0xad1   :  { %4423 = vmatpush.bf16.msrb.mxu2 %v11986_v63 }
 0xad5   :  { %4424 = vmatpush.bf16.msrb.mxu2 %v11987_v54 }
 0xad9   :  { %4425 = vmatpush.bf16.msrb.mxu2 %v11988_v60 }
 0xadd   :  { %4426 = vmatpush.bf16.msrb.mxu2 %v11989_v22 }
 0xae1   :  { %4427 = vmatpush.bf16.msrb.mxu2 %v11990_v41 }
 0xae5   :  { %4428 = vmatpush.bf16.msrb.mxu2 %v11991_v13 }
 0xae9   :  { %4429 = vmatpush.bf16.msrb.mxu2 %v11992_v15  ;;  %v4117_v8 = vpop.f32.mrf.mxu0 }
 0xaea   :  { %v4118_v20 = vadd.f32 %v4117_v8, %v11993_v40  ;;  %v10358_v61 = vpop.f32.mrf.mxu1 }
 0xaec   :  { %v4131_v7 = vadd.f32 %v10168_v0, %v4118_v20  ;;  %v11996_v0 = vld [vmem:[#allocation152_spill] sm:$0xff] }
 0xaee   :  { %v5688_v2 = vmul.f32 -1.442695, %v4131_v7 }
 0xaef   :  { %v4091_v37 = vpop.f32.mrf.mxu2 }
 0xaf0   :  { %6192 = vpow2.f32 %v5688_v2  ;;  %v4092_v31 = vadd.f32 %v4091_v37, %v11994_v23 }
 0xaf1   :  { %v10362_v1 = vpop.f32.mrf.mxu3  ;;  %v4119_v4 = vpop.f32.mrf.mxu0 }
 0xaf2   :  { %11995 = vst [vmem:[#allocation100_spill] sm:$0xff] %v10362_v1  ;;  %v4105_v57 = vadd.f32 %v10172_v36, %v4092_v31  ;;  %v4368_v63 = vpop.f32.mrf.mxu1 }
 0xaf4   :  { %v5687_v54 = vmul.f32 -1.442695, %v4105_v57  ;;  %v11998_v57 = vld [vmem:[#allocation154_spill] sm:$0xff] }
 0xaf6   :  { %v6193_v60 = vpop.eup %6192  ;;  %6194 = vpow2.f32 %v5687_v54 }
 0xaf7   :  { %v4208_v22 = vadd.f32 1.0, %v6193_v60  ;;  %v4093_v41 = vpop.f32.mrf.mxu2 }
 0xaf9   :  { %6196 = vrcp.f32 %v4208_v22  ;;  %v4394_v13 = vpop.f32.mrf.mxu3  ;;  %v4169_v15 = vpop.f32.mrf.mxu0  ;;  %vm4214_vm13 = vweird.f32 %v4208_v22  ;;  %v4218_v28 = vand.u32 2147483647, %v4208_v22 }
 0xafa   :  { %v4170_v8 = vadd.f32 %v4169_v15, %v11996_v0  ;;  %v10366_v20 = vpop.f32.mrf.mxu1 }
 0xafb   :  { %11997 = vst [vmem:[#allocation146_spill] sm:$0xff] %v10366_v20  ;;  %vm4219_vm1 = vcmp.eq.f32.partialorder %v4218_v28, 8.507059e+37 }
 0xafc   :  { %v6195_v7 = vpop.eup %6194  ;;  %v4183_v2 = vadd.f32 %v10179_v9, %v4170_v8 }
 0xafd   :  { %v4189_v37 = vadd.f32 1.0, %v6195_v7  ;;  %v4220_v7 = vand.u32 2147483648, %v4208_v22 }
 0xafe   :  { %v5689_v4 = vmul.f32 -1.442695, %v4183_v2 }
 0xaff   :  { %v6197_v40 = vpop.eup %6196  ;;  %6198 = vrcp.f32 %v4189_v37  ;;  %v4143_v36 = vpop.f32.mrf.mxu2  ;;  %vm4195_vm0 = vweird.f32 %v4189_v37 }
 0xb00   :  { %v4210_v31 = vmul.f32 %v6197_v40, %v4208_v22  ;;  %6200 = vpow2.f32 %v5689_v4  ;;  %v4144_v63 = vadd.f32 %v4143_v36, %v11998_v57  ;;  %vm4215_vm12 = vweird.f32 %v6197_v40 }
 0xb01   :  { %v10370_v54 = vpop.f32.mrf.mxu3  ;;  %v4171_v60 = vpop.f32.mrf.mxu0  ;;  %vm10373_vm14 = vmor %vm4214_vm13, %vm4215_vm12 }
 0xb02   :  { %11999 = vst [vmem:[#allocation148_spill] sm:$0xff] %v10370_v54  ;;  %v4211_v41 = vsub.f32 1.0, %v4210_v31  ;;  %v4420_v13 = vpop.f32.mrf.mxu1  ;;  %v4157_v0 = vadd.f32 %v10186_v44, %v4144_v63  ;;  %v4201_v31 = vand.u32 2147483648, %v4189_v37  ;;  %v4199_v63 = vand.u32 2147483647, %v4189_v37 }
 0xb04   :  { %v4212_v15 = vmul.f32 %v6197_v40, %v4211_v41  ;;  %6202 = vtanh.f32 %v4157_v0  ;;  %v4202_v22 = vor.u32 1.1754944e-38, %v4201_v31  ;;  %vm4200_vm3 = vcmp.eq.f32.partialorder %v4199_v63, 8.507059e+37 }
 0xb05   :  { %v6199_v23 = vpop.eup %6198 }
 0xb06   :  { %v6201_v21 = vpop.eup %6200  ;;  %v4191_v9 = vmul.f32 %v6199_v23, %v4189_v37  ;;  %v4213_v8 = vadd.f32 %v6197_v40, %v4212_v15  ;;  %vm4196_vm15 = vweird.f32 %v6199_v23 }
 0xb07   :  { %v4228_v2 = vadd.f32 1.0, %v6201_v21  ;;  %v4145_v20 = vpop.f32.mrf.mxu2  ;;  %v4221_v21 = vor.u32 1.1754944e-38, %v4220_v7  ;;  %vm4197_vm2 = vmor %vm4195_vm0, %vm4196_vm15 }
 0xb08   :  { %v4192_v4 = vsub.f32 1.0, %v4191_v9  ;;  %v4217_v41 = vsel %vm10373_vm14, %v6197_v40, %v4213_v8 }
 0xb09   :  { %6204 = vrcp.f32 %v4228_v2  ;;  %v4446_v60 = vpop.f32.mrf.mxu3  ;;  %v4222_v0 = vsel %vm4219_vm1, %v4221_v21, %v4217_v41  ;;  %v4240_v7 = vand.u32 2147483648, %v4228_v2  ;;  %v4238_v28 = vand.u32 2147483647, %v4228_v2 }
 0xb0a   :  { %v4193_v44 = vmul.f32 %v6199_v23, %v4192_v4  ;;  %v4300_v13 = vpop.f32.mrf.mxu0  ;;  %v6203_v15 = vpop.eup %6202  ;;  %v4244_v47 = vmul.f32 %v4222_v0, %v10073_v33  ;;  %vm4234_vm5 = vweird.f32 %v4228_v2 }
 0xb0b   :  { %vm4239_vm7 = vcmp.eq.f32.partialorder %v4238_v28, 8.507059e+37 }
 0xb0c   :  { %v4194_v20 = vadd.f32 %v6199_v23, %v4193_v44  ;;  %v4241_v44 = vor.u32 1.1754944e-38, %v4240_v7 }
 0xb0e   :  { %v4198_v9 = vsel %vm4197_vm2, %v6199_v23, %v4194_v20 }
 0xb0f   :  { %v6205_v57 = vpop.eup %6204  ;;  %v4203_v54 = vsel %vm4200_vm3, %v4202_v22, %v4198_v9  ;;  %v4274_v60 = vpop.f32.mrf.mxu2 }
 0xb10   :  { %v4230_v4 = vmul.f32 %v6205_v57, %v4228_v2  ;;  %v4245_v1 = vmul.f32 %v6203_v15, %v4203_v54  ;;  %vm4235_vm4 = vweird.f32 %v6205_v57 }
 0xb11   :  { %vm4236_vm6 = vmor %vm4234_vm5, %vm4235_vm4 }
 0xb12   :  { %v4231_v36 = vsub.f32 1.0, %v4230_v4  ;;  %v10380_v40 = vadd.f32 %v4245_v1, %v4244_v47  ;;  %v4302_v8 = vpop.f32.mrf.mxu0  ;;  %v6420_v47 = vld [vmem:[%s10539_s2] ss:$0 sm:$0xff] }
 0xb13   :  { %v4275_v1 = vadd.f32 %v6420_v47, %v4274_v60  ;;  %v12006_v8 = vld [vmem:[#allocation146_spill] sm:$0xff] }
 0xb14   :  { %v4232_v37 = vmul.f32 %v6205_v57, %v4231_v36  ;;  %6206 = vtanh.f32 %v10380_v40 }
 0xb15   :  { %v4288_v20 = vadd.f32 %v10319_v39, %v4275_v1 }
 0xb16   :  { %v4233_v23 = vadd.f32 %v6205_v57, %v4232_v37 }
 0xb17   :  { %v4276_v31 = vpop.f32.mrf.mxu2  ;;  %v4301_v2 = vadd.f32 %v4300_v13, %v4288_v20 }
 0xb18   :  { %v4237_v63 = vsel %vm4236_vm6, %v6205_v57, %v4233_v23 }
 0xb19   :  { %v4242_v41 = vsel %vm4239_vm7, %v4241_v44, %v4237_v63  ;;  %v4314_v22 = vadd.f32 %v10339_v48, %v4301_v2 }
 0xb1a   :  { %v6207_v33 = vpop.eup %6206 }
 0xb1b   :  { %v4248_v54 = vmul.f32 %v6207_v33, %v4242_v41 }
 0xb1d   :  { %v4512_v21 = vpack.c.bf16 %v4248_v54, %v4248_v54 }
 0xb1f   :  { %4534 = vmatmul.bf16.vlgmr.msra.gmra.mxu1 %v4512_v21  ;;  %4560 = vmatmul.bf16.vlgmr.msra.gmra.mxu3 %v4512_v21 }
 0xb2f   :  { %v4326_v0 = vpop.f32.mrf.mxu2  ;;  %4586 = vmatmul.bf16.vlgmr.msrb.gmra.mxu1 %v4512_v21  ;;  %4612 = vmatmul.bf16.vlgmr.msrb.gmra.mxu3 %v4512_v21 }
 0xb30   :  { %v4327_v15 = vadd.f32 %v4326_v0, %v4314_v22  ;;  %v12007_v0 = vld [vmem:[#allocation145_spill] sm:$0xff] }
 0xb32   :  { %v4340_v57 = vadd.f32 %v10344_v6, %v4327_v15 }
 0xb34   :  { %v4343_v9 = vpack.c.bf16 %v4340_v57, %v4340_v57 }
 0xb36   :  { %4352 = vmatmul.bf16.vlgmr.msra.gmra.mxu0 %v4343_v9  ;;  %4378 = vmatmul.bf16.vlgmr.msra.gmra.mxu2 %v4343_v9 }
 0xb37   :  { %v4328_v4 = vpop.f32.mrf.mxu2  ;;  %4513 = vmatpush.bf16.msra.mxu0 %v7657_v10  ;;  %4539 = vmatpush.bf16.msra.mxu2 %v7741_v30 }
 0xb3b   :  { %4514 = vmatpush.bf16.msra.mxu0 %v7707_v26  ;;  %4540 = vmatpush.bf16.msra.mxu2 %v7764_v19 }
 0xb3f   :  { %4515 = vmatpush.bf16.msra.mxu0 %v7720_v35  ;;  %4541 = vmatpush.bf16.msra.mxu2 %v7784_v11 }
 0xb43   :  { %4516 = vmatpush.bf16.msra.mxu0 %v7731_v5  ;;  %4542 = vmatpush.bf16.msra.mxu2 %v7805_v42 }
 0xb46   :  { %4404 = vmatmul.bf16.vlgmr.msrb.gmra.mxu0 %v4343_v9  ;;  %4430 = vmatmul.bf16.vlgmr.msrb.gmra.mxu2 %v4343_v9 }
 0xb47   :  { %4517 = vmatpush.bf16.msra.mxu0 %v7751_v53  ;;  %4543 = vmatpush.bf16.msra.mxu2 %v7832_v27 }
 0xb4b   :  { %4518 = vmatpush.bf16.msra.mxu0 %v11115_v50  ;;  %4544 = vmatpush.bf16.msra.mxu2 %v11117_v58 }
 0xb4f   :  { %4519 = vmatpush.bf16.msra.mxu0 %v11118_v45  ;;  %4545 = vmatpush.bf16.msra.mxu2 %v11121_v51  ;;  %v12002_v45 = vld [vmem:[#allocation100_spill] sm:$0xff] }
 0xb53   :  { %4520 = vmatpush.bf16.msra.mxu0 %v11122_v16  ;;  %4546 = vmatpush.bf16.msra.mxu2 %v7902_v24 }
 0xb57   :  { %4565 = vmatpush.bf16.msrb.mxu0 %v11124_v59  ;;  %4591 = vmatpush.bf16.msrb.mxu2 %v7911_v17 }
 0xb5b   :  { %4566 = vmatpush.bf16.msrb.mxu0 %v11127_v52  ;;  %4592 = vmatpush.bf16.msrb.mxu2 %v11872_v46 }
 0xb5f   :  { %4567 = vmatpush.bf16.msrb.mxu0 %v11875_v62  ;;  %4593 = vmatpush.bf16.msrb.mxu2 %v11876_v3 }
 0xb63   :  { %4568 = vmatpush.bf16.msrb.mxu0 %v11879_v38  ;;  %4594 = vmatpush.bf16.msrb.mxu2 %v11880_v18 }
 0xb67   :  { %4569 = vmatpush.bf16.msrb.mxu0 %v11883_v34  ;;  %4595 = vmatpush.bf16.msrb.mxu2 %v11884_v56 }
 0xb6b   :  { %4570 = vmatpush.bf16.msrb.mxu0 %v11887_v14  ;;  %4596 = vmatpush.bf16.msrb.mxu2 %v11888_v43  ;;  %v12003_v43 = vld [vmem:[#allocation115_spill] sm:$0xff] }
 0xb6f   :  { %4571 = vmatpush.bf16.msrb.mxu0 %v11889_v32  ;;  %4597 = vmatpush.bf16.msrb.mxu2 %v11890_v55 }
 0xb73   :  { %4572 = vmatpush.bf16.msrb.mxu0 %v11891_v12  ;;  %4598 = vmatpush.bf16.msrb.mxu2 %v11892_v29  ;;  %v12004_v29 = vld [vmem:[#allocation148_spill] sm:$0xff] }
 0xb9c   :  { %v10421_v42 = vpop.f32.mrf.mxu1 }
 0xba2   :  { %v10423_v10 = vpop.f32.mrf.mxu3 }
 0xba4   :  { %v4537_v26 = vpop.f32.mrf.mxu1 }
 0xbaa   :  { %v4563_v35 = vpop.f32.mrf.mxu3 }
 0xbac   :  { %v10425_v5 = vpop.f32.mrf.mxu1 }
 0xbb2   :  { %v10428_v19 = vpop.f32.mrf.mxu3 }
 0xbb3   :  { %v4353_v30 = vpop.f32.mrf.mxu0 }
 0xbb4   :  { %v4354_v53 = vadd.f32 %v4353_v30, %v11902_v49  ;;  %v4589_v27 = vpop.f32.mrf.mxu1  ;;  %v12005_v49 = vld [vmem:[#allocation119_spill] sm:$0xff] }
 0xbb6   :  { %v4367_v11 = vadd.f32 %v10358_v61, %v4354_v53 }
 0xbb8   :  { %v5691_v17 = vmul.f32 -1.442695, %v4367_v11 }
 0xbb9   :  { %v4379_v24 = vpop.f32.mrf.mxu2 }
 0xbba   :  { %6208 = vpow2.f32 %v5691_v17  ;;  %v4380_v50 = vadd.f32 %v4379_v24, %v11899_v25  ;;  %v4615_v16 = vpop.f32.mrf.mxu3 }
 0xbbb   :  { %v4355_v58 = vpop.f32.mrf.mxu0 }
 0xbbc   :  { %v4393_v51 = vadd.f32 %v12002_v45, %v4380_v50 }
 0xbbe   :  { %v5692_v59 = vmul.f32 -1.442695, %v4393_v51 }
 0xbc0   :  { %v6209_v52 = vpop.eup %6208  ;;  %6210 = vpow2.f32 %v5692_v59  ;;  %v5961_v59 = vld [vmem:[%s10546_s9 + $0x38] sm:$0xff] }
 0xbc1   :  { %v4451_v46 = vadd.f32 1.0, %v6209_v52  ;;  %v4381_v62 = vpop.f32.mrf.mxu2 }
 0xbc3   :  { %6212 = vrcp.f32 %v4451_v46  ;;  %v4405_v3 = vpop.f32.mrf.mxu0  ;;  %v4463_v31 = vand.u32 2147483648, %v4451_v46  ;;  %vm4457_vm10 = vweird.f32 %v4451_v46  ;;  %v4461_v63 = vand.u32 2147483647, %v4451_v46 }
 0xbc4   :  { %v4406_v39 = vadd.f32 %v4405_v3, %v12005_v49 }
 0xbc5   :  { %v4464_v1 = vor.u32 1.1754944e-38, %v4463_v31  ;;  %vm4462_vm15 = vcmp.eq.f32.partialorder %v4461_v63, 8.507059e+37  ;;  %v12011_v63 = vld [vmem:[#allocation154_spill] sm:$0xff] }
 0xbc6   :  { %v6211_v38 = vpop.eup %6210  ;;  %v4419_v7 = vadd.f32 %v12006_v8, %v4406_v39  ;;  %v5957_v39 = vld [vmem:[%s10546_s9 + $0x18] sm:$0xff] }
 0xbc7   :  { %v4470_v18 = vadd.f32 1.0, %v6211_v38  ;;  %v5960_v38 = vld [vmem:[%s10546_s9 + $0x30] sm:$0xff] }
 0xbc9   :  { %v6213_v34 = vpop.eup %6212  ;;  %6214 = vrcp.f32 %v4470_v18  ;;  %v4431_v56 = vpop.f32.mrf.mxu2  ;;  %v4482_v37 = vand.u32 2147483648, %v4470_v18  ;;  %v4480_v44 = vand.u32 2147483647, %v4470_v18  ;;  %vm4476_vm11 = vweird.f32 %v4470_v18 }
 0xbca   :  { %v4453_v14 = vmul.f32 %v6213_v34, %v4451_v46  ;;  %v4432_v32 = vadd.f32 %v4431_v56, %v12003_v43  ;;  %vm4458_vm8 = vweird.f32 %v6213_v34  ;;  %v12008_v46 = vld [vmem:[#allocation151_spill] sm:$0xff]  ;;  %v12009_v56 = vld [vmem:[#allocation150_spill] sm:$0xff]  ;;  %v5959_v43 = vld [vmem:[%s10546_s9 + $0x28] sm:$0xff] }
 0xbcb   :  { %v4407_v55 = vpop.f32.mrf.mxu0  ;;  %vm4459_vm12 = vmor %vm4457_vm10, %vm4458_vm8  ;;  %v4483_v54 = vor.u32 1.1754944e-38, %v4482_v37  ;;  %vm4481_vm14 = vcmp.eq.f32.partialorder %v4480_v44, 8.507059e+37  ;;  %v5954_v44 = vld [vmem:[%s10546_s9] sm:$0xff] }
 0xbcc   :  { %v4454_v12 = vsub.f32 1.0, %v4453_v14  ;;  %v4445_v25 = vadd.f32 %v12004_v29, %v4432_v32 }
 0xbce   :  { %v5693_v48 = vmul.f32 -1.442695, %v4445_v25  ;;  %v4455_v61 = vmul.f32 %v6213_v34, %v4454_v12 }
 0xbcf   :  { %v6215_v6 = vpop.eup %6214 }
 0xbd0   :  { %v4472_v13 = vmul.f32 %v6215_v6, %v4470_v18  ;;  %6216 = vpow2.f32 %v5693_v48  ;;  %v4456_v28 = vadd.f32 %v6213_v34, %v4455_v61  ;;  %vm4477_vm9 = vweird.f32 %v6215_v6 }
 0xbd1   :  { %v4433_v60 = vpop.f32.mrf.mxu2  ;;  %6218 = vtanh.f32 %v4419_v7  ;;  %vm4478_vm13 = vmor %vm4476_vm11, %vm4477_vm9  ;;  %v12010_v7 = vld [vmem:[#allocation152_spill] sm:$0xff] }
 0xbd2   :  { %v4473_v36 = vsub.f32 1.0, %v4472_v13  ;;  %v4460_v21 = vsel %vm4459_vm12, %v6213_v34, %v4456_v28  ;;  %v5955_v13 = vld [vmem:[%s10546_s9 + $0x8] sm:$0xff] }
 0xbd3   :  { %v4465_v22 = vsel %vm4462_vm15, %v4464_v1, %v4460_v21 }
 0xbd4   :  { %v4474_v23 = vmul.f32 %v6215_v6, %v4473_v36 }
 0xbd6   :  { %v6217_v41 = vpop.eup %6216  ;;  %v4475_v33 = vadd.f32 %v6215_v6, %v4474_v23 }
 0xbd7   :  { %v4490_v47 = vadd.f32 1.0, %v6217_v41  ;;  %v6219_v57 = vpop.eup %6218 }
 0xbd8   :  { %v4479_v20 = vsel %vm4478_vm13, %v6215_v6, %v4475_v33  ;;  %v4507_v9 = vmul.f32 %v6219_v57, %v4465_v22 }
 0xbd9   :  { %v4484_v2 = vsel %vm4481_vm14, %v4483_v54, %v4479_v20  ;;  %6220 = vrcp.f32 %v4490_v47  ;;  %v4502_v53 = vand.u32 2147483648, %v4490_v47  ;;  %v4500_v27 = vand.u32 2147483647, %v4490_v47 }
 0xbda   :  { %v4506_v15 = vmul.f32 %v4484_v2, %v12007_v0  ;;  %vm4496_vm1 = vweird.f32 %v4490_v47 }
 0xbdb   :  { %v4503_v24 = vor.u32 1.1754944e-38, %v4502_v53  ;;  %vm4501_vm3 = vcmp.eq.f32.partialorder %v4500_v27, 8.507059e+37 }
 0xbdc   :  { %v4508_v26 = vadd.f32 %v4507_v9, %v4506_v15 }
 0xbde   :  { %6222 = vtanh.f32 %v4508_v26 }
 0xbdf   :  { %v6221_v4 = vpop.eup %6220 }
 0xbe0   :  { %v4492_v35 = vmul.f32 %v6221_v4, %v4490_v47  ;;  %vm4497_vm0 = vweird.f32 %v6221_v4 }
 0xbe1   :  { %vm4498_vm2 = vmor %vm4496_vm1, %vm4497_vm0  ;;  %vm4903_vm0 = vcmask 523264   ;;  %vm4920_vm1 = vcmask 484352  }
 0xbe2   :  { %v4493_v30 = vsub.f32 1.0, %v4492_v35 }
 0xbe4   :  { %v4494_v11 = vmul.f32 %v6221_v4, %v4493_v30  ;;  %v6223_v58 = vpop.eup %6222 }
 0xbe6   :  { %v4495_v17 = vadd.f32 %v6221_v4, %v4494_v11 }
 0xbe8   :  { %v4499_v50 = vsel %vm4498_vm2, %v6221_v4, %v4495_v17  ;;  %v5968_v4 = vld [vmem:[%s10550_s13 + $0x30] sm:$0xff] }
 0xbe9   :  { %v4504_v45 = vsel %vm4501_vm3, %v4503_v24, %v4499_v50  ;;  %v5967_v50 = vld [vmem:[%s10550_s13 + $0x28] sm:$0xff] }
 0xbea   :  { %v4510_v51 = vmul.f32 %v6223_v58, %v4504_v45 }
 0xbec   :  { %v4511_v16 = vpack.c.bf16 %v4510_v51, %v4510_v51 }
 0xbee   :  { %4521 = vmatmul.bf16.vlgmr.msra.gmra.mxu0 %v4511_v16  ;;  %4547 = vmatmul.bf16.vlgmr.msra.gmra.mxu2 %v4511_v16 }
 0xbef   :  { %4759 = vmatpush.bf16.msra.mxu0 %v5961_v59  ;;  %v5966_v59 = vld [vmem:[%s10550_s13 + $0x20] sm:$0xff] }
 0xbf3   :  { %4760 = vmatpush.bf16.msra.mxu0 %v5960_v38  ;;  %v5965_v38 = vld [vmem:[%s10550_s13 + $0x18] sm:$0xff] }
 0xbf7   :  { %4761 = vmatpush.bf16.msra.mxu0 %v5959_v43 }
 0xbfe   :  { %4573 = vmatmul.bf16.vlgmr.msrb.gmra.mxu0 %v4511_v16  ;;  %4599 = vmatmul.bf16.vlgmr.msrb.gmra.mxu2 %v4511_v16 }
 0xc6b   :  { %v4522_v52 = vpop.f32.mrf.mxu0 }
 0xc6c   :  { %v4523_v62 = vadd.f32 %v4522_v52, %v12008_v46 }
 0xc6e   :  { %v4536_v3 = vadd.f32 %v10421_v42, %v4523_v62  ;;  %v5958_v42 = vld [vmem:[%s10546_s9 + $0x20] sm:$0xff] }
 0xc6f   :  { %4762 = vmatpush.bf16.msra.mxu0 %v5958_v42 }
 0xc70   :  { %v5694_v18 = vmul.f32 -1.442695, %v4536_v3 }
 0xc71   :  { %v4548_v34 = vpop.f32.mrf.mxu2 }
 0xc72   :  { %6224 = vpow2.f32 %v5694_v18  ;;  %v4549_v14 = vadd.f32 %v4548_v34, %v12009_v56 }
 0xc73   :  { %v4524_v32 = vpop.f32.mrf.mxu0  ;;  %4763 = vmatpush.bf16.msra.mxu0 %v5957_v39 }
 0xc74   :  { %v4562_v55 = vadd.f32 %v10423_v10, %v4549_v14  ;;  %v5956_v10 = vld [vmem:[%s10546_s9 + $0x10] sm:$0xff] }
 0xc76   :  { %v5695_v12 = vmul.f32 -1.442695, %v4562_v55  ;;  %v5977_v55 = vld [vmem:[%s10544_s7] ss:$0 sm:$0xff] }
 0xc77   :  { %4764 = vmatpush.bf16.msra.mxu0 %v5956_v10  ;;  %v5963_v10 = vld [vmem:[%s10550_s13 + $0x8] sm:$0xff] }
 0xc78   :  { %v6225_v29 = vpop.eup %6224  ;;  %6226 = vpow2.f32 %v5695_v12 }
 0xc79   :  { %v4620_v25 = vadd.f32 1.0, %v6225_v29  ;;  %v4550_v49 = vpop.f32.mrf.mxu2 }
 0xc7b   :  { %6228 = vrcp.f32 %v4620_v25  ;;  %v4574_v48 = vpop.f32.mrf.mxu0  ;;  %4765 = vmatpush.bf16.msra.mxu0 %v5955_v13  ;;  %v4632_v57 = vand.u32 2147483648, %v4620_v25  ;;  %vm4626_vm6 = vweird.f32 %v4620_v25  ;;  %v4630_v26 = vand.u32 2147483647, %v4620_v25  ;;  %v5973_v13 = vld [vmem:[%s10552_s15 + $0x18] sm:$0xff] }
 0xc7c   :  { %v4575_v41 = vadd.f32 %v4574_v48, %v12011_v63  ;;  %4911 = vmatpush.bf16.msra.mxu2 %v5973_v13 }
 0xc7d   :  { %v4633_v17 = vor.u32 1.1754944e-38, %v4632_v57  ;;  %vm4631_vm11 = vcmp.eq.f32.partialorder %v4630_v26, 8.507059e+37 }
 0xc7e   :  { %v6227_v6 = vpop.eup %6226  ;;  %v4588_v2 = vadd.f32 %v10425_v5, %v4575_v41 }
 0xc7f   :  { %v4639_v61 = vadd.f32 1.0, %v6227_v6  ;;  %4766 = vmatpush.bf16.msra.mxu0 %v5954_v44  ;;  %v5964_v6 = vld [vmem:[%s10550_s13 + $0x10] sm:$0xff] }
 0xc81   :  { %v6229_v60 = vpop.eup %6228  ;;  %6230 = vrcp.f32 %v4639_v61  ;;  %v4600_v36 = vpop.f32.mrf.mxu2  ;;  %v4651_v22 = vand.u32 2147483648, %v4639_v61  ;;  %v4649_v9 = vand.u32 2147483647, %v4639_v61  ;;  %vm4645_vm7 = vweird.f32 %v4639_v61 }
 0xc82   :  { %v4622_v8 = vmul.f32 %v6229_v60, %v4620_v25  ;;  %v4601_v37 = vadd.f32 %v4600_v36, %v12010_v7  ;;  %vm4627_vm4 = vweird.f32 %v6229_v60  ;;  %v5978_v25 = vld [vmem:[%s10545_s8] ss:$0 sm:$0xff]  ;;  %v5971_v36 = vld [vmem:[%s10552_s15 + $0x8] sm:$0xff] }
 0xc83   :  { %v4576_v28 = vpop.f32.mrf.mxu0  ;;  %vm10476_vm8 = vmor %vm4626_vm6, %vm4627_vm4  ;;  %v4652_v53 = vor.u32 1.1754944e-38, %v4651_v22  ;;  %vm4650_vm10 = vcmp.eq.f32.partialorder %v4649_v9, 8.507059e+37  ;;  %v5980_v7 = vld [vmem:[%s10548_s11] ss:$0 sm:$0xff] }
 0xc84   :  { %v4623_v23 = vsub.f32 1.0, %v4622_v8  ;;  %v4614_v31 = vadd.f32 %v10428_v19, %v4601_v37  ;;  %v5969_v19 = vld [vmem:[%s10550_s13 + $0x38] sm:$0xff]  ;;  %v5979_v8 = vld [vmem:[%s10547_s10] ss:$0 sm:$0xff] }
 0xc85   :  { %4852 = vmatpush.bf16.msra.mxu1 %v5969_v19  ;;  %v5983_v22 = vld [vmem:[%s10553_s16] ss:$0 sm:$0xff] }
 0xc86   :  { %v5696_v33 = vmul.f32 -1.442695, %v4614_v31  ;;  %v4624_v21 = vmul.f32 %v6229_v60, %v4623_v23  ;;  %v5981_v23 = vld [vmem:[%s10549_s12] ss:$0 sm:$0xff] }
 0xc87   :  { %v6231_v54 = vpop.eup %6230 }
 0xc88   :  { %v4641_v47 = vmul.f32 %v6231_v54, %v4639_v61  ;;  %6232 = vpow2.f32 %v5696_v33  ;;  %v4625_v0 = vadd.f32 %v6229_v60, %v4624_v21  ;;  %vm4646_vm5 = vweird.f32 %v6231_v54  ;;  %v5962_v61 = vld [vmem:[%s10550_s13] sm:$0xff] }
 0xc89   :  { %v4602_v1 = vpop.f32.mrf.mxu2  ;;  %6234 = vtanh.f32 %v4588_v2  ;;  %vm4647_vm9 = vmor %vm4645_vm7, %vm4646_vm5  ;;  %4853 = vmatpush.bf16.msra.mxu1 %v5968_v4  ;;  %v5982_v21 = vld [vmem:[%s10551_s14] ss:$0 sm:$0xff] }
 0xc8a   :  { %v4642_v20 = vsub.f32 1.0, %v4641_v47  ;;  %v4629_v11 = vsel %vm10476_vm8, %v6229_v60, %v4625_v0  ;;  %v5972_v60 = vld [vmem:[%s10552_s15 + $0x10] sm:$0xff] }
 0xc8b   :  { %v4634_v45 = vsel %vm4631_vm11, %v4633_v17, %v4629_v11  ;;  %4912 = vmatpush.bf16.msra.mxu2 %v5972_v60 }
 0xc8c   :  { %v4643_v15 = vmul.f32 %v6231_v54, %v4642_v20 }
 0xc8d   :  { %4854 = vmatpush.bf16.msra.mxu1 %v5967_v50 }
 0xc8e   :  { %v6233_v35 = vpop.eup %6232  ;;  %v4644_v30 = vadd.f32 %v6231_v54, %v4643_v15 }
 0xc8f   :  { %v4659_v27 = vadd.f32 1.0, %v6233_v35  ;;  %v6235_v16 = vpop.eup %6234  ;;  %4913 = vmatpush.bf16.msra.mxu2 %v5971_v36 }
 0xc90   :  { %v4648_v24 = vsel %vm4647_vm9, %v6231_v54, %v4644_v30  ;;  %v4676_v52 = vmul.f32 %v6235_v16, %v4634_v45  ;;  %v5970_v54 = vld [vmem:[%s10552_s15] sm:$0xff] }
 0xc91   :  { %v4653_v58 = vsel %vm4650_vm10, %v4652_v53, %v4648_v24  ;;  %6236 = vrcp.f32 %v4659_v27  ;;  %4855 = vmatpush.bf16.msra.mxu1 %v5966_v59  ;;  %v4671_v34 = vand.u32 2147483648, %v4659_v27  ;;  %vm4665_vm13 = vweird.f32 %v4659_v27 }
 0xc92   :  { %v4675_v51 = vmul.f32 %v4653_v58, %v10380_v40  ;;  %v4669_v40 = vand.u32 2147483647, %v4659_v27 }
 0xc93   :  { %v4672_v43 = vor.u32 1.1754944e-38, %v4671_v34  ;;  %4914 = vmatpush.bf16.msra.mxu2 %v5970_v54 }
 0xc94   :  { %v4677_v62 = vadd.f32 %v4676_v52, %v4675_v51  ;;  %vm4670_vm15 = vcmp.eq.f32.partialorder %v4669_v40, 8.507059e+37 }
 0xc95   :  { %4856 = vmatpush.bf16.msra.mxu1 %v5965_v38 }
 0xc96   :  { %6238 = vtanh.f32 %v4677_v62 }
 0xc97   :  { %v6237_v46 = vpop.eup %6236 }
 0xc98   :  { %v4661_v3 = vmul.f32 %v6237_v46, %v4659_v27  ;;  %vm4666_vm12 = vweird.f32 %v6237_v46 }
 0xc99   :  { %vm4667_vm14 = vmor %vm4665_vm13, %vm4666_vm12  ;;  %4857 = vmatpush.bf16.msra.mxu1 %v5964_v6 }
 0xc9a   :  { %v4662_v18 = vsub.f32 1.0, %v4661_v3 }
 0xc9c   :  { %v4663_v56 = vmul.f32 %v6237_v46, %v4662_v18  ;;  %v6239_v12 = vpop.eup %6238 }
 0xc9d   :  { %4858 = vmatpush.bf16.msra.mxu1 %v5963_v10 }
 0xc9e   :  { %v4664_v14 = vadd.f32 %v6237_v46, %v4663_v56 }
 0xca0   :  { %v4668_v32 = vsel %vm4667_vm14, %v6237_v46, %v4664_v14 }
 0xca1   :  { %v4673_v42 = vsel %vm4670_vm15, %v4672_v43, %v4668_v32  ;;  %4859 = vmatpush.bf16.msra.mxu1 %v5962_v61 }
 0xca2   :  { %v4679_v29 = vmul.f32 %v6239_v12, %v4673_v42 }
 0xca4   :  { %v4684_v49 = vmul.f32 %v5977_v55, %v4679_v29 }
 0xca6   :  { %v4689_v39 = vadd.f32 %v5978_v25, %v4684_v49 }
 0xca8   :  { %v4690_v48 = vpack.c.bf16 %v4689_v39, %v4689_v39 }
 0xcaa   :  { %4767 = vmatmul.bf16.vlgmr.msra.gmra.mxu0 %v4690_v48 }
 0xd27   :  { %v4768_v37 = vpop.f32.mrf.mxu0 }
 0xd28   :  { %v4769_v28 = vadd.f32 %v5979_v8, %v4768_v37 }
 0xd2a   :  { %v4776_v31 = vmul.f32 %v5980_v7, %v4769_v28 }
 0xd2c   :  { %v4781_v44 = vadd.f32 %v5981_v23, %v4776_v31 }
 0xd2e   :  { %v4782_v63 = vmax.f32 %v4781_v44, 0.0 }
 0xd2f   :  { %v4770_v41 = vpop.f32.mrf.mxu0 }
 0xd30   :  { %v4783_v33 = vpack.c.bf16 %v4782_v63, %v4782_v63 }
 0xd32   :  { %4860 = vmatmul.bf16.vlgmr.msra.gmra.mxu1 %v4783_v33 }
 0xdaf   :  { %v4861_v47 = vpop.f32.mrf.mxu1 }
 0xdb0   :  { %v4862_v1 = vadd.f32 %v5982_v21, %v4861_v47 }
 0xdb2   :  { %v4865_v20 = vmax.f32 %v4862_v1, 0.0 }
 0xdb4   :  { %v4866_v2 = vpack.c.bf16 %v4865_v20, %v4865_v20 }
 0xdb6   :  { %5777 = vmatmul.msk.bf16.vlgmr.msra.gmra.mxu2 %vm4903_vm0, %v4866_v2 }
 0xdb7   :  { %v4863_v19 = vpop.f32.mrf.mxu1 }
 0xe39   :  { %v4916_v0 = vpop.f32.mrf.mxu2 }
 0xe3a   :  { %v4917_v15 = vadd.f32 %v5983_v22, %v4916_v0 }
 0xe3c   :  { %4921 = vst.msk [vmem:[#allocation2] sm:$0x3] %vm4920_vm1, %v4917_v15 }
 0xe3d   :  { %4932 = dma.vmem_to_hbm [thread:$0]  %s4928_s23, 32, %s4930_s25, [#allocation3]  }
 0xe41   :  { %v4918_v57 = vpop.f32.mrf.mxu2 }
 0xe42   :  { %6445 = dma.done.wait [#allocation3], 32  }
 0xe43   :  { %6446 = vsyncadd [#allocation3], 4294967264 }
 0xe44   :  { %4937 = vsyncpa [#allocation3], 1 }

</bundles_post_ra>
